<compile_context>
chip_gen: v6e
topology: v6e:2x2x1
jax: 0.10.0
libtpu: 0.0.40
codegen_flags: <defaults>
</compile_context>

<pallas_src>
import functools

import numpy as np
import jax
import jax.numpy as jnp
from jax import lax
from jax.experimental import pallas as pl
from jax.experimental.pallas import tpu as pltpu

LEAK = 0.1          # LeakyReLU negative slope
CBAM_RATIO = 16     # canonical CBAM channel-reduction ratio
SA_K = 7            # canonical CBAM spatial-attention kernel size
SA_PAD = SA_K // 2
LANES = 128


# ------------------------------- Pallas kernel -------------------------------

def _fsda_kernel(mp_ref, w1_ref, b1_ref, fc1_ref, fc2_ref, w2_ref, b2_ref,
                 mask_ref, taps_ref, out_ref, *, C, HW, Wf):
    """Both branches (mag/pha) + CBAM + recombination for one batch element.

    Layout: feature maps are (rows, HWp) with the padded spatial axis on lanes.
    mp_ref block is (1, 2C, HWp): rows [0:C] = magnitude, rows [C:2C] = phase.
    All learned weights carry a leading branch axis of size 2 (0 = mag, 1 = pha).
    taps_ref lives in SMEM: (2, 2*49) = [branch, (avg taps 0..48, max taps 0..48)].
    """
    HWp = mp_ref.shape[-1]
    mp = mp_ref[0]                                           # (2C, HWp)

    lane = lax.broadcasted_iota(jnp.int32, (1, HWp), 1)
    lane_valid = lane < HW                                   # (1, HWp) bool
    lane_valid_f = lane_valid.astype(jnp.float32)
    inv_hw = 1.0 / HW

    outs = []
    for br in range(2):                                      # static unroll: mag, pha
        feat = mp[br * C:(br + 1) * C, :]                    # (C, HWp)

        # conv1x1 (C -> 64) + bias, LeakyReLU(0.1) (maximum form: cmp-free)
        y = jnp.dot(w1_ref[br], feat, preferred_element_type=jnp.float32)
        y = y + b1_ref[br]                                   # (64, HWp)
        y = jnp.maximum(y, LEAK * y)

        # --- CBAM channel attention (fused avg/max MLP, pad-masked pooling) ---
        p_avg = jnp.sum(y * lane_valid_f, axis=1, keepdims=True) * inv_hw
        p_max = jnp.max(jnp.where(lane_valid, y, -jnp.inf), axis=1, keepdims=True)
        p2 = jnp.concatenate([p_avg, p_max], axis=1)         # (64, 2)
        h = jnp.maximum(
            jnp.dot(fc1_ref[br], p2, preferred_element_type=jnp.float32), 0.0)
        z = jnp.dot(fc2_ref[br], h, preferred_element_type=jnp.float32)  # (64, 2)
        ca = jax.nn.sigmoid(z[:, 0:1] + z[:, 1:2])           # (64, 1)
        y = y * ca

        # --- CBAM spatial attention: 7x7 conv as 49 masked lane rolls (XLU) ---
        c_avg = jnp.sum(y, axis=0, keepdims=True) * (1.0 / 64.0)   # (1, HWp)
        c_max = jnp.max(y, axis=0, keepdims=True)                  # (1, HWp)
        cm = jnp.concatenate([c_avg, c_max], axis=0)               # (2, HWp)
        sa_pre = jnp.zeros((1, HWp), jnp.float32)
        t = 0
        for du in range(-SA_PAD, SA_PAD + 1):
            for dv in range(-SA_PAD, SA_PAD + 1):
                # out[p] needs in[p + du*Wf + dv]  ->  roll by the negated offset
                shift = (-(du * Wf + dv)) % HWp
                rolled = pltpu.roll(cm, shift, axis=1) if shift else cm
                tap_a = taps_ref[br, t]                      # SMEM scalar (avg chan)
                tap_m = taps_ref[br, SA_K * SA_K + t]        # SMEM scalar (max chan)
                contrib = tap_a * rolled[0:1, :] + tap_m * rolled[1:2, :]
                # mask kills wrap-around at Wf-row boundaries / image edges / pad
                sa_pre = sa_pre + contrib * mask_ref[pl.ds(t, 1), :]
                t += 1
        y = y * jax.nn.sigmoid(sa_pre)                       # broadcast over sublanes

        # conv1x1 (64 -> C) + bias, residual add
        out = jnp.dot(w2_ref[br], y, preferred_element_type=jnp.float32)
        outs.append(feat + out + b2_ref[br])                 # (C, HWp)

    mag_out, pha_out = outs
    # single dense (2C, HWp) store: rows [0:C] = real, rows [C:2C] = imag
    out_ref[0] = jnp.concatenate(
        [mag_out * jnp.cos(pha_out), mag_out * jnp.sin(pha_out)], axis=0)


def _fsda_branches(mp, p, *, C, HW, Wf):
    """mp: (N, 2C, HWp) f32 -> (N, 2C, HWp) f32 (real rows 0:C, imag rows C:2C)."""
    N, C2, HWp = mp.shape

    def full(arr):
        zeros = (0,) * arr.ndim
        return pl.BlockSpec(arr.shape, lambda b, _z=zeros: _z)

    io_spec = pl.BlockSpec((1, C2, HWp), lambda b: (b, 0, 0))
    vmem_weights = (p["w1"], p["b1"], p["fc1"], p["fc2"],
                    p["w2"], p["b2"], p["sa_mask"])
    kernel = functools.partial(_fsda_kernel, C=C, HW=HW, Wf=Wf)

    # NOTE(v7x): with N >= 2 the parallel batch axis already feeds both
    # TensorCores; for N == 1 an HW-tile axis would be needed (see TODO above).
    return pl.pallas_call(
        kernel,
        out_shape=jax.ShapeDtypeStruct((N, C2, HWp), jnp.float32),
        grid=(N,),
        in_specs=[io_spec] + [full(w) for w in vmem_weights]
                + [pl.BlockSpec(memory_space=pltpu.MemorySpace.SMEM)],
        out_specs=io_spec,
        compiler_params=pltpu.CompilerParams(
            dimension_semantics=("parallel",)),
    )(mp, *vmem_weights, p["sa_taps"])


@jax.jit
def fsda_forward(x, packed):
    """x: (N, C, H, W) float32 (NCHW, same as the PyTorch module)."""
    N, C, H, W = x.shape
    # TODO(synk): FFT/iFFT have no Pallas equivalent; computed with XLA's jnp.fft.
    Xf = jnp.fft.rfft2(x, norm="ortho")                      # (N, C, H, Wf) complex64
    Wf = Xf.shape[-1]
    HW = H * Wf
    HWp = ((HW + LANES - 1) // LANES) * LANES                # lane-dense padding

    mag = jnp.abs(Xf).reshape(N, C, HW)
    pha = jnp.angle(Xf).reshape(N, C, HW)
    mp = jnp.concatenate([mag, pha], axis=1)                 # (N, 2C, HW)
    if HWp != HW:
        mp = jnp.pad(mp, ((0, 0), (0, 0), (0, HWp - HW)))

    out = _fsda_branches(mp, packed, C=C, HW=HW, Wf=Wf)      # (N, 2C, HWp)
    real = out[:, :C, :HW].reshape(N, C, H, Wf)
    imag = out[:, C:, :HW].reshape(N, C, H, Wf)
    return jnp.fft.irfft2(real + 1j * imag, s=(H, W), norm="ortho")


# ---------------------------- parameter handling ------------------------------

def init_raw_params(nc, key):
    """Synthetic weights in PyTorch-like shapes.
    Conv2d(nc,64,1): (64,nc,1,1)+(64,); CBAM fc1/fc2 (no bias): (R,64)/(64,R);
    CBAM spatial Conv2d(2,1,7,pad=3,no bias): (1,2,7,7); Conv2d(64,nc,1): (nc,64,1,1)+(nc,)."""
    R = 64 // CBAM_RATIO

    def branch(k):
        ks = jax.random.split(k, 7)
        return {
            "conv1_w": 0.1 * jax.random.normal(ks[0], (64, nc, 1, 1), jnp.float32),
            "conv1_b": 0.1 * jax.random.normal(ks[1], (64,), jnp.float32),
            "fc1_w":   0.1 * jax.random.normal(ks[2], (R, 64), jnp.float32),
            "fc2_w":   0.1 * jax.random.normal(ks[3], (64, R), jnp.float32),
            "sa_w":    0.1 * jax.random.normal(ks[4], (1, 2, SA_K, SA_K), jnp.float32),
            "conv2_w": 0.1 * jax.random.normal(ks[5], (nc, 64, 1, 1), jnp.float32),
            "conv2_b": 0.1 * jax.random.normal(ks[6], (nc,), jnp.float32),
        }

    kmag, kpha = jax.random.split(key)
    return {"mag": branch(kmag), "pha": branch(kpha)}


def _build_sa_masks(H, Wf, HWp):
    """(49, HWp) validity masks for the shift-and-accumulate 7x7 zero-padded conv."""
    HW = H * Wf
    pos = np.arange(HWp)
    hh, ww = pos // Wf, pos % Wf
    rows = []
    for du in range(-SA_PAD, SA_PAD + 1):
        for dv in range(-SA_PAD, SA_PAD + 1):
            ok = ((pos < HW) & (hh + du >= 0) & (hh + du < H)
                  & (ww + dv >= 0) & (ww + dv < Wf))
            rows.append(ok)
    return jnp.asarray(np.stack(rows, axis=0).astype(np.float32))


def pack_params(raw, H, Wf):
    """Repack PyTorch-layout weights into the kernel layout (branch-stacked)."""
    HW = H * Wf
    HWp = ((HW + LANES - 1) // LANES) * LANES

    def branch(rp):
        return {
            "w1": rp["conv1_w"].reshape(64, -1),             # (64, C)
            "b1": rp["conv1_b"].reshape(64, 1),
            "fc1": rp["fc1_w"],                              # (R, 64)
            "fc2": rp["fc2_w"],                              # (64, R)
            "w2": rp["conv2_w"].reshape(-1, 64),             # (C, 64)
            "b2": rp["conv2_b"].reshape(-1, 1),
            # 7x7 taps flattened channel-major: [avg taps (49), max taps (49)]
            "sa_taps": rp["sa_w"][0].reshape(2 * SA_K * SA_K),
        }

    bm, bp = branch(raw["mag"]), branch(raw["pha"])
    packed = {k: jnp.stack([bm[k], bp[k]], axis=0) for k in bm}
    packed["sa_mask"] = _build_sa_masks(H, Wf, HWp)          # shared across branches
    return packed


# --------------------------- pure-XLA reference -------------------------------

def _ref_branch(feat, rp):
    """Reference for one process{mag,pha} branch.  feat: (N, C, H, Wf)."""
    y = jnp.einsum("nchw,oc->nohw", feat, rp["conv1_w"][:, :, 0, 0])
    y = y + rp["conv1_b"][None, :, None, None]
    y = jnp.where(y >= 0.0, y, LEAK * y)
    # channel attention
    v_avg = y.mean(axis=(2, 3))
    v_max = y.max(axis=(2, 3))
    mlp = lambda v: jnp.maximum(v @ rp["fc1_w"].T, 0.0) @ rp["fc2_w"].T
    ca = jax.nn.sigmoid(mlp(v_avg) + mlp(v_max))[:, :, None, None]
    y = y * ca
    # spatial attention (direct 7x7 conv — validates the roll/mask construction)
    s = jnp.concatenate([jnp.mean(y, axis=1, keepdims=True),
                         jnp.max(y, axis=1, keepdims=True)], axis=1)
    sa = lax.conv_general_dilated(s, rp["sa_w"], (1, 1),
                                  [(SA_PAD, SA_PAD), (SA_PAD, SA_PAD)],
                                  dimension_numbers=("NCHW", "OIHW", "NCHW"))
    y = y * jax.nn.sigmoid(sa)
    out = jnp.einsum("nchw,oc->nohw", y, rp["conv2_w"][:, :, 0, 0])
    out = out + rp["conv2_b"][None, :, None, None]
    return feat + out


def fsda_reference(x, raw):
    _, _, H, W = x.shape
    Xf = jnp.fft.rfft2(x, norm="ortho")
    mag = _ref_branch(jnp.abs(Xf), raw["mag"])
    pha = _ref_branch(jnp.angle(Xf), raw["pha"])
    real = mag * jnp.cos(pha)
    imag = mag * jnp.sin(pha)
    return jnp.fft.irfft2(real + 1j * imag, s=(H, W), norm="ortho")


# ----------------------------------- main -------------------------------------

if __name__ == "__main__":
    key = jax.random.PRNGKey(0)
    kx, kp = jax.random.split(key)

    N, C, H, W = 2, 4, 16, 16
    x = jax.random.normal(kx, (N, C, H, W), jnp.float32)

    raw = init_raw_params(C, kp)
    packed = pack_params(raw, H, W // 2 + 1)

    out = fsda_forward(x, packed)
    out = jax.block_until_ready(out)

    assert out.shape == (N, C, H, W), out.shape
    assert bool(jnp.all(jnp.isfinite(out)))

    with jax.default_matmul_precision("highest"):
        ref = fsda_reference(x, raw)
    max_err = float(jnp.max(jnp.abs(out - ref)))
    assert max_err < 3e-2, max_err

    print("KERNEL_OK")
</pallas_src>

<mosaic_0001>
module attributes {stable_mosaic.version = 11 : i64} {
  func.func @_fsda_kernel(%arg0: i32, %arg1: memref<1x8x256xf32, #tpu.memory_space<vmem>>, %arg2: memref<2x64x4xf32, #tpu.memory_space<vmem>>, %arg3: memref<2x64x1xf32, #tpu.memory_space<vmem>>, %arg4: memref<2x4x64xf32, #tpu.memory_space<vmem>>, %arg5: memref<2x64x4xf32, #tpu.memory_space<vmem>>, %arg6: memref<2x4x64xf32, #tpu.memory_space<vmem>>, %arg7: memref<2x4x1xf32, #tpu.memory_space<vmem>>, %arg8: memref<49x256xf32, #tpu.memory_space<vmem>>, %arg9: memref<2x98xf32, #tpu.memory_space<smem>>, %arg10: memref<1x8x256xf32, #tpu.memory_space<vmem>>) attributes {dimension_semantics = [#tpu.dimension_semantics<parallel>], iteration_bounds = array<i64: 2>, scalar_prefetch = 0 : i64, scratch_operands = 0 : i64, tpu.core_type = #tpu.core_type<tc>, window_params = [{transform_indices = @transform_0, window_bounds = array<i64: 1, 8, 256>}, {pipeline_mode = #tpu.pipeline_mode<synchronous>, transform_indices = @transform_1, window_bounds = array<i64: 2, 64, 4>}, {pipeline_mode = #tpu.pipeline_mode<synchronous>, transform_indices = @transform_2, window_bounds = array<i64: 2, 64, 1>}, {pipeline_mode = #tpu.pipeline_mode<synchronous>, transform_indices = @transform_3, window_bounds = array<i64: 2, 4, 64>}, {pipeline_mode = #tpu.pipeline_mode<synchronous>, transform_indices = @transform_4, window_bounds = array<i64: 2, 64, 4>}, {pipeline_mode = #tpu.pipeline_mode<synchronous>, transform_indices = @transform_5, window_bounds = array<i64: 2, 4, 64>}, {pipeline_mode = #tpu.pipeline_mode<synchronous>, transform_indices = @transform_6, window_bounds = array<i64: 2, 4, 1>}, {pipeline_mode = #tpu.pipeline_mode<synchronous>, transform_indices = @transform_7, window_bounds = array<i64: 49, 256>}, {transform_indices = @transform_8, window_bounds = array<i64: 2, 98>}, {transform_indices = @transform_9, window_bounds = array<i64: 1, 8, 256>}]} {
    %c0 = arith.constant 0 : index
    %c0_0 = arith.constant 0 : index
    %c0_1 = arith.constant 0 : index
    %0 = vector.load %arg1[%c0, %c0_0, %c0_1] : memref<1x8x256xf32, #tpu.memory_space<vmem>>, vector<1x8x256xf32>
    %1 = vector.shape_cast %0 : vector<1x8x256xf32> to vector<8x256xf32>
    %2 = tpu.iota {dimensions = array<i32: 1>} : vector<1x256xi32>
    %c144_i32 = arith.constant 144 : i32
    %3 = vector.broadcast %c144_i32 : i32 to vector<1x256xi32>
    %4 = arith.cmpi slt, %2, %3 : vector<1x256xi32>
    %5 = arith.extui %4 : vector<1x256xi1> to vector<1x256xi32>
    %6 = arith.sitofp %5 : vector<1x256xi32> to vector<1x256xf32>
    %7 = vector.extract_strided_slice %1 {offsets = [0, 0], sizes = [4, 256], strides = [1, 1]} : vector<8x256xf32> to vector<4x256xf32>
    %c0_2 = arith.constant 0 : index
    %c0_3 = arith.constant 0 : index
    %c0_4 = arith.constant 0 : index
    %8 = vector.load %arg2[%c0_2, %c0_3, %c0_4] : memref<2x64x4xf32, #tpu.memory_space<vmem>>, vector<1x64x4xf32>
    %9 = vector.shape_cast %8 : vector<1x64x4xf32> to vector<64x4xf32>
    %cst = arith.constant dense<0.000000e+00> : vector<64x256xf32>
    %10 = tpu.matmul %9, %7, %cst {dimension_numbers = #tpu.dot_dimension_numbers<[1], [0], [0], [1], [0, 0, 1, 1], [], []>} : vector<64x4xf32>, vector<4x256xf32>, vector<64x256xf32> -> vector<64x256xf32>
    %c0_5 = arith.constant 0 : index
    %c0_6 = arith.constant 0 : index
    %c0_7 = arith.constant 0 : index
    %11 = vector.load %arg3[%c0_5, %c0_6, %c0_7] : memref<2x64x1xf32, #tpu.memory_space<vmem>>, vector<1x64x1xf32>
    %12 = vector.shape_cast %11 : vector<1x64x1xf32> to vector<64x1xf32>
    %13 = vector.broadcast %12 : vector<64x1xf32> to vector<64x256xf32>
    %14 = arith.addf %10, %13 : vector<64x256xf32>
    %cst_8 = arith.constant 1.000000e-01 : f32
    %15 = vector.broadcast %cst_8 : f32 to vector<64x256xf32>
    %16 = arith.mulf %15, %14 : vector<64x256xf32>
    %17 = arith.maximumf %14, %16 : vector<64x256xf32>
    %18 = vector.broadcast %6 : vector<1x256xf32> to vector<64x256xf32>
    %19 = arith.mulf %17, %18 : vector<64x256xf32>
    %cst_9 = arith.constant dense<0.000000e+00> : vector<64xf32>
    %20 = vector.multi_reduction <add>, %19, %cst_9 [1] : vector<64x256xf32> to vector<64xf32>
    %21 = vector.shape_cast %20 : vector<64xf32> to vector<64x1xf32>
    %cst_10 = arith.constant 0.0069444445 : f32
    %22 = vector.broadcast %cst_10 : f32 to vector<64x1xf32>
    %23 = arith.mulf %21, %22 : vector<64x1xf32>
    %cst_11 = arith.constant 0xFF800000 : f32
    %24 = vector.shape_cast %4 : vector<1x256xi1> to vector<1x256xi1>
    %25 = vector.broadcast %24 : vector<1x256xi1> to vector<64x256xi1>
    %26 = vector.broadcast %cst_11 : f32 to vector<64x256xf32>
    %27 = arith.select %25, %17, %26 : vector<64x256xi1>, vector<64x256xf32>
    %cst_12 = arith.constant dense<0xFF800000> : vector<64xf32>
    %28 = vector.multi_reduction <maximumf>, %27, %cst_12 [1] : vector<64x256xf32> to vector<64xf32>
    %29 = vector.shape_cast %28 : vector<64xf32> to vector<64x1xf32>
    %30 = tpu.concatenate %23, %29 in 1 : vector<64x1xf32>, vector<64x1xf32> -> vector<64x2xf32>
    %c0_13 = arith.constant 0 : index
    %c0_14 = arith.constant 0 : index
    %c0_15 = arith.constant 0 : index
    %31 = vector.load %arg4[%c0_13, %c0_14, %c0_15] : memref<2x4x64xf32, #tpu.memory_space<vmem>>, vector<1x4x64xf32>
    %32 = vector.shape_cast %31 : vector<1x4x64xf32> to vector<4x64xf32>
    %cst_16 = arith.constant dense<0.000000e+00> : vector<4x2xf32>
    %33 = tpu.matmul %32, %30, %cst_16 {dimension_numbers = #tpu.dot_dimension_numbers<[1], [0], [0], [1], [0, 0, 1, 1], [], []>} : vector<4x64xf32>, vector<64x2xf32>, vector<4x2xf32> -> vector<4x2xf32>
    %cst_17 = arith.constant 0.000000e+00 : f32
    %34 = vector.broadcast %cst_17 : f32 to vector<4x2xf32>
    %35 = arith.maximumf %33, %34 : vector<4x2xf32>
    %c0_18 = arith.constant 0 : index
    %c0_19 = arith.constant 0 : index
    %c0_20 = arith.constant 0 : index
    %36 = vector.load %arg5[%c0_18, %c0_19, %c0_20] : memref<2x64x4xf32, #tpu.memory_space<vmem>>, vector<1x64x4xf32>
    %37 = vector.shape_cast %36 : vector<1x64x4xf32> to vector<64x4xf32>
    %cst_21 = arith.constant dense<0.000000e+00> : vector<64x2xf32>
    %38 = tpu.matmul %37, %35, %cst_21 {dimension_numbers = #tpu.dot_dimension_numbers<[1], [0], [0], [1], [0, 0, 1, 1], [], []>} : vector<64x4xf32>, vector<4x2xf32>, vector<64x2xf32> -> vector<64x2xf32>
    %39 = vector.extract_strided_slice %38 {offsets = [0, 0], sizes = [64, 1], strides = [1, 1]} : vector<64x2xf32> to vector<64x1xf32>
    %40 = vector.extract_strided_slice %38 {offsets = [0, 1], sizes = [64, 1], strides = [1, 1]} : vector<64x2xf32> to vector<64x1xf32>
    %41 = arith.addf %39, %40 : vector<64x1xf32>
    %42 = arith.negf %41 : vector<64x1xf32>
    %43 = math.exp %42 : vector<64x1xf32>
    %cst_22 = arith.constant 1.000000e+00 : f32
    %44 = vector.broadcast %cst_22 : f32 to vector<64x1xf32>
    %45 = arith.addf %44, %43 : vector<64x1xf32>
    %46 = arith.divf %44, %45 : vector<64x1xf32>
    %47 = vector.broadcast %46 : vector<64x1xf32> to vector<64x256xf32>
    %48 = arith.mulf %17, %47 : vector<64x256xf32>
    %cst_23 = arith.constant dense<0.000000e+00> : vector<256xf32>
    %49 = vector.multi_reduction <add>, %48, %cst_23 [0] : vector<64x256xf32> to vector<256xf32>
    %50 = vector.shape_cast %49 : vector<256xf32> to vector<1x256xf32>
    %cst_24 = arith.constant 1.562500e-02 : f32
    %51 = vector.broadcast %cst_24 : f32 to vector<1x256xf32>
    %52 = arith.mulf %50, %51 : vector<1x256xf32>
    %cst_25 = arith.constant dense<0xFF800000> : vector<256xf32>
    %53 = vector.multi_reduction <maximumf>, %48, %cst_25 [0] : vector<64x256xf32> to vector<256xf32>
    %54 = vector.shape_cast %53 : vector<256xf32> to vector<1x256xf32>
    %55 = tpu.concatenate %52, %54 in 0 : vector<1x256xf32>, vector<1x256xf32> -> vector<2x256xf32>
    %cst_26 = arith.constant 0.000000e+00 : f32
    %56 = vector.broadcast %cst_26 : f32 to vector<1x256xf32>
    %c30_i32 = arith.constant 30 : i32
    %57 = tpu.dynamic_rotate %55 by %c30_i32 dim 1 : vector<2x256xf32>, i32 -> vector<2x256xf32>
    %c0_27 = arith.constant 0 : index
    %c0_28 = arith.constant 0 : index
    %58 = memref.load %arg9[%c0_27, %c0_28] : memref<2x98xf32, #tpu.memory_space<smem>>
    %c0_29 = arith.constant 0 : index
    %c49 = arith.constant 49 : index
    %59 = memref.load %arg9[%c0_29, %c49] : memref<2x98xf32, #tpu.memory_space<smem>>
    %60 = vector.extract_strided_slice %57 {offsets = [0, 0], sizes = [1, 256], strides = [1, 1]} : vector<2x256xf32> to vector<1x256xf32>
    %61 = vector.broadcast %58 : f32 to vector<1x256xf32>
    %62 = arith.mulf %61, %60 : vector<1x256xf32>
    %63 = vector.extract_strided_slice %57 {offsets = [1, 0], sizes = [1, 256], strides = [1, 1]} : vector<2x256xf32> to vector<1x256xf32>
    %64 = vector.broadcast %59 : f32 to vector<1x256xf32>
    %65 = arith.mulf %64, %63 : vector<1x256xf32>
    %66 = arith.addf %62, %65 : vector<1x256xf32>
    %c0_30 = arith.constant 0 : index
    %c0_31 = arith.constant 0 : index
    %67 = vector.load %arg8[%c0_30, %c0_31] : memref<49x256xf32, #tpu.memory_space<vmem>>, vector<1x256xf32>
    %68 = arith.mulf %66, %67 : vector<1x256xf32>
    %69 = arith.addf %56, %68 : vector<1x256xf32>
    %c29_i32 = arith.constant 29 : i32
    %70 = tpu.dynamic_rotate %55 by %c29_i32 dim 1 : vector<2x256xf32>, i32 -> vector<2x256xf32>
    %c0_32 = arith.constant 0 : index
    %c1 = arith.constant 1 : index
    %71 = memref.load %arg9[%c0_32, %c1] : memref<2x98xf32, #tpu.memory_space<smem>>
    %c0_33 = arith.constant 0 : index
    %c50 = arith.constant 50 : index
    %72 = memref.load %arg9[%c0_33, %c50] : memref<2x98xf32, #tpu.memory_space<smem>>
    %73 = vector.extract_strided_slice %70 {offsets = [0, 0], sizes = [1, 256], strides = [1, 1]} : vector<2x256xf32> to vector<1x256xf32>
    %74 = vector.broadcast %71 : f32 to vector<1x256xf32>
    %75 = arith.mulf %74, %73 : vector<1x256xf32>
    %76 = vector.extract_strided_slice %70 {offsets = [1, 0], sizes = [1, 256], strides = [1, 1]} : vector<2x256xf32> to vector<1x256xf32>
    %77 = vector.broadcast %72 : f32 to vector<1x256xf32>
    %78 = arith.mulf %77, %76 : vector<1x256xf32>
    %79 = arith.addf %75, %78 : vector<1x256xf32>
    %c1_34 = arith.constant 1 : index
    %c0_35 = arith.constant 0 : index
    %80 = vector.load %arg8[%c1_34, %c0_35] : memref<49x256xf32, #tpu.memory_space<vmem>>, vector<1x256xf32>
    %81 = arith.mulf %79, %80 : vector<1x256xf32>
    %82 = arith.addf %69, %81 : vector<1x256xf32>
    %c28_i32 = arith.constant 28 : i32
    %83 = tpu.dynamic_rotate %55 by %c28_i32 dim 1 : vector<2x256xf32>, i32 -> vector<2x256xf32>
    %c0_36 = arith.constant 0 : index
    %c2 = arith.constant 2 : index
    %84 = memref.load %arg9[%c0_36, %c2] : memref<2x98xf32, #tpu.memory_space<smem>>
    %c0_37 = arith.constant 0 : index
    %c51 = arith.constant 51 : index
    %85 = memref.load %arg9[%c0_37, %c51] : memref<2x98xf32, #tpu.memory_space<smem>>
    %86 = vector.extract_strided_slice %83 {offsets = [0, 0], sizes = [1, 256], strides = [1, 1]} : vector<2x256xf32> to vector<1x256xf32>
    %87 = vector.broadcast %84 : f32 to vector<1x256xf32>
    %88 = arith.mulf %87, %86 : vector<1x256xf32>
    %89 = vector.extract_strided_slice %83 {offsets = [1, 0], sizes = [1, 256], strides = [1, 1]} : vector<2x256xf32> to vector<1x256xf32>
    %90 = vector.broadcast %85 : f32 to vector<1x256xf32>
    %91 = arith.mulf %90, %89 : vector<1x256xf32>
    %92 = arith.addf %88, %91 : vector<1x256xf32>
    %c2_38 = arith.constant 2 : index
    %c0_39 = arith.constant 0 : index
    %93 = vector.load %arg8[%c2_38, %c0_39] : memref<49x256xf32, #tpu.memory_space<vmem>>, vector<1x256xf32>
    %94 = arith.mulf %92, %93 : vector<1x256xf32>
    %95 = arith.addf %82, %94 : vector<1x256xf32>
    %c27_i32 = arith.constant 27 : i32
    %96 = tpu.dynamic_rotate %55 by %c27_i32 dim 1 : vector<2x256xf32>, i32 -> vector<2x256xf32>
    %c0_40 = arith.constant 0 : index
    %c3 = arith.constant 3 : index
    %97 = memref.load %arg9[%c0_40, %c3] : memref<2x98xf32, #tpu.memory_space<smem>>
    %c0_41 = arith.constant 0 : index
    %c52 = arith.constant 52 : index
    %98 = memref.load %arg9[%c0_41, %c52] : memref<2x98xf32, #tpu.memory_space<smem>>
    %99 = vector.extract_strided_slice %96 {offsets = [0, 0], sizes = [1, 256], strides = [1, 1]} : vector<2x256xf32> to vector<1x256xf32>
    %100 = vector.broadcast %97 : f32 to vector<1x256xf32>
    %101 = arith.mulf %100, %99 : vector<1x256xf32>
    %102 = vector.extract_strided_slice %96 {offsets = [1, 0], sizes = [1, 256], strides = [1, 1]} : vector<2x256xf32> to vector<1x256xf32>
    %103 = vector.broadcast %98 : f32 to vector<1x256xf32>
    %104 = arith.mulf %103, %102 : vector<1x256xf32>
    %105 = arith.addf %101, %104 : vector<1x256xf32>
    %c3_42 = arith.constant 3 : index
    %c0_43 = arith.constant 0 : index
    %106 = vector.load %arg8[%c3_42, %c0_43] : memref<49x256xf32, #tpu.memory_space<vmem>>, vector<1x256xf32>
    %107 = arith.mulf %105, %106 : vector<1x256xf32>
    %108 = arith.addf %95, %107 : vector<1x256xf32>
    %c26_i32 = arith.constant 26 : i32
    %109 = tpu.dynamic_rotate %55 by %c26_i32 dim 1 : vector<2x256xf32>, i32 -> vector<2x256xf32>
    %c0_44 = arith.constant 0 : index
    %c4 = arith.constant 4 : index
    %110 = memref.load %arg9[%c0_44, %c4] : memref<2x98xf32, #tpu.memory_space<smem>>
    %c0_45 = arith.constant 0 : index
    %c53 = arith.constant 53 : index
    %111 = memref.load %arg9[%c0_45, %c53] : memref<2x98xf32, #tpu.memory_space<smem>>
    %112 = vector.extract_strided_slice %109 {offsets = [0, 0], sizes = [1, 256], strides = [1, 1]} : vector<2x256xf32> to vector<1x256xf32>
    %113 = vector.broadcast %110 : f32 to vector<1x256xf32>
    %114 = arith.mulf %113, %112 : vector<1x256xf32>
    %115 = vector.extract_strided_slice %109 {offsets = [1, 0], sizes = [1, 256], strides = [1, 1]} : vector<2x256xf32> to vector<1x256xf32>
    %116 = vector.broadcast %111 : f32 to vector<1x256xf32>
    %117 = arith.mulf %116, %115 : vector<1x256xf32>
    %118 = arith.addf %114, %117 : vector<1x256xf32>
    %c4_46 = arith.constant 4 : index
    %c0_47 = arith.constant 0 : index
    %119 = vector.load %arg8[%c4_46, %c0_47] : memref<49x256xf32, #tpu.memory_space<vmem>>, vector<1x256xf32>
    %120 = arith.mulf %118, %119 : vector<1x256xf32>
    %121 = arith.addf %108, %120 : vector<1x256xf32>
    %c25_i32 = arith.constant 25 : i32
    %122 = tpu.dynamic_rotate %55 by %c25_i32 dim 1 : vector<2x256xf32>, i32 -> vector<2x256xf32>
    %c0_48 = arith.constant 0 : index
    %c5 = arith.constant 5 : index
    %123 = memref.load %arg9[%c0_48, %c5] : memref<2x98xf32, #tpu.memory_space<smem>>
    %c0_49 = arith.constant 0 : index
    %c54 = arith.constant 54 : index
    %124 = memref.load %arg9[%c0_49, %c54] : memref<2x98xf32, #tpu.memory_space<smem>>
    %125 = vector.extract_strided_slice %122 {offsets = [0, 0], sizes = [1, 256], strides = [1, 1]} : vector<2x256xf32> to vector<1x256xf32>
    %126 = vector.broadcast %123 : f32 to vector<1x256xf32>
    %127 = arith.mulf %126, %125 : vector<1x256xf32>
    %128 = vector.extract_strided_slice %122 {offsets = [1, 0], sizes = [1, 256], strides = [1, 1]} : vector<2x256xf32> to vector<1x256xf32>
    %129 = vector.broadcast %124 : f32 to vector<1x256xf32>
    %130 = arith.mulf %129, %128 : vector<1x256xf32>
    %131 = arith.addf %127, %130 : vector<1x256xf32>
    %c5_50 = arith.constant 5 : index
    %c0_51 = arith.constant 0 : index
    %132 = vector.load %arg8[%c5_50, %c0_51] : memref<49x256xf32, #tpu.memory_space<vmem>>, vector<1x256xf32>
    %133 = arith.mulf %131, %132 : vector<1x256xf32>
    %134 = arith.addf %121, %133 : vector<1x256xf32>
    %c24_i32 = arith.constant 24 : i32
    %135 = tpu.dynamic_rotate %55 by %c24_i32 dim 1 : vector<2x256xf32>, i32 -> vector<2x256xf32>
    %c0_52 = arith.constant 0 : index
    %c6 = arith.constant 6 : index
    %136 = memref.load %arg9[%c0_52, %c6] : memref<2x98xf32, #tpu.memory_space<smem>>
    %c0_53 = arith.constant 0 : index
    %c55 = arith.constant 55 : index
    %137 = memref.load %arg9[%c0_53, %c55] : memref<2x98xf32, #tpu.memory_space<smem>>
    %138 = vector.extract_strided_slice %135 {offsets = [0, 0], sizes = [1, 256], strides = [1, 1]} : vector<2x256xf32> to vector<1x256xf32>
    %139 = vector.broadcast %136 : f32 to vector<1x256xf32>
    %140 = arith.mulf %139, %138 : vector<1x256xf32>
    %141 = vector.extract_strided_slice %135 {offsets = [1, 0], sizes = [1, 256], strides = [1, 1]} : vector<2x256xf32> to vector<1x256xf32>
    %142 = vector.broadcast %137 : f32 to vector<1x256xf32>
    %143 = arith.mulf %142, %141 : vector<1x256xf32>
    %144 = arith.addf %140, %143 : vector<1x256xf32>
    %c6_54 = arith.constant 6 : index
    %c0_55 = arith.constant 0 : index
    %145 = vector.load %arg8[%c6_54, %c0_55] : memref<49x256xf32, #tpu.memory_space<vmem>>, vector<1x256xf32>
    %146 = arith.mulf %144, %145 : vector<1x256xf32>
    %147 = arith.addf %134, %146 : vector<1x256xf32>
    %c21_i32 = arith.constant 21 : i32
    %148 = tpu.dynamic_rotate %55 by %c21_i32 dim 1 : vector<2x256xf32>, i32 -> vector<2x256xf32>
    %c0_56 = arith.constant 0 : index
    %c7 = arith.constant 7 : index
    %149 = memref.load %arg9[%c0_56, %c7] : memref<2x98xf32, #tpu.memory_space<smem>>
    %c0_57 = arith.constant 0 : index
    %c56 = arith.constant 56 : index
    %150 = memref.load %arg9[%c0_57, %c56] : memref<2x98xf32, #tpu.memory_space<smem>>
    %151 = vector.extract_strided_slice %148 {offsets = [0, 0], sizes = [1, 256], strides = [1, 1]} : vector<2x256xf32> to vector<1x256xf32>
    %152 = vector.broadcast %149 : f32 to vector<1x256xf32>
    %153 = arith.mulf %152, %151 : vector<1x256xf32>
    %154 = vector.extract_strided_slice %148 {offsets = [1, 0], sizes = [1, 256], strides = [1, 1]} : vector<2x256xf32> to vector<1x256xf32>
    %155 = vector.broadcast %150 : f32 to vector<1x256xf32>
    %156 = arith.mulf %155, %154 : vector<1x256xf32>
    %157 = arith.addf %153, %156 : vector<1x256xf32>
    %c7_58 = arith.constant 7 : index
    %c0_59 = arith.constant 0 : index
    %158 = vector.load %arg8[%c7_58, %c0_59] : memref<49x256xf32, #tpu.memory_space<vmem>>, vector<1x256xf32>
    %159 = arith.mulf %157, %158 : vector<1x256xf32>
    %160 = arith.addf %147, %159 : vector<1x256xf32>
    %c20_i32 = arith.constant 20 : i32
    %161 = tpu.dynamic_rotate %55 by %c20_i32 dim 1 : vector<2x256xf32>, i32 -> vector<2x256xf32>
    %c0_60 = arith.constant 0 : index
    %c8 = arith.constant 8 : index
    %162 = memref.load %arg9[%c0_60, %c8] : memref<2x98xf32, #tpu.memory_space<smem>>
    %c0_61 = arith.constant 0 : index
    %c57 = arith.constant 57 : index
    %163 = memref.load %arg9[%c0_61, %c57] : memref<2x98xf32, #tpu.memory_space<smem>>
    %164 = vector.extract_strided_slice %161 {offsets = [0, 0], sizes = [1, 256], strides = [1, 1]} : vector<2x256xf32> to vector<1x256xf32>
    %165 = vector.broadcast %162 : f32 to vector<1x256xf32>
    %166 = arith.mulf %165, %164 : vector<1x256xf32>
    %167 = vector.extract_strided_slice %161 {offsets = [1, 0], sizes = [1, 256], strides = [1, 1]} : vector<2x256xf32> to vector<1x256xf32>
    %168 = vector.broadcast %163 : f32 to vector<1x256xf32>
    %169 = arith.mulf %168, %167 : vector<1x256xf32>
    %170 = arith.addf %166, %169 : vector<1x256xf32>
    %c8_62 = arith.constant 8 : index
    %c0_63 = arith.constant 0 : index
    %171 = vector.load %arg8[%c8_62, %c0_63] : memref<49x256xf32, #tpu.memory_space<vmem>>, vector<1x256xf32>
    %172 = arith.mulf %170, %171 : vector<1x256xf32>
    %173 = arith.addf %160, %172 : vector<1x256xf32>
    %c19_i32 = arith.constant 19 : i32
    %174 = tpu.dynamic_rotate %55 by %c19_i32 dim 1 : vector<2x256xf32>, i32 -> vector<2x256xf32>
    %c0_64 = arith.constant 0 : index
    %c9 = arith.constant 9 : index
    %175 = memref.load %arg9[%c0_64, %c9] : memref<2x98xf32, #tpu.memory_space<smem>>
    %c0_65 = arith.constant 0 : index
    %c58 = arith.constant 58 : index
    %176 = memref.load %arg9[%c0_65, %c58] : memref<2x98xf32, #tpu.memory_space<smem>>
    %177 = vector.extract_strided_slice %174 {offsets = [0, 0], sizes = [1, 256], strides = [1, 1]} : vector<2x256xf32> to vector<1x256xf32>
    %178 = vector.broadcast %175 : f32 to vector<1x256xf32>
    %179 = arith.mulf %178, %177 : vector<1x256xf32>
    %180 = vector.extract_strided_slice %174 {offsets = [1, 0], sizes = [1, 256], strides = [1, 1]} : vector<2x256xf32> to vector<1x256xf32>
    %181 = vector.broadcast %176 : f32 to vector<1x256xf32>
    %182 = arith.mulf %181, %180 : vector<1x256xf32>
    %183 = arith.addf %179, %182 : vector<1x256xf32>
    %c9_66 = arith.constant 9 : index
    %c0_67 = arith.constant 0 : index
    %184 = vector.load %arg8[%c9_66, %c0_67] : memref<49x256xf32, #tpu.memory_space<vmem>>, vector<1x256xf32>
    %185 = arith.mulf %183, %184 : vector<1x256xf32>
    %186 = arith.addf %173, %185 : vector<1x256xf32>
    %c18_i32 = arith.constant 18 : i32
    %187 = tpu.dynamic_rotate %55 by %c18_i32 dim 1 : vector<2x256xf32>, i32 -> vector<2x256xf32>
    %c0_68 = arith.constant 0 : index
    %c10 = arith.constant 10 : index
    %188 = memref.load %arg9[%c0_68, %c10] : memref<2x98xf32, #tpu.memory_space<smem>>
    %c0_69 = arith.constant 0 : index
    %c59 = arith.constant 59 : index
    %189 = memref.load %arg9[%c0_69, %c59] : memref<2x98xf32, #tpu.memory_space<smem>>
    %190 = vector.extract_strided_slice %187 {offsets = [0, 0], sizes = [1, 256], strides = [1, 1]} : vector<2x256xf32> to vector<1x256xf32>
    %191 = vector.broadcast %188 : f32 to vector<1x256xf32>
    %192 = arith.mulf %191, %190 : vector<1x256xf32>
    %193 = vector.extract_strided_slice %187 {offsets = [1, 0], sizes = [1, 256], strides = [1, 1]} : vector<2x256xf32> to vector<1x256xf32>
    %194 = vector.broadcast %189 : f32 to vector<1x256xf32>
    %195 = arith.mulf %194, %193 : vector<1x256xf32>
    %196 = arith.addf %192, %195 : vector<1x256xf32>
    %c10_70 = arith.constant 10 : index
    %c0_71 = arith.constant 0 : index
    %197 = vector.load %arg8[%c10_70, %c0_71] : memref<49x256xf32, #tpu.memory_space<vmem>>, vector<1x256xf32>
    %198 = arith.mulf %196, %197 : vector<1x256xf32>
    %199 = arith.addf %186, %198 : vector<1x256xf32>
    %c17_i32 = arith.constant 17 : i32
    %200 = tpu.dynamic_rotate %55 by %c17_i32 dim 1 : vector<2x256xf32>, i32 -> vector<2x256xf32>
    %c0_72 = arith.constant 0 : index
    %c11 = arith.constant 11 : index
    %201 = memref.load %arg9[%c0_72, %c11] : memref<2x98xf32, #tpu.memory_space<smem>>
    %c0_73 = arith.constant 0 : index
    %c60 = arith.constant 60 : index
    %202 = memref.load %arg9[%c0_73, %c60] : memref<2x98xf32, #tpu.memory_space<smem>>
    %203 = vector.extract_strided_slice %200 {offsets = [0, 0], sizes = [1, 256], strides = [1, 1]} : vector<2x256xf32> to vector<1x256xf32>
    %204 = vector.broadcast %201 : f32 to vector<1x256xf32>
    %205 = arith.mulf %204, %203 : vector<1x256xf32>
    %206 = vector.extract_strided_slice %200 {offsets = [1, 0], sizes = [1, 256], strides = [1, 1]} : vector<2x256xf32> to vector<1x256xf32>
    %207 = vector.broadcast %202 : f32 to vector<1x256xf32>
    %208 = arith.mulf %207, %206 : vector<1x256xf32>
    %209 = arith.addf %205, %208 : vector<1x256xf32>
    %c11_74 = arith.constant 11 : index
    %c0_75 = arith.constant 0 : index
    %210 = vector.load %arg8[%c11_74, %c0_75] : memref<49x256xf32, #tpu.memory_space<vmem>>, vector<1x256xf32>
    %211 = arith.mulf %209, %210 : vector<1x256xf32>
    %212 = arith.addf %199, %211 : vector<1x256xf32>
    %c16_i32 = arith.constant 16 : i32
    %213 = tpu.dynamic_rotate %55 by %c16_i32 dim 1 : vector<2x256xf32>, i32 -> vector<2x256xf32>
    %c0_76 = arith.constant 0 : index
    %c12 = arith.constant 12 : index
    %214 = memref.load %arg9[%c0_76, %c12] : memref<2x98xf32, #tpu.memory_space<smem>>
    %c0_77 = arith.constant 0 : index
    %c61 = arith.constant 61 : index
    %215 = memref.load %arg9[%c0_77, %c61] : memref<2x98xf32, #tpu.memory_space<smem>>
    %216 = vector.extract_strided_slice %213 {offsets = [0, 0], sizes = [1, 256], strides = [1, 1]} : vector<2x256xf32> to vector<1x256xf32>
    %217 = vector.broadcast %214 : f32 to vector<1x256xf32>
    %218 = arith.mulf %217, %216 : vector<1x256xf32>
    %219 = vector.extract_strided_slice %213 {offsets = [1, 0], sizes = [1, 256], strides = [1, 1]} : vector<2x256xf32> to vector<1x256xf32>
    %220 = vector.broadcast %215 : f32 to vector<1x256xf32>
    %221 = arith.mulf %220, %219 : vector<1x256xf32>
    %222 = arith.addf %218, %221 : vector<1x256xf32>
    %c12_78 = arith.constant 12 : index
    %c0_79 = arith.constant 0 : index
    %223 = vector.load %arg8[%c12_78, %c0_79] : memref<49x256xf32, #tpu.memory_space<vmem>>, vector<1x256xf32>
    %224 = arith.mulf %222, %223 : vector<1x256xf32>
    %225 = arith.addf %212, %224 : vector<1x256xf32>
    %c15_i32 = arith.constant 15 : i32
    %226 = tpu.dynamic_rotate %55 by %c15_i32 dim 1 : vector<2x256xf32>, i32 -> vector<2x256xf32>
    %c0_80 = arith.constant 0 : index
    %c13 = arith.constant 13 : index
    %227 = memref.load %arg9[%c0_80, %c13] : memref<2x98xf32, #tpu.memory_space<smem>>
    %c0_81 = arith.constant 0 : index
    %c62 = arith.constant 62 : index
    %228 = memref.load %arg9[%c0_81, %c62] : memref<2x98xf32, #tpu.memory_space<smem>>
    %229 = vector.extract_strided_slice %226 {offsets = [0, 0], sizes = [1, 256], strides = [1, 1]} : vector<2x256xf32> to vector<1x256xf32>
    %230 = vector.broadcast %227 : f32 to vector<1x256xf32>
    %231 = arith.mulf %230, %229 : vector<1x256xf32>
    %232 = vector.extract_strided_slice %226 {offsets = [1, 0], sizes = [1, 256], strides = [1, 1]} : vector<2x256xf32> to vector<1x256xf32>
    %233 = vector.broadcast %228 : f32 to vector<1x256xf32>
    %234 = arith.mulf %233, %232 : vector<1x256xf32>
    %235 = arith.addf %231, %234 : vector<1x256xf32>
    %c13_82 = arith.constant 13 : index
    %c0_83 = arith.constant 0 : index
    %236 = vector.load %arg8[%c13_82, %c0_83] : memref<49x256xf32, #tpu.memory_space<vmem>>, vector<1x256xf32>
    %237 = arith.mulf %235, %236 : vector<1x256xf32>
    %238 = arith.addf %225, %237 : vector<1x256xf32>
    %c12_i32 = arith.constant 12 : i32
    %239 = tpu.dynamic_rotate %55 by %c12_i32 dim 1 : vector<2x256xf32>, i32 -> vector<2x256xf32>
    %c0_84 = arith.constant 0 : index
    %c14 = arith.constant 14 : index
    %240 = memref.load %arg9[%c0_84, %c14] : memref<2x98xf32, #tpu.memory_space<smem>>
    %c0_85 = arith.constant 0 : index
    %c63 = arith.constant 63 : index
    %241 = memref.load %arg9[%c0_85, %c63] : memref<2x98xf32, #tpu.memory_space<smem>>
    %242 = vector.extract_strided_slice %239 {offsets = [0, 0], sizes = [1, 256], strides = [1, 1]} : vector<2x256xf32> to vector<1x256xf32>
    %243 = vector.broadcast %240 : f32 to vector<1x256xf32>
    %244 = arith.mulf %243, %242 : vector<1x256xf32>
    %245 = vector.extract_strided_slice %239 {offsets = [1, 0], sizes = [1, 256], strides = [1, 1]} : vector<2x256xf32> to vector<1x256xf32>
    %246 = vector.broadcast %241 : f32 to vector<1x256xf32>
    %247 = arith.mulf %246, %245 : vector<1x256xf32>
    %248 = arith.addf %244, %247 : vector<1x256xf32>
    %c14_86 = arith.constant 14 : index
    %c0_87 = arith.constant 0 : index
    %249 = vector.load %arg8[%c14_86, %c0_87] : memref<49x256xf32, #tpu.memory_space<vmem>>, vector<1x256xf32>
    %250 = arith.mulf %248, %249 : vector<1x256xf32>
    %251 = arith.addf %238, %250 : vector<1x256xf32>
    %c11_i32 = arith.constant 11 : i32
    %252 = tpu.dynamic_rotate %55 by %c11_i32 dim 1 : vector<2x256xf32>, i32 -> vector<2x256xf32>
    %c0_88 = arith.constant 0 : index
    %c15 = arith.constant 15 : index
    %253 = memref.load %arg9[%c0_88, %c15] : memref<2x98xf32, #tpu.memory_space<smem>>
    %c0_89 = arith.constant 0 : index
    %c64 = arith.constant 64 : index
    %254 = memref.load %arg9[%c0_89, %c64] : memref<2x98xf32, #tpu.memory_space<smem>>
    %255 = vector.extract_strided_slice %252 {offsets = [0, 0], sizes = [1, 256], strides = [1, 1]} : vector<2x256xf32> to vector<1x256xf32>
    %256 = vector.broadcast %253 : f32 to vector<1x256xf32>
    %257 = arith.mulf %256, %255 : vector<1x256xf32>
    %258 = vector.extract_strided_slice %252 {offsets = [1, 0], sizes = [1, 256], strides = [1, 1]} : vector<2x256xf32> to vector<1x256xf32>
    %259 = vector.broadcast %254 : f32 to vector<1x256xf32>
    %260 = arith.mulf %259, %258 : vector<1x256xf32>
    %261 = arith.addf %257, %260 : vector<1x256xf32>
    %c15_90 = arith.constant 15 : index
    %c0_91 = arith.constant 0 : index
    %262 = vector.load %arg8[%c15_90, %c0_91] : memref<49x256xf32, #tpu.memory_space<vmem>>, vector<1x256xf32>
    %263 = arith.mulf %261, %262 : vector<1x256xf32>
    %264 = arith.addf %251, %263 : vector<1x256xf32>
    %c10_i32 = arith.constant 10 : i32
    %265 = tpu.dynamic_rotate %55 by %c10_i32 dim 1 : vector<2x256xf32>, i32 -> vector<2x256xf32>
    %c0_92 = arith.constant 0 : index
    %c16 = arith.constant 16 : index
    %266 = memref.load %arg9[%c0_92, %c16] : memref<2x98xf32, #tpu.memory_space<smem>>
    %c0_93 = arith.constant 0 : index
    %c65 = arith.constant 65 : index
    %267 = memref.load %arg9[%c0_93, %c65] : memref<2x98xf32, #tpu.memory_space<smem>>
    %268 = vector.extract_strided_slice %265 {offsets = [0, 0], sizes = [1, 256], strides = [1, 1]} : vector<2x256xf32> to vector<1x256xf32>
    %269 = vector.broadcast %266 : f32 to vector<1x256xf32>
    %270 = arith.mulf %269, %268 : vector<1x256xf32>
    %271 = vector.extract_strided_slice %265 {offsets = [1, 0], sizes = [1, 256], strides = [1, 1]} : vector<2x256xf32> to vector<1x256xf32>
    %272 = vector.broadcast %267 : f32 to vector<1x256xf32>
    %273 = arith.mulf %272, %271 : vector<1x256xf32>
    %274 = arith.addf %270, %273 : vector<1x256xf32>
    %c16_94 = arith.constant 16 : index
    %c0_95 = arith.constant 0 : index
    %275 = vector.load %arg8[%c16_94, %c0_95] : memref<49x256xf32, #tpu.memory_space<vmem>>, vector<1x256xf32>
    %276 = arith.mulf %274, %275 : vector<1x256xf32>
    %277 = arith.addf %264, %276 : vector<1x256xf32>
    %c9_i32 = arith.constant 9 : i32
    %278 = tpu.dynamic_rotate %55 by %c9_i32 dim 1 : vector<2x256xf32>, i32 -> vector<2x256xf32>
    %c0_96 = arith.constant 0 : index
    %c17 = arith.constant 17 : index
    %279 = memref.load %arg9[%c0_96, %c17] : memref<2x98xf32, #tpu.memory_space<smem>>
    %c0_97 = arith.constant 0 : index
    %c66 = arith.constant 66 : index
    %280 = memref.load %arg9[%c0_97, %c66] : memref<2x98xf32, #tpu.memory_space<smem>>
    %281 = vector.extract_strided_slice %278 {offsets = [0, 0], sizes = [1, 256], strides = [1, 1]} : vector<2x256xf32> to vector<1x256xf32>
    %282 = vector.broadcast %279 : f32 to vector<1x256xf32>
    %283 = arith.mulf %282, %281 : vector<1x256xf32>
    %284 = vector.extract_strided_slice %278 {offsets = [1, 0], sizes = [1, 256], strides = [1, 1]} : vector<2x256xf32> to vector<1x256xf32>
    %285 = vector.broadcast %280 : f32 to vector<1x256xf32>
    %286 = arith.mulf %285, %284 : vector<1x256xf32>
    %287 = arith.addf %283, %286 : vector<1x256xf32>
    %c17_98 = arith.constant 17 : index
    %c0_99 = arith.constant 0 : index
    %288 = vector.load %arg8[%c17_98, %c0_99] : memref<49x256xf32, #tpu.memory_space<vmem>>, vector<1x256xf32>
    %289 = arith.mulf %287, %288 : vector<1x256xf32>
    %290 = arith.addf %277, %289 : vector<1x256xf32>
    %c8_i32 = arith.constant 8 : i32
    %291 = tpu.dynamic_rotate %55 by %c8_i32 dim 1 : vector<2x256xf32>, i32 -> vector<2x256xf32>
    %c0_100 = arith.constant 0 : index
    %c18 = arith.constant 18 : index
    %292 = memref.load %arg9[%c0_100, %c18] : memref<2x98xf32, #tpu.memory_space<smem>>
    %c0_101 = arith.constant 0 : index
    %c67 = arith.constant 67 : index
    %293 = memref.load %arg9[%c0_101, %c67] : memref<2x98xf32, #tpu.memory_space<smem>>
    %294 = vector.extract_strided_slice %291 {offsets = [0, 0], sizes = [1, 256], strides = [1, 1]} : vector<2x256xf32> to vector<1x256xf32>
    %295 = vector.broadcast %292 : f32 to vector<1x256xf32>
    %296 = arith.mulf %295, %294 : vector<1x256xf32>
    %297 = vector.extract_strided_slice %291 {offsets = [1, 0], sizes = [1, 256], strides = [1, 1]} : vector<2x256xf32> to vector<1x256xf32>
    %298 = vector.broadcast %293 : f32 to vector<1x256xf32>
    %299 = arith.mulf %298, %297 : vector<1x256xf32>
    %300 = arith.addf %296, %299 : vector<1x256xf32>
    %c18_102 = arith.constant 18 : index
    %c0_103 = arith.constant 0 : index
    %301 = vector.load %arg8[%c18_102, %c0_103] : memref<49x256xf32, #tpu.memory_space<vmem>>, vector<1x256xf32>
    %302 = arith.mulf %300, %301 : vector<1x256xf32>
    %303 = arith.addf %290, %302 : vector<1x256xf32>
    %c7_i32 = arith.constant 7 : i32
    %304 = tpu.dynamic_rotate %55 by %c7_i32 dim 1 : vector<2x256xf32>, i32 -> vector<2x256xf32>
    %c0_104 = arith.constant 0 : index
    %c19 = arith.constant 19 : index
    %305 = memref.load %arg9[%c0_104, %c19] : memref<2x98xf32, #tpu.memory_space<smem>>
    %c0_105 = arith.constant 0 : index
    %c68 = arith.constant 68 : index
    %306 = memref.load %arg9[%c0_105, %c68] : memref<2x98xf32, #tpu.memory_space<smem>>
    %307 = vector.extract_strided_slice %304 {offsets = [0, 0], sizes = [1, 256], strides = [1, 1]} : vector<2x256xf32> to vector<1x256xf32>
    %308 = vector.broadcast %305 : f32 to vector<1x256xf32>
    %309 = arith.mulf %308, %307 : vector<1x256xf32>
    %310 = vector.extract_strided_slice %304 {offsets = [1, 0], sizes = [1, 256], strides = [1, 1]} : vector<2x256xf32> to vector<1x256xf32>
    %311 = vector.broadcast %306 : f32 to vector<1x256xf32>
    %312 = arith.mulf %311, %310 : vector<1x256xf32>
    %313 = arith.addf %309, %312 : vector<1x256xf32>
    %c19_106 = arith.constant 19 : index
    %c0_107 = arith.constant 0 : index
    %314 = vector.load %arg8[%c19_106, %c0_107] : memref<49x256xf32, #tpu.memory_space<vmem>>, vector<1x256xf32>
    %315 = arith.mulf %313, %314 : vector<1x256xf32>
    %316 = arith.addf %303, %315 : vector<1x256xf32>
    %c6_i32 = arith.constant 6 : i32
    %317 = tpu.dynamic_rotate %55 by %c6_i32 dim 1 : vector<2x256xf32>, i32 -> vector<2x256xf32>
    %c0_108 = arith.constant 0 : index
    %c20 = arith.constant 20 : index
    %318 = memref.load %arg9[%c0_108, %c20] : memref<2x98xf32, #tpu.memory_space<smem>>
    %c0_109 = arith.constant 0 : index
    %c69 = arith.constant 69 : index
    %319 = memref.load %arg9[%c0_109, %c69] : memref<2x98xf32, #tpu.memory_space<smem>>
    %320 = vector.extract_strided_slice %317 {offsets = [0, 0], sizes = [1, 256], strides = [1, 1]} : vector<2x256xf32> to vector<1x256xf32>
    %321 = vector.broadcast %318 : f32 to vector<1x256xf32>
    %322 = arith.mulf %321, %320 : vector<1x256xf32>
    %323 = vector.extract_strided_slice %317 {offsets = [1, 0], sizes = [1, 256], strides = [1, 1]} : vector<2x256xf32> to vector<1x256xf32>
    %324 = vector.broadcast %319 : f32 to vector<1x256xf32>
    %325 = arith.mulf %324, %323 : vector<1x256xf32>
    %326 = arith.addf %322, %325 : vector<1x256xf32>
    %c20_110 = arith.constant 20 : index
    %c0_111 = arith.constant 0 : index
    %327 = vector.load %arg8[%c20_110, %c0_111] : memref<49x256xf32, #tpu.memory_space<vmem>>, vector<1x256xf32>
    %328 = arith.mulf %326, %327 : vector<1x256xf32>
    %329 = arith.addf %316, %328 : vector<1x256xf32>
    %c3_i32 = arith.constant 3 : i32
    %330 = tpu.dynamic_rotate %55 by %c3_i32 dim 1 : vector<2x256xf32>, i32 -> vector<2x256xf32>
    %c0_112 = arith.constant 0 : index
    %c21 = arith.constant 21 : index
    %331 = memref.load %arg9[%c0_112, %c21] : memref<2x98xf32, #tpu.memory_space<smem>>
    %c0_113 = arith.constant 0 : index
    %c70 = arith.constant 70 : index
    %332 = memref.load %arg9[%c0_113, %c70] : memref<2x98xf32, #tpu.memory_space<smem>>
    %333 = vector.extract_strided_slice %330 {offsets = [0, 0], sizes = [1, 256], strides = [1, 1]} : vector<2x256xf32> to vector<1x256xf32>
    %334 = vector.broadcast %331 : f32 to vector<1x256xf32>
    %335 = arith.mulf %334, %333 : vector<1x256xf32>
    %336 = vector.extract_strided_slice %330 {offsets = [1, 0], sizes = [1, 256], strides = [1, 1]} : vector<2x256xf32> to vector<1x256xf32>
    %337 = vector.broadcast %332 : f32 to vector<1x256xf32>
    %338 = arith.mulf %337, %336 : vector<1x256xf32>
    %339 = arith.addf %335, %338 : vector<1x256xf32>
    %c21_114 = arith.constant 21 : index
    %c0_115 = arith.constant 0 : index
    %340 = vector.load %arg8[%c21_114, %c0_115] : memref<49x256xf32, #tpu.memory_space<vmem>>, vector<1x256xf32>
    %341 = arith.mulf %339, %340 : vector<1x256xf32>
    %342 = arith.addf %329, %341 : vector<1x256xf32>
    %c2_i32 = arith.constant 2 : i32
    %343 = tpu.dynamic_rotate %55 by %c2_i32 dim 1 : vector<2x256xf32>, i32 -> vector<2x256xf32>
    %c0_116 = arith.constant 0 : index
    %c22 = arith.constant 22 : index
    %344 = memref.load %arg9[%c0_116, %c22] : memref<2x98xf32, #tpu.memory_space<smem>>
    %c0_117 = arith.constant 0 : index
    %c71 = arith.constant 71 : index
    %345 = memref.load %arg9[%c0_117, %c71] : memref<2x98xf32, #tpu.memory_space<smem>>
    %346 = vector.extract_strided_slice %343 {offsets = [0, 0], sizes = [1, 256], strides = [1, 1]} : vector<2x256xf32> to vector<1x256xf32>
    %347 = vector.broadcast %344 : f32 to vector<1x256xf32>
    %348 = arith.mulf %347, %346 : vector<1x256xf32>
    %349 = vector.extract_strided_slice %343 {offsets = [1, 0], sizes = [1, 256], strides = [1, 1]} : vector<2x256xf32> to vector<1x256xf32>
    %350 = vector.broadcast %345 : f32 to vector<1x256xf32>
    %351 = arith.mulf %350, %349 : vector<1x256xf32>
    %352 = arith.addf %348, %351 : vector<1x256xf32>
    %c22_118 = arith.constant 22 : index
    %c0_119 = arith.constant 0 : index
    %353 = vector.load %arg8[%c22_118, %c0_119] : memref<49x256xf32, #tpu.memory_space<vmem>>, vector<1x256xf32>
    %354 = arith.mulf %352, %353 : vector<1x256xf32>
    %355 = arith.addf %342, %354 : vector<1x256xf32>
    %c1_i32 = arith.constant 1 : i32
    %356 = tpu.dynamic_rotate %55 by %c1_i32 dim 1 : vector<2x256xf32>, i32 -> vector<2x256xf32>
    %c0_120 = arith.constant 0 : index
    %c23 = arith.constant 23 : index
    %357 = memref.load %arg9[%c0_120, %c23] : memref<2x98xf32, #tpu.memory_space<smem>>
    %c0_121 = arith.constant 0 : index
    %c72 = arith.constant 72 : index
    %358 = memref.load %arg9[%c0_121, %c72] : memref<2x98xf32, #tpu.memory_space<smem>>
    %359 = vector.extract_strided_slice %356 {offsets = [0, 0], sizes = [1, 256], strides = [1, 1]} : vector<2x256xf32> to vector<1x256xf32>
    %360 = vector.broadcast %357 : f32 to vector<1x256xf32>
    %361 = arith.mulf %360, %359 : vector<1x256xf32>
    %362 = vector.extract_strided_slice %356 {offsets = [1, 0], sizes = [1, 256], strides = [1, 1]} : vector<2x256xf32> to vector<1x256xf32>
    %363 = vector.broadcast %358 : f32 to vector<1x256xf32>
    %364 = arith.mulf %363, %362 : vector<1x256xf32>
    %365 = arith.addf %361, %364 : vector<1x256xf32>
    %c23_122 = arith.constant 23 : index
    %c0_123 = arith.constant 0 : index
    %366 = vector.load %arg8[%c23_122, %c0_123] : memref<49x256xf32, #tpu.memory_space<vmem>>, vector<1x256xf32>
    %367 = arith.mulf %365, %366 : vector<1x256xf32>
    %368 = arith.addf %355, %367 : vector<1x256xf32>
    %c0_124 = arith.constant 0 : index
    %c24 = arith.constant 24 : index
    %369 = memref.load %arg9[%c0_124, %c24] : memref<2x98xf32, #tpu.memory_space<smem>>
    %c0_125 = arith.constant 0 : index
    %c73 = arith.constant 73 : index
    %370 = memref.load %arg9[%c0_125, %c73] : memref<2x98xf32, #tpu.memory_space<smem>>
    %371 = vector.extract_strided_slice %55 {offsets = [0, 0], sizes = [1, 256], strides = [1, 1]} : vector<2x256xf32> to vector<1x256xf32>
    %372 = vector.broadcast %369 : f32 to vector<1x256xf32>
    %373 = arith.mulf %372, %371 : vector<1x256xf32>
    %374 = vector.extract_strided_slice %55 {offsets = [1, 0], sizes = [1, 256], strides = [1, 1]} : vector<2x256xf32> to vector<1x256xf32>
    %375 = vector.broadcast %370 : f32 to vector<1x256xf32>
    %376 = arith.mulf %375, %374 : vector<1x256xf32>
    %377 = arith.addf %373, %376 : vector<1x256xf32>
    %c24_126 = arith.constant 24 : index
    %c0_127 = arith.constant 0 : index
    %378 = vector.load %arg8[%c24_126, %c0_127] : memref<49x256xf32, #tpu.memory_space<vmem>>, vector<1x256xf32>
    %379 = arith.mulf %377, %378 : vector<1x256xf32>
    %380 = arith.addf %368, %379 : vector<1x256xf32>
    %c255_i32 = arith.constant 255 : i32
    %381 = tpu.dynamic_rotate %55 by %c255_i32 dim 1 : vector<2x256xf32>, i32 -> vector<2x256xf32>
    %c0_128 = arith.constant 0 : index
    %c25 = arith.constant 25 : index
    %382 = memref.load %arg9[%c0_128, %c25] : memref<2x98xf32, #tpu.memory_space<smem>>
    %c0_129 = arith.constant 0 : index
    %c74 = arith.constant 74 : index
    %383 = memref.load %arg9[%c0_129, %c74] : memref<2x98xf32, #tpu.memory_space<smem>>
    %384 = vector.extract_strided_slice %381 {offsets = [0, 0], sizes = [1, 256], strides = [1, 1]} : vector<2x256xf32> to vector<1x256xf32>
    %385 = vector.broadcast %382 : f32 to vector<1x256xf32>
    %386 = arith.mulf %385, %384 : vector<1x256xf32>
    %387 = vector.extract_strided_slice %381 {offsets = [1, 0], sizes = [1, 256], strides = [1, 1]} : vector<2x256xf32> to vector<1x256xf32>
    %388 = vector.broadcast %383 : f32 to vector<1x256xf32>
    %389 = arith.mulf %388, %387 : vector<1x256xf32>
    %390 = arith.addf %386, %389 : vector<1x256xf32>
    %c25_130 = arith.constant 25 : index
    %c0_131 = arith.constant 0 : index
    %391 = vector.load %arg8[%c25_130, %c0_131] : memref<49x256xf32, #tpu.memory_space<vmem>>, vector<1x256xf32>
    %392 = arith.mulf %390, %391 : vector<1x256xf32>
    %393 = arith.addf %380, %392 : vector<1x256xf32>
    %c254_i32 = arith.constant 254 : i32
    %394 = tpu.dynamic_rotate %55 by %c254_i32 dim 1 : vector<2x256xf32>, i32 -> vector<2x256xf32>
    %c0_132 = arith.constant 0 : index
    %c26 = arith.constant 26 : index
    %395 = memref.load %arg9[%c0_132, %c26] : memref<2x98xf32, #tpu.memory_space<smem>>
    %c0_133 = arith.constant 0 : index
    %c75 = arith.constant 75 : index
    %396 = memref.load %arg9[%c0_133, %c75] : memref<2x98xf32, #tpu.memory_space<smem>>
    %397 = vector.extract_strided_slice %394 {offsets = [0, 0], sizes = [1, 256], strides = [1, 1]} : vector<2x256xf32> to vector<1x256xf32>
    %398 = vector.broadcast %395 : f32 to vector<1x256xf32>
    %399 = arith.mulf %398, %397 : vector<1x256xf32>
    %400 = vector.extract_strided_slice %394 {offsets = [1, 0], sizes = [1, 256], strides = [1, 1]} : vector<2x256xf32> to vector<1x256xf32>
    %401 = vector.broadcast %396 : f32 to vector<1x256xf32>
    %402 = arith.mulf %401, %400 : vector<1x256xf32>
    %403 = arith.addf %399, %402 : vector<1x256xf32>
    %c26_134 = arith.constant 26 : index
    %c0_135 = arith.constant 0 : index
    %404 = vector.load %arg8[%c26_134, %c0_135] : memref<49x256xf32, #tpu.memory_space<vmem>>, vector<1x256xf32>
    %405 = arith.mulf %403, %404 : vector<1x256xf32>
    %406 = arith.addf %393, %405 : vector<1x256xf32>
    %c253_i32 = arith.constant 253 : i32
    %407 = tpu.dynamic_rotate %55 by %c253_i32 dim 1 : vector<2x256xf32>, i32 -> vector<2x256xf32>
    %c0_136 = arith.constant 0 : index
    %c27 = arith.constant 27 : index
    %408 = memref.load %arg9[%c0_136, %c27] : memref<2x98xf32, #tpu.memory_space<smem>>
    %c0_137 = arith.constant 0 : index
    %c76 = arith.constant 76 : index
    %409 = memref.load %arg9[%c0_137, %c76] : memref<2x98xf32, #tpu.memory_space<smem>>
    %410 = vector.extract_strided_slice %407 {offsets = [0, 0], sizes = [1, 256], strides = [1, 1]} : vector<2x256xf32> to vector<1x256xf32>
    %411 = vector.broadcast %408 : f32 to vector<1x256xf32>
    %412 = arith.mulf %411, %410 : vector<1x256xf32>
    %413 = vector.extract_strided_slice %407 {offsets = [1, 0], sizes = [1, 256], strides = [1, 1]} : vector<2x256xf32> to vector<1x256xf32>
    %414 = vector.broadcast %409 : f32 to vector<1x256xf32>
    %415 = arith.mulf %414, %413 : vector<1x256xf32>
    %416 = arith.addf %412, %415 : vector<1x256xf32>
    %c27_138 = arith.constant 27 : index
    %c0_139 = arith.constant 0 : index
    %417 = vector.load %arg8[%c27_138, %c0_139] : memref<49x256xf32, #tpu.memory_space<vmem>>, vector<1x256xf32>
    %418 = arith.mulf %416, %417 : vector<1x256xf32>
    %419 = arith.addf %406, %418 : vector<1x256xf32>
    %c250_i32 = arith.constant 250 : i32
    %420 = tpu.dynamic_rotate %55 by %c250_i32 dim 1 : vector<2x256xf32>, i32 -> vector<2x256xf32>
    %c0_140 = arith.constant 0 : index
    %c28 = arith.constant 28 : index
    %421 = memref.load %arg9[%c0_140, %c28] : memref<2x98xf32, #tpu.memory_space<smem>>
    %c0_141 = arith.constant 0 : index
    %c77 = arith.constant 77 : index
    %422 = memref.load %arg9[%c0_141, %c77] : memref<2x98xf32, #tpu.memory_space<smem>>
    %423 = vector.extract_strided_slice %420 {offsets = [0, 0], sizes = [1, 256], strides = [1, 1]} : vector<2x256xf32> to vector<1x256xf32>
    %424 = vector.broadcast %421 : f32 to vector<1x256xf32>
    %425 = arith.mulf %424, %423 : vector<1x256xf32>
    %426 = vector.extract_strided_slice %420 {offsets = [1, 0], sizes = [1, 256], strides = [1, 1]} : vector<2x256xf32> to vector<1x256xf32>
    %427 = vector.broadcast %422 : f32 to vector<1x256xf32>
    %428 = arith.mulf %427, %426 : vector<1x256xf32>
    %429 = arith.addf %425, %428 : vector<1x256xf32>
    %c28_142 = arith.constant 28 : index
    %c0_143 = arith.constant 0 : index
    %430 = vector.load %arg8[%c28_142, %c0_143] : memref<49x256xf32, #tpu.memory_space<vmem>>, vector<1x256xf32>
    %431 = arith.mulf %429, %430 : vector<1x256xf32>
    %432 = arith.addf %419, %431 : vector<1x256xf32>
    %c249_i32 = arith.constant 249 : i32
    %433 = tpu.dynamic_rotate %55 by %c249_i32 dim 1 : vector<2x256xf32>, i32 -> vector<2x256xf32>
    %c0_144 = arith.constant 0 : index
    %c29 = arith.constant 29 : index
    %434 = memref.load %arg9[%c0_144, %c29] : memref<2x98xf32, #tpu.memory_space<smem>>
    %c0_145 = arith.constant 0 : index
    %c78 = arith.constant 78 : index
    %435 = memref.load %arg9[%c0_145, %c78] : memref<2x98xf32, #tpu.memory_space<smem>>
    %436 = vector.extract_strided_slice %433 {offsets = [0, 0], sizes = [1, 256], strides = [1, 1]} : vector<2x256xf32> to vector<1x256xf32>
    %437 = vector.broadcast %434 : f32 to vector<1x256xf32>
    %438 = arith.mulf %437, %436 : vector<1x256xf32>
    %439 = vector.extract_strided_slice %433 {offsets = [1, 0], sizes = [1, 256], strides = [1, 1]} : vector<2x256xf32> to vector<1x256xf32>
    %440 = vector.broadcast %435 : f32 to vector<1x256xf32>
    %441 = arith.mulf %440, %439 : vector<1x256xf32>
    %442 = arith.addf %438, %441 : vector<1x256xf32>
    %c29_146 = arith.constant 29 : index
    %c0_147 = arith.constant 0 : index
    %443 = vector.load %arg8[%c29_146, %c0_147] : memref<49x256xf32, #tpu.memory_space<vmem>>, vector<1x256xf32>
    %444 = arith.mulf %442, %443 : vector<1x256xf32>
    %445 = arith.addf %432, %444 : vector<1x256xf32>
    %c248_i32 = arith.constant 248 : i32
    %446 = tpu.dynamic_rotate %55 by %c248_i32 dim 1 : vector<2x256xf32>, i32 -> vector<2x256xf32>
    %c0_148 = arith.constant 0 : index
    %c30 = arith.constant 30 : index
    %447 = memref.load %arg9[%c0_148, %c30] : memref<2x98xf32, #tpu.memory_space<smem>>
    %c0_149 = arith.constant 0 : index
    %c79 = arith.constant 79 : index
    %448 = memref.load %arg9[%c0_149, %c79] : memref<2x98xf32, #tpu.memory_space<smem>>
    %449 = vector.extract_strided_slice %446 {offsets = [0, 0], sizes = [1, 256], strides = [1, 1]} : vector<2x256xf32> to vector<1x256xf32>
    %450 = vector.broadcast %447 : f32 to vector<1x256xf32>
    %451 = arith.mulf %450, %449 : vector<1x256xf32>
    %452 = vector.extract_strided_slice %446 {offsets = [1, 0], sizes = [1, 256], strides = [1, 1]} : vector<2x256xf32> to vector<1x256xf32>
    %453 = vector.broadcast %448 : f32 to vector<1x256xf32>
    %454 = arith.mulf %453, %452 : vector<1x256xf32>
    %455 = arith.addf %451, %454 : vector<1x256xf32>
    %c30_150 = arith.constant 30 : index
    %c0_151 = arith.constant 0 : index
    %456 = vector.load %arg8[%c30_150, %c0_151] : memref<49x256xf32, #tpu.memory_space<vmem>>, vector<1x256xf32>
    %457 = arith.mulf %455, %456 : vector<1x256xf32>
    %458 = arith.addf %445, %457 : vector<1x256xf32>
    %c247_i32 = arith.constant 247 : i32
    %459 = tpu.dynamic_rotate %55 by %c247_i32 dim 1 : vector<2x256xf32>, i32 -> vector<2x256xf32>
    %c0_152 = arith.constant 0 : index
    %c31 = arith.constant 31 : index
    %460 = memref.load %arg9[%c0_152, %c31] : memref<2x98xf32, #tpu.memory_space<smem>>
    %c0_153 = arith.constant 0 : index
    %c80 = arith.constant 80 : index
    %461 = memref.load %arg9[%c0_153, %c80] : memref<2x98xf32, #tpu.memory_space<smem>>
    %462 = vector.extract_strided_slice %459 {offsets = [0, 0], sizes = [1, 256], strides = [1, 1]} : vector<2x256xf32> to vector<1x256xf32>
    %463 = vector.broadcast %460 : f32 to vector<1x256xf32>
    %464 = arith.mulf %463, %462 : vector<1x256xf32>
    %465 = vector.extract_strided_slice %459 {offsets = [1, 0], sizes = [1, 256], strides = [1, 1]} : vector<2x256xf32> to vector<1x256xf32>
    %466 = vector.broadcast %461 : f32 to vector<1x256xf32>
    %467 = arith.mulf %466, %465 : vector<1x256xf32>
    %468 = arith.addf %464, %467 : vector<1x256xf32>
    %c31_154 = arith.constant 31 : index
    %c0_155 = arith.constant 0 : index
    %469 = vector.load %arg8[%c31_154, %c0_155] : memref<49x256xf32, #tpu.memory_space<vmem>>, vector<1x256xf32>
    %470 = arith.mulf %468, %469 : vector<1x256xf32>
    %471 = arith.addf %458, %470 : vector<1x256xf32>
    %c246_i32 = arith.constant 246 : i32
    %472 = tpu.dynamic_rotate %55 by %c246_i32 dim 1 : vector<2x256xf32>, i32 -> vector<2x256xf32>
    %c0_156 = arith.constant 0 : index
    %c32 = arith.constant 32 : index
    %473 = memref.load %arg9[%c0_156, %c32] : memref<2x98xf32, #tpu.memory_space<smem>>
    %c0_157 = arith.constant 0 : index
    %c81 = arith.constant 81 : index
    %474 = memref.load %arg9[%c0_157, %c81] : memref<2x98xf32, #tpu.memory_space<smem>>
    %475 = vector.extract_strided_slice %472 {offsets = [0, 0], sizes = [1, 256], strides = [1, 1]} : vector<2x256xf32> to vector<1x256xf32>
    %476 = vector.broadcast %473 : f32 to vector<1x256xf32>
    %477 = arith.mulf %476, %475 : vector<1x256xf32>
    %478 = vector.extract_strided_slice %472 {offsets = [1, 0], sizes = [1, 256], strides = [1, 1]} : vector<2x256xf32> to vector<1x256xf32>
    %479 = vector.broadcast %474 : f32 to vector<1x256xf32>
    %480 = arith.mulf %479, %478 : vector<1x256xf32>
    %481 = arith.addf %477, %480 : vector<1x256xf32>
    %c32_158 = arith.constant 32 : index
    %c0_159 = arith.constant 0 : index
    %482 = vector.load %arg8[%c32_158, %c0_159] : memref<49x256xf32, #tpu.memory_space<vmem>>, vector<1x256xf32>
    %483 = arith.mulf %481, %482 : vector<1x256xf32>
    %484 = arith.addf %471, %483 : vector<1x256xf32>
    %c245_i32 = arith.constant 245 : i32
    %485 = tpu.dynamic_rotate %55 by %c245_i32 dim 1 : vector<2x256xf32>, i32 -> vector<2x256xf32>
    %c0_160 = arith.constant 0 : index
    %c33 = arith.constant 33 : index
    %486 = memref.load %arg9[%c0_160, %c33] : memref<2x98xf32, #tpu.memory_space<smem>>
    %c0_161 = arith.constant 0 : index
    %c82 = arith.constant 82 : index
    %487 = memref.load %arg9[%c0_161, %c82] : memref<2x98xf32, #tpu.memory_space<smem>>
    %488 = vector.extract_strided_slice %485 {offsets = [0, 0], sizes = [1, 256], strides = [1, 1]} : vector<2x256xf32> to vector<1x256xf32>
    %489 = vector.broadcast %486 : f32 to vector<1x256xf32>
    %490 = arith.mulf %489, %488 : vector<1x256xf32>
    %491 = vector.extract_strided_slice %485 {offsets = [1, 0], sizes = [1, 256], strides = [1, 1]} : vector<2x256xf32> to vector<1x256xf32>
    %492 = vector.broadcast %487 : f32 to vector<1x256xf32>
    %493 = arith.mulf %492, %491 : vector<1x256xf32>
    %494 = arith.addf %490, %493 : vector<1x256xf32>
    %c33_162 = arith.constant 33 : index
    %c0_163 = arith.constant 0 : index
    %495 = vector.load %arg8[%c33_162, %c0_163] : memref<49x256xf32, #tpu.memory_space<vmem>>, vector<1x256xf32>
    %496 = arith.mulf %494, %495 : vector<1x256xf32>
    %497 = arith.addf %484, %496 : vector<1x256xf32>
    %c244_i32 = arith.constant 244 : i32
    %498 = tpu.dynamic_rotate %55 by %c244_i32 dim 1 : vector<2x256xf32>, i32 -> vector<2x256xf32>
    %c0_164 = arith.constant 0 : index
    %c34 = arith.constant 34 : index
    %499 = memref.load %arg9[%c0_164, %c34] : memref<2x98xf32, #tpu.memory_space<smem>>
    %c0_165 = arith.constant 0 : index
    %c83 = arith.constant 83 : index
    %500 = memref.load %arg9[%c0_165, %c83] : memref<2x98xf32, #tpu.memory_space<smem>>
    %501 = vector.extract_strided_slice %498 {offsets = [0, 0], sizes = [1, 256], strides = [1, 1]} : vector<2x256xf32> to vector<1x256xf32>
    %502 = vector.broadcast %499 : f32 to vector<1x256xf32>
    %503 = arith.mulf %502, %501 : vector<1x256xf32>
    %504 = vector.extract_strided_slice %498 {offsets = [1, 0], sizes = [1, 256], strides = [1, 1]} : vector<2x256xf32> to vector<1x256xf32>
    %505 = vector.broadcast %500 : f32 to vector<1x256xf32>
    %506 = arith.mulf %505, %504 : vector<1x256xf32>
    %507 = arith.addf %503, %506 : vector<1x256xf32>
    %c34_166 = arith.constant 34 : index
    %c0_167 = arith.constant 0 : index
    %508 = vector.load %arg8[%c34_166, %c0_167] : memref<49x256xf32, #tpu.memory_space<vmem>>, vector<1x256xf32>
    %509 = arith.mulf %507, %508 : vector<1x256xf32>
    %510 = arith.addf %497, %509 : vector<1x256xf32>
    %c241_i32 = arith.constant 241 : i32
    %511 = tpu.dynamic_rotate %55 by %c241_i32 dim 1 : vector<2x256xf32>, i32 -> vector<2x256xf32>
    %c0_168 = arith.constant 0 : index
    %c35 = arith.constant 35 : index
    %512 = memref.load %arg9[%c0_168, %c35] : memref<2x98xf32, #tpu.memory_space<smem>>
    %c0_169 = arith.constant 0 : index
    %c84 = arith.constant 84 : index
    %513 = memref.load %arg9[%c0_169, %c84] : memref<2x98xf32, #tpu.memory_space<smem>>
    %514 = vector.extract_strided_slice %511 {offsets = [0, 0], sizes = [1, 256], strides = [1, 1]} : vector<2x256xf32> to vector<1x256xf32>
    %515 = vector.broadcast %512 : f32 to vector<1x256xf32>
    %516 = arith.mulf %515, %514 : vector<1x256xf32>
    %517 = vector.extract_strided_slice %511 {offsets = [1, 0], sizes = [1, 256], strides = [1, 1]} : vector<2x256xf32> to vector<1x256xf32>
    %518 = vector.broadcast %513 : f32 to vector<1x256xf32>
    %519 = arith.mulf %518, %517 : vector<1x256xf32>
    %520 = arith.addf %516, %519 : vector<1x256xf32>
    %c35_170 = arith.constant 35 : index
    %c0_171 = arith.constant 0 : index
    %521 = vector.load %arg8[%c35_170, %c0_171] : memref<49x256xf32, #tpu.memory_space<vmem>>, vector<1x256xf32>
    %522 = arith.mulf %520, %521 : vector<1x256xf32>
    %523 = arith.addf %510, %522 : vector<1x256xf32>
    %c240_i32 = arith.constant 240 : i32
    %524 = tpu.dynamic_rotate %55 by %c240_i32 dim 1 : vector<2x256xf32>, i32 -> vector<2x256xf32>
    %c0_172 = arith.constant 0 : index
    %c36 = arith.constant 36 : index
    %525 = memref.load %arg9[%c0_172, %c36] : memref<2x98xf32, #tpu.memory_space<smem>>
    %c0_173 = arith.constant 0 : index
    %c85 = arith.constant 85 : index
    %526 = memref.load %arg9[%c0_173, %c85] : memref<2x98xf32, #tpu.memory_space<smem>>
    %527 = vector.extract_strided_slice %524 {offsets = [0, 0], sizes = [1, 256], strides = [1, 1]} : vector<2x256xf32> to vector<1x256xf32>
    %528 = vector.broadcast %525 : f32 to vector<1x256xf32>
    %529 = arith.mulf %528, %527 : vector<1x256xf32>
    %530 = vector.extract_strided_slice %524 {offsets = [1, 0], sizes = [1, 256], strides = [1, 1]} : vector<2x256xf32> to vector<1x256xf32>
    %531 = vector.broadcast %526 : f32 to vector<1x256xf32>
    %532 = arith.mulf %531, %530 : vector<1x256xf32>
    %533 = arith.addf %529, %532 : vector<1x256xf32>
    %c36_174 = arith.constant 36 : index
    %c0_175 = arith.constant 0 : index
    %534 = vector.load %arg8[%c36_174, %c0_175] : memref<49x256xf32, #tpu.memory_space<vmem>>, vector<1x256xf32>
    %535 = arith.mulf %533, %534 : vector<1x256xf32>
    %536 = arith.addf %523, %535 : vector<1x256xf32>
    %c239_i32 = arith.constant 239 : i32
    %537 = tpu.dynamic_rotate %55 by %c239_i32 dim 1 : vector<2x256xf32>, i32 -> vector<2x256xf32>
    %c0_176 = arith.constant 0 : index
    %c37 = arith.constant 37 : index
    %538 = memref.load %arg9[%c0_176, %c37] : memref<2x98xf32, #tpu.memory_space<smem>>
    %c0_177 = arith.constant 0 : index
    %c86 = arith.constant 86 : index
    %539 = memref.load %arg9[%c0_177, %c86] : memref<2x98xf32, #tpu.memory_space<smem>>
    %540 = vector.extract_strided_slice %537 {offsets = [0, 0], sizes = [1, 256], strides = [1, 1]} : vector<2x256xf32> to vector<1x256xf32>
    %541 = vector.broadcast %538 : f32 to vector<1x256xf32>
    %542 = arith.mulf %541, %540 : vector<1x256xf32>
    %543 = vector.extract_strided_slice %537 {offsets = [1, 0], sizes = [1, 256], strides = [1, 1]} : vector<2x256xf32> to vector<1x256xf32>
    %544 = vector.broadcast %539 : f32 to vector<1x256xf32>
    %545 = arith.mulf %544, %543 : vector<1x256xf32>
    %546 = arith.addf %542, %545 : vector<1x256xf32>
    %c37_178 = arith.constant 37 : index
    %c0_179 = arith.constant 0 : index
    %547 = vector.load %arg8[%c37_178, %c0_179] : memref<49x256xf32, #tpu.memory_space<vmem>>, vector<1x256xf32>
    %548 = arith.mulf %546, %547 : vector<1x256xf32>
    %549 = arith.addf %536, %548 : vector<1x256xf32>
    %c238_i32 = arith.constant 238 : i32
    %550 = tpu.dynamic_rotate %55 by %c238_i32 dim 1 : vector<2x256xf32>, i32 -> vector<2x256xf32>
    %c0_180 = arith.constant 0 : index
    %c38 = arith.constant 38 : index
    %551 = memref.load %arg9[%c0_180, %c38] : memref<2x98xf32, #tpu.memory_space<smem>>
    %c0_181 = arith.constant 0 : index
    %c87 = arith.constant 87 : index
    %552 = memref.load %arg9[%c0_181, %c87] : memref<2x98xf32, #tpu.memory_space<smem>>
    %553 = vector.extract_strided_slice %550 {offsets = [0, 0], sizes = [1, 256], strides = [1, 1]} : vector<2x256xf32> to vector<1x256xf32>
    %554 = vector.broadcast %551 : f32 to vector<1x256xf32>
    %555 = arith.mulf %554, %553 : vector<1x256xf32>
    %556 = vector.extract_strided_slice %550 {offsets = [1, 0], sizes = [1, 256], strides = [1, 1]} : vector<2x256xf32> to vector<1x256xf32>
    %557 = vector.broadcast %552 : f32 to vector<1x256xf32>
    %558 = arith.mulf %557, %556 : vector<1x256xf32>
    %559 = arith.addf %555, %558 : vector<1x256xf32>
    %c38_182 = arith.constant 38 : index
    %c0_183 = arith.constant 0 : index
    %560 = vector.load %arg8[%c38_182, %c0_183] : memref<49x256xf32, #tpu.memory_space<vmem>>, vector<1x256xf32>
    %561 = arith.mulf %559, %560 : vector<1x256xf32>
    %562 = arith.addf %549, %561 : vector<1x256xf32>
    %c237_i32 = arith.constant 237 : i32
    %563 = tpu.dynamic_rotate %55 by %c237_i32 dim 1 : vector<2x256xf32>, i32 -> vector<2x256xf32>
    %c0_184 = arith.constant 0 : index
    %c39 = arith.constant 39 : index
    %564 = memref.load %arg9[%c0_184, %c39] : memref<2x98xf32, #tpu.memory_space<smem>>
    %c0_185 = arith.constant 0 : index
    %c88 = arith.constant 88 : index
    %565 = memref.load %arg9[%c0_185, %c88] : memref<2x98xf32, #tpu.memory_space<smem>>
    %566 = vector.extract_strided_slice %563 {offsets = [0, 0], sizes = [1, 256], strides = [1, 1]} : vector<2x256xf32> to vector<1x256xf32>
    %567 = vector.broadcast %564 : f32 to vector<1x256xf32>
    %568 = arith.mulf %567, %566 : vector<1x256xf32>
    %569 = vector.extract_strided_slice %563 {offsets = [1, 0], sizes = [1, 256], strides = [1, 1]} : vector<2x256xf32> to vector<1x256xf32>
    %570 = vector.broadcast %565 : f32 to vector<1x256xf32>
    %571 = arith.mulf %570, %569 : vector<1x256xf32>
    %572 = arith.addf %568, %571 : vector<1x256xf32>
    %c39_186 = arith.constant 39 : index
    %c0_187 = arith.constant 0 : index
    %573 = vector.load %arg8[%c39_186, %c0_187] : memref<49x256xf32, #tpu.memory_space<vmem>>, vector<1x256xf32>
    %574 = arith.mulf %572, %573 : vector<1x256xf32>
    %575 = arith.addf %562, %574 : vector<1x256xf32>
    %c236_i32 = arith.constant 236 : i32
    %576 = tpu.dynamic_rotate %55 by %c236_i32 dim 1 : vector<2x256xf32>, i32 -> vector<2x256xf32>
    %c0_188 = arith.constant 0 : index
    %c40 = arith.constant 40 : index
    %577 = memref.load %arg9[%c0_188, %c40] : memref<2x98xf32, #tpu.memory_space<smem>>
    %c0_189 = arith.constant 0 : index
    %c89 = arith.constant 89 : index
    %578 = memref.load %arg9[%c0_189, %c89] : memref<2x98xf32, #tpu.memory_space<smem>>
    %579 = vector.extract_strided_slice %576 {offsets = [0, 0], sizes = [1, 256], strides = [1, 1]} : vector<2x256xf32> to vector<1x256xf32>
    %580 = vector.broadcast %577 : f32 to vector<1x256xf32>
    %581 = arith.mulf %580, %579 : vector<1x256xf32>
    %582 = vector.extract_strided_slice %576 {offsets = [1, 0], sizes = [1, 256], strides = [1, 1]} : vector<2x256xf32> to vector<1x256xf32>
    %583 = vector.broadcast %578 : f32 to vector<1x256xf32>
    %584 = arith.mulf %583, %582 : vector<1x256xf32>
    %585 = arith.addf %581, %584 : vector<1x256xf32>
    %c40_190 = arith.constant 40 : index
    %c0_191 = arith.constant 0 : index
    %586 = vector.load %arg8[%c40_190, %c0_191] : memref<49x256xf32, #tpu.memory_space<vmem>>, vector<1x256xf32>
    %587 = arith.mulf %585, %586 : vector<1x256xf32>
    %588 = arith.addf %575, %587 : vector<1x256xf32>
    %c235_i32 = arith.constant 235 : i32
    %589 = tpu.dynamic_rotate %55 by %c235_i32 dim 1 : vector<2x256xf32>, i32 -> vector<2x256xf32>
    %c0_192 = arith.constant 0 : index
    %c41 = arith.constant 41 : index
    %590 = memref.load %arg9[%c0_192, %c41] : memref<2x98xf32, #tpu.memory_space<smem>>
    %c0_193 = arith.constant 0 : index
    %c90 = arith.constant 90 : index
    %591 = memref.load %arg9[%c0_193, %c90] : memref<2x98xf32, #tpu.memory_space<smem>>
    %592 = vector.extract_strided_slice %589 {offsets = [0, 0], sizes = [1, 256], strides = [1, 1]} : vector<2x256xf32> to vector<1x256xf32>
    %593 = vector.broadcast %590 : f32 to vector<1x256xf32>
    %594 = arith.mulf %593, %592 : vector<1x256xf32>
    %595 = vector.extract_strided_slice %589 {offsets = [1, 0], sizes = [1, 256], strides = [1, 1]} : vector<2x256xf32> to vector<1x256xf32>
    %596 = vector.broadcast %591 : f32 to vector<1x256xf32>
    %597 = arith.mulf %596, %595 : vector<1x256xf32>
    %598 = arith.addf %594, %597 : vector<1x256xf32>
    %c41_194 = arith.constant 41 : index
    %c0_195 = arith.constant 0 : index
    %599 = vector.load %arg8[%c41_194, %c0_195] : memref<49x256xf32, #tpu.memory_space<vmem>>, vector<1x256xf32>
    %600 = arith.mulf %598, %599 : vector<1x256xf32>
    %601 = arith.addf %588, %600 : vector<1x256xf32>
    %c232_i32 = arith.constant 232 : i32
    %602 = tpu.dynamic_rotate %55 by %c232_i32 dim 1 : vector<2x256xf32>, i32 -> vector<2x256xf32>
    %c0_196 = arith.constant 0 : index
    %c42 = arith.constant 42 : index
    %603 = memref.load %arg9[%c0_196, %c42] : memref<2x98xf32, #tpu.memory_space<smem>>
    %c0_197 = arith.constant 0 : index
    %c91 = arith.constant 91 : index
    %604 = memref.load %arg9[%c0_197, %c91] : memref<2x98xf32, #tpu.memory_space<smem>>
    %605 = vector.extract_strided_slice %602 {offsets = [0, 0], sizes = [1, 256], strides = [1, 1]} : vector<2x256xf32> to vector<1x256xf32>
    %606 = vector.broadcast %603 : f32 to vector<1x256xf32>
    %607 = arith.mulf %606, %605 : vector<1x256xf32>
    %608 = vector.extract_strided_slice %602 {offsets = [1, 0], sizes = [1, 256], strides = [1, 1]} : vector<2x256xf32> to vector<1x256xf32>
    %609 = vector.broadcast %604 : f32 to vector<1x256xf32>
    %610 = arith.mulf %609, %608 : vector<1x256xf32>
    %611 = arith.addf %607, %610 : vector<1x256xf32>
    %c42_198 = arith.constant 42 : index
    %c0_199 = arith.constant 0 : index
    %612 = vector.load %arg8[%c42_198, %c0_199] : memref<49x256xf32, #tpu.memory_space<vmem>>, vector<1x256xf32>
    %613 = arith.mulf %611, %612 : vector<1x256xf32>
    %614 = arith.addf %601, %613 : vector<1x256xf32>
    %c231_i32 = arith.constant 231 : i32
    %615 = tpu.dynamic_rotate %55 by %c231_i32 dim 1 : vector<2x256xf32>, i32 -> vector<2x256xf32>
    %c0_200 = arith.constant 0 : index
    %c43 = arith.constant 43 : index
    %616 = memref.load %arg9[%c0_200, %c43] : memref<2x98xf32, #tpu.memory_space<smem>>
    %c0_201 = arith.constant 0 : index
    %c92 = arith.constant 92 : index
    %617 = memref.load %arg9[%c0_201, %c92] : memref<2x98xf32, #tpu.memory_space<smem>>
    %618 = vector.extract_strided_slice %615 {offsets = [0, 0], sizes = [1, 256], strides = [1, 1]} : vector<2x256xf32> to vector<1x256xf32>
    %619 = vector.broadcast %616 : f32 to vector<1x256xf32>
    %620 = arith.mulf %619, %618 : vector<1x256xf32>
    %621 = vector.extract_strided_slice %615 {offsets = [1, 0], sizes = [1, 256], strides = [1, 1]} : vector<2x256xf32> to vector<1x256xf32>
    %622 = vector.broadcast %617 : f32 to vector<1x256xf32>
    %623 = arith.mulf %622, %621 : vector<1x256xf32>
    %624 = arith.addf %620, %623 : vector<1x256xf32>
    %c43_202 = arith.constant 43 : index
    %c0_203 = arith.constant 0 : index
    %625 = vector.load %arg8[%c43_202, %c0_203] : memref<49x256xf32, #tpu.memory_space<vmem>>, vector<1x256xf32>
    %626 = arith.mulf %624, %625 : vector<1x256xf32>
    %627 = arith.addf %614, %626 : vector<1x256xf32>
    %c230_i32 = arith.constant 230 : i32
    %628 = tpu.dynamic_rotate %55 by %c230_i32 dim 1 : vector<2x256xf32>, i32 -> vector<2x256xf32>
    %c0_204 = arith.constant 0 : index
    %c44 = arith.constant 44 : index
    %629 = memref.load %arg9[%c0_204, %c44] : memref<2x98xf32, #tpu.memory_space<smem>>
    %c0_205 = arith.constant 0 : index
    %c93 = arith.constant 93 : index
    %630 = memref.load %arg9[%c0_205, %c93] : memref<2x98xf32, #tpu.memory_space<smem>>
    %631 = vector.extract_strided_slice %628 {offsets = [0, 0], sizes = [1, 256], strides = [1, 1]} : vector<2x256xf32> to vector<1x256xf32>
    %632 = vector.broadcast %629 : f32 to vector<1x256xf32>
    %633 = arith.mulf %632, %631 : vector<1x256xf32>
    %634 = vector.extract_strided_slice %628 {offsets = [1, 0], sizes = [1, 256], strides = [1, 1]} : vector<2x256xf32> to vector<1x256xf32>
    %635 = vector.broadcast %630 : f32 to vector<1x256xf32>
    %636 = arith.mulf %635, %634 : vector<1x256xf32>
    %637 = arith.addf %633, %636 : vector<1x256xf32>
    %c44_206 = arith.constant 44 : index
    %c0_207 = arith.constant 0 : index
    %638 = vector.load %arg8[%c44_206, %c0_207] : memref<49x256xf32, #tpu.memory_space<vmem>>, vector<1x256xf32>
    %639 = arith.mulf %637, %638 : vector<1x256xf32>
    %640 = arith.addf %627, %639 : vector<1x256xf32>
    %c229_i32 = arith.constant 229 : i32
    %641 = tpu.dynamic_rotate %55 by %c229_i32 dim 1 : vector<2x256xf32>, i32 -> vector<2x256xf32>
    %c0_208 = arith.constant 0 : index
    %c45 = arith.constant 45 : index
    %642 = memref.load %arg9[%c0_208, %c45] : memref<2x98xf32, #tpu.memory_space<smem>>
    %c0_209 = arith.constant 0 : index
    %c94 = arith.constant 94 : index
    %643 = memref.load %arg9[%c0_209, %c94] : memref<2x98xf32, #tpu.memory_space<smem>>
    %644 = vector.extract_strided_slice %641 {offsets = [0, 0], sizes = [1, 256], strides = [1, 1]} : vector<2x256xf32> to vector<1x256xf32>
    %645 = vector.broadcast %642 : f32 to vector<1x256xf32>
    %646 = arith.mulf %645, %644 : vector<1x256xf32>
    %647 = vector.extract_strided_slice %641 {offsets = [1, 0], sizes = [1, 256], strides = [1, 1]} : vector<2x256xf32> to vector<1x256xf32>
    %648 = vector.broadcast %643 : f32 to vector<1x256xf32>
    %649 = arith.mulf %648, %647 : vector<1x256xf32>
    %650 = arith.addf %646, %649 : vector<1x256xf32>
    %c45_210 = arith.constant 45 : index
    %c0_211 = arith.constant 0 : index
    %651 = vector.load %arg8[%c45_210, %c0_211] : memref<49x256xf32, #tpu.memory_space<vmem>>, vector<1x256xf32>
    %652 = arith.mulf %650, %651 : vector<1x256xf32>
    %653 = arith.addf %640, %652 : vector<1x256xf32>
    %c228_i32 = arith.constant 228 : i32
    %654 = tpu.dynamic_rotate %55 by %c228_i32 dim 1 : vector<2x256xf32>, i32 -> vector<2x256xf32>
    %c0_212 = arith.constant 0 : index
    %c46 = arith.constant 46 : index
    %655 = memref.load %arg9[%c0_212, %c46] : memref<2x98xf32, #tpu.memory_space<smem>>
    %c0_213 = arith.constant 0 : index
    %c95 = arith.constant 95 : index
    %656 = memref.load %arg9[%c0_213, %c95] : memref<2x98xf32, #tpu.memory_space<smem>>
    %657 = vector.extract_strided_slice %654 {offsets = [0, 0], sizes = [1, 256], strides = [1, 1]} : vector<2x256xf32> to vector<1x256xf32>
    %658 = vector.broadcast %655 : f32 to vector<1x256xf32>
    %659 = arith.mulf %658, %657 : vector<1x256xf32>
    %660 = vector.extract_strided_slice %654 {offsets = [1, 0], sizes = [1, 256], strides = [1, 1]} : vector<2x256xf32> to vector<1x256xf32>
    %661 = vector.broadcast %656 : f32 to vector<1x256xf32>
    %662 = arith.mulf %661, %660 : vector<1x256xf32>
    %663 = arith.addf %659, %662 : vector<1x256xf32>
    %c46_214 = arith.constant 46 : index
    %c0_215 = arith.constant 0 : index
    %664 = vector.load %arg8[%c46_214, %c0_215] : memref<49x256xf32, #tpu.memory_space<vmem>>, vector<1x256xf32>
    %665 = arith.mulf %663, %664 : vector<1x256xf32>
    %666 = arith.addf %653, %665 : vector<1x256xf32>
    %c227_i32 = arith.constant 227 : i32
    %667 = tpu.dynamic_rotate %55 by %c227_i32 dim 1 : vector<2x256xf32>, i32 -> vector<2x256xf32>
    %c0_216 = arith.constant 0 : index
    %c47 = arith.constant 47 : index
    %668 = memref.load %arg9[%c0_216, %c47] : memref<2x98xf32, #tpu.memory_space<smem>>
    %c0_217 = arith.constant 0 : index
    %c96 = arith.constant 96 : index
    %669 = memref.load %arg9[%c0_217, %c96] : memref<2x98xf32, #tpu.memory_space<smem>>
    %670 = vector.extract_strided_slice %667 {offsets = [0, 0], sizes = [1, 256], strides = [1, 1]} : vector<2x256xf32> to vector<1x256xf32>
    %671 = vector.broadcast %668 : f32 to vector<1x256xf32>
    %672 = arith.mulf %671, %670 : vector<1x256xf32>
    %673 = vector.extract_strided_slice %667 {offsets = [1, 0], sizes = [1, 256], strides = [1, 1]} : vector<2x256xf32> to vector<1x256xf32>
    %674 = vector.broadcast %669 : f32 to vector<1x256xf32>
    %675 = arith.mulf %674, %673 : vector<1x256xf32>
    %676 = arith.addf %672, %675 : vector<1x256xf32>
    %c47_218 = arith.constant 47 : index
    %c0_219 = arith.constant 0 : index
    %677 = vector.load %arg8[%c47_218, %c0_219] : memref<49x256xf32, #tpu.memory_space<vmem>>, vector<1x256xf32>
    %678 = arith.mulf %676, %677 : vector<1x256xf32>
    %679 = arith.addf %666, %678 : vector<1x256xf32>
    %c226_i32 = arith.constant 226 : i32
    %680 = tpu.dynamic_rotate %55 by %c226_i32 dim 1 : vector<2x256xf32>, i32 -> vector<2x256xf32>
    %c0_220 = arith.constant 0 : index
    %c48 = arith.constant 48 : index
    %681 = memref.load %arg9[%c0_220, %c48] : memref<2x98xf32, #tpu.memory_space<smem>>
    %c0_221 = arith.constant 0 : index
    %c97 = arith.constant 97 : index
    %682 = memref.load %arg9[%c0_221, %c97] : memref<2x98xf32, #tpu.memory_space<smem>>
    %683 = vector.extract_strided_slice %680 {offsets = [0, 0], sizes = [1, 256], strides = [1, 1]} : vector<2x256xf32> to vector<1x256xf32>
    %684 = vector.broadcast %681 : f32 to vector<1x256xf32>
    %685 = arith.mulf %684, %683 : vector<1x256xf32>
    %686 = vector.extract_strided_slice %680 {offsets = [1, 0], sizes = [1, 256], strides = [1, 1]} : vector<2x256xf32> to vector<1x256xf32>
    %687 = vector.broadcast %682 : f32 to vector<1x256xf32>
    %688 = arith.mulf %687, %686 : vector<1x256xf32>
    %689 = arith.addf %685, %688 : vector<1x256xf32>
    %c48_222 = arith.constant 48 : index
    %c0_223 = arith.constant 0 : index
    %690 = vector.load %arg8[%c48_222, %c0_223] : memref<49x256xf32, #tpu.memory_space<vmem>>, vector<1x256xf32>
    %691 = arith.mulf %689, %690 : vector<1x256xf32>
    %692 = arith.addf %679, %691 : vector<1x256xf32>
    %693 = arith.negf %692 : vector<1x256xf32>
    %694 = math.exp %693 : vector<1x256xf32>
    %cst_224 = arith.constant 1.000000e+00 : f32
    %695 = vector.broadcast %cst_224 : f32 to vector<1x256xf32>
    %696 = arith.addf %695, %694 : vector<1x256xf32>
    %697 = arith.divf %695, %696 : vector<1x256xf32>
    %698 = vector.broadcast %697 : vector<1x256xf32> to vector<64x256xf32>
    %699 = arith.mulf %48, %698 : vector<64x256xf32>
    %c0_225 = arith.constant 0 : index
    %c0_226 = arith.constant 0 : index
    %c0_227 = arith.constant 0 : index
    %700 = vector.load %arg6[%c0_225, %c0_226, %c0_227] : memref<2x4x64xf32, #tpu.memory_space<vmem>>, vector<1x4x64xf32>
    %701 = vector.shape_cast %700 : vector<1x4x64xf32> to vector<4x64xf32>
    %cst_228 = arith.constant dense<0.000000e+00> : vector<4x256xf32>
    %702 = tpu.matmul %701, %699, %cst_228 {dimension_numbers = #tpu.dot_dimension_numbers<[1], [0], [0], [1], [0, 0, 1, 1], [], []>} : vector<4x64xf32>, vector<64x256xf32>, vector<4x256xf32> -> vector<4x256xf32>
    %703 = arith.addf %7, %702 : vector<4x256xf32>
    %c0_229 = arith.constant 0 : index
    %c0_230 = arith.constant 0 : index
    %c0_231 = arith.constant 0 : index
    %704 = vector.load %arg7[%c0_229, %c0_230, %c0_231] : memref<2x4x1xf32, #tpu.memory_space<vmem>>, vector<1x4x1xf32>
    %705 = vector.shape_cast %704 : vector<1x4x1xf32> to vector<4x1xf32>
    %706 = vector.broadcast %705 : vector<4x1xf32> to vector<4x256xf32>
    %707 = arith.addf %703, %706 : vector<4x256xf32>
    %708 = vector.extract_strided_slice %1 {offsets = [4, 0], sizes = [4, 256], strides = [1, 1]} : vector<8x256xf32> to vector<4x256xf32>
    %c1_232 = arith.constant 1 : index
    %c0_233 = arith.constant 0 : index
    %c0_234 = arith.constant 0 : index
    %709 = vector.load %arg2[%c1_232, %c0_233, %c0_234] : memref<2x64x4xf32, #tpu.memory_space<vmem>>, vector<1x64x4xf32>
    %710 = vector.shape_cast %709 : vector<1x64x4xf32> to vector<64x4xf32>
    %cst_235 = arith.constant dense<0.000000e+00> : vector<64x256xf32>
    %711 = tpu.matmul %710, %708, %cst_235 {dimension_numbers = #tpu.dot_dimension_numbers<[1], [0], [0], [1], [0, 0, 1, 1], [], []>} : vector<64x4xf32>, vector<4x256xf32>, vector<64x256xf32> -> vector<64x256xf32>
    %c1_236 = arith.constant 1 : index
    %c0_237 = arith.constant 0 : index
    %c0_238 = arith.constant 0 : index
    %712 = vector.load %arg3[%c1_236, %c0_237, %c0_238] : memref<2x64x1xf32, #tpu.memory_space<vmem>>, vector<1x64x1xf32>
    %713 = vector.shape_cast %712 : vector<1x64x1xf32> to vector<64x1xf32>
    %714 = vector.broadcast %713 : vector<64x1xf32> to vector<64x256xf32>
    %715 = arith.addf %711, %714 : vector<64x256xf32>
    %cst_239 = arith.constant 1.000000e-01 : f32
    %716 = vector.broadcast %cst_239 : f32 to vector<64x256xf32>
    %717 = arith.mulf %716, %715 : vector<64x256xf32>
    %718 = arith.maximumf %715, %717 : vector<64x256xf32>
    %719 = vector.broadcast %6 : vector<1x256xf32> to vector<64x256xf32>
    %720 = arith.mulf %718, %719 : vector<64x256xf32>
    %cst_240 = arith.constant dense<0.000000e+00> : vector<64xf32>
    %721 = vector.multi_reduction <add>, %720, %cst_240 [1] : vector<64x256xf32> to vector<64xf32>
    %722 = vector.shape_cast %721 : vector<64xf32> to vector<64x1xf32>
    %cst_241 = arith.constant 0.0069444445 : f32
    %723 = vector.broadcast %cst_241 : f32 to vector<64x1xf32>
    %724 = arith.mulf %722, %723 : vector<64x1xf32>
    %cst_242 = arith.constant 0xFF800000 : f32
    %725 = vector.shape_cast %4 : vector<1x256xi1> to vector<1x256xi1>
    %726 = vector.broadcast %725 : vector<1x256xi1> to vector<64x256xi1>
    %727 = vector.broadcast %cst_242 : f32 to vector<64x256xf32>
    %728 = arith.select %726, %718, %727 : vector<64x256xi1>, vector<64x256xf32>
    %cst_243 = arith.constant dense<0xFF800000> : vector<64xf32>
    %729 = vector.multi_reduction <maximumf>, %728, %cst_243 [1] : vector<64x256xf32> to vector<64xf32>
    %730 = vector.shape_cast %729 : vector<64xf32> to vector<64x1xf32>
    %731 = tpu.concatenate %724, %730 in 1 : vector<64x1xf32>, vector<64x1xf32> -> vector<64x2xf32>
    %c1_244 = arith.constant 1 : index
    %c0_245 = arith.constant 0 : index
    %c0_246 = arith.constant 0 : index
    %732 = vector.load %arg4[%c1_244, %c0_245, %c0_246] : memref<2x4x64xf32, #tpu.memory_space<vmem>>, vector<1x4x64xf32>
    %733 = vector.shape_cast %732 : vector<1x4x64xf32> to vector<4x64xf32>
    %cst_247 = arith.constant dense<0.000000e+00> : vector<4x2xf32>
    %734 = tpu.matmul %733, %731, %cst_247 {dimension_numbers = #tpu.dot_dimension_numbers<[1], [0], [0], [1], [0, 0, 1, 1], [], []>} : vector<4x64xf32>, vector<64x2xf32>, vector<4x2xf32> -> vector<4x2xf32>
    %cst_248 = arith.constant 0.000000e+00 : f32
    %735 = vector.broadcast %cst_248 : f32 to vector<4x2xf32>
    %736 = arith.maximumf %734, %735 : vector<4x2xf32>
    %c1_249 = arith.constant 1 : index
    %c0_250 = arith.constant 0 : index
    %c0_251 = arith.constant 0 : index
    %737 = vector.load %arg5[%c1_249, %c0_250, %c0_251] : memref<2x64x4xf32, #tpu.memory_space<vmem>>, vector<1x64x4xf32>
    %738 = vector.shape_cast %737 : vector<1x64x4xf32> to vector<64x4xf32>
    %cst_252 = arith.constant dense<0.000000e+00> : vector<64x2xf32>
    %739 = tpu.matmul %738, %736, %cst_252 {dimension_numbers = #tpu.dot_dimension_numbers<[1], [0], [0], [1], [0, 0, 1, 1], [], []>} : vector<64x4xf32>, vector<4x2xf32>, vector<64x2xf32> -> vector<64x2xf32>
    %740 = vector.extract_strided_slice %739 {offsets = [0, 0], sizes = [64, 1], strides = [1, 1]} : vector<64x2xf32> to vector<64x1xf32>
    %741 = vector.extract_strided_slice %739 {offsets = [0, 1], sizes = [64, 1], strides = [1, 1]} : vector<64x2xf32> to vector<64x1xf32>
    %742 = arith.addf %740, %741 : vector<64x1xf32>
    %743 = arith.negf %742 : vector<64x1xf32>
    %744 = math.exp %743 : vector<64x1xf32>
    %cst_253 = arith.constant 1.000000e+00 : f32
    %745 = vector.broadcast %cst_253 : f32 to vector<64x1xf32>
    %746 = arith.addf %745, %744 : vector<64x1xf32>
    %747 = arith.divf %745, %746 : vector<64x1xf32>
    %748 = vector.broadcast %747 : vector<64x1xf32> to vector<64x256xf32>
    %749 = arith.mulf %718, %748 : vector<64x256xf32>
    %cst_254 = arith.constant dense<0.000000e+00> : vector<256xf32>
    %750 = vector.multi_reduction <add>, %749, %cst_254 [0] : vector<64x256xf32> to vector<256xf32>
    %751 = vector.shape_cast %750 : vector<256xf32> to vector<1x256xf32>
    %cst_255 = arith.constant 1.562500e-02 : f32
    %752 = vector.broadcast %cst_255 : f32 to vector<1x256xf32>
    %753 = arith.mulf %751, %752 : vector<1x256xf32>
    %cst_256 = arith.constant dense<0xFF800000> : vector<256xf32>
    %754 = vector.multi_reduction <maximumf>, %749, %cst_256 [0] : vector<64x256xf32> to vector<256xf32>
    %755 = vector.shape_cast %754 : vector<256xf32> to vector<1x256xf32>
    %756 = tpu.concatenate %753, %755 in 0 : vector<1x256xf32>, vector<1x256xf32> -> vector<2x256xf32>
    %cst_257 = arith.constant 0.000000e+00 : f32
    %757 = vector.broadcast %cst_257 : f32 to vector<1x256xf32>
    %c30_i32_258 = arith.constant 30 : i32
    %758 = tpu.dynamic_rotate %756 by %c30_i32_258 dim 1 : vector<2x256xf32>, i32 -> vector<2x256xf32>
    %c1_259 = arith.constant 1 : index
    %c0_260 = arith.constant 0 : index
    %759 = memref.load %arg9[%c1_259, %c0_260] : memref<2x98xf32, #tpu.memory_space<smem>>
    %c1_261 = arith.constant 1 : index
    %c49_262 = arith.constant 49 : index
    %760 = memref.load %arg9[%c1_261, %c49_262] : memref<2x98xf32, #tpu.memory_space<smem>>
    %761 = vector.extract_strided_slice %758 {offsets = [0, 0], sizes = [1, 256], strides = [1, 1]} : vector<2x256xf32> to vector<1x256xf32>
    %762 = vector.broadcast %759 : f32 to vector<1x256xf32>
    %763 = arith.mulf %762, %761 : vector<1x256xf32>
    %764 = vector.extract_strided_slice %758 {offsets = [1, 0], sizes = [1, 256], strides = [1, 1]} : vector<2x256xf32> to vector<1x256xf32>
    %765 = vector.broadcast %760 : f32 to vector<1x256xf32>
    %766 = arith.mulf %765, %764 : vector<1x256xf32>
    %767 = arith.addf %763, %766 : vector<1x256xf32>
    %c0_263 = arith.constant 0 : index
    %c0_264 = arith.constant 0 : index
    %768 = vector.load %arg8[%c0_263, %c0_264] : memref<49x256xf32, #tpu.memory_space<vmem>>, vector<1x256xf32>
    %769 = arith.mulf %767, %768 : vector<1x256xf32>
    %770 = arith.addf %757, %769 : vector<1x256xf32>
    %c29_i32_265 = arith.constant 29 : i32
    %771 = tpu.dynamic_rotate %756 by %c29_i32_265 dim 1 : vector<2x256xf32>, i32 -> vector<2x256xf32>
    %c1_266 = arith.constant 1 : index
    %c1_267 = arith.constant 1 : index
    %772 = memref.load %arg9[%c1_266, %c1_267] : memref<2x98xf32, #tpu.memory_space<smem>>
    %c1_268 = arith.constant 1 : index
    %c50_269 = arith.constant 50 : index
    %773 = memref.load %arg9[%c1_268, %c50_269] : memref<2x98xf32, #tpu.memory_space<smem>>
    %774 = vector.extract_strided_slice %771 {offsets = [0, 0], sizes = [1, 256], strides = [1, 1]} : vector<2x256xf32> to vector<1x256xf32>
    %775 = vector.broadcast %772 : f32 to vector<1x256xf32>
    %776 = arith.mulf %775, %774 : vector<1x256xf32>
    %777 = vector.extract_strided_slice %771 {offsets = [1, 0], sizes = [1, 256], strides = [1, 1]} : vector<2x256xf32> to vector<1x256xf32>
    %778 = vector.broadcast %773 : f32 to vector<1x256xf32>
    %779 = arith.mulf %778, %777 : vector<1x256xf32>
    %780 = arith.addf %776, %779 : vector<1x256xf32>
    %c1_270 = arith.constant 1 : index
    %c0_271 = arith.constant 0 : index
    %781 = vector.load %arg8[%c1_270, %c0_271] : memref<49x256xf32, #tpu.memory_space<vmem>>, vector<1x256xf32>
    %782 = arith.mulf %780, %781 : vector<1x256xf32>
    %783 = arith.addf %770, %782 : vector<1x256xf32>
    %c28_i32_272 = arith.constant 28 : i32
    %784 = tpu.dynamic_rotate %756 by %c28_i32_272 dim 1 : vector<2x256xf32>, i32 -> vector<2x256xf32>
    %c1_273 = arith.constant 1 : index
    %c2_274 = arith.constant 2 : index
    %785 = memref.load %arg9[%c1_273, %c2_274] : memref<2x98xf32, #tpu.memory_space<smem>>
    %c1_275 = arith.constant 1 : index
    %c51_276 = arith.constant 51 : index
    %786 = memref.load %arg9[%c1_275, %c51_276] : memref<2x98xf32, #tpu.memory_space<smem>>
    %787 = vector.extract_strided_slice %784 {offsets = [0, 0], sizes = [1, 256], strides = [1, 1]} : vector<2x256xf32> to vector<1x256xf32>
    %788 = vector.broadcast %785 : f32 to vector<1x256xf32>
    %789 = arith.mulf %788, %787 : vector<1x256xf32>
    %790 = vector.extract_strided_slice %784 {offsets = [1, 0], sizes = [1, 256], strides = [1, 1]} : vector<2x256xf32> to vector<1x256xf32>
    %791 = vector.broadcast %786 : f32 to vector<1x256xf32>
    %792 = arith.mulf %791, %790 : vector<1x256xf32>
    %793 = arith.addf %789, %792 : vector<1x256xf32>
    %c2_277 = arith.constant 2 : index
    %c0_278 = arith.constant 0 : index
    %794 = vector.load %arg8[%c2_277, %c0_278] : memref<49x256xf32, #tpu.memory_space<vmem>>, vector<1x256xf32>
    %795 = arith.mulf %793, %794 : vector<1x256xf32>
    %796 = arith.addf %783, %795 : vector<1x256xf32>
    %c27_i32_279 = arith.constant 27 : i32
    %797 = tpu.dynamic_rotate %756 by %c27_i32_279 dim 1 : vector<2x256xf32>, i32 -> vector<2x256xf32>
    %c1_280 = arith.constant 1 : index
    %c3_281 = arith.constant 3 : index
    %798 = memref.load %arg9[%c1_280, %c3_281] : memref<2x98xf32, #tpu.memory_space<smem>>
    %c1_282 = arith.constant 1 : index
    %c52_283 = arith.constant 52 : index
    %799 = memref.load %arg9[%c1_282, %c52_283] : memref<2x98xf32, #tpu.memory_space<smem>>
    %800 = vector.extract_strided_slice %797 {offsets = [0, 0], sizes = [1, 256], strides = [1, 1]} : vector<2x256xf32> to vector<1x256xf32>
    %801 = vector.broadcast %798 : f32 to vector<1x256xf32>
    %802 = arith.mulf %801, %800 : vector<1x256xf32>
    %803 = vector.extract_strided_slice %797 {offsets = [1, 0], sizes = [1, 256], strides = [1, 1]} : vector<2x256xf32> to vector<1x256xf32>
    %804 = vector.broadcast %799 : f32 to vector<1x256xf32>
    %805 = arith.mulf %804, %803 : vector<1x256xf32>
    %806 = arith.addf %802, %805 : vector<1x256xf32>
    %c3_284 = arith.constant 3 : index
    %c0_285 = arith.constant 0 : index
    %807 = vector.load %arg8[%c3_284, %c0_285] : memref<49x256xf32, #tpu.memory_space<vmem>>, vector<1x256xf32>
    %808 = arith.mulf %806, %807 : vector<1x256xf32>
    %809 = arith.addf %796, %808 : vector<1x256xf32>
    %c26_i32_286 = arith.constant 26 : i32
    %810 = tpu.dynamic_rotate %756 by %c26_i32_286 dim 1 : vector<2x256xf32>, i32 -> vector<2x256xf32>
    %c1_287 = arith.constant 1 : index
    %c4_288 = arith.constant 4 : index
    %811 = memref.load %arg9[%c1_287, %c4_288] : memref<2x98xf32, #tpu.memory_space<smem>>
    %c1_289 = arith.constant 1 : index
    %c53_290 = arith.constant 53 : index
    %812 = memref.load %arg9[%c1_289, %c53_290] : memref<2x98xf32, #tpu.memory_space<smem>>
    %813 = vector.extract_strided_slice %810 {offsets = [0, 0], sizes = [1, 256], strides = [1, 1]} : vector<2x256xf32> to vector<1x256xf32>
    %814 = vector.broadcast %811 : f32 to vector<1x256xf32>
    %815 = arith.mulf %814, %813 : vector<1x256xf32>
    %816 = vector.extract_strided_slice %810 {offsets = [1, 0], sizes = [1, 256], strides = [1, 1]} : vector<2x256xf32> to vector<1x256xf32>
    %817 = vector.broadcast %812 : f32 to vector<1x256xf32>
    %818 = arith.mulf %817, %816 : vector<1x256xf32>
    %819 = arith.addf %815, %818 : vector<1x256xf32>
    %c4_291 = arith.constant 4 : index
    %c0_292 = arith.constant 0 : index
    %820 = vector.load %arg8[%c4_291, %c0_292] : memref<49x256xf32, #tpu.memory_space<vmem>>, vector<1x256xf32>
    %821 = arith.mulf %819, %820 : vector<1x256xf32>
    %822 = arith.addf %809, %821 : vector<1x256xf32>
    %c25_i32_293 = arith.constant 25 : i32
    %823 = tpu.dynamic_rotate %756 by %c25_i32_293 dim 1 : vector<2x256xf32>, i32 -> vector<2x256xf32>
    %c1_294 = arith.constant 1 : index
    %c5_295 = arith.constant 5 : index
    %824 = memref.load %arg9[%c1_294, %c5_295] : memref<2x98xf32, #tpu.memory_space<smem>>
    %c1_296 = arith.constant 1 : index
    %c54_297 = arith.constant 54 : index
    %825 = memref.load %arg9[%c1_296, %c54_297] : memref<2x98xf32, #tpu.memory_space<smem>>
    %826 = vector.extract_strided_slice %823 {offsets = [0, 0], sizes = [1, 256], strides = [1, 1]} : vector<2x256xf32> to vector<1x256xf32>
    %827 = vector.broadcast %824 : f32 to vector<1x256xf32>
    %828 = arith.mulf %827, %826 : vector<1x256xf32>
    %829 = vector.extract_strided_slice %823 {offsets = [1, 0], sizes = [1, 256], strides = [1, 1]} : vector<2x256xf32> to vector<1x256xf32>
    %830 = vector.broadcast %825 : f32 to vector<1x256xf32>
    %831 = arith.mulf %830, %829 : vector<1x256xf32>
    %832 = arith.addf %828, %831 : vector<1x256xf32>
    %c5_298 = arith.constant 5 : index
    %c0_299 = arith.constant 0 : index
    %833 = vector.load %arg8[%c5_298, %c0_299] : memref<49x256xf32, #tpu.memory_space<vmem>>, vector<1x256xf32>
    %834 = arith.mulf %832, %833 : vector<1x256xf32>
    %835 = arith.addf %822, %834 : vector<1x256xf32>
    %c24_i32_300 = arith.constant 24 : i32
    %836 = tpu.dynamic_rotate %756 by %c24_i32_300 dim 1 : vector<2x256xf32>, i32 -> vector<2x256xf32>
    %c1_301 = arith.constant 1 : index
    %c6_302 = arith.constant 6 : index
    %837 = memref.load %arg9[%c1_301, %c6_302] : memref<2x98xf32, #tpu.memory_space<smem>>
    %c1_303 = arith.constant 1 : index
    %c55_304 = arith.constant 55 : index
    %838 = memref.load %arg9[%c1_303, %c55_304] : memref<2x98xf32, #tpu.memory_space<smem>>
    %839 = vector.extract_strided_slice %836 {offsets = [0, 0], sizes = [1, 256], strides = [1, 1]} : vector<2x256xf32> to vector<1x256xf32>
    %840 = vector.broadcast %837 : f32 to vector<1x256xf32>
    %841 = arith.mulf %840, %839 : vector<1x256xf32>
    %842 = vector.extract_strided_slice %836 {offsets = [1, 0], sizes = [1, 256], strides = [1, 1]} : vector<2x256xf32> to vector<1x256xf32>
    %843 = vector.broadcast %838 : f32 to vector<1x256xf32>
    %844 = arith.mulf %843, %842 : vector<1x256xf32>
    %845 = arith.addf %841, %844 : vector<1x256xf32>
    %c6_305 = arith.constant 6 : index
    %c0_306 = arith.constant 0 : index
    %846 = vector.load %arg8[%c6_305, %c0_306] : memref<49x256xf32, #tpu.memory_space<vmem>>, vector<1x256xf32>
    %847 = arith.mulf %845, %846 : vector<1x256xf32>
    %848 = arith.addf %835, %847 : vector<1x256xf32>
    %c21_i32_307 = arith.constant 21 : i32
    %849 = tpu.dynamic_rotate %756 by %c21_i32_307 dim 1 : vector<2x256xf32>, i32 -> vector<2x256xf32>
    %c1_308 = arith.constant 1 : index
    %c7_309 = arith.constant 7 : index
    %850 = memref.load %arg9[%c1_308, %c7_309] : memref<2x98xf32, #tpu.memory_space<smem>>
    %c1_310 = arith.constant 1 : index
    %c56_311 = arith.constant 56 : index
    %851 = memref.load %arg9[%c1_310, %c56_311] : memref<2x98xf32, #tpu.memory_space<smem>>
    %852 = vector.extract_strided_slice %849 {offsets = [0, 0], sizes = [1, 256], strides = [1, 1]} : vector<2x256xf32> to vector<1x256xf32>
    %853 = vector.broadcast %850 : f32 to vector<1x256xf32>
    %854 = arith.mulf %853, %852 : vector<1x256xf32>
    %855 = vector.extract_strided_slice %849 {offsets = [1, 0], sizes = [1, 256], strides = [1, 1]} : vector<2x256xf32> to vector<1x256xf32>
    %856 = vector.broadcast %851 : f32 to vector<1x256xf32>
    %857 = arith.mulf %856, %855 : vector<1x256xf32>
    %858 = arith.addf %854, %857 : vector<1x256xf32>
    %c7_312 = arith.constant 7 : index
    %c0_313 = arith.constant 0 : index
    %859 = vector.load %arg8[%c7_312, %c0_313] : memref<49x256xf32, #tpu.memory_space<vmem>>, vector<1x256xf32>
    %860 = arith.mulf %858, %859 : vector<1x256xf32>
    %861 = arith.addf %848, %860 : vector<1x256xf32>
    %c20_i32_314 = arith.constant 20 : i32
    %862 = tpu.dynamic_rotate %756 by %c20_i32_314 dim 1 : vector<2x256xf32>, i32 -> vector<2x256xf32>
    %c1_315 = arith.constant 1 : index
    %c8_316 = arith.constant 8 : index
    %863 = memref.load %arg9[%c1_315, %c8_316] : memref<2x98xf32, #tpu.memory_space<smem>>
    %c1_317 = arith.constant 1 : index
    %c57_318 = arith.constant 57 : index
    %864 = memref.load %arg9[%c1_317, %c57_318] : memref<2x98xf32, #tpu.memory_space<smem>>
    %865 = vector.extract_strided_slice %862 {offsets = [0, 0], sizes = [1, 256], strides = [1, 1]} : vector<2x256xf32> to vector<1x256xf32>
    %866 = vector.broadcast %863 : f32 to vector<1x256xf32>
    %867 = arith.mulf %866, %865 : vector<1x256xf32>
    %868 = vector.extract_strided_slice %862 {offsets = [1, 0], sizes = [1, 256], strides = [1, 1]} : vector<2x256xf32> to vector<1x256xf32>
    %869 = vector.broadcast %864 : f32 to vector<1x256xf32>
    %870 = arith.mulf %869, %868 : vector<1x256xf32>
    %871 = arith.addf %867, %870 : vector<1x256xf32>
    %c8_319 = arith.constant 8 : index
    %c0_320 = arith.constant 0 : index
    %872 = vector.load %arg8[%c8_319, %c0_320] : memref<49x256xf32, #tpu.memory_space<vmem>>, vector<1x256xf32>
    %873 = arith.mulf %871, %872 : vector<1x256xf32>
    %874 = arith.addf %861, %873 : vector<1x256xf32>
    %c19_i32_321 = arith.constant 19 : i32
    %875 = tpu.dynamic_rotate %756 by %c19_i32_321 dim 1 : vector<2x256xf32>, i32 -> vector<2x256xf32>
    %c1_322 = arith.constant 1 : index
    %c9_323 = arith.constant 9 : index
    %876 = memref.load %arg9[%c1_322, %c9_323] : memref<2x98xf32, #tpu.memory_space<smem>>
    %c1_324 = arith.constant 1 : index
    %c58_325 = arith.constant 58 : index
    %877 = memref.load %arg9[%c1_324, %c58_325] : memref<2x98xf32, #tpu.memory_space<smem>>
    %878 = vector.extract_strided_slice %875 {offsets = [0, 0], sizes = [1, 256], strides = [1, 1]} : vector<2x256xf32> to vector<1x256xf32>
    %879 = vector.broadcast %876 : f32 to vector<1x256xf32>
    %880 = arith.mulf %879, %878 : vector<1x256xf32>
    %881 = vector.extract_strided_slice %875 {offsets = [1, 0], sizes = [1, 256], strides = [1, 1]} : vector<2x256xf32> to vector<1x256xf32>
    %882 = vector.broadcast %877 : f32 to vector<1x256xf32>
    %883 = arith.mulf %882, %881 : vector<1x256xf32>
    %884 = arith.addf %880, %883 : vector<1x256xf32>
    %c9_326 = arith.constant 9 : index
    %c0_327 = arith.constant 0 : index
    %885 = vector.load %arg8[%c9_326, %c0_327] : memref<49x256xf32, #tpu.memory_space<vmem>>, vector<1x256xf32>
    %886 = arith.mulf %884, %885 : vector<1x256xf32>
    %887 = arith.addf %874, %886 : vector<1x256xf32>
    %c18_i32_328 = arith.constant 18 : i32
    %888 = tpu.dynamic_rotate %756 by %c18_i32_328 dim 1 : vector<2x256xf32>, i32 -> vector<2x256xf32>
    %c1_329 = arith.constant 1 : index
    %c10_330 = arith.constant 10 : index
    %889 = memref.load %arg9[%c1_329, %c10_330] : memref<2x98xf32, #tpu.memory_space<smem>>
    %c1_331 = arith.constant 1 : index
    %c59_332 = arith.constant 59 : index
    %890 = memref.load %arg9[%c1_331, %c59_332] : memref<2x98xf32, #tpu.memory_space<smem>>
    %891 = vector.extract_strided_slice %888 {offsets = [0, 0], sizes = [1, 256], strides = [1, 1]} : vector<2x256xf32> to vector<1x256xf32>
    %892 = vector.broadcast %889 : f32 to vector<1x256xf32>
    %893 = arith.mulf %892, %891 : vector<1x256xf32>
    %894 = vector.extract_strided_slice %888 {offsets = [1, 0], sizes = [1, 256], strides = [1, 1]} : vector<2x256xf32> to vector<1x256xf32>
    %895 = vector.broadcast %890 : f32 to vector<1x256xf32>
    %896 = arith.mulf %895, %894 : vector<1x256xf32>
    %897 = arith.addf %893, %896 : vector<1x256xf32>
    %c10_333 = arith.constant 10 : index
    %c0_334 = arith.constant 0 : index
    %898 = vector.load %arg8[%c10_333, %c0_334] : memref<49x256xf32, #tpu.memory_space<vmem>>, vector<1x256xf32>
    %899 = arith.mulf %897, %898 : vector<1x256xf32>
    %900 = arith.addf %887, %899 : vector<1x256xf32>
    %c17_i32_335 = arith.constant 17 : i32
    %901 = tpu.dynamic_rotate %756 by %c17_i32_335 dim 1 : vector<2x256xf32>, i32 -> vector<2x256xf32>
    %c1_336 = arith.constant 1 : index
    %c11_337 = arith.constant 11 : index
    %902 = memref.load %arg9[%c1_336, %c11_337] : memref<2x98xf32, #tpu.memory_space<smem>>
    %c1_338 = arith.constant 1 : index
    %c60_339 = arith.constant 60 : index
    %903 = memref.load %arg9[%c1_338, %c60_339] : memref<2x98xf32, #tpu.memory_space<smem>>
    %904 = vector.extract_strided_slice %901 {offsets = [0, 0], sizes = [1, 256], strides = [1, 1]} : vector<2x256xf32> to vector<1x256xf32>
    %905 = vector.broadcast %902 : f32 to vector<1x256xf32>
    %906 = arith.mulf %905, %904 : vector<1x256xf32>
    %907 = vector.extract_strided_slice %901 {offsets = [1, 0], sizes = [1, 256], strides = [1, 1]} : vector<2x256xf32> to vector<1x256xf32>
    %908 = vector.broadcast %903 : f32 to vector<1x256xf32>
    %909 = arith.mulf %908, %907 : vector<1x256xf32>
    %910 = arith.addf %906, %909 : vector<1x256xf32>
    %c11_340 = arith.constant 11 : index
    %c0_341 = arith.constant 0 : index
    %911 = vector.load %arg8[%c11_340, %c0_341] : memref<49x256xf32, #tpu.memory_space<vmem>>, vector<1x256xf32>
    %912 = arith.mulf %910, %911 : vector<1x256xf32>
    %913 = arith.addf %900, %912 : vector<1x256xf32>
    %c16_i32_342 = arith.constant 16 : i32
    %914 = tpu.dynamic_rotate %756 by %c16_i32_342 dim 1 : vector<2x256xf32>, i32 -> vector<2x256xf32>
    %c1_343 = arith.constant 1 : index
    %c12_344 = arith.constant 12 : index
    %915 = memref.load %arg9[%c1_343, %c12_344] : memref<2x98xf32, #tpu.memory_space<smem>>
    %c1_345 = arith.constant 1 : index
    %c61_346 = arith.constant 61 : index
    %916 = memref.load %arg9[%c1_345, %c61_346] : memref<2x98xf32, #tpu.memory_space<smem>>
    %917 = vector.extract_strided_slice %914 {offsets = [0, 0], sizes = [1, 256], strides = [1, 1]} : vector<2x256xf32> to vector<1x256xf32>
    %918 = vector.broadcast %915 : f32 to vector<1x256xf32>
    %919 = arith.mulf %918, %917 : vector<1x256xf32>
    %920 = vector.extract_strided_slice %914 {offsets = [1, 0], sizes = [1, 256], strides = [1, 1]} : vector<2x256xf32> to vector<1x256xf32>
    %921 = vector.broadcast %916 : f32 to vector<1x256xf32>
    %922 = arith.mulf %921, %920 : vector<1x256xf32>
    %923 = arith.addf %919, %922 : vector<1x256xf32>
    %c12_347 = arith.constant 12 : index
    %c0_348 = arith.constant 0 : index
    %924 = vector.load %arg8[%c12_347, %c0_348] : memref<49x256xf32, #tpu.memory_space<vmem>>, vector<1x256xf32>
    %925 = arith.mulf %923, %924 : vector<1x256xf32>
    %926 = arith.addf %913, %925 : vector<1x256xf32>
    %c15_i32_349 = arith.constant 15 : i32
    %927 = tpu.dynamic_rotate %756 by %c15_i32_349 dim 1 : vector<2x256xf32>, i32 -> vector<2x256xf32>
    %c1_350 = arith.constant 1 : index
    %c13_351 = arith.constant 13 : index
    %928 = memref.load %arg9[%c1_350, %c13_351] : memref<2x98xf32, #tpu.memory_space<smem>>
    %c1_352 = arith.constant 1 : index
    %c62_353 = arith.constant 62 : index
    %929 = memref.load %arg9[%c1_352, %c62_353] : memref<2x98xf32, #tpu.memory_space<smem>>
    %930 = vector.extract_strided_slice %927 {offsets = [0, 0], sizes = [1, 256], strides = [1, 1]} : vector<2x256xf32> to vector<1x256xf32>
    %931 = vector.broadcast %928 : f32 to vector<1x256xf32>
    %932 = arith.mulf %931, %930 : vector<1x256xf32>
    %933 = vector.extract_strided_slice %927 {offsets = [1, 0], sizes = [1, 256], strides = [1, 1]} : vector<2x256xf32> to vector<1x256xf32>
    %934 = vector.broadcast %929 : f32 to vector<1x256xf32>
    %935 = arith.mulf %934, %933 : vector<1x256xf32>
    %936 = arith.addf %932, %935 : vector<1x256xf32>
    %c13_354 = arith.constant 13 : index
    %c0_355 = arith.constant 0 : index
    %937 = vector.load %arg8[%c13_354, %c0_355] : memref<49x256xf32, #tpu.memory_space<vmem>>, vector<1x256xf32>
    %938 = arith.mulf %936, %937 : vector<1x256xf32>
    %939 = arith.addf %926, %938 : vector<1x256xf32>
    %c12_i32_356 = arith.constant 12 : i32
    %940 = tpu.dynamic_rotate %756 by %c12_i32_356 dim 1 : vector<2x256xf32>, i32 -> vector<2x256xf32>
    %c1_357 = arith.constant 1 : index
    %c14_358 = arith.constant 14 : index
    %941 = memref.load %arg9[%c1_357, %c14_358] : memref<2x98xf32, #tpu.memory_space<smem>>
    %c1_359 = arith.constant 1 : index
    %c63_360 = arith.constant 63 : index
    %942 = memref.load %arg9[%c1_359, %c63_360] : memref<2x98xf32, #tpu.memory_space<smem>>
    %943 = vector.extract_strided_slice %940 {offsets = [0, 0], sizes = [1, 256], strides = [1, 1]} : vector<2x256xf32> to vector<1x256xf32>
    %944 = vector.broadcast %941 : f32 to vector<1x256xf32>
    %945 = arith.mulf %944, %943 : vector<1x256xf32>
    %946 = vector.extract_strided_slice %940 {offsets = [1, 0], sizes = [1, 256], strides = [1, 1]} : vector<2x256xf32> to vector<1x256xf32>
    %947 = vector.broadcast %942 : f32 to vector<1x256xf32>
    %948 = arith.mulf %947, %946 : vector<1x256xf32>
    %949 = arith.addf %945, %948 : vector<1x256xf32>
    %c14_361 = arith.constant 14 : index
    %c0_362 = arith.constant 0 : index
    %950 = vector.load %arg8[%c14_361, %c0_362] : memref<49x256xf32, #tpu.memory_space<vmem>>, vector<1x256xf32>
    %951 = arith.mulf %949, %950 : vector<1x256xf32>
    %952 = arith.addf %939, %951 : vector<1x256xf32>
    %c11_i32_363 = arith.constant 11 : i32
    %953 = tpu.dynamic_rotate %756 by %c11_i32_363 dim 1 : vector<2x256xf32>, i32 -> vector<2x256xf32>
    %c1_364 = arith.constant 1 : index
    %c15_365 = arith.constant 15 : index
    %954 = memref.load %arg9[%c1_364, %c15_365] : memref<2x98xf32, #tpu.memory_space<smem>>
    %c1_366 = arith.constant 1 : index
    %c64_367 = arith.constant 64 : index
    %955 = memref.load %arg9[%c1_366, %c64_367] : memref<2x98xf32, #tpu.memory_space<smem>>
    %956 = vector.extract_strided_slice %953 {offsets = [0, 0], sizes = [1, 256], strides = [1, 1]} : vector<2x256xf32> to vector<1x256xf32>
    %957 = vector.broadcast %954 : f32 to vector<1x256xf32>
    %958 = arith.mulf %957, %956 : vector<1x256xf32>
    %959 = vector.extract_strided_slice %953 {offsets = [1, 0], sizes = [1, 256], strides = [1, 1]} : vector<2x256xf32> to vector<1x256xf32>
    %960 = vector.broadcast %955 : f32 to vector<1x256xf32>
    %961 = arith.mulf %960, %959 : vector<1x256xf32>
    %962 = arith.addf %958, %961 : vector<1x256xf32>
    %c15_368 = arith.constant 15 : index
    %c0_369 = arith.constant 0 : index
    %963 = vector.load %arg8[%c15_368, %c0_369] : memref<49x256xf32, #tpu.memory_space<vmem>>, vector<1x256xf32>
    %964 = arith.mulf %962, %963 : vector<1x256xf32>
    %965 = arith.addf %952, %964 : vector<1x256xf32>
    %c10_i32_370 = arith.constant 10 : i32
    %966 = tpu.dynamic_rotate %756 by %c10_i32_370 dim 1 : vector<2x256xf32>, i32 -> vector<2x256xf32>
    %c1_371 = arith.constant 1 : index
    %c16_372 = arith.constant 16 : index
    %967 = memref.load %arg9[%c1_371, %c16_372] : memref<2x98xf32, #tpu.memory_space<smem>>
    %c1_373 = arith.constant 1 : index
    %c65_374 = arith.constant 65 : index
    %968 = memref.load %arg9[%c1_373, %c65_374] : memref<2x98xf32, #tpu.memory_space<smem>>
    %969 = vector.extract_strided_slice %966 {offsets = [0, 0], sizes = [1, 256], strides = [1, 1]} : vector<2x256xf32> to vector<1x256xf32>
    %970 = vector.broadcast %967 : f32 to vector<1x256xf32>
    %971 = arith.mulf %970, %969 : vector<1x256xf32>
    %972 = vector.extract_strided_slice %966 {offsets = [1, 0], sizes = [1, 256], strides = [1, 1]} : vector<2x256xf32> to vector<1x256xf32>
    %973 = vector.broadcast %968 : f32 to vector<1x256xf32>
    %974 = arith.mulf %973, %972 : vector<1x256xf32>
    %975 = arith.addf %971, %974 : vector<1x256xf32>
    %c16_375 = arith.constant 16 : index
    %c0_376 = arith.constant 0 : index
    %976 = vector.load %arg8[%c16_375, %c0_376] : memref<49x256xf32, #tpu.memory_space<vmem>>, vector<1x256xf32>
    %977 = arith.mulf %975, %976 : vector<1x256xf32>
    %978 = arith.addf %965, %977 : vector<1x256xf32>
    %c9_i32_377 = arith.constant 9 : i32
    %979 = tpu.dynamic_rotate %756 by %c9_i32_377 dim 1 : vector<2x256xf32>, i32 -> vector<2x256xf32>
    %c1_378 = arith.constant 1 : index
    %c17_379 = arith.constant 17 : index
    %980 = memref.load %arg9[%c1_378, %c17_379] : memref<2x98xf32, #tpu.memory_space<smem>>
    %c1_380 = arith.constant 1 : index
    %c66_381 = arith.constant 66 : index
    %981 = memref.load %arg9[%c1_380, %c66_381] : memref<2x98xf32, #tpu.memory_space<smem>>
    %982 = vector.extract_strided_slice %979 {offsets = [0, 0], sizes = [1, 256], strides = [1, 1]} : vector<2x256xf32> to vector<1x256xf32>
    %983 = vector.broadcast %980 : f32 to vector<1x256xf32>
    %984 = arith.mulf %983, %982 : vector<1x256xf32>
    %985 = vector.extract_strided_slice %979 {offsets = [1, 0], sizes = [1, 256], strides = [1, 1]} : vector<2x256xf32> to vector<1x256xf32>
    %986 = vector.broadcast %981 : f32 to vector<1x256xf32>
    %987 = arith.mulf %986, %985 : vector<1x256xf32>
    %988 = arith.addf %984, %987 : vector<1x256xf32>
    %c17_382 = arith.constant 17 : index
    %c0_383 = arith.constant 0 : index
    %989 = vector.load %arg8[%c17_382, %c0_383] : memref<49x256xf32, #tpu.memory_space<vmem>>, vector<1x256xf32>
    %990 = arith.mulf %988, %989 : vector<1x256xf32>
    %991 = arith.addf %978, %990 : vector<1x256xf32>
    %c8_i32_384 = arith.constant 8 : i32
    %992 = tpu.dynamic_rotate %756 by %c8_i32_384 dim 1 : vector<2x256xf32>, i32 -> vector<2x256xf32>
    %c1_385 = arith.constant 1 : index
    %c18_386 = arith.constant 18 : index
    %993 = memref.load %arg9[%c1_385, %c18_386] : memref<2x98xf32, #tpu.memory_space<smem>>
    %c1_387 = arith.constant 1 : index
    %c67_388 = arith.constant 67 : index
    %994 = memref.load %arg9[%c1_387, %c67_388] : memref<2x98xf32, #tpu.memory_space<smem>>
    %995 = vector.extract_strided_slice %992 {offsets = [0, 0], sizes = [1, 256], strides = [1, 1]} : vector<2x256xf32> to vector<1x256xf32>
    %996 = vector.broadcast %993 : f32 to vector<1x256xf32>
    %997 = arith.mulf %996, %995 : vector<1x256xf32>
    %998 = vector.extract_strided_slice %992 {offsets = [1, 0], sizes = [1, 256], strides = [1, 1]} : vector<2x256xf32> to vector<1x256xf32>
    %999 = vector.broadcast %994 : f32 to vector<1x256xf32>
    %1000 = arith.mulf %999, %998 : vector<1x256xf32>
    %1001 = arith.addf %997, %1000 : vector<1x256xf32>
    %c18_389 = arith.constant 18 : index
    %c0_390 = arith.constant 0 : index
    %1002 = vector.load %arg8[%c18_389, %c0_390] : memref<49x256xf32, #tpu.memory_space<vmem>>, vector<1x256xf32>
    %1003 = arith.mulf %1001, %1002 : vector<1x256xf32>
    %1004 = arith.addf %991, %1003 : vector<1x256xf32>
    %c7_i32_391 = arith.constant 7 : i32
    %1005 = tpu.dynamic_rotate %756 by %c7_i32_391 dim 1 : vector<2x256xf32>, i32 -> vector<2x256xf32>
    %c1_392 = arith.constant 1 : index
    %c19_393 = arith.constant 19 : index
    %1006 = memref.load %arg9[%c1_392, %c19_393] : memref<2x98xf32, #tpu.memory_space<smem>>
    %c1_394 = arith.constant 1 : index
    %c68_395 = arith.constant 68 : index
    %1007 = memref.load %arg9[%c1_394, %c68_395] : memref<2x98xf32, #tpu.memory_space<smem>>
    %1008 = vector.extract_strided_slice %1005 {offsets = [0, 0], sizes = [1, 256], strides = [1, 1]} : vector<2x256xf32> to vector<1x256xf32>
    %1009 = vector.broadcast %1006 : f32 to vector<1x256xf32>
    %1010 = arith.mulf %1009, %1008 : vector<1x256xf32>
    %1011 = vector.extract_strided_slice %1005 {offsets = [1, 0], sizes = [1, 256], strides = [1, 1]} : vector<2x256xf32> to vector<1x256xf32>
    %1012 = vector.broadcast %1007 : f32 to vector<1x256xf32>
    %1013 = arith.mulf %1012, %1011 : vector<1x256xf32>
    %1014 = arith.addf %1010, %1013 : vector<1x256xf32>
    %c19_396 = arith.constant 19 : index
    %c0_397 = arith.constant 0 : index
    %1015 = vector.load %arg8[%c19_396, %c0_397] : memref<49x256xf32, #tpu.memory_space<vmem>>, vector<1x256xf32>
    %1016 = arith.mulf %1014, %1015 : vector<1x256xf32>
    %1017 = arith.addf %1004, %1016 : vector<1x256xf32>
    %c6_i32_398 = arith.constant 6 : i32
    %1018 = tpu.dynamic_rotate %756 by %c6_i32_398 dim 1 : vector<2x256xf32>, i32 -> vector<2x256xf32>
    %c1_399 = arith.constant 1 : index
    %c20_400 = arith.constant 20 : index
    %1019 = memref.load %arg9[%c1_399, %c20_400] : memref<2x98xf32, #tpu.memory_space<smem>>
    %c1_401 = arith.constant 1 : index
    %c69_402 = arith.constant 69 : index
    %1020 = memref.load %arg9[%c1_401, %c69_402] : memref<2x98xf32, #tpu.memory_space<smem>>
    %1021 = vector.extract_strided_slice %1018 {offsets = [0, 0], sizes = [1, 256], strides = [1, 1]} : vector<2x256xf32> to vector<1x256xf32>
    %1022 = vector.broadcast %1019 : f32 to vector<1x256xf32>
    %1023 = arith.mulf %1022, %1021 : vector<1x256xf32>
    %1024 = vector.extract_strided_slice %1018 {offsets = [1, 0], sizes = [1, 256], strides = [1, 1]} : vector<2x256xf32> to vector<1x256xf32>
    %1025 = vector.broadcast %1020 : f32 to vector<1x256xf32>
    %1026 = arith.mulf %1025, %1024 : vector<1x256xf32>
    %1027 = arith.addf %1023, %1026 : vector<1x256xf32>
    %c20_403 = arith.constant 20 : index
    %c0_404 = arith.constant 0 : index
    %1028 = vector.load %arg8[%c20_403, %c0_404] : memref<49x256xf32, #tpu.memory_space<vmem>>, vector<1x256xf32>
    %1029 = arith.mulf %1027, %1028 : vector<1x256xf32>
    %1030 = arith.addf %1017, %1029 : vector<1x256xf32>
    %c3_i32_405 = arith.constant 3 : i32
    %1031 = tpu.dynamic_rotate %756 by %c3_i32_405 dim 1 : vector<2x256xf32>, i32 -> vector<2x256xf32>
    %c1_406 = arith.constant 1 : index
    %c21_407 = arith.constant 21 : index
    %1032 = memref.load %arg9[%c1_406, %c21_407] : memref<2x98xf32, #tpu.memory_space<smem>>
    %c1_408 = arith.constant 1 : index
    %c70_409 = arith.constant 70 : index
    %1033 = memref.load %arg9[%c1_408, %c70_409] : memref<2x98xf32, #tpu.memory_space<smem>>
    %1034 = vector.extract_strided_slice %1031 {offsets = [0, 0], sizes = [1, 256], strides = [1, 1]} : vector<2x256xf32> to vector<1x256xf32>
    %1035 = vector.broadcast %1032 : f32 to vector<1x256xf32>
    %1036 = arith.mulf %1035, %1034 : vector<1x256xf32>
    %1037 = vector.extract_strided_slice %1031 {offsets = [1, 0], sizes = [1, 256], strides = [1, 1]} : vector<2x256xf32> to vector<1x256xf32>
    %1038 = vector.broadcast %1033 : f32 to vector<1x256xf32>
    %1039 = arith.mulf %1038, %1037 : vector<1x256xf32>
    %1040 = arith.addf %1036, %1039 : vector<1x256xf32>
    %c21_410 = arith.constant 21 : index
    %c0_411 = arith.constant 0 : index
    %1041 = vector.load %arg8[%c21_410, %c0_411] : memref<49x256xf32, #tpu.memory_space<vmem>>, vector<1x256xf32>
    %1042 = arith.mulf %1040, %1041 : vector<1x256xf32>
    %1043 = arith.addf %1030, %1042 : vector<1x256xf32>
    %c2_i32_412 = arith.constant 2 : i32
    %1044 = tpu.dynamic_rotate %756 by %c2_i32_412 dim 1 : vector<2x256xf32>, i32 -> vector<2x256xf32>
    %c1_413 = arith.constant 1 : index
    %c22_414 = arith.constant 22 : index
    %1045 = memref.load %arg9[%c1_413, %c22_414] : memref<2x98xf32, #tpu.memory_space<smem>>
    %c1_415 = arith.constant 1 : index
    %c71_416 = arith.constant 71 : index
    %1046 = memref.load %arg9[%c1_415, %c71_416] : memref<2x98xf32, #tpu.memory_space<smem>>
    %1047 = vector.extract_strided_slice %1044 {offsets = [0, 0], sizes = [1, 256], strides = [1, 1]} : vector<2x256xf32> to vector<1x256xf32>
    %1048 = vector.broadcast %1045 : f32 to vector<1x256xf32>
    %1049 = arith.mulf %1048, %1047 : vector<1x256xf32>
    %1050 = vector.extract_strided_slice %1044 {offsets = [1, 0], sizes = [1, 256], strides = [1, 1]} : vector<2x256xf32> to vector<1x256xf32>
    %1051 = vector.broadcast %1046 : f32 to vector<1x256xf32>
    %1052 = arith.mulf %1051, %1050 : vector<1x256xf32>
    %1053 = arith.addf %1049, %1052 : vector<1x256xf32>
    %c22_417 = arith.constant 22 : index
    %c0_418 = arith.constant 0 : index
    %1054 = vector.load %arg8[%c22_417, %c0_418] : memref<49x256xf32, #tpu.memory_space<vmem>>, vector<1x256xf32>
    %1055 = arith.mulf %1053, %1054 : vector<1x256xf32>
    %1056 = arith.addf %1043, %1055 : vector<1x256xf32>
    %c1_i32_419 = arith.constant 1 : i32
    %1057 = tpu.dynamic_rotate %756 by %c1_i32_419 dim 1 : vector<2x256xf32>, i32 -> vector<2x256xf32>
    %c1_420 = arith.constant 1 : index
    %c23_421 = arith.constant 23 : index
    %1058 = memref.load %arg9[%c1_420, %c23_421] : memref<2x98xf32, #tpu.memory_space<smem>>
    %c1_422 = arith.constant 1 : index
    %c72_423 = arith.constant 72 : index
    %1059 = memref.load %arg9[%c1_422, %c72_423] : memref<2x98xf32, #tpu.memory_space<smem>>
    %1060 = vector.extract_strided_slice %1057 {offsets = [0, 0], sizes = [1, 256], strides = [1, 1]} : vector<2x256xf32> to vector<1x256xf32>
    %1061 = vector.broadcast %1058 : f32 to vector<1x256xf32>
    %1062 = arith.mulf %1061, %1060 : vector<1x256xf32>
    %1063 = vector.extract_strided_slice %1057 {offsets = [1, 0], sizes = [1, 256], strides = [1, 1]} : vector<2x256xf32> to vector<1x256xf32>
    %1064 = vector.broadcast %1059 : f32 to vector<1x256xf32>
    %1065 = arith.mulf %1064, %1063 : vector<1x256xf32>
    %1066 = arith.addf %1062, %1065 : vector<1x256xf32>
    %c23_424 = arith.constant 23 : index
    %c0_425 = arith.constant 0 : index
    %1067 = vector.load %arg8[%c23_424, %c0_425] : memref<49x256xf32, #tpu.memory_space<vmem>>, vector<1x256xf32>
    %1068 = arith.mulf %1066, %1067 : vector<1x256xf32>
    %1069 = arith.addf %1056, %1068 : vector<1x256xf32>
    %c1_426 = arith.constant 1 : index
    %c24_427 = arith.constant 24 : index
    %1070 = memref.load %arg9[%c1_426, %c24_427] : memref<2x98xf32, #tpu.memory_space<smem>>
    %c1_428 = arith.constant 1 : index
    %c73_429 = arith.constant 73 : index
    %1071 = memref.load %arg9[%c1_428, %c73_429] : memref<2x98xf32, #tpu.memory_space<smem>>
    %1072 = vector.extract_strided_slice %756 {offsets = [0, 0], sizes = [1, 256], strides = [1, 1]} : vector<2x256xf32> to vector<1x256xf32>
    %1073 = vector.broadcast %1070 : f32 to vector<1x256xf32>
    %1074 = arith.mulf %1073, %1072 : vector<1x256xf32>
    %1075 = vector.extract_strided_slice %756 {offsets = [1, 0], sizes = [1, 256], strides = [1, 1]} : vector<2x256xf32> to vector<1x256xf32>
    %1076 = vector.broadcast %1071 : f32 to vector<1x256xf32>
    %1077 = arith.mulf %1076, %1075 : vector<1x256xf32>
    %1078 = arith.addf %1074, %1077 : vector<1x256xf32>
    %c24_430 = arith.constant 24 : index
    %c0_431 = arith.constant 0 : index
    %1079 = vector.load %arg8[%c24_430, %c0_431] : memref<49x256xf32, #tpu.memory_space<vmem>>, vector<1x256xf32>
    %1080 = arith.mulf %1078, %1079 : vector<1x256xf32>
    %1081 = arith.addf %1069, %1080 : vector<1x256xf32>
    %c255_i32_432 = arith.constant 255 : i32
    %1082 = tpu.dynamic_rotate %756 by %c255_i32_432 dim 1 : vector<2x256xf32>, i32 -> vector<2x256xf32>
    %c1_433 = arith.constant 1 : index
    %c25_434 = arith.constant 25 : index
    %1083 = memref.load %arg9[%c1_433, %c25_434] : memref<2x98xf32, #tpu.memory_space<smem>>
    %c1_435 = arith.constant 1 : index
    %c74_436 = arith.constant 74 : index
    %1084 = memref.load %arg9[%c1_435, %c74_436] : memref<2x98xf32, #tpu.memory_space<smem>>
    %1085 = vector.extract_strided_slice %1082 {offsets = [0, 0], sizes = [1, 256], strides = [1, 1]} : vector<2x256xf32> to vector<1x256xf32>
    %1086 = vector.broadcast %1083 : f32 to vector<1x256xf32>
    %1087 = arith.mulf %1086, %1085 : vector<1x256xf32>
    %1088 = vector.extract_strided_slice %1082 {offsets = [1, 0], sizes = [1, 256], strides = [1, 1]} : vector<2x256xf32> to vector<1x256xf32>
    %1089 = vector.broadcast %1084 : f32 to vector<1x256xf32>
    %1090 = arith.mulf %1089, %1088 : vector<1x256xf32>
    %1091 = arith.addf %1087, %1090 : vector<1x256xf32>
    %c25_437 = arith.constant 25 : index
    %c0_438 = arith.constant 0 : index
    %1092 = vector.load %arg8[%c25_437, %c0_438] : memref<49x256xf32, #tpu.memory_space<vmem>>, vector<1x256xf32>
    %1093 = arith.mulf %1091, %1092 : vector<1x256xf32>
    %1094 = arith.addf %1081, %1093 : vector<1x256xf32>
    %c254_i32_439 = arith.constant 254 : i32
    %1095 = tpu.dynamic_rotate %756 by %c254_i32_439 dim 1 : vector<2x256xf32>, i32 -> vector<2x256xf32>
    %c1_440 = arith.constant 1 : index
    %c26_441 = arith.constant 26 : index
    %1096 = memref.load %arg9[%c1_440, %c26_441] : memref<2x98xf32, #tpu.memory_space<smem>>
    %c1_442 = arith.constant 1 : index
    %c75_443 = arith.constant 75 : index
    %1097 = memref.load %arg9[%c1_442, %c75_443] : memref<2x98xf32, #tpu.memory_space<smem>>
    %1098 = vector.extract_strided_slice %1095 {offsets = [0, 0], sizes = [1, 256], strides = [1, 1]} : vector<2x256xf32> to vector<1x256xf32>
    %1099 = vector.broadcast %1096 : f32 to vector<1x256xf32>
    %1100 = arith.mulf %1099, %1098 : vector<1x256xf32>
    %1101 = vector.extract_strided_slice %1095 {offsets = [1, 0], sizes = [1, 256], strides = [1, 1]} : vector<2x256xf32> to vector<1x256xf32>
    %1102 = vector.broadcast %1097 : f32 to vector<1x256xf32>
    %1103 = arith.mulf %1102, %1101 : vector<1x256xf32>
    %1104 = arith.addf %1100, %1103 : vector<1x256xf32>
    %c26_444 = arith.constant 26 : index
    %c0_445 = arith.constant 0 : index
    %1105 = vector.load %arg8[%c26_444, %c0_445] : memref<49x256xf32, #tpu.memory_space<vmem>>, vector<1x256xf32>
    %1106 = arith.mulf %1104, %1105 : vector<1x256xf32>
    %1107 = arith.addf %1094, %1106 : vector<1x256xf32>
    %c253_i32_446 = arith.constant 253 : i32
    %1108 = tpu.dynamic_rotate %756 by %c253_i32_446 dim 1 : vector<2x256xf32>, i32 -> vector<2x256xf32>
    %c1_447 = arith.constant 1 : index
    %c27_448 = arith.constant 27 : index
    %1109 = memref.load %arg9[%c1_447, %c27_448] : memref<2x98xf32, #tpu.memory_space<smem>>
    %c1_449 = arith.constant 1 : index
    %c76_450 = arith.constant 76 : index
    %1110 = memref.load %arg9[%c1_449, %c76_450] : memref<2x98xf32, #tpu.memory_space<smem>>
    %1111 = vector.extract_strided_slice %1108 {offsets = [0, 0], sizes = [1, 256], strides = [1, 1]} : vector<2x256xf32> to vector<1x256xf32>
    %1112 = vector.broadcast %1109 : f32 to vector<1x256xf32>
    %1113 = arith.mulf %1112, %1111 : vector<1x256xf32>
    %1114 = vector.extract_strided_slice %1108 {offsets = [1, 0], sizes = [1, 256], strides = [1, 1]} : vector<2x256xf32> to vector<1x256xf32>
    %1115 = vector.broadcast %1110 : f32 to vector<1x256xf32>
    %1116 = arith.mulf %1115, %1114 : vector<1x256xf32>
    %1117 = arith.addf %1113, %1116 : vector<1x256xf32>
    %c27_451 = arith.constant 27 : index
    %c0_452 = arith.constant 0 : index
    %1118 = vector.load %arg8[%c27_451, %c0_452] : memref<49x256xf32, #tpu.memory_space<vmem>>, vector<1x256xf32>
    %1119 = arith.mulf %1117, %1118 : vector<1x256xf32>
    %1120 = arith.addf %1107, %1119 : vector<1x256xf32>
    %c250_i32_453 = arith.constant 250 : i32
    %1121 = tpu.dynamic_rotate %756 by %c250_i32_453 dim 1 : vector<2x256xf32>, i32 -> vector<2x256xf32>
    %c1_454 = arith.constant 1 : index
    %c28_455 = arith.constant 28 : index
    %1122 = memref.load %arg9[%c1_454, %c28_455] : memref<2x98xf32, #tpu.memory_space<smem>>
    %c1_456 = arith.constant 1 : index
    %c77_457 = arith.constant 77 : index
    %1123 = memref.load %arg9[%c1_456, %c77_457] : memref<2x98xf32, #tpu.memory_space<smem>>
    %1124 = vector.extract_strided_slice %1121 {offsets = [0, 0], sizes = [1, 256], strides = [1, 1]} : vector<2x256xf32> to vector<1x256xf32>
    %1125 = vector.broadcast %1122 : f32 to vector<1x256xf32>
    %1126 = arith.mulf %1125, %1124 : vector<1x256xf32>
    %1127 = vector.extract_strided_slice %1121 {offsets = [1, 0], sizes = [1, 256], strides = [1, 1]} : vector<2x256xf32> to vector<1x256xf32>
    %1128 = vector.broadcast %1123 : f32 to vector<1x256xf32>
    %1129 = arith.mulf %1128, %1127 : vector<1x256xf32>
    %1130 = arith.addf %1126, %1129 : vector<1x256xf32>
    %c28_458 = arith.constant 28 : index
    %c0_459 = arith.constant 0 : index
    %1131 = vector.load %arg8[%c28_458, %c0_459] : memref<49x256xf32, #tpu.memory_space<vmem>>, vector<1x256xf32>
    %1132 = arith.mulf %1130, %1131 : vector<1x256xf32>
    %1133 = arith.addf %1120, %1132 : vector<1x256xf32>
    %c249_i32_460 = arith.constant 249 : i32
    %1134 = tpu.dynamic_rotate %756 by %c249_i32_460 dim 1 : vector<2x256xf32>, i32 -> vector<2x256xf32>
    %c1_461 = arith.constant 1 : index
    %c29_462 = arith.constant 29 : index
    %1135 = memref.load %arg9[%c1_461, %c29_462] : memref<2x98xf32, #tpu.memory_space<smem>>
    %c1_463 = arith.constant 1 : index
    %c78_464 = arith.constant 78 : index
    %1136 = memref.load %arg9[%c1_463, %c78_464] : memref<2x98xf32, #tpu.memory_space<smem>>
    %1137 = vector.extract_strided_slice %1134 {offsets = [0, 0], sizes = [1, 256], strides = [1, 1]} : vector<2x256xf32> to vector<1x256xf32>
    %1138 = vector.broadcast %1135 : f32 to vector<1x256xf32>
    %1139 = arith.mulf %1138, %1137 : vector<1x256xf32>
    %1140 = vector.extract_strided_slice %1134 {offsets = [1, 0], sizes = [1, 256], strides = [1, 1]} : vector<2x256xf32> to vector<1x256xf32>
    %1141 = vector.broadcast %1136 : f32 to vector<1x256xf32>
    %1142 = arith.mulf %1141, %1140 : vector<1x256xf32>
    %1143 = arith.addf %1139, %1142 : vector<1x256xf32>
    %c29_465 = arith.constant 29 : index
    %c0_466 = arith.constant 0 : index
    %1144 = vector.load %arg8[%c29_465, %c0_466] : memref<49x256xf32, #tpu.memory_space<vmem>>, vector<1x256xf32>
    %1145 = arith.mulf %1143, %1144 : vector<1x256xf32>
    %1146 = arith.addf %1133, %1145 : vector<1x256xf32>
    %c248_i32_467 = arith.constant 248 : i32
    %1147 = tpu.dynamic_rotate %756 by %c248_i32_467 dim 1 : vector<2x256xf32>, i32 -> vector<2x256xf32>
    %c1_468 = arith.constant 1 : index
    %c30_469 = arith.constant 30 : index
    %1148 = memref.load %arg9[%c1_468, %c30_469] : memref<2x98xf32, #tpu.memory_space<smem>>
    %c1_470 = arith.constant 1 : index
    %c79_471 = arith.constant 79 : index
    %1149 = memref.load %arg9[%c1_470, %c79_471] : memref<2x98xf32, #tpu.memory_space<smem>>
    %1150 = vector.extract_strided_slice %1147 {offsets = [0, 0], sizes = [1, 256], strides = [1, 1]} : vector<2x256xf32> to vector<1x256xf32>
    %1151 = vector.broadcast %1148 : f32 to vector<1x256xf32>
    %1152 = arith.mulf %1151, %1150 : vector<1x256xf32>
    %1153 = vector.extract_strided_slice %1147 {offsets = [1, 0], sizes = [1, 256], strides = [1, 1]} : vector<2x256xf32> to vector<1x256xf32>
    %1154 = vector.broadcast %1149 : f32 to vector<1x256xf32>
    %1155 = arith.mulf %1154, %1153 : vector<1x256xf32>
    %1156 = arith.addf %1152, %1155 : vector<1x256xf32>
    %c30_472 = arith.constant 30 : index
    %c0_473 = arith.constant 0 : index
    %1157 = vector.load %arg8[%c30_472, %c0_473] : memref<49x256xf32, #tpu.memory_space<vmem>>, vector<1x256xf32>
    %1158 = arith.mulf %1156, %1157 : vector<1x256xf32>
    %1159 = arith.addf %1146, %1158 : vector<1x256xf32>
    %c247_i32_474 = arith.constant 247 : i32
    %1160 = tpu.dynamic_rotate %756 by %c247_i32_474 dim 1 : vector<2x256xf32>, i32 -> vector<2x256xf32>
    %c1_475 = arith.constant 1 : index
    %c31_476 = arith.constant 31 : index
    %1161 = memref.load %arg9[%c1_475, %c31_476] : memref<2x98xf32, #tpu.memory_space<smem>>
    %c1_477 = arith.constant 1 : index
    %c80_478 = arith.constant 80 : index
    %1162 = memref.load %arg9[%c1_477, %c80_478] : memref<2x98xf32, #tpu.memory_space<smem>>
    %1163 = vector.extract_strided_slice %1160 {offsets = [0, 0], sizes = [1, 256], strides = [1, 1]} : vector<2x256xf32> to vector<1x256xf32>
    %1164 = vector.broadcast %1161 : f32 to vector<1x256xf32>
    %1165 = arith.mulf %1164, %1163 : vector<1x256xf32>
    %1166 = vector.extract_strided_slice %1160 {offsets = [1, 0], sizes = [1, 256], strides = [1, 1]} : vector<2x256xf32> to vector<1x256xf32>
    %1167 = vector.broadcast %1162 : f32 to vector<1x256xf32>
    %1168 = arith.mulf %1167, %1166 : vector<1x256xf32>
    %1169 = arith.addf %1165, %1168 : vector<1x256xf32>
    %c31_479 = arith.constant 31 : index
    %c0_480 = arith.constant 0 : index
    %1170 = vector.load %arg8[%c31_479, %c0_480] : memref<49x256xf32, #tpu.memory_space<vmem>>, vector<1x256xf32>
    %1171 = arith.mulf %1169, %1170 : vector<1x256xf32>
    %1172 = arith.addf %1159, %1171 : vector<1x256xf32>
    %c246_i32_481 = arith.constant 246 : i32
    %1173 = tpu.dynamic_rotate %756 by %c246_i32_481 dim 1 : vector<2x256xf32>, i32 -> vector<2x256xf32>
    %c1_482 = arith.constant 1 : index
    %c32_483 = arith.constant 32 : index
    %1174 = memref.load %arg9[%c1_482, %c32_483] : memref<2x98xf32, #tpu.memory_space<smem>>
    %c1_484 = arith.constant 1 : index
    %c81_485 = arith.constant 81 : index
    %1175 = memref.load %arg9[%c1_484, %c81_485] : memref<2x98xf32, #tpu.memory_space<smem>>
    %1176 = vector.extract_strided_slice %1173 {offsets = [0, 0], sizes = [1, 256], strides = [1, 1]} : vector<2x256xf32> to vector<1x256xf32>
    %1177 = vector.broadcast %1174 : f32 to vector<1x256xf32>
    %1178 = arith.mulf %1177, %1176 : vector<1x256xf32>
    %1179 = vector.extract_strided_slice %1173 {offsets = [1, 0], sizes = [1, 256], strides = [1, 1]} : vector<2x256xf32> to vector<1x256xf32>
    %1180 = vector.broadcast %1175 : f32 to vector<1x256xf32>
    %1181 = arith.mulf %1180, %1179 : vector<1x256xf32>
    %1182 = arith.addf %1178, %1181 : vector<1x256xf32>
    %c32_486 = arith.constant 32 : index
    %c0_487 = arith.constant 0 : index
    %1183 = vector.load %arg8[%c32_486, %c0_487] : memref<49x256xf32, #tpu.memory_space<vmem>>, vector<1x256xf32>
    %1184 = arith.mulf %1182, %1183 : vector<1x256xf32>
    %1185 = arith.addf %1172, %1184 : vector<1x256xf32>
    %c245_i32_488 = arith.constant 245 : i32
    %1186 = tpu.dynamic_rotate %756 by %c245_i32_488 dim 1 : vector<2x256xf32>, i32 -> vector<2x256xf32>
    %c1_489 = arith.constant 1 : index
    %c33_490 = arith.constant 33 : index
    %1187 = memref.load %arg9[%c1_489, %c33_490] : memref<2x98xf32, #tpu.memory_space<smem>>
    %c1_491 = arith.constant 1 : index
    %c82_492 = arith.constant 82 : index
    %1188 = memref.load %arg9[%c1_491, %c82_492] : memref<2x98xf32, #tpu.memory_space<smem>>
    %1189 = vector.extract_strided_slice %1186 {offsets = [0, 0], sizes = [1, 256], strides = [1, 1]} : vector<2x256xf32> to vector<1x256xf32>
    %1190 = vector.broadcast %1187 : f32 to vector<1x256xf32>
    %1191 = arith.mulf %1190, %1189 : vector<1x256xf32>
    %1192 = vector.extract_strided_slice %1186 {offsets = [1, 0], sizes = [1, 256], strides = [1, 1]} : vector<2x256xf32> to vector<1x256xf32>
    %1193 = vector.broadcast %1188 : f32 to vector<1x256xf32>
    %1194 = arith.mulf %1193, %1192 : vector<1x256xf32>
    %1195 = arith.addf %1191, %1194 : vector<1x256xf32>
    %c33_493 = arith.constant 33 : index
    %c0_494 = arith.constant 0 : index
    %1196 = vector.load %arg8[%c33_493, %c0_494] : memref<49x256xf32, #tpu.memory_space<vmem>>, vector<1x256xf32>
    %1197 = arith.mulf %1195, %1196 : vector<1x256xf32>
    %1198 = arith.addf %1185, %1197 : vector<1x256xf32>
    %c244_i32_495 = arith.constant 244 : i32
    %1199 = tpu.dynamic_rotate %756 by %c244_i32_495 dim 1 : vector<2x256xf32>, i32 -> vector<2x256xf32>
    %c1_496 = arith.constant 1 : index
    %c34_497 = arith.constant 34 : index
    %1200 = memref.load %arg9[%c1_496, %c34_497] : memref<2x98xf32, #tpu.memory_space<smem>>
    %c1_498 = arith.constant 1 : index
    %c83_499 = arith.constant 83 : index
    %1201 = memref.load %arg9[%c1_498, %c83_499] : memref<2x98xf32, #tpu.memory_space<smem>>
    %1202 = vector.extract_strided_slice %1199 {offsets = [0, 0], sizes = [1, 256], strides = [1, 1]} : vector<2x256xf32> to vector<1x256xf32>
    %1203 = vector.broadcast %1200 : f32 to vector<1x256xf32>
    %1204 = arith.mulf %1203, %1202 : vector<1x256xf32>
    %1205 = vector.extract_strided_slice %1199 {offsets = [1, 0], sizes = [1, 256], strides = [1, 1]} : vector<2x256xf32> to vector<1x256xf32>
    %1206 = vector.broadcast %1201 : f32 to vector<1x256xf32>
    %1207 = arith.mulf %1206, %1205 : vector<1x256xf32>
    %1208 = arith.addf %1204, %1207 : vector<1x256xf32>
    %c34_500 = arith.constant 34 : index
    %c0_501 = arith.constant 0 : index
    %1209 = vector.load %arg8[%c34_500, %c0_501] : memref<49x256xf32, #tpu.memory_space<vmem>>, vector<1x256xf32>
    %1210 = arith.mulf %1208, %1209 : vector<1x256xf32>
    %1211 = arith.addf %1198, %1210 : vector<1x256xf32>
    %c241_i32_502 = arith.constant 241 : i32
    %1212 = tpu.dynamic_rotate %756 by %c241_i32_502 dim 1 : vector<2x256xf32>, i32 -> vector<2x256xf32>
    %c1_503 = arith.constant 1 : index
    %c35_504 = arith.constant 35 : index
    %1213 = memref.load %arg9[%c1_503, %c35_504] : memref<2x98xf32, #tpu.memory_space<smem>>
    %c1_505 = arith.constant 1 : index
    %c84_506 = arith.constant 84 : index
    %1214 = memref.load %arg9[%c1_505, %c84_506] : memref<2x98xf32, #tpu.memory_space<smem>>
    %1215 = vector.extract_strided_slice %1212 {offsets = [0, 0], sizes = [1, 256], strides = [1, 1]} : vector<2x256xf32> to vector<1x256xf32>
    %1216 = vector.broadcast %1213 : f32 to vector<1x256xf32>
    %1217 = arith.mulf %1216, %1215 : vector<1x256xf32>
    %1218 = vector.extract_strided_slice %1212 {offsets = [1, 0], sizes = [1, 256], strides = [1, 1]} : vector<2x256xf32> to vector<1x256xf32>
    %1219 = vector.broadcast %1214 : f32 to vector<1x256xf32>
    %1220 = arith.mulf %1219, %1218 : vector<1x256xf32>
    %1221 = arith.addf %1217, %1220 : vector<1x256xf32>
    %c35_507 = arith.constant 35 : index
    %c0_508 = arith.constant 0 : index
    %1222 = vector.load %arg8[%c35_507, %c0_508] : memref<49x256xf32, #tpu.memory_space<vmem>>, vector<1x256xf32>
    %1223 = arith.mulf %1221, %1222 : vector<1x256xf32>
    %1224 = arith.addf %1211, %1223 : vector<1x256xf32>
    %c240_i32_509 = arith.constant 240 : i32
    %1225 = tpu.dynamic_rotate %756 by %c240_i32_509 dim 1 : vector<2x256xf32>, i32 -> vector<2x256xf32>
    %c1_510 = arith.constant 1 : index
    %c36_511 = arith.constant 36 : index
    %1226 = memref.load %arg9[%c1_510, %c36_511] : memref<2x98xf32, #tpu.memory_space<smem>>
    %c1_512 = arith.constant 1 : index
    %c85_513 = arith.constant 85 : index
    %1227 = memref.load %arg9[%c1_512, %c85_513] : memref<2x98xf32, #tpu.memory_space<smem>>
    %1228 = vector.extract_strided_slice %1225 {offsets = [0, 0], sizes = [1, 256], strides = [1, 1]} : vector<2x256xf32> to vector<1x256xf32>
    %1229 = vector.broadcast %1226 : f32 to vector<1x256xf32>
    %1230 = arith.mulf %1229, %1228 : vector<1x256xf32>
    %1231 = vector.extract_strided_slice %1225 {offsets = [1, 0], sizes = [1, 256], strides = [1, 1]} : vector<2x256xf32> to vector<1x256xf32>
    %1232 = vector.broadcast %1227 : f32 to vector<1x256xf32>
    %1233 = arith.mulf %1232, %1231 : vector<1x256xf32>
    %1234 = arith.addf %1230, %1233 : vector<1x256xf32>
    %c36_514 = arith.constant 36 : index
    %c0_515 = arith.constant 0 : index
    %1235 = vector.load %arg8[%c36_514, %c0_515] : memref<49x256xf32, #tpu.memory_space<vmem>>, vector<1x256xf32>
    %1236 = arith.mulf %1234, %1235 : vector<1x256xf32>
    %1237 = arith.addf %1224, %1236 : vector<1x256xf32>
    %c239_i32_516 = arith.constant 239 : i32
    %1238 = tpu.dynamic_rotate %756 by %c239_i32_516 dim 1 : vector<2x256xf32>, i32 -> vector<2x256xf32>
    %c1_517 = arith.constant 1 : index
    %c37_518 = arith.constant 37 : index
    %1239 = memref.load %arg9[%c1_517, %c37_518] : memref<2x98xf32, #tpu.memory_space<smem>>
    %c1_519 = arith.constant 1 : index
    %c86_520 = arith.constant 86 : index
    %1240 = memref.load %arg9[%c1_519, %c86_520] : memref<2x98xf32, #tpu.memory_space<smem>>
    %1241 = vector.extract_strided_slice %1238 {offsets = [0, 0], sizes = [1, 256], strides = [1, 1]} : vector<2x256xf32> to vector<1x256xf32>
    %1242 = vector.broadcast %1239 : f32 to vector<1x256xf32>
    %1243 = arith.mulf %1242, %1241 : vector<1x256xf32>
    %1244 = vector.extract_strided_slice %1238 {offsets = [1, 0], sizes = [1, 256], strides = [1, 1]} : vector<2x256xf32> to vector<1x256xf32>
    %1245 = vector.broadcast %1240 : f32 to vector<1x256xf32>
    %1246 = arith.mulf %1245, %1244 : vector<1x256xf32>
    %1247 = arith.addf %1243, %1246 : vector<1x256xf32>
    %c37_521 = arith.constant 37 : index
    %c0_522 = arith.constant 0 : index
    %1248 = vector.load %arg8[%c37_521, %c0_522] : memref<49x256xf32, #tpu.memory_space<vmem>>, vector<1x256xf32>
    %1249 = arith.mulf %1247, %1248 : vector<1x256xf32>
    %1250 = arith.addf %1237, %1249 : vector<1x256xf32>
    %c238_i32_523 = arith.constant 238 : i32
    %1251 = tpu.dynamic_rotate %756 by %c238_i32_523 dim 1 : vector<2x256xf32>, i32 -> vector<2x256xf32>
    %c1_524 = arith.constant 1 : index
    %c38_525 = arith.constant 38 : index
    %1252 = memref.load %arg9[%c1_524, %c38_525] : memref<2x98xf32, #tpu.memory_space<smem>>
    %c1_526 = arith.constant 1 : index
    %c87_527 = arith.constant 87 : index
    %1253 = memref.load %arg9[%c1_526, %c87_527] : memref<2x98xf32, #tpu.memory_space<smem>>
    %1254 = vector.extract_strided_slice %1251 {offsets = [0, 0], sizes = [1, 256], strides = [1, 1]} : vector<2x256xf32> to vector<1x256xf32>
    %1255 = vector.broadcast %1252 : f32 to vector<1x256xf32>
    %1256 = arith.mulf %1255, %1254 : vector<1x256xf32>
    %1257 = vector.extract_strided_slice %1251 {offsets = [1, 0], sizes = [1, 256], strides = [1, 1]} : vector<2x256xf32> to vector<1x256xf32>
    %1258 = vector.broadcast %1253 : f32 to vector<1x256xf32>
    %1259 = arith.mulf %1258, %1257 : vector<1x256xf32>
    %1260 = arith.addf %1256, %1259 : vector<1x256xf32>
    %c38_528 = arith.constant 38 : index
    %c0_529 = arith.constant 0 : index
    %1261 = vector.load %arg8[%c38_528, %c0_529] : memref<49x256xf32, #tpu.memory_space<vmem>>, vector<1x256xf32>
    %1262 = arith.mulf %1260, %1261 : vector<1x256xf32>
    %1263 = arith.addf %1250, %1262 : vector<1x256xf32>
    %c237_i32_530 = arith.constant 237 : i32
    %1264 = tpu.dynamic_rotate %756 by %c237_i32_530 dim 1 : vector<2x256xf32>, i32 -> vector<2x256xf32>
    %c1_531 = arith.constant 1 : index
    %c39_532 = arith.constant 39 : index
    %1265 = memref.load %arg9[%c1_531, %c39_532] : memref<2x98xf32, #tpu.memory_space<smem>>
    %c1_533 = arith.constant 1 : index
    %c88_534 = arith.constant 88 : index
    %1266 = memref.load %arg9[%c1_533, %c88_534] : memref<2x98xf32, #tpu.memory_space<smem>>
    %1267 = vector.extract_strided_slice %1264 {offsets = [0, 0], sizes = [1, 256], strides = [1, 1]} : vector<2x256xf32> to vector<1x256xf32>
    %1268 = vector.broadcast %1265 : f32 to vector<1x256xf32>
    %1269 = arith.mulf %1268, %1267 : vector<1x256xf32>
    %1270 = vector.extract_strided_slice %1264 {offsets = [1, 0], sizes = [1, 256], strides = [1, 1]} : vector<2x256xf32> to vector<1x256xf32>
    %1271 = vector.broadcast %1266 : f32 to vector<1x256xf32>
    %1272 = arith.mulf %1271, %1270 : vector<1x256xf32>
    %1273 = arith.addf %1269, %1272 : vector<1x256xf32>
    %c39_535 = arith.constant 39 : index
    %c0_536 = arith.constant 0 : index
    %1274 = vector.load %arg8[%c39_535, %c0_536] : memref<49x256xf32, #tpu.memory_space<vmem>>, vector<1x256xf32>
    %1275 = arith.mulf %1273, %1274 : vector<1x256xf32>
    %1276 = arith.addf %1263, %1275 : vector<1x256xf32>
    %c236_i32_537 = arith.constant 236 : i32
    %1277 = tpu.dynamic_rotate %756 by %c236_i32_537 dim 1 : vector<2x256xf32>, i32 -> vector<2x256xf32>
    %c1_538 = arith.constant 1 : index
    %c40_539 = arith.constant 40 : index
    %1278 = memref.load %arg9[%c1_538, %c40_539] : memref<2x98xf32, #tpu.memory_space<smem>>
    %c1_540 = arith.constant 1 : index
    %c89_541 = arith.constant 89 : index
    %1279 = memref.load %arg9[%c1_540, %c89_541] : memref<2x98xf32, #tpu.memory_space<smem>>
    %1280 = vector.extract_strided_slice %1277 {offsets = [0, 0], sizes = [1, 256], strides = [1, 1]} : vector<2x256xf32> to vector<1x256xf32>
    %1281 = vector.broadcast %1278 : f32 to vector<1x256xf32>
    %1282 = arith.mulf %1281, %1280 : vector<1x256xf32>
    %1283 = vector.extract_strided_slice %1277 {offsets = [1, 0], sizes = [1, 256], strides = [1, 1]} : vector<2x256xf32> to vector<1x256xf32>
    %1284 = vector.broadcast %1279 : f32 to vector<1x256xf32>
    %1285 = arith.mulf %1284, %1283 : vector<1x256xf32>
    %1286 = arith.addf %1282, %1285 : vector<1x256xf32>
    %c40_542 = arith.constant 40 : index
    %c0_543 = arith.constant 0 : index
    %1287 = vector.load %arg8[%c40_542, %c0_543] : memref<49x256xf32, #tpu.memory_space<vmem>>, vector<1x256xf32>
    %1288 = arith.mulf %1286, %1287 : vector<1x256xf32>
    %1289 = arith.addf %1276, %1288 : vector<1x256xf32>
    %c235_i32_544 = arith.constant 235 : i32
    %1290 = tpu.dynamic_rotate %756 by %c235_i32_544 dim 1 : vector<2x256xf32>, i32 -> vector<2x256xf32>
    %c1_545 = arith.constant 1 : index
    %c41_546 = arith.constant 41 : index
    %1291 = memref.load %arg9[%c1_545, %c41_546] : memref<2x98xf32, #tpu.memory_space<smem>>
    %c1_547 = arith.constant 1 : index
    %c90_548 = arith.constant 90 : index
    %1292 = memref.load %arg9[%c1_547, %c90_548] : memref<2x98xf32, #tpu.memory_space<smem>>
    %1293 = vector.extract_strided_slice %1290 {offsets = [0, 0], sizes = [1, 256], strides = [1, 1]} : vector<2x256xf32> to vector<1x256xf32>
    %1294 = vector.broadcast %1291 : f32 to vector<1x256xf32>
    %1295 = arith.mulf %1294, %1293 : vector<1x256xf32>
    %1296 = vector.extract_strided_slice %1290 {offsets = [1, 0], sizes = [1, 256], strides = [1, 1]} : vector<2x256xf32> to vector<1x256xf32>
    %1297 = vector.broadcast %1292 : f32 to vector<1x256xf32>
    %1298 = arith.mulf %1297, %1296 : vector<1x256xf32>
    %1299 = arith.addf %1295, %1298 : vector<1x256xf32>
    %c41_549 = arith.constant 41 : index
    %c0_550 = arith.constant 0 : index
    %1300 = vector.load %arg8[%c41_549, %c0_550] : memref<49x256xf32, #tpu.memory_space<vmem>>, vector<1x256xf32>
    %1301 = arith.mulf %1299, %1300 : vector<1x256xf32>
    %1302 = arith.addf %1289, %1301 : vector<1x256xf32>
    %c232_i32_551 = arith.constant 232 : i32
    %1303 = tpu.dynamic_rotate %756 by %c232_i32_551 dim 1 : vector<2x256xf32>, i32 -> vector<2x256xf32>
    %c1_552 = arith.constant 1 : index
    %c42_553 = arith.constant 42 : index
    %1304 = memref.load %arg9[%c1_552, %c42_553] : memref<2x98xf32, #tpu.memory_space<smem>>
    %c1_554 = arith.constant 1 : index
    %c91_555 = arith.constant 91 : index
    %1305 = memref.load %arg9[%c1_554, %c91_555] : memref<2x98xf32, #tpu.memory_space<smem>>
    %1306 = vector.extract_strided_slice %1303 {offsets = [0, 0], sizes = [1, 256], strides = [1, 1]} : vector<2x256xf32> to vector<1x256xf32>
    %1307 = vector.broadcast %1304 : f32 to vector<1x256xf32>
    %1308 = arith.mulf %1307, %1306 : vector<1x256xf32>
    %1309 = vector.extract_strided_slice %1303 {offsets = [1, 0], sizes = [1, 256], strides = [1, 1]} : vector<2x256xf32> to vector<1x256xf32>
    %1310 = vector.broadcast %1305 : f32 to vector<1x256xf32>
    %1311 = arith.mulf %1310, %1309 : vector<1x256xf32>
    %1312 = arith.addf %1308, %1311 : vector<1x256xf32>
    %c42_556 = arith.constant 42 : index
    %c0_557 = arith.constant 0 : index
    %1313 = vector.load %arg8[%c42_556, %c0_557] : memref<49x256xf32, #tpu.memory_space<vmem>>, vector<1x256xf32>
    %1314 = arith.mulf %1312, %1313 : vector<1x256xf32>
    %1315 = arith.addf %1302, %1314 : vector<1x256xf32>
    %c231_i32_558 = arith.constant 231 : i32
    %1316 = tpu.dynamic_rotate %756 by %c231_i32_558 dim 1 : vector<2x256xf32>, i32 -> vector<2x256xf32>
    %c1_559 = arith.constant 1 : index
    %c43_560 = arith.constant 43 : index
    %1317 = memref.load %arg9[%c1_559, %c43_560] : memref<2x98xf32, #tpu.memory_space<smem>>
    %c1_561 = arith.constant 1 : index
    %c92_562 = arith.constant 92 : index
    %1318 = memref.load %arg9[%c1_561, %c92_562] : memref<2x98xf32, #tpu.memory_space<smem>>
    %1319 = vector.extract_strided_slice %1316 {offsets = [0, 0], sizes = [1, 256], strides = [1, 1]} : vector<2x256xf32> to vector<1x256xf32>
    %1320 = vector.broadcast %1317 : f32 to vector<1x256xf32>
    %1321 = arith.mulf %1320, %1319 : vector<1x256xf32>
    %1322 = vector.extract_strided_slice %1316 {offsets = [1, 0], sizes = [1, 256], strides = [1, 1]} : vector<2x256xf32> to vector<1x256xf32>
    %1323 = vector.broadcast %1318 : f32 to vector<1x256xf32>
    %1324 = arith.mulf %1323, %1322 : vector<1x256xf32>
    %1325 = arith.addf %1321, %1324 : vector<1x256xf32>
    %c43_563 = arith.constant 43 : index
    %c0_564 = arith.constant 0 : index
    %1326 = vector.load %arg8[%c43_563, %c0_564] : memref<49x256xf32, #tpu.memory_space<vmem>>, vector<1x256xf32>
    %1327 = arith.mulf %1325, %1326 : vector<1x256xf32>
    %1328 = arith.addf %1315, %1327 : vector<1x256xf32>
    %c230_i32_565 = arith.constant 230 : i32
    %1329 = tpu.dynamic_rotate %756 by %c230_i32_565 dim 1 : vector<2x256xf32>, i32 -> vector<2x256xf32>
    %c1_566 = arith.constant 1 : index
    %c44_567 = arith.constant 44 : index
    %1330 = memref.load %arg9[%c1_566, %c44_567] : memref<2x98xf32, #tpu.memory_space<smem>>
    %c1_568 = arith.constant 1 : index
    %c93_569 = arith.constant 93 : index
    %1331 = memref.load %arg9[%c1_568, %c93_569] : memref<2x98xf32, #tpu.memory_space<smem>>
    %1332 = vector.extract_strided_slice %1329 {offsets = [0, 0], sizes = [1, 256], strides = [1, 1]} : vector<2x256xf32> to vector<1x256xf32>
    %1333 = vector.broadcast %1330 : f32 to vector<1x256xf32>
    %1334 = arith.mulf %1333, %1332 : vector<1x256xf32>
    %1335 = vector.extract_strided_slice %1329 {offsets = [1, 0], sizes = [1, 256], strides = [1, 1]} : vector<2x256xf32> to vector<1x256xf32>
    %1336 = vector.broadcast %1331 : f32 to vector<1x256xf32>
    %1337 = arith.mulf %1336, %1335 : vector<1x256xf32>
    %1338 = arith.addf %1334, %1337 : vector<1x256xf32>
    %c44_570 = arith.constant 44 : index
    %c0_571 = arith.constant 0 : index
    %1339 = vector.load %arg8[%c44_570, %c0_571] : memref<49x256xf32, #tpu.memory_space<vmem>>, vector<1x256xf32>
    %1340 = arith.mulf %1338, %1339 : vector<1x256xf32>
    %1341 = arith.addf %1328, %1340 : vector<1x256xf32>
    %c229_i32_572 = arith.constant 229 : i32
    %1342 = tpu.dynamic_rotate %756 by %c229_i32_572 dim 1 : vector<2x256xf32>, i32 -> vector<2x256xf32>
    %c1_573 = arith.constant 1 : index
    %c45_574 = arith.constant 45 : index
    %1343 = memref.load %arg9[%c1_573, %c45_574] : memref<2x98xf32, #tpu.memory_space<smem>>
    %c1_575 = arith.constant 1 : index
    %c94_576 = arith.constant 94 : index
    %1344 = memref.load %arg9[%c1_575, %c94_576] : memref<2x98xf32, #tpu.memory_space<smem>>
    %1345 = vector.extract_strided_slice %1342 {offsets = [0, 0], sizes = [1, 256], strides = [1, 1]} : vector<2x256xf32> to vector<1x256xf32>
    %1346 = vector.broadcast %1343 : f32 to vector<1x256xf32>
    %1347 = arith.mulf %1346, %1345 : vector<1x256xf32>
    %1348 = vector.extract_strided_slice %1342 {offsets = [1, 0], sizes = [1, 256], strides = [1, 1]} : vector<2x256xf32> to vector<1x256xf32>
    %1349 = vector.broadcast %1344 : f32 to vector<1x256xf32>
    %1350 = arith.mulf %1349, %1348 : vector<1x256xf32>
    %1351 = arith.addf %1347, %1350 : vector<1x256xf32>
    %c45_577 = arith.constant 45 : index
    %c0_578 = arith.constant 0 : index
    %1352 = vector.load %arg8[%c45_577, %c0_578] : memref<49x256xf32, #tpu.memory_space<vmem>>, vector<1x256xf32>
    %1353 = arith.mulf %1351, %1352 : vector<1x256xf32>
    %1354 = arith.addf %1341, %1353 : vector<1x256xf32>
    %c228_i32_579 = arith.constant 228 : i32
    %1355 = tpu.dynamic_rotate %756 by %c228_i32_579 dim 1 : vector<2x256xf32>, i32 -> vector<2x256xf32>
    %c1_580 = arith.constant 1 : index
    %c46_581 = arith.constant 46 : index
    %1356 = memref.load %arg9[%c1_580, %c46_581] : memref<2x98xf32, #tpu.memory_space<smem>>
    %c1_582 = arith.constant 1 : index
    %c95_583 = arith.constant 95 : index
    %1357 = memref.load %arg9[%c1_582, %c95_583] : memref<2x98xf32, #tpu.memory_space<smem>>
    %1358 = vector.extract_strided_slice %1355 {offsets = [0, 0], sizes = [1, 256], strides = [1, 1]} : vector<2x256xf32> to vector<1x256xf32>
    %1359 = vector.broadcast %1356 : f32 to vector<1x256xf32>
    %1360 = arith.mulf %1359, %1358 : vector<1x256xf32>
    %1361 = vector.extract_strided_slice %1355 {offsets = [1, 0], sizes = [1, 256], strides = [1, 1]} : vector<2x256xf32> to vector<1x256xf32>
    %1362 = vector.broadcast %1357 : f32 to vector<1x256xf32>
    %1363 = arith.mulf %1362, %1361 : vector<1x256xf32>
    %1364 = arith.addf %1360, %1363 : vector<1x256xf32>
    %c46_584 = arith.constant 46 : index
    %c0_585 = arith.constant 0 : index
    %1365 = vector.load %arg8[%c46_584, %c0_585] : memref<49x256xf32, #tpu.memory_space<vmem>>, vector<1x256xf32>
    %1366 = arith.mulf %1364, %1365 : vector<1x256xf32>
    %1367 = arith.addf %1354, %1366 : vector<1x256xf32>
    %c227_i32_586 = arith.constant 227 : i32
    %1368 = tpu.dynamic_rotate %756 by %c227_i32_586 dim 1 : vector<2x256xf32>, i32 -> vector<2x256xf32>
    %c1_587 = arith.constant 1 : index
    %c47_588 = arith.constant 47 : index
    %1369 = memref.load %arg9[%c1_587, %c47_588] : memref<2x98xf32, #tpu.memory_space<smem>>
    %c1_589 = arith.constant 1 : index
    %c96_590 = arith.constant 96 : index
    %1370 = memref.load %arg9[%c1_589, %c96_590] : memref<2x98xf32, #tpu.memory_space<smem>>
    %1371 = vector.extract_strided_slice %1368 {offsets = [0, 0], sizes = [1, 256], strides = [1, 1]} : vector<2x256xf32> to vector<1x256xf32>
    %1372 = vector.broadcast %1369 : f32 to vector<1x256xf32>
    %1373 = arith.mulf %1372, %1371 : vector<1x256xf32>
    %1374 = vector.extract_strided_slice %1368 {offsets = [1, 0], sizes = [1, 256], strides = [1, 1]} : vector<2x256xf32> to vector<1x256xf32>
    %1375 = vector.broadcast %1370 : f32 to vector<1x256xf32>
    %1376 = arith.mulf %1375, %1374 : vector<1x256xf32>
    %1377 = arith.addf %1373, %1376 : vector<1x256xf32>
    %c47_591 = arith.constant 47 : index
    %c0_592 = arith.constant 0 : index
    %1378 = vector.load %arg8[%c47_591, %c0_592] : memref<49x256xf32, #tpu.memory_space<vmem>>, vector<1x256xf32>
    %1379 = arith.mulf %1377, %1378 : vector<1x256xf32>
    %1380 = arith.addf %1367, %1379 : vector<1x256xf32>
    %c226_i32_593 = arith.constant 226 : i32
    %1381 = tpu.dynamic_rotate %756 by %c226_i32_593 dim 1 : vector<2x256xf32>, i32 -> vector<2x256xf32>
    %c1_594 = arith.constant 1 : index
    %c48_595 = arith.constant 48 : index
    %1382 = memref.load %arg9[%c1_594, %c48_595] : memref<2x98xf32, #tpu.memory_space<smem>>
    %c1_596 = arith.constant 1 : index
    %c97_597 = arith.constant 97 : index
    %1383 = memref.load %arg9[%c1_596, %c97_597] : memref<2x98xf32, #tpu.memory_space<smem>>
    %1384 = vector.extract_strided_slice %1381 {offsets = [0, 0], sizes = [1, 256], strides = [1, 1]} : vector<2x256xf32> to vector<1x256xf32>
    %1385 = vector.broadcast %1382 : f32 to vector<1x256xf32>
    %1386 = arith.mulf %1385, %1384 : vector<1x256xf32>
    %1387 = vector.extract_strided_slice %1381 {offsets = [1, 0], sizes = [1, 256], strides = [1, 1]} : vector<2x256xf32> to vector<1x256xf32>
    %1388 = vector.broadcast %1383 : f32 to vector<1x256xf32>
    %1389 = arith.mulf %1388, %1387 : vector<1x256xf32>
    %1390 = arith.addf %1386, %1389 : vector<1x256xf32>
    %c48_598 = arith.constant 48 : index
    %c0_599 = arith.constant 0 : index
    %1391 = vector.load %arg8[%c48_598, %c0_599] : memref<49x256xf32, #tpu.memory_space<vmem>>, vector<1x256xf32>
    %1392 = arith.mulf %1390, %1391 : vector<1x256xf32>
    %1393 = arith.addf %1380, %1392 : vector<1x256xf32>
    %1394 = arith.negf %1393 : vector<1x256xf32>
    %1395 = math.exp %1394 : vector<1x256xf32>
    %cst_600 = arith.constant 1.000000e+00 : f32
    %1396 = vector.broadcast %cst_600 : f32 to vector<1x256xf32>
    %1397 = arith.addf %1396, %1395 : vector<1x256xf32>
    %1398 = arith.divf %1396, %1397 : vector<1x256xf32>
    %1399 = vector.broadcast %1398 : vector<1x256xf32> to vector<64x256xf32>
    %1400 = arith.mulf %749, %1399 : vector<64x256xf32>
    %c1_601 = arith.constant 1 : index
    %c0_602 = arith.constant 0 : index
    %c0_603 = arith.constant 0 : index
    %1401 = vector.load %arg6[%c1_601, %c0_602, %c0_603] : memref<2x4x64xf32, #tpu.memory_space<vmem>>, vector<1x4x64xf32>
    %1402 = vector.shape_cast %1401 : vector<1x4x64xf32> to vector<4x64xf32>
    %cst_604 = arith.constant dense<0.000000e+00> : vector<4x256xf32>
    %1403 = tpu.matmul %1402, %1400, %cst_604 {dimension_numbers = #tpu.dot_dimension_numbers<[1], [0], [0], [1], [0, 0, 1, 1], [], []>} : vector<4x64xf32>, vector<64x256xf32>, vector<4x256xf32> -> vector<4x256xf32>
    %1404 = arith.addf %708, %1403 : vector<4x256xf32>
    %c1_605 = arith.constant 1 : index
    %c0_606 = arith.constant 0 : index
    %c0_607 = arith.constant 0 : index
    %1405 = vector.load %arg7[%c1_605, %c0_606, %c0_607] : memref<2x4x1xf32, #tpu.memory_space<vmem>>, vector<1x4x1xf32>
    %1406 = vector.shape_cast %1405 : vector<1x4x1xf32> to vector<4x1xf32>
    %1407 = vector.broadcast %1406 : vector<4x1xf32> to vector<4x256xf32>
    %1408 = arith.addf %1404, %1407 : vector<4x256xf32>
    %1409 = math.cos %1408 : vector<4x256xf32>
    %1410 = arith.mulf %707, %1409 : vector<4x256xf32>
    %1411 = math.sin %1408 : vector<4x256xf32>
    %1412 = arith.mulf %707, %1411 : vector<4x256xf32>
    %1413 = tpu.concatenate %1410, %1412 in 0 : vector<4x256xf32>, vector<4x256xf32> -> vector<8x256xf32>
    %c0_608 = arith.constant 0 : index
    %c0_609 = arith.constant 0 : index
    %c0_610 = arith.constant 0 : index
    %1414 = vector.load %arg10[%c0_608, %c0_609, %c0_610] : memref<1x8x256xf32, #tpu.memory_space<vmem>>, vector<1x8x256xf32>
    %1415 = vector.shape_cast %1414 : vector<1x8x256xf32> to vector<8x256xf32>
    %1416 = vector.shape_cast %1413 : vector<8x256xf32> to vector<1x8x256xf32>
    tpu.vector_store %arg10[%c0_608, %c0_609, %c0_610], %1416 {strides = array<i32>} : memref<1x8x256xf32, #tpu.memory_space<vmem>>, vector<1x8x256xf32>,
    return
  }
  func.func @transform_0(%arg0: i32) -> (i32, i32, i32) {
    %c0_i32 = arith.constant 0 : i32
    %c0_i32_0 = arith.constant 0 : i32
    %c0_i32_1 = arith.constant 0 : i32
    return %arg0, %c0_i32, %c0_i32_0 : i32, i32, i32
  }
  func.func @transform_1(%arg0: i32) -> (i32, i32, i32) {
    %c0_i32 = arith.constant 0 : i32
    %c0_i32_0 = arith.constant 0 : i32
    %c0_i32_1 = arith.constant 0 : i32
    %c0_i32_2 = arith.constant 0 : i32
    return %c0_i32, %c0_i32_0, %c0_i32_1 : i32, i32, i32
  }
  func.func @transform_2(%arg0: i32) -> (i32, i32, i32) {
    %c0_i32 = arith.constant 0 : i32
    %c0_i32_0 = arith.constant 0 : i32
    %c0_i32_1 = arith.constant 0 : i32
    %c0_i32_2 = arith.constant 0 : i32
    return %c0_i32, %c0_i32_0, %c0_i32_1 : i32, i32, i32
  }
  func.func @transform_3(%arg0: i32) -> (i32, i32, i32) {
    %c0_i32 = arith.constant 0 : i32
    %c0_i32_0 = arith.constant 0 : i32
    %c0_i32_1 = arith.constant 0 : i32
    %c0_i32_2 = arith.constant 0 : i32
    return %c0_i32, %c0_i32_0, %c0_i32_1 : i32, i32, i32
  }
  func.func @transform_4(%arg0: i32) -> (i32, i32, i32) {
    %c0_i32 = arith.constant 0 : i32
    %c0_i32_0 = arith.constant 0 : i32
    %c0_i32_1 = arith.constant 0 : i32
    %c0_i32_2 = arith.constant 0 : i32
    return %c0_i32, %c0_i32_0, %c0_i32_1 : i32, i32, i32
  }
  func.func @transform_5(%arg0: i32) -> (i32, i32, i32) {
    %c0_i32 = arith.constant 0 : i32
    %c0_i32_0 = arith.constant 0 : i32
    %c0_i32_1 = arith.constant 0 : i32
    %c0_i32_2 = arith.constant 0 : i32
    return %c0_i32, %c0_i32_0, %c0_i32_1 : i32, i32, i32
  }
  func.func @transform_6(%arg0: i32) -> (i32, i32, i32) {
    %c0_i32 = arith.constant 0 : i32
    %c0_i32_0 = arith.constant 0 : i32
    %c0_i32_1 = arith.constant 0 : i32
    %c0_i32_2 = arith.constant 0 : i32
    return %c0_i32, %c0_i32_0, %c0_i32_1 : i32, i32, i32
  }
  func.func @transform_7(%arg0: i32) -> (i32, i32) {
    %c0_i32 = arith.constant 0 : i32
    %c0_i32_0 = arith.constant 0 : i32
    %c0_i32_1 = arith.constant 0 : i32
    return %c0_i32, %c0_i32_0 : i32, i32
  }
  func.func @transform_8(%arg0: i32) -> (i32, i32) {
    %c0_i32 = arith.constant 0 : i32
    %c0_i32_0 = arith.constant 0 : i32
    %c0_i32_1 = arith.constant 0 : i32
    return %c0_i32, %c0_i32_0 : i32, i32
  }
  func.func @transform_9(%arg0: i32) -> (i32, i32, i32) {
    %c0_i32 = arith.constant 0 : i32
    %c0_i32_0 = arith.constant 0 : i32
    %c0_i32_1 = arith.constant 0 : i32
    return %arg0, %c0_i32, %c0_i32_0 : i32, i32, i32
  }
}

</mosaic_0001>

<bundles_post_ra>
// kernel: reverse.0
= control target key start
LH: loop header
LB: loop body
LE: loop exit
PB: predicated region body
PF: predicated region fallthrough
CT: control target
= control target key end

     0   :  { %v72_v3 = vlaneseq  ;;  %v65_v9 = vld [vmem:[#allocation0 + $0x7] ss:$-1 sm:$0xff]  ;;  %v79_v12 = vld [vmem:[#allocation0 + $0x17] ss:$-1 sm:$0xff]  ;;  %s331_s0 = inlined_call_operand.vmem [shape: f32[2,4,16,7], index: 0, kind: input, shape index: {}]   ;;  %s332_s1 = inlined_call_operand.vmem [shape: f32[2,4,16,7], index: 1, kind: output, shape index: {}]  }
   0x1   :  { %v45_v0 = vld [vmem:[%s331_s0] sm:$0xff]  ;;  %v47_v1 = vld [vmem:[%s331_s0 + $0x8] sm:$0xff]  ;;  %v49_v2 = vld [vmem:[%s331_s0 + $0x10] sm:$0xff]  ;;  %v66_v10 = vrot.slane %v65_v9, 1  ;;  %v80_v14 = vrot.slane %v79_v12, 1 }
   0x2   :  { %46 = vst [vmem:[#allocation0 + $0x8] sm:$0xff] %v45_v0  ;;  %48 = vst [vmem:[#allocation0 + $0x18] sm:$0xff] %v47_v1  ;;  %v51_v4 = vld [vmem:[%s331_s0 + $0x18] sm:$0xff]  ;;  %v53_v5 = vld [vmem:[%s331_s0 + $0x20] sm:$0xff]  ;;  %v73_v11 = vshrl.u32 %v72_v3, 7 }
   0x3   :  { %50 = vst [vmem:[#allocation0 + $0x28] sm:$0xff] %v49_v2  ;;  %v55_v6 = vld [vmem:[%s331_s0 + $0x28] sm:$0xff]  ;;  %52 = vst [vmem:[#allocation0 + $0x38] sm:$0xff] %v51_v4  ;;  %v57_v7 = vld [vmem:[%s331_s0 + $0x30] sm:$0xff] }
   0x4   :  { %54 = vst [vmem:[#allocation0 + $0x48] sm:$0xff] %v53_v5  ;;  %56 = vst [vmem:[#allocation0 + $0x58] sm:$0xff] %v55_v6  ;;  %v59_v8 = vld [vmem:[%s331_s0 + $0x38] sm:$0xff]  ;;  %v93_v13 = vld [vmem:[#allocation0 + $0x27] ss:$-1 sm:$0xff]  ;;  %vm74_vm0 = vcmp.lt.s32.totalorder %v73_v11, 7 }
   0x5   :  { %58 = vst [vmem:[#allocation0 + $0x68] sm:$0xff] %v57_v7  ;;  %60 = vst [vmem:[#allocation0 + $0x78] sm:$0xff] %v59_v8  ;;  %v94_v15 = vrot.slane %v93_v13, 1  ;;  %v107_v16 = vld [vmem:[#allocation0 + $0x37] ss:$-1 sm:$0xff] }
   0x6   :  { %67 = vst [vmem:[#allocation1] sm:$0xff] %v66_v10  ;;  %v108_v17 = vrot.slane %v107_v16, 1  ;;  %v121_v18 = vld [vmem:[#allocation0 + $0x47] ss:$-1 sm:$0xff]  ;;  %v135_v19 = vld [vmem:[#allocation0 + $0x57] ss:$-1 sm:$0xff] }
   0x7   :  { %81 = vst [vmem:[#allocation1 + $0x8] sm:$0xff] %v80_v14  ;;  %95 = vst [vmem:[#allocation1 + $0x10] sm:$0xff] %v94_v15  ;;  %v122_v20 = vrot.slane %v121_v18, 1  ;;  %v136_v21 = vrot.slane %v135_v19, 1  ;;  %v149_v22 = vld [vmem:[#allocation0 + $0x67] ss:$-1 sm:$0xff] }
   0x8   :  { %v163_v23 = vld [vmem:[#allocation0 + $0x77] ss:$-1 sm:$0xff]  ;;  %109 = vst [vmem:[#allocation1 + $0x18] sm:$0xff] %v108_v17  ;;  %v150_v24 = vrot.slane %v149_v22, 1 }
   0x9   :  { %v164_v25 = vrot.slane %v163_v23, 1  ;;  %v70_v26 = vld [vmem:[#allocation0 + $0xf] ss:$-1 sm:$0xff]  ;;  %v84_v27 = vld [vmem:[#allocation0 + $0x1f] ss:$-1 sm:$0xff]  ;;  %123 = vst [vmem:[#allocation1 + $0x20] sm:$0xff] %v122_v20 }
   0xa   :  { %v98_v28 = vld [vmem:[#allocation0 + $0x2f] ss:$-1 sm:$0xff]  ;;  %137 = vst [vmem:[#allocation1 + $0x28] sm:$0xff] %v136_v21  ;;  %v71_v29 = vrot.slane %v70_v26, 1  ;;  %v85_v30 = vrot.slane %v84_v27, 1  ;;  %151 = vst [vmem:[#allocation1 + $0x30] sm:$0xff] %v150_v24 }
   0xb   :  { %v99_v31 = vrot.slane %v98_v28, 1  ;;  %v112_v32 = vld [vmem:[#allocation0 + $0x3f] ss:$-1 sm:$0xff]  ;;  %165 = vst [vmem:[#allocation1 + $0x38] sm:$0xff] %v164_v25  ;;  %v126_v34 = vld [vmem:[#allocation0 + $0x4f] ss:$-1 sm:$0xff] }
   0xc   :  { %v113_v33 = vrot.slane %v112_v32, 1  ;;  %v140_v35 = vld [vmem:[#allocation0 + $0x5f] ss:$-1 sm:$0xff]  ;;  %75 = vst.msk [vmem:[#allocation1] sm:$0xff] %vm74_vm0, %v71_v29  ;;  %89 = vst.msk [vmem:[#allocation1 + $0x8] sm:$0xff] %vm74_vm0, %v85_v30  ;;  %v127_v36 = vrot.slane %v126_v34, 1 }
   0xd   :  { %103 = vst.msk [vmem:[#allocation1 + $0x10] sm:$0xff] %vm74_vm0, %v99_v31  ;;  %v141_v37 = vrot.slane %v140_v35, 1  ;;  %v154_v38 = vld [vmem:[#allocation0 + $0x6f] ss:$-1 sm:$0xff]  ;;  %v168_v39 = vld [vmem:[#allocation0 + $0x7f] ss:$-1 sm:$0xff] }
   0xe   :  { %117 = vst.msk [vmem:[#allocation1 + $0x18] sm:$0xff] %vm74_vm0, %v113_v33  ;;  %v155_v40 = vrot.slane %v154_v38, 1  ;;  %v169_v41 = vrot.slane %v168_v39, 1  ;;  %131 = vst.msk [vmem:[#allocation1 + $0x20] sm:$0xff] %vm74_vm0, %v127_v36 }
   0xf   :  { %145 = vst.msk [vmem:[#allocation1 + $0x28] sm:$0xff] %vm74_vm0, %v141_v37 }
  0x10   :  { %159 = vst.msk [vmem:[#allocation1 + $0x30] sm:$0xff] %vm74_vm0, %v155_v40  ;;  %173 = vst.msk [vmem:[#allocation1 + $0x38] sm:$0xff] %vm74_vm0, %v169_v41 }
  0x13   :  { %v216_v42 = vld [vmem:[#allocation1] sm:$0xff]  ;;  %v218_v43 = vld [vmem:[#allocation1 + $0x8] sm:$0xff] }
  0x14   :  { %v220_v44 = vld [vmem:[#allocation1 + $0x10] sm:$0xff]  ;;  %217 = vst [vmem:[%s332_s1] sm:$0xff] %v216_v42  ;;  %219 = vst [vmem:[%s332_s1 + $0x8] sm:$0xff] %v218_v43 }
  0x15   :  { %221 = vst [vmem:[%s332_s1 + $0x10] sm:$0xff] %v220_v44  ;;  %v222_v45 = vld [vmem:[#allocation1 + $0x18] sm:$0xff]  ;;  %v224_v46 = vld [vmem:[#allocation1 + $0x20] sm:$0xff] }
  0x16   :  { %223 = vst [vmem:[%s332_s1 + $0x18] sm:$0xff] %v222_v45  ;;  %v226_v47 = vld [vmem:[#allocation1 + $0x28] sm:$0xff]  ;;  %225 = vst [vmem:[%s332_s1 + $0x20] sm:$0xff] %v224_v46 }
  0x17   :  { %227 = vst [vmem:[%s332_s1 + $0x28] sm:$0xff] %v226_v47  ;;  %v228_v48 = vld [vmem:[#allocation1 + $0x30] sm:$0xff]  ;;  %v230_v49 = vld [vmem:[#allocation1 + $0x38] sm:$0xff] }
  0x18   :  { %229 = vst [vmem:[%s332_s1 + $0x30] sm:$0xff] %v228_v48  ;;  %231 = vst [vmem:[%s332_s1 + $0x38] sm:$0xff] %v230_v49 }

// kernel: fsda_forward.1
= control target key start
LH: loop header
LB: loop body
LE: loop exit
PB: predicated region body
PF: predicated region fallthrough
CT: control target
= control target key end

     0   :  { %s10268_s0 = inlined_call_operand.vmem [shape: f32[2,8,256], index: 0, kind: input, shape index: {}]   ;;  %s10269_s1 = inlined_call_operand.vmem [shape: f32[2,64,4], index: 1, kind: input, shape index: {}]   ;;  %s10270_s2 = inlined_call_operand.vmem [shape: f32[2,64,1], index: 2, kind: input, shape index: {}]   ;;  %s10271_s3 = inlined_call_operand.vmem [shape: f32[2,4,64], index: 3, kind: input, shape index: {}]   ;;  %s10272_s4 = inlined_call_operand.vmem [shape: f32[2,64,4], index: 4, kind: input, shape index: {}]   ;;  %s10273_s5 = inlined_call_operand.vmem [shape: f32[2,4,64], index: 5, kind: input, shape index: {}]   ;;  %s10274_s6 = inlined_call_operand.vmem [shape: f32[2,4,1], index: 6, kind: input, shape index: {}]   ;;  %s10275_s7 = inlined_call_operand.vmem [shape: f32[49,256], index: 7, kind: input, shape index: {}]   ;;  %s10276_s8 = inlined_call_operand.vmem [shape: f32[2,98], index: 8, kind: input, shape index: {}]   ;;  %s10277_s9 = inlined_call_operand.vmem [shape: f32[2,8,256], index: 9, kind: output, shape index: {}]  }
   0x1   :  { %10674 = sst [smem:[#allocation167_spill]] %s10268_s0 }
   0x2   :  { %10675 = sst [smem:[#allocation168_spill]] %s10269_s1 }
   0x3   :  { %10676 = sst [smem:[#allocation169_spill]] %s10270_s2 }
   0x4   :  { %10677 = sst [smem:[#allocation170_spill]] %s10271_s3 }
   0x5   :  { %10678 = sst [smem:[#allocation171_spill]] %s10272_s4 }
   0x6   :  { %10679 = sst [smem:[#allocation172_spill]] %s10273_s5 }
   0x7   :  { %10680 = sst [smem:[#allocation173_spill]] %s10274_s6 }
   0x8   :  { %10681 = sst [smem:[#allocation174_spill]] %s10275_s7 }
   0x9   :  { %10682 = sst [smem:[#allocation175_spill]] %s10276_s8 }
   0xa   :  { %10683 = sst [smem:[#allocation176_spill]] %s10277_s9 }
   0xb   :  { %14 = vsyncpa [#allocation3], 0  ;;  %s6608_s30 = smov 0  }
   0xc LB: > { %10684 = sst [smem:[#allocation5_spill]] %s6498_s30  ;;  %s5831_s10 = sadd.s32 4294967295, %s6498_s30   ;;  %s6498_s30 = sphi %s6608_s30, %s20_s30  }
   0xd   : > { %p5833_p0 = scmp.ge.s32.totalorder %s6498_s30, 1  ;;  %p245_p1 = scmp.lt.s32.totalorder %s6498_s30, 3 }
   0xe   : > { %s10685_s8 = sld [smem:[#allocation175_spill]]  ;;  %p6313_p3 = scmp.eq.s32.totalorder %s5831_s10, 0 }
   0xf   : > { %p6619_p2 = pnand %p5833_p0, %p245_p1 }
  0x11   : > { %p6309_p4 = pneg %p6619_p2 }
  0x13   : > { %p6310_p5 = pnand %p6313_p3, %p6309_p4 }
  0x14   : > { %s279_s13 = sshll.u32 %s10685_s8, 4  ;;  %s280_s13 = int_to_ptr.vmem [resolvable:$true] %s279_s13 }
  0x15   : > { %s6473_s15 = scalar_lea.vmem %s280_s13, 32  ;;  %p6475_p7 = pneg %p6310_p5 }
  0x16   : > { %p6474_p6 = scmp.ne.s32.totalorder %s280_s13, %s6473_s15  ;;  %p6481_p10 = scmp.lt.s32.totalorder %s280_s13, %s280_s13 }
  0x17   : > { %p6482_p11 = scmp.lt.s32.totalorder %s6473_s15, %s6473_s15 }
  0x18   : > { %p6476_p8 = pnand %p6475_p7, %p6474_p6 }
  0x19   : > { %p6483_p12 = por %p6482_p11, %p6481_p10 }
  0x1a   : > { %p6477_p9 = pneg %p6476_p8 }
  0x1c   : > { %p6484_p13 = pnand %p6483_p12, %p6477_p9 }
  0x1e   : > { %6487 = shalt.err (!%p6484_p13)
}
  0x1f   : > { %s6500_s16 = smov [#allocation2]   ;;  %300 = sbr.rel (%p6619_p2) target bundleno = 2972 (0xb9c), region = 56 }
  0x20   : > { %6312 = dma.vmem_to_smem (!%p6310_p5), %s280_s13, 32, %s6500_s16, [#allocation3]  }
  0x24   : > { %6493 = dma.done.wait (%p6313_p3), [#allocation3], 32  }
  0x25   : > { %6495 = vsyncadd (%p6313_p3), [#allocation3], 4294967264 }
  0x26   : > { %306 = sfence }
  0x27   : > { %p337_p0 = scmp.lt.s32.totalorder %s5831_s10, 1  ;;  %v10341_v0 = vmov 0.0   ;;  %v6502_v1 = vmov 0   ;;  %s10688_s2 = sld [smem:[#allocation169_spill]]  ;;  %vm439_vm0 = vcmask 1043456   ;;  %vm414_vm1 = vcmask 31744  }
  0x28   : > { %510 = vmatprep.mubr.f32.mxu0 %v10341_v0  ;;  %6231 = vmatprep.subr.mxu1 %v10341_v0  ;;  %s10689_s0 = sld [smem:[#allocation167_spill]]  ;;  %v349_v24 = vlaneseq  ;;  %vm6503_vm3 = vmmov 0   ;;  %vm681_vm4 = vcmask 7168   ;;  %vm691_vm5 = vcmask 523264   ;;  %s10315_s17 = smov 127  }
  0x29   : > { %s11578_s10 = smov (!%p337_p0, %s5831_s10), 1  ;;  %6382 = vset.pattern.permute.xlu1 %v6502_v1  ;;  %6381 = vset.pattern.permute.xlu0 %v6502_v1  ;;  %s10691_s1 = sld [smem:[#allocation168_spill]]  ;;  %vm1104_vm6 = vcmask 1040384  }
  0x2a   : > { %10687 = sst [smem:[#allocation6_spill]] %s11578_s10  ;;  %s10278_s21 = sshll.u32 %s11578_s10, 4  ;;  %v6729_v28 = vand.u32 127, %v349_v24  ;;  %6247 = vmatprep.mubr.msk.f32.mxu1 %vm6503_vm3, %v10341_v0 }
  0x2b   : > { %s10692_s3 = sld [smem:[#allocation170_spill]]  ;;  %s10313_s18 = smov 30  }
  0x2c   : > { %v6732_v34 = vadd.s32 128, %v6729_v28  ;;  %s10693_s4 = sld [smem:[#allocation171_spill]]  ;;  %s10309_s19 = smov 29   ;;  %vm1111_vm7 = vcmp.lt.s32.totalorder %v6729_v28, 30  ;;  %vm1150_vm8 = vcmp.lt.s32.totalorder %v6729_v28, 29  ;;  %vm1190_vm9 = vcmp.lt.s32.totalorder %v6729_v28, 28 }
  0x2d   : > { %v371_v2 = vld [vmem:[%s10688_s2 + $0x28] sm:$0xff]  ;;  %v373_v3 = vld [vmem:[%s10688_s2 + $0x38] sm:$0xff]  ;;  %v370_v5 = vld [vmem:[%s10688_s2 + $0x20] sm:$0xff]  ;;  %s10307_s20 = smov 28   ;;  %s10305_s22 = smov 27   ;;  %vm1230_vm10 = vcmp.lt.s32.totalorder %v6729_v28, 27 }
  0x2e   : > { %401 = vperm.xlu1 %6382, %v371_v2   ;;  %411 = vperm.xlu0 %6381, %v373_v3   ;;  %s6646_s24 = scalar_lea.vmem %s10689_s0, %s10278_s21  ;;  %v372_v8 = vld [vmem:[%s10688_s2 + $0x30] sm:$0xff]  ;;  %v369_v11 = vld [vmem:[%s10688_s2 + $0x18] sm:$0xff]  ;;  %v366_v12 = vld [vmem:[%s10688_s2] sm:$0xff]  ;;  %vm353_vm2 = vcmp.lt.s32.totalorder %v6732_v34, 144  ;;  %s10303_s23 = smov 26   ;;  %vm1270_vm11 = vcmp.lt.s32.totalorder %v6729_v28, 26 }
  0x2f   : > { %10690 = sst [smem:[#allocation7_spill]] %s6646_s24  ;;  %v358_v4 = vld [vmem:[%s10691_s1] sm:$0xff]  ;;  %v6655_v6 = vld [vmem:[%s6646_s24 + $0x8] sm:$0xff]  ;;  %v368_v9 = vld [vmem:[%s10688_s2 + $0x10] sm:$0xff]  ;;  %v6740_v47 = vsel %vm353_vm2, 1.0, %v10341_v0  ;;  %s10299_s25 = smov 25  }
  0x30   : > { %v6658_v7 = vld [vmem:[%s6646_s24] sm:$0xff]  ;;  %5843 = vmatprep.subr.msk.mxu0 %vm439_vm0, %v6655_v6  ;;  %v359_v10 = vld [vmem:[%s10691_s1 + $0x8] sm:$0xff]  ;;  %v360_v13 = vld [vmem:[%s10691_s1 + $0x10] sm:$0xff]  ;;  %s10297_s26 = smov 24   ;;  %s10295_s27 = smov 21   ;;  %vm10529_vm12 = vcmp.lt.s32.totalorder %v6729_v28, 25 }
  0x31   : > { %5844 = vmatpush1.msk.msra.mxu0 %vm439_vm0, %v6658_v7  ;;  %v367_v14 = vld [vmem:[%s10688_s2 + $0x8] sm:$0xff]  ;;  %v361_v15 = vld [vmem:[%s10691_s1 + $0x18] sm:$0xff]  ;;  %v362_v16 = vld [vmem:[%s10691_s1 + $0x20] sm:$0xff]  ;;  %s10291_s28 = smov 20   ;;  %s10289_s29 = smov 19   ;;  %vm10532_vm13 = vcmp.lt.s32.totalorder %v6729_v28, 24 }
  0x32   : > { %396 = vperm.xlu1 %6382, %v370_v5   ;;  %5845 = vmatmul.mubr.msk.f32.vlgmr.msra.gmra.mxu0 %vm414_vm1, %v358_v4  ;;  %v363_v17 = vld [vmem:[%s10691_s1 + $0x28] sm:$0xff]  ;;  %v364_v18 = vld [vmem:[%s10691_s1 + $0x30] sm:$0xff]  ;;  %v365_v19 = vld [vmem:[%s10691_s1 + $0x38] sm:$0xff]  ;;  %s10285_s11 = smov 18   ;;  %s10283_s12 = smov 17   ;;  %vm10569_vm14 = vcmp.lt.s32.totalorder %v6729_v28, 21 }
  0x33   : > { %406 = vperm.xlu0 %6381, %v372_v8   ;;  %516 = vmatprep.mubr.f32.mxu0 %v10341_v0  ;;  %s10279_s13 = smov 16   ;;  %s10281_s14 = smov 15   ;;  %vm10544_vm15 = vcmp.lt.s32.totalorder %v6729_v28, 20 }
  0x34   : > { %s10287_s15 = smov 12   ;;  %s7147_s16 = sld [smem:[#allocation2 + $0x18]] }
  0x35   : > { %s7149_s21 = sld [smem:[#allocation2 + $0x49]]  ;;  %s10319_s0 = smov 7  }
  0x36   : > { %386 = vperm.xlu1 %6382, %v368_v9   ;;  %5846 = vmatmul.mubr.msk.f32.gmra.mxu0 %vm414_vm1, %v359_v10  ;;  %s7249_s8 = sld [smem:[#allocation2 + $0x3a]]  ;;  %s10323_s30 = smov 6  }
  0x37   : > { %391 = vperm.xlu0 %6381, %v369_v11   ;;  %522 = vmatprep.mubr.f32.mxu0 %v10341_v0  ;;  %s7259_s9 = sld [smem:[#allocation2 + $0xa]]  ;;  %s10329_s6 = smov 3  }
  0x38   : > { %s7267_s10 = sld [smem:[#allocation2 + $0x3b]]  ;;  %s10334_s5 = smov 2  }
  0x39   : > { %s7284_s24 = sld [smem:[#allocation2 + $0x3c]] }
  0x3a   : > { %376 = vperm.xlu1 %6382, %v366_v12   ;;  %5847 = vmatmul.mubr.msk.f32.gmra.mxu0 %vm414_vm1, %v360_v13  ;;  %s10766_s7 = sld [smem:[#allocation174_spill]] }
  0x3b   : > { %381 = vperm.xlu0 %6381, %v367_v14   ;;  %528 = vmatprep.mubr.f32.mxu0 %v10341_v0 }
  0x3c   : > { %10731 = sst [smem:[#allocation45_spill]] %s7249_s8  ;;  %s10432_s8 = smov 121  }
  0x3d   : > { %10733 = sst [smem:[#allocation47_spill]] %s7259_s9 }
  0x3e   : > { %5848 = vmatmul.mubr.msk.f32.gmra.mxu0 %vm414_vm1, %v361_v15  ;;  %10736 = sst [smem:[#allocation50_spill]] %s7267_s10 }
  0x3f   : > { %534 = vmatprep.mubr.f32.mxu0 %v10341_v0  ;;  %10743 = sst [smem:[#allocation57_spill]] %s7284_s24 }
  0x40   : > { %v1130_v34 = vld [vmem:[%s10766_s7] ss:$8 sm:$0x3]  ;;  %s7390_s24 = sld [smem:[#allocation2 + $0x40]] }
  0x41   : > { %s7598_s9 = sld [smem:[#allocation2 + $0x17]] }
  0x42   : > { %5849 = vmatmul.mubr.msk.f32.gmra.mxu0 %vm414_vm1, %v362_v16  ;;  %s7642_s10 = sld [smem:[#allocation2 + $0x4a]] }
  0x43   : > { %540 = vmatprep.mubr.f32.mxu0 %v10341_v0 }
  0x46   : > { %5850 = vmatmul.mubr.msk.f32.gmra.mxu0 %vm414_vm1, %v363_v17 }
  0x47   : > { %546 = vmatprep.mubr.f32.mxu0 %v10341_v0  ;;  %10809 = sst [smem:[#allocation116_spill]] %s7598_s9 }
  0x48   : > { %s7779_s9 = sld [smem:[#allocation2 + $0x4f]] }
  0x4a   : > { %5851 = vmatmul.mubr.msk.f32.gmra.mxu0 %vm414_vm1, %v364_v18 }
  0x4b   : > { %552 = vmatprep.mubr.f32.mxu0 %v10341_v0 }
  0x4e   : > { %5852 = vmatmul.mubr.msk.f32.gmra.mxu0 %vm414_vm1, %v365_v19  ;;  %10846 = sst [smem:[#allocation147_spill]] %s7779_s9 }
  0x4f   : > { %3163 = vmatprep.mubr.f32.mxu0 %v10341_v0  ;;  %s7905_s9 = sld [smem:[#allocation2 + $0x21]] }
  0xa9   : > { %v6716_v20 = vpop.permute.xlu0 %411  ;;  %v402_v29 = vpop.permute.xlu1 %401 }
  0xad   : > { %v397_v37 = vpop.permute.xlu1 %396 }
  0xae   : > { %v407_v25 = vpop.permute.xlu0 %406 }
  0xb1   : > { %v387_v10 = vpop.permute.xlu1 %386 }
  0xb2   : > { %v392_v31 = vpop.permute.xlu0 %391 }
  0xf2   : > { %v6718_v21 = vpop.f32.mrf.mxu0 }
  0xf4   : > { %v6720_v22 = vpop.f32.mrf.mxu0 }
  0xf6   : > { %v6722_v23 = vpop.f32.mrf.mxu0 }
  0xf8   : > { %v6724_v26 = vpop.f32.mrf.mxu0 }
  0xfa   : > { %v6726_v27 = vpop.f32.mrf.mxu0 }
  0xfc   : > { %v526_v30 = vpop.f32.mrf.mxu0 }
  0xfd   : > { %v527_v14 = vadd.f32 %v526_v30, %v387_v10 }
  0xfe   : > { %v530_v32 = vpop.f32.mrf.mxu0 }
  0xff   : > { %v531_v33 = vadd.f32 %v530_v32, %v392_v31 }
 0x100   : > { %v532_v35 = vpop.f32.mrf.mxu0 }
 0x101   : > { %v533_v36 = vadd.f32 %v532_v35, %v392_v31  ;;  %v565_v39 = vmul.f32 0.1, %v531_v33 }
 0x102   : > { %v536_v38 = vpop.f32.mrf.mxu0 }
 0x103   : > { %v566_v40 = vmul.f32 0.1, %v533_v36  ;;  %v537_v41 = vadd.f32 %v536_v38, %v397_v37  ;;  %v6742_v48 = vmax.f32 %v531_v33, %v565_v39  ;;  %v377_v39 = vpop.permute.xlu1 %376 }
 0x104   : > { %v538_v42 = vpop.f32.mrf.mxu0 }
 0x105   : > { %v6735_v43 = vmax.f32 %v533_v36, %v566_v40  ;;  %v539_v44 = vadd.f32 %v538_v42, %v397_v37  ;;  %v567_v45 = vmul.f32 0.1, %v537_v41  ;;  %v564_v36 = vmul.f32 0.1, %v527_v14 }
 0x106   : > { %v542_v46 = vpop.f32.mrf.mxu0  ;;  %v525_v40 = vadd.f32 %v6726_v27, %v387_v10 }
 0x107   : > { %v568_v49 = vmul.f32 0.1, %v539_v44  ;;  %v543_v50 = vadd.f32 %v542_v46, %v402_v29  ;;  %v598_v51 = vmul.f32 %v6740_v47, %v6735_v43  ;;  %v6749_v56 = vmax.f32 %v537_v41, %v567_v45 }
 0x108   : > { %v544_v52 = vpop.f32.mrf.mxu0  ;;  %v6791_v45 = vmax.f32 %v527_v14, %v564_v36  ;;  %v648_v27 = vsel %vm353_vm2, %v6735_v43, -inf }
 0x109   : > { %v6746_v53 = vmax.f32 %v539_v44, %v568_v49  ;;  %v545_v54 = vadd.f32 %v544_v52, %v402_v29  ;;  %v616_v55 = vadd.f32 %v598_v51, %v6742_v48  ;;  %v569_v57 = vmul.f32 0.1, %v543_v50 }
 0x10a   : > { %v548_v58 = vpop.f32.mrf.mxu0  ;;  %v563_v51 = vmul.f32 0.1, %v525_v40 }
 0x10b   : > { %v570_v59 = vmul.f32 0.1, %v545_v54  ;;  %v549_v60 = vadd.f32 %v548_v58, %v407_v25  ;;  %617 = vadd.xlane.f32.xlu0 %v616_v55  ;;  %v650_v61 = vsel %vm353_vm2, %v6746_v53, -inf  ;;  %v600_v1 = vmul.f32 %v6740_v47, %v6746_v53 }
 0x10c   : > { %v550_v62 = vpop.f32.mrf.mxu0  ;;  %v669_v63 = vmax.f32 %v6749_v56, %v650_v61  ;;  %v6759_v4 = vmax.f32 %v543_v50, %v569_v57  ;;  %v666_v55 = vmax.f32 %v6742_v48, %v648_v27  ;;  %v596_v58 = vmul.f32 %v6740_v47, %v6791_v45 }
 0x10d   : > { %v6757_v2 = vmax.f32 %v545_v54, %v570_v59  ;;  %v551_v3 = vadd.f32 %v550_v62, %v407_v25  ;;  %v571_v5 = vmul.f32 0.1, %v549_v60  ;;  %v619_v9 = vadd.f32 %v600_v1, %v6749_v56  ;;  %v382_v25 = vpop.permute.xlu0 %381 }
 0x10e   : > { %v554_v8 = vpop.f32.mrf.mxu0  ;;  %670 = vmax.xlane.f32.xlu1 %v669_v63  ;;  %v521_v30 = vadd.f32 %v6724_v26, %v382_v25  ;;  %v515_v26 = vadd.f32 %v6720_v22, %v377_v39  ;;  %v519_v22 = vadd.f32 %v6722_v23, %v382_v25  ;;  %v646_v59 = vsel %vm353_vm2, %v6791_v45, -inf }
 0x10f   : > { %v572_v11 = vmul.f32 0.1, %v551_v3  ;;  %v555_v12 = vadd.f32 %v554_v8, %v6716_v20  ;;  %v652_v13 = vsel %vm353_vm2, %v6757_v2, -inf  ;;  %620 = vadd.xlane.f32.xlu0 %v619_v9  ;;  %v602_v17 = vmul.f32 %v6740_v47, %v6757_v2 }
 0x110   : > { %v556_v15 = vpop.f32.mrf.mxu0  ;;  %v672_v16 = vmax.f32 %v6759_v4, %v652_v13  ;;  %v6772_v29 = vmax.f32 %v549_v60, %v571_v5  ;;  %v562_v42 = vmul.f32 0.1, %v521_v30  ;;  %v560_v52 = vmul.f32 0.1, %v515_v26 }
 0x111   : > { %v6769_v18 = vmax.f32 %v551_v3, %v572_v11  ;;  %v557_v19 = vadd.f32 %v556_v15, %v6716_v20  ;;  %v573_v31 = vmul.f32 0.1, %v555_v12  ;;  %v622_v32 = vadd.f32 %v602_v17, %v6759_v4 }
 0x112   : > { %673 = vmax.xlane.f32.xlu1 %v672_v16  ;;  %v6801_v54 = vmax.f32 %v521_v30, %v562_v42  ;;  %v513_v60 = vadd.f32 %v6718_v21, %v377_v39  ;;  %v561_v23 = vmul.f32 0.1, %v519_v22  ;;  %v6811_v61 = vmax.f32 %v525_v40, %v563_v51 }
 0x113   : > { %v574_v33 = vmul.f32 0.1, %v557_v19  ;;  %v654_v35 = vsel %vm353_vm2, %v6769_v18, -inf  ;;  %623 = vadd.xlane.f32.xlu0 %v622_v32  ;;  %v604_v20 = vmul.f32 %v6740_v47, %v6769_v18  ;;  %v6785_v41 = vmax.f32 %v555_v12, %v573_v31 }
 0x114   : > { %v675_v37 = vmax.f32 %v6772_v29, %v654_v35  ;;  %v6813_v62 = vmax.f32 %v515_v26, %v560_v52  ;;  %v663_v63 = vmax.f32 %v6811_v61, %v646_v59  ;;  %v613_v1 = vadd.f32 %v596_v58, %v6811_v61 }
 0x115   : > { %v6782_v38 = vmax.f32 %v557_v19, %v574_v33  ;;  %v625_v46 = vadd.f32 %v604_v20, %v6772_v29  ;;  %v594_v3 = vmul.f32 %v6740_v47, %v6801_v54  ;;  %v644_v5 = vsel %vm353_vm2, %v6801_v54, -inf }
 0x116   : > { %676 = vmax.xlane.f32.xlu1 %v675_v37  ;;  %v559_v8 = vmul.f32 0.1, %v513_v60  ;;  %v6822_v21 = vmax.f32 %v519_v22, %v561_v23  ;;  %v592_v11 = vmul.f32 %v6740_v47, %v6813_v62  ;;  %v642_v14 = vsel %vm353_vm2, %v6813_v62, -inf }
 0x117   : > { %v656_v44 = vsel %vm353_vm2, %v6782_v38, -inf  ;;  %v606_v50 = vmul.f32 %v6740_v47, %v6782_v38 }
 0x118   : > { %v678_v49 = vmax.f32 %v6785_v41, %v656_v44  ;;  %v660_v9 = vmax.f32 %v6822_v21, %v644_v5  ;;  %v610_v10 = vadd.f32 %v594_v3, %v6822_v21  ;;  %v6828_v12 = vmax.f32 %v513_v60, %v559_v8  ;;  %v766_v5 = vld [vmem:[%s10693_s4] sm:$0xff] }
 0x119   : > { %v628_v57 = vadd.f32 %v606_v50, %v6785_v41 }
 0x11a   : > { %626 = vadd.xlane.f32.xlu1 %v625_v46  ;;  %679 = vmax.xlane.f32.xlu0 %v678_v49  ;;  %v607_v13 = vadd.f32 %v592_v11, %v6828_v12  ;;  %v657_v15 = vmax.f32 %v6828_v12, %v642_v14  ;;  %v3238_v11 = vrot.slane %v6658_v7, 4  ;;  %v767_v14 = vld [vmem:[%s10693_s4 + $0x8] sm:$0xff]  ;;  %v770_v7 = vld [vmem:[%s10693_s4 + $0x20] sm:$0xff] }
 0x11e   : > { %667 = vmax.xlane.f32.xlu1 %v666_v55  ;;  %629 = vadd.xlane.f32.xlu0 %v628_v57 }
 0x122   : > { %664 = vmax.xlane.f32.xlu1 %v663_v63  ;;  %614 = vadd.xlane.f32.xlu0 %v613_v1  ;;  %v690_v1 = vld [vmem:[%s10692_s3] sm:$0xf]  ;;  %s7307_s3 = sld [smem:[#allocation2 + $0x3d]] }
 0x126   : > { %661 = vmax.xlane.f32.xlu1 %v660_v9  ;;  %611 = vadd.xlane.f32.xlu0 %v610_v10  ;;  %v3239_v10 = vrot.slane %v6655_v6, 4  ;;  %v769_v6 = vld [vmem:[%s10693_s4 + $0x18] sm:$0xff] }
 0x128   : > { %10750 = sst [smem:[#allocation64_spill]] %s7307_s3  ;;  %s10343_s3 = smov 1  }
 0x12a   : > { %608 = vadd.xlane.f32.xlu0 %v607_v13 }
 0x12e   : > { %658 = vmax.xlane.f32.xlu0 %v657_v15  ;;  %v768_v15 = vld [vmem:[%s10693_s4 + $0x10] sm:$0xff] }
 0x194   : > { %v618_v16 = vpop.xlane.xlu0 %617 }
 0x195   : > { %v634_v27 = vmul.f32 0.0069444445, %v618_v16  ;;  %v771_v16 = vld [vmem:[%s10693_s4 + $0x28] sm:$0xff] }
 0x197   : > { %v671_v17 = vpop.xlane.xlu1 %670 }
 0x198   : > { %v621_v19 = vpop.xlane.xlu0 %620 }
 0x199   : > { %v635_v42 = vmul.f32 0.0069444445, %v621_v19  ;;  %v773_v19 = vld [vmem:[%s10693_s4 + $0x38] sm:$0xff] }
 0x19b   : > { %v674_v25 = vpop.xlane.xlu1 %673  ;;  %v686_v51 = vsel %vm681_vm4, %v635_v42, %v671_v17  ;;  %v772_v17 = vld [vmem:[%s10693_s4 + $0x30] sm:$0xff]  ;;  %s7295_s4 = sld [smem:[#allocation2 + $0xc]] }
 0x19c   : > { %v624_v31 = vpop.xlane.xlu0 %623 }
 0x19d   : > { %v636_v39 = vmul.f32 0.0069444445, %v624_v31  ;;  %v6020_v31 = vld [vmem:[%s10691_s1 + $0x48] sm:$0xff] }
 0x19f   : > { %v677_v32 = vpop.xlane.xlu1 %676  ;;  %v687_v46 = vsel %vm681_vm4, %v636_v39, %v674_v25  ;;  %v6019_v25 = vld [vmem:[%s10691_s1 + $0x40] sm:$0xff] }
 0x1a1   : > { %10746 = sst [smem:[#allocation60_spill]] %s7295_s4 }
 0x1a2   : > { %s7404_s4 = sld [smem:[#allocation2 + $0x10]] }
 0x1a3   : > { %v627_v30 = vpop.xlane.xlu1 %626  ;;  %v680_v33 = vpop.xlane.xlu0 %679 }
 0x1a4   : > { %v637_v36 = vmul.f32 0.0069444445, %v627_v30  ;;  %v6022_v30 = vld [vmem:[%s10691_s1 + $0x58] sm:$0xff] }
 0x1a6   : > { %v688_v44 = vsel %vm681_vm4, %v637_v36, %v677_v32  ;;  %v6021_v32 = vld [vmem:[%s10691_s1 + $0x50] sm:$0xff] }
 0x1a7   : > { %v630_v35 = vpop.xlane.xlu0 %629  ;;  %v668_v20 = vpop.xlane.xlu1 %667  ;;  %v6025_v36 = vld [vmem:[%s10691_s1 + $0x70] sm:$0xff] }
 0x1a8   : > { %v638_v37 = vmul.f32 0.0069444445, %v630_v35  ;;  %v685_v55 = vsel %vm681_vm4, %v634_v27, %v668_v20  ;;  %v6024_v35 = vld [vmem:[%s10691_s1 + $0x68] sm:$0xff]  ;;  %v6033_v27 = vld [vmem:[%s10688_s2 + $0x70] sm:$0xff] }
 0x1aa   : > { %v689_v40 = vsel %vm681_vm4, %v638_v37, %v680_v33  ;;  %v6023_v33 = vld [vmem:[%s10691_s1 + $0x60] sm:$0xff]  ;;  %v6026_v37 = vld [vmem:[%s10691_s1 + $0x78] sm:$0xff]  ;;  %s7228_s1 = sld [smem:[#allocation2 + $0x8]] }
 0x1ab   : > { %6232 = vmatpush3.msra.mxu1 %v689_v40  ;;  %v615_v26 = vpop.xlane.xlu0 %614  ;;  %v665_v49 = vpop.xlane.xlu1 %664 }
 0x1ac   : > { %6233 = vmatprep.subr.mxu1 %v10341_v0  ;;  %v633_v22 = vmul.f32 0.0069444445, %v615_v26 }
 0x1ad   : > { %6234 = vmatpush3.msra.mxu1 %v688_v44 }
 0x1ae   : > { %6235 = vmatprep.subr.mxu1 %v10341_v0  ;;  %v684_v58 = vsel %vm681_vm4, %v633_v22, %v665_v49  ;;  %v6032_v22 = vld [vmem:[%s10688_s2 + $0x68] sm:$0xff] }
 0x1af   : > { %6236 = vmatpush3.msra.mxu1 %v687_v46  ;;  %v612_v50 = vpop.xlane.xlu0 %611  ;;  %v662_v59 = vpop.xlane.xlu1 %661 }
 0x1b0   : > { %6237 = vmatprep.subr.mxu1 %v10341_v0  ;;  %v632_v52 = vmul.f32 0.0069444445, %v612_v50  ;;  %v6034_v50 = vld [vmem:[%s10688_s2 + $0x78] sm:$0xff]  ;;  %10726 = sst [smem:[#allocation40_spill]] %s7228_s1 }
 0x1b1   : > { %6238 = vmatpush3.msra.mxu1 %v686_v51  ;;  %v6031_v51 = vld [vmem:[%s10688_s2 + $0x60] sm:$0xff]  ;;  %s7572_s1 = sld [smem:[#allocation2 + $0x16]] }
 0x1b2   : > { %6239 = vmatprep.subr.mxu1 %v10341_v0  ;;  %v683_v23 = vsel %vm681_vm4, %v632_v52, %v662_v59  ;;  %v6030_v52 = vld [vmem:[%s10688_s2 + $0x58] sm:$0xff] }
 0x1b3   : > { %6240 = vmatpush3.msra.mxu1 %v685_v55  ;;  %v609_v57 = vpop.xlane.xlu0 %608  ;;  %v6029_v55 = vld [vmem:[%s10688_s2 + $0x50] sm:$0xff] }
 0x1b4   : > { %6241 = vmatprep.subr.mxu1 %v10341_v0  ;;  %v631_v60 = vmul.f32 0.0069444445, %v609_v57  ;;  %v6028_v57 = vld [vmem:[%s10688_s2 + $0x48] sm:$0xff] }
 0x1b5   : > { %6242 = vmatpush3.msra.mxu1 %v684_v58  ;;  %v6027_v58 = vld [vmem:[%s10688_s2 + $0x40] sm:$0xff]  ;;  %s7232_s2 = sld [smem:[#allocation2 + $0x39]] }
 0x1b6   : > { %6243 = vmatprep.subr.mxu1 %v10341_v0 }
 0x1b7   : > { %6244 = vmatpush3.msra.mxu1 %v683_v23  ;;  %v659_v63 = vpop.xlane.xlu0 %658 }
 0x1b8   : > { %6245 = vmatprep.subr.mxu1 %v10341_v0  ;;  %v682_v3 = vsel %vm681_vm4, %v631_v60, %v659_v63 }
 0x1b9   : > { %6246 = vmatpush3.msra.mxu1 %v682_v3 }
 0x1ba   : > { %6248 = vmatmul.mubr.msk.f32.vlgmr.msra.gmra.mxu1 %vm691_vm5, %v690_v1 }
 0x1bb   : > { %6252 = vmatprep.mubr.msk.f32.mxu1 %vm414_vm1, %v766_v5  ;;  %10727 = sst [smem:[#allocation41_spill]] %s7232_s2  ;;  %s10451_s2 = smov 120  }
 0x27a   : > { %v761_v8 = vpop.f32.mrf.mxu1 }
 0x27b   : > { %v765_v9 = vmax.f32 %v761_v8, 0.0 }
 0x27c   : > { %v6249_v13 = vpop.f32.mrf.mxu1 }
 0x27d   : > { %6250 = vmatprep.subr.msk.mxu1 %vm439_vm0, %v765_v9 }
 0x27e   : > { %6251 = vmatpush3.msk.msra.mxu1 %vm439_vm0, %v765_v9 }
 0x27f   : > { %6253 = vmatmul.mubr.msk.f32.vlgmr.msra.gmra.mxu1 %vm414_vm1, %v767_v14  ;;  %6035 = vmatprep.subr.msk.mxu1 %vm439_vm0, %v3239_v10 }
 0x280   : > { %6255 = vmatprep.mubr.msk.f32.mxu1 %vm414_vm1, %v768_v15  ;;  %6036 = vmatpush1.msk.msra.mxu1 %vm439_vm0, %v3238_v11 }
 0x283   : > { %6256 = vmatmul.mubr.msk.f32.gmra.mxu1 %vm414_vm1, %v769_v6 }
 0x284   : > { %6258 = vmatprep.mubr.msk.f32.mxu1 %vm414_vm1, %v770_v7 }
 0x287   : > { %6259 = vmatmul.mubr.msk.f32.gmra.mxu1 %vm414_vm1, %v771_v16 }
 0x288   : > { %6261 = vmatprep.mubr.msk.f32.mxu1 %vm414_vm1, %v772_v17 }
 0x28b   : > { %6262 = vmatmul.mubr.msk.f32.gmra.mxu1 %vm414_vm1, %v773_v19 }
 0x28c   : > { %3332 = vmatprep.mubr.f32.mxu1 %v10341_v0 }
 0x28f   : > { %6037 = vmatmul.mubr.msk.f32.vlgmr.msra.gmra.mxu1 %vm414_vm1, %v6019_v25 }
 0x290   : > { %3338 = vmatprep.mubr.f32.mxu1 %v10341_v0 }
 0x293   : > { %6038 = vmatmul.mubr.msk.f32.gmra.mxu1 %vm414_vm1, %v6020_v31 }
 0x294   : > { %3344 = vmatprep.mubr.f32.mxu1 %v10341_v0 }
 0x297   : > { %6039 = vmatmul.mubr.msk.f32.gmra.mxu1 %vm414_vm1, %v6021_v32 }
 0x298   : > { %3350 = vmatprep.mubr.f32.mxu1 %v10341_v0 }
 0x29b   : > { %6040 = vmatmul.mubr.msk.f32.gmra.mxu1 %vm414_vm1, %v6022_v30 }
 0x29c   : > { %3356 = vmatprep.mubr.f32.mxu1 %v10341_v0 }
 0x29f   : > { %6041 = vmatmul.mubr.msk.f32.gmra.mxu1 %vm414_vm1, %v6023_v33 }
 0x2a0   : > { %3362 = vmatprep.mubr.f32.mxu1 %v10341_v0 }
 0x2a3   : > { %6042 = vmatmul.mubr.msk.f32.gmra.mxu1 %vm414_vm1, %v6024_v35 }
 0x2a4   : > { %3368 = vmatprep.mubr.f32.mxu1 %v10341_v0 }
 0x2a7   : > { %6043 = vmatmul.mubr.msk.f32.gmra.mxu1 %vm414_vm1, %v6025_v36 }
 0x2a8   : > { %3374 = vmatprep.mubr.f32.mxu1 %v10341_v0 }
 0x2ab   : > { %6044 = vmatmul.mubr.msk.f32.gmra.mxu1 %vm414_vm1, %v6026_v37 }
 0x2ac   : > { %5299 = vmatprep.mubr.f32.mxu1 %v10341_v0 }
 0x33f   : > { %v6254_v20 = vpop.f32.mrf.mxu1 }
 0x340   : > { %916 = vrot.lane.b32.xlu0 %v6254_v20, %s10315_s17 }
 0x341   : > { %v867_v39 = vpop.f32.mrf.mxu1 }
 0x342   : > { %914 = vrot.lane.b32.xlu1 %v867_v39, %s10315_s17 }
 0x343   : > { %v6257_v40 = vpop.f32.mrf.mxu1 }
 0x345   : > { %v877_v26 = vpop.f32.mrf.mxu1 }
 0x346   : > { %918 = vrot.lane.b32.xlu1 %v877_v26, %s10315_s17 }
 0x347   : > { %v6260_v42 = vpop.f32.mrf.mxu1 }
 0x349   : > { %v887_v44 = vpop.f32.mrf.mxu1 }
 0x34a   : > { %920 = vrot.lane.b32.xlu1 %v6257_v40, %s10315_s17  ;;  %922 = vrot.lane.b32.xlu0 %v887_v44, %s10315_s17 }
 0x34b   : > { %v6263_v46 = vpop.f32.mrf.mxu1 }
 0x34d   : > { %v897_v49 = vpop.f32.mrf.mxu1 }
 0x34e   : > { %924 = vrot.lane.b32.xlu1 %v6260_v42, %s10315_s17  ;;  %926 = vrot.lane.b32.xlu0 %v897_v49, %s10315_s17 }
 0x352   : > { %928 = vrot.lane.b32.xlu1 %v6263_v46, %s10315_s17  ;;  %3235 = vperm.xlu0 %6381, %v6034_v50   ;;  %s7208_s17 = sld [smem:[#allocation2 + $0x7]] }
 0x356   : > { %3230 = vperm.xlu1 %6382, %v6033_v27   ;;  %3225 = vperm.xlu0 %6381, %v6032_v22  }
 0x358   : > { %10722 = sst [smem:[#allocation36_spill]] %s7208_s17  ;;  %s10388_s17 = smov 125  }
 0x35a   : > { %3220 = vperm.xlu1 %6382, %v6031_v51   ;;  %3215 = vperm.xlu0 %6381, %v6030_v52  }
 0x35e   : > { %3210 = vperm.xlu1 %6382, %v6029_v55   ;;  %3205 = vperm.xlu0 %6381, %v6028_v57  }
 0x362   : > { %3200 = vperm.xlu1 %6382, %v6027_v58  }
 0x3b2   : > { %v917_v59 = vpop.permute.xlu0 %916 }
 0x3b3   : > { %v939_v60 = vadd.f32 %v6254_v20, %v917_v59 }
 0x3b4   : > { %v915_v23 = vpop.permute.xlu1 %914 }
 0x3b5   : > { %v5864_v63 = vmul.f32 -1.442695, %v939_v60  ;;  %v938_v1 = vadd.f32 %v915_v23, %v867_v39 }
 0x3b7   : > { %6383 = vpow2.f32 %v5864_v63  ;;  %v5863_v3 = vmul.f32 -1.442695, %v938_v1 }
 0x3b8   : > { %v919_v5 = vpop.permute.xlu1 %918 }
 0x3b9   : > { %6385 = vpow2.f32 %v5863_v3  ;;  %v940_v8 = vadd.f32 %v919_v5, %v877_v26 }
 0x3bb   : > { %v5865_v9 = vmul.f32 -1.442695, %v940_v8 }
 0x3bc   : > { %v921_v10 = vpop.permute.xlu1 %920  ;;  %v923_v11 = vpop.permute.xlu0 %922 }
 0x3bd   : > { %6387 = vpow2.f32 %v5865_v9  ;;  %v941_v13 = vadd.f32 %v6257_v40, %v921_v10  ;;  %v942_v14 = vadd.f32 %v923_v11, %v887_v44 }
 0x3bf   : > { %v5866_v15 = vmul.f32 -1.442695, %v941_v13  ;;  %v5867_v6 = vmul.f32 -1.442695, %v942_v14 }
 0x3c0   : > { %v925_v7 = vpop.permute.xlu1 %924  ;;  %v927_v16 = vpop.permute.xlu0 %926 }
 0x3c1   : > { %6389 = vpow2.f32 %v5866_v15  ;;  %v943_v17 = vadd.f32 %v6260_v42, %v925_v7  ;;  %v944_v19 = vadd.f32 %v927_v16, %v897_v49 }
 0x3c2   : > { %6391 = vpow2.f32 %v5867_v6 }
 0x3c3   : > { %v5868_v25 = vmul.f32 -1.442695, %v943_v17  ;;  %v5869_v31 = vmul.f32 -1.442695, %v944_v19 }
 0x3c4   : > { %v6384_v32 = vpop.eup %6383  ;;  %v929_v30 = vpop.permute.xlu1 %928 }
 0x3c5   : > { %v971_v33 = vadd.f32 1.0, %v6384_v32  ;;  %6393 = vpow2.f32 %v5868_v25  ;;  %v945_v35 = vadd.f32 %v6263_v46, %v929_v30 }
 0x3c6   : > { %v6386_v36 = vpop.eup %6385  ;;  %6395 = vpow2.f32 %v5869_v31 }
 0x3c7   : > { %6397 = vrcp.f32 %v971_v33  ;;  %v970_v37 = vadd.f32 1.0, %v6386_v36  ;;  %v5870_v20 = vmul.f32 -1.442695, %v945_v35 }
 0x3c9   : > { %6399 = vrcp.f32 %v970_v37 }
 0x3ca   : > { %v6388_v39 = vpop.eup %6387  ;;  %6401 = vpow2.f32 %v5870_v20 }
 0x3cb   : > { %v972_v40 = vadd.f32 1.0, %v6388_v39 }
 0x3cd   : > { %6403 = vrcp.f32 %v972_v40  ;;  %v6967_v3 = vpop.permute.xlu0 %3235 }
 0x3ce   : > { %v6390_v26 = vpop.eup %6389 }
 0x3cf   : > { %v6392_v42 = vpop.eup %6391  ;;  %v973_v44 = vadd.f32 1.0, %v6390_v26 }
 0x3d0   : > { %v974_v49 = vadd.f32 1.0, %v6392_v42 }
 0x3d1   : > { %6405 = vrcp.f32 %v973_v44  ;;  %v6969_v5 = vpop.permute.xlu1 %3230  ;;  %v6971_v8 = vpop.permute.xlu0 %3225 }
 0x3d2   : > { %v6394_v50 = vpop.eup %6393  ;;  %6407 = vrcp.f32 %v974_v49 }
 0x3d3   : > { %v6396_v27 = vpop.eup %6395  ;;  %v975_v22 = vadd.f32 1.0, %v6394_v50 }
 0x3d4   : > { %v6398_v46 = vpop.eup %6397  ;;  %v976_v51 = vadd.f32 1.0, %v6396_v27 }
 0x3d5   : > { %6409 = vrcp.f32 %v975_v22  ;;  %1001 = vperm.xlu1 %6382, %v6398_v46   ;;  %v6973_v9 = vpop.permute.xlu1 %3220  ;;  %v6975_v10 = vpop.permute.xlu0 %3215 }
 0x3d6   : > { %v6400_v52 = vpop.eup %6399  ;;  %6411 = vrcp.f32 %v976_v51 }
 0x3d7   : > { %v6402_v55 = vpop.eup %6401  ;;  %996 = vperm.xlu0 %6381, %v6400_v52  }
 0x3d8   : > { %v977_v57 = vadd.f32 1.0, %v6402_v55 }
 0x3d9   : > { %v6977_v11 = vpop.permute.xlu1 %3210  ;;  %v6979_v13 = vpop.permute.xlu0 %3205 }
 0x3da   : > { %v6404_v58 = vpop.eup %6403  ;;  %6413 = vrcp.f32 %v977_v57 }
 0x3db   : > { %1006 = vperm.xlu0 %6381, %v6404_v58  }
 0x3dd   : > { %v6981_v14 = vpop.permute.xlu1 %3200 }
 0x3de   : > { %v6406_v59 = vpop.eup %6405 }
 0x3df   : > { %v6408_v60 = vpop.eup %6407  ;;  %1011 = vperm.xlu1 %6382, %v6406_v59  }
 0x3e0   : > { %1016 = vperm.xlu0 %6381, %v6408_v60  }
 0x3e2   : > { %v6410_v23 = vpop.eup %6409 }
 0x3e3   : > { %v6412_v63 = vpop.eup %6411  ;;  %1021 = vperm.xlu1 %6382, %v6410_v23  }
 0x3e4   : > { %1026 = vperm.xlu0 %6381, %v6412_v63  }
 0x3e7   : > { %v6414_v1 = vpop.eup %6413 }
 0x3e8   : > { %1031 = vperm.xlu1 %6382, %v6414_v1  }
 0x450   : > { %v1002_v6 = vpop.permute.xlu1 %1001 }
 0x451   : > { %v6990_v19 = vmul.f32 %v1002_v6, %v6822_v21  ;;  %v6993_v25 = vmul.f32 %v1002_v6, %v6801_v54 }
 0x452   : > { %v997_v15 = vpop.permute.xlu0 %996 }
 0x453   : > { %v6984_v7 = vmul.f32 %v997_v15, %v6828_v12  ;;  %v6987_v16 = vmul.f32 %v997_v15, %v6813_v62  ;;  %10696 = vst [vmem:[#allocation10_spill] sm:$0xff] %v6990_v19  ;;  %10697 = vst [vmem:[#allocation11_spill] sm:$0xff] %v6993_v25 }
 0x455   : > { %10694 = vst [vmem:[#allocation8_spill] sm:$0xff] %v6984_v7  ;;  %10695 = vst [vmem:[#allocation9_spill] sm:$0xff] %v6987_v16  ;;  %v1050_v12 = vadd.f32 %v6990_v19, %v6984_v7  ;;  %v1063_v62 = vadd.f32 %v6993_v25, %v6987_v16 }
 0x456   : > { %v1007_v17 = vpop.permute.xlu0 %1006 }
 0x457   : > { %v6996_v31 = vmul.f32 %v1007_v17, %v6811_v61  ;;  %v6999_v32 = vmul.f32 %v1007_v17, %v6791_v45 }
 0x459   : > { %10698 = vst [vmem:[#allocation12_spill] sm:$0xff] %v6996_v31  ;;  %10699 = vst [vmem:[#allocation13_spill] sm:$0xff] %v6999_v32  ;;  %v1051_v33 = vadd.f32 %v1050_v12, %v6996_v31  ;;  %v1064_v21 = vadd.f32 %v1063_v62, %v6999_v32  ;;  %v1078_v44 = vmax.f32 %v6984_v7, %v6996_v31  ;;  %v5904_v31 = vld [vmem:[%s10766_s7 + $0x13] ss:$8 sm:$0x3] }
 0x45a   : > { %v1012_v30 = vpop.permute.xlu1 %1011 }
 0x45b   : > { %v7008_v54 = vmul.f32 %v1012_v30, %v6742_v48  ;;  %v7011_v61 = vmul.f32 %v1012_v30, %v6735_v43  ;;  %v1017_v35 = vpop.permute.xlu0 %1016 }
 0x45c   : > { %v7016_v37 = vmul.f32 %v1017_v35, %v6749_v56  ;;  %v7019_v20 = vmul.f32 %v1017_v35, %v6746_v53  ;;  %v1091_v56 = vmax.f32 %v6987_v16, %v6999_v32 }
 0x45d   : > { %10700 = vst [vmem:[#allocation14_spill] sm:$0xff] %v7008_v54  ;;  %10701 = vst [vmem:[#allocation15_spill] sm:$0xff] %v7011_v61  ;;  %v1052_v45 = vadd.f32 %v1051_v33, %v7008_v54  ;;  %v1065_v36 = vadd.f32 %v1064_v21, %v7011_v61  ;;  %v1092_v27 = vmax.f32 %v6993_v25, %v7011_v61  ;;  %v5910_v61 = vld [vmem:[%s10766_s7 + $0x15] ss:$8 sm:$0x3] }
 0x45e   : > { %10702 = vst [vmem:[#allocation16_spill] sm:$0xff] %v7016_v37  ;;  %10703 = vst [vmem:[#allocation17_spill] sm:$0xff] %v7019_v20  ;;  %v1022_v39 = vpop.permute.xlu1 %1021  ;;  %v1080_v22 = vmax.f32 %v1078_v44, %v7016_v37  ;;  %v1093_v46 = vmax.f32 %v1091_v56, %v7019_v20 }
 0x45f   : > { %v1053_v40 = vadd.f32 %v1052_v45, %v7016_v37  ;;  %v1066_v48 = vadd.f32 %v1065_v36, %v7019_v20  ;;  %v7024_v26 = vmul.f32 %v1022_v39, %v6759_v4  ;;  %v7027_v43 = vmul.f32 %v1022_v39, %v6757_v2  ;;  %v1027_v42 = vpop.permute.xlu0 %1026 }
 0x460   : > { %v7036_v50 = vmul.f32 %v1027_v42, %v6772_v29  ;;  %v7039_v4 = vmul.f32 %v1027_v42, %v6769_v18  ;;  %v1079_v2 = vmax.f32 %v6990_v19, %v7008_v54  ;;  %v5898_v19 = vld [vmem:[%s10766_s7 + $0x11] ss:$8 sm:$0x3] }
 0x461   : > { %10704 = vst [vmem:[#allocation18_spill] sm:$0xff] %v7024_v26  ;;  %10705 = vst [vmem:[#allocation19_spill] sm:$0xff] %v7027_v43  ;;  %v1054_v53 = vadd.f32 %v1053_v40, %v7024_v26  ;;  %v1067_v49 = vadd.f32 %v1066_v48, %v7027_v43  ;;  %v1094_v18 = vmax.f32 %v1092_v27, %v7027_v43 }
 0x462   : > { %10706 = vst [vmem:[#allocation20_spill] sm:$0xff] %v7036_v50  ;;  %10707 = vst [vmem:[#allocation21_spill] sm:$0xff] %v7039_v4  ;;  %v1081_v29 = vmax.f32 %v1079_v2, %v7024_v26  ;;  %v1082_v59 = vmax.f32 %v1080_v22, %v7036_v50  ;;  %v1095_v60 = vmax.f32 %v1093_v46, %v7039_v4  ;;  %v5913_v26 = vld [vmem:[%s10766_s7 + $0x16] ss:$8 sm:$0x3] }
 0x463   : > { %v1055_v51 = vadd.f32 %v1054_v53, %v7036_v50  ;;  %v1068_v52 = vadd.f32 %v1067_v49, %v7039_v4  ;;  %v1032_v55 = vpop.permute.xlu1 %1031  ;;  %v5916_v50 = vld [vmem:[%s10766_s7 + $0x17] ss:$8 sm:$0x3] }
 0x464   : > { %v7052_v57 = vmul.f32 %v1032_v55, %v6785_v41  ;;  %v7055_v58 = vmul.f32 %v1032_v55, %v6782_v38 }
 0x466   : > { %10708 = vst [vmem:[#allocation22_spill] sm:$0xff] %v7052_v57  ;;  %10709 = vst [vmem:[#allocation23_spill] sm:$0xff] %v7055_v58  ;;  %v1056_v23 = vadd.f32 %v1055_v51, %v7052_v57  ;;  %v1069_v63 = vadd.f32 %v1068_v52, %v7055_v58  ;;  %v1083_v1 = vmax.f32 %v1081_v29, %v7052_v57 }
 0x467   : > { %v1096_v15 = vmax.f32 %v1094_v18, %v7055_v58 }
 0x468   : > { %v1057_v6 = vrot.slane %v1056_v23, 4  ;;  %v1070_v17 = vrot.slane %v1069_v63, 4  ;;  %v1084_v12 = vmax.f32 %v1082_v59, %v1083_v1 }
 0x469   : > { %v1097_v41 = vmax.f32 %v1095_v60, %v1096_v15  ;;  %v7073_v60 = vpop.f32.mrf.mxu1 }
 0x46a   : > { %v1058_v62 = vadd.f32 %v1057_v6, %v1056_v23  ;;  %v1071_v30 = vadd.f32 %v1070_v17, %v1069_v63  ;;  %v1085_v38 = vrot.slane %v1084_v12, 4 }
 0x46b   : > { %v1098_v33 = vrot.slane %v1097_v41, 4  ;;  %v7079_v23 = vpop.f32.mrf.mxu1 }
 0x46c   : > { %v1059_v21 = vrot.slane %v1058_v62, 2  ;;  %v1072_v35 = vrot.slane %v1071_v30, 2  ;;  %v1086_v45 = vmax.f32 %v1084_v12, %v1085_v38 }
 0x46d   : > { %v1099_v36 = vmax.f32 %v1097_v41, %v1098_v33  ;;  %v7085_v63 = vpop.f32.mrf.mxu1 }
 0x46e   : > { %v1060_v39 = vadd.f32 %v1059_v21, %v1058_v62  ;;  %v1073_v40 = vadd.f32 %v1072_v35, %v1071_v30  ;;  %v1087_v48 = vrot.slane %v1086_v45, 2 }
 0x46f   : > { %v1100_v42 = vrot.slane %v1099_v36, 2  ;;  %v7091_v1 = vpop.f32.mrf.mxu1 }
 0x470   : > { %v1061_v44 = vrot.slane %v1060_v39, 1  ;;  %v1074_v56 = vrot.slane %v1073_v40, 1  ;;  %v1088_v53 = vmax.f32 %v1086_v45, %v1087_v48 }
 0x471   : > { %v1101_v49 = vmax.f32 %v1099_v36, %v1100_v42  ;;  %v7097_v15 = vpop.f32.mrf.mxu1 }
 0x472   : > { %v1062_v2 = vadd.f32 %v1061_v44, %v1060_v39  ;;  %v1075_v27 = vadd.f32 %v1074_v56, %v1073_v40  ;;  %v1089_v22 = vrot.slane %v1088_v53, 1 }
 0x473   : > { %v1102_v46 = vrot.slane %v1101_v49, 1  ;;  %v7103_v6 = vpop.f32.mrf.mxu1 }
 0x474   : > { %v1076_v51 = vmul.f32 0.015625, %v1062_v2  ;;  %v1077_v52 = vmul.f32 0.015625, %v1075_v27  ;;  %v1090_v55 = vmax.f32 %v1088_v53, %v1089_v22 }
 0x475   : > { %v1103_v29 = vmax.f32 %v1101_v49, %v1102_v46  ;;  %v7109_v17 = vpop.f32.mrf.mxu1 }
 0x476   : > { %v7064_v18 = vsel %vm1104_vm6, %v1076_v51, %v1090_v55 }
 0x477   : > { %v7067_v59 = vsel %vm1104_vm6, %v1077_v52, %v1103_v29  ;;  %1107 = vrot.lane.b32.xlu0 %v7064_v18, %s10313_s18  ;;  %v7115_v12 = vpop.f32.mrf.mxu1  ;;  %v3353_v52 = vadd.f32 %v7109_v17, %v6975_v10 }
 0x478   : > { %1109 = vrot.lane.b32.xlu1 %v7067_v59, %s10313_s18  ;;  %s7202_s18 = sld [smem:[#allocation2 + $0x37]]  ;;  %v3355_v22 = vadd.f32 %v7115_v12, %v6975_v10  ;;  %v3343_v12 = vadd.f32 %v7091_v1, %v6979_v13 }
 0x479   : > { %v7121_v41 = vpop.f32.mrf.mxu1 }
 0x47a   : > { %v3359_v27 = vadd.f32 %v7121_v41, %v6973_v9  ;;  %v3388_v41 = vmul.f32 0.1, %v3355_v22 }
 0x47b   : > { %1146 = vrot.lane.b32.xlu0 %v7064_v18, %s10309_s19  ;;  %v3360_v62 = vpop.f32.mrf.mxu1 }
 0x47c   : > { %1148 = vrot.lane.b32.xlu1 %v7067_v59, %s10309_s19  ;;  %v3361_v49 = vadd.f32 %v3360_v62, %v6973_v9  ;;  %s10317_s19 = smov 8   ;;  %v3347_v9 = vadd.f32 %v7097_v15, %v6977_v11  ;;  %v3389_v17 = vmul.f32 0.1, %v3359_v27  ;;  %v3341_v62 = vadd.f32 %v7085_v63, %v6979_v13 }
 0x47d   : > { %v3364_v30 = vpop.f32.mrf.mxu1 }
 0x47e   : > { %v3365_v2 = vadd.f32 %v3364_v30, %v6971_v8  ;;  %10721 = sst [smem:[#allocation35_spill]] %s7202_s18  ;;  %v3390_v29 = vmul.f32 0.1, %v3361_v49 }
 0x47f   : > { %1186 = vrot.lane.b32.xlu0 %v7064_v18, %s10307_s20  ;;  %v3366_v38 = vpop.f32.mrf.mxu1  ;;  %s7655_s18 = sld [smem:[#allocation2 + $0x1a]] }
 0x480   : > { %1188 = vrot.lane.b32.xlu1 %v7067_v59, %s10307_s20  ;;  %v3367_v40 = vadd.f32 %v3366_v38, %v6971_v8  ;;  %s7190_s20 = sld [smem:[#allocation2 + $0x36]]  ;;  %v3349_v8 = vadd.f32 %v7103_v6, %v6977_v11  ;;  %v3391_v10 = vmul.f32 0.1, %v3365_v2  ;;  %v3337_v6 = vadd.f32 %v7079_v23, %v6981_v14 }
 0x481   : > { %v3370_v33 = vpop.f32.mrf.mxu1  ;;  %v3387_v23 = vmul.f32 0.1, %v3353_v52  ;;  %v3335_v38 = vadd.f32 %v7073_v60, %v6981_v14 }
 0x482   : > { %v3371_v44 = vadd.f32 %v3370_v33, %v6969_v5  ;;  %v3392_v53 = vmul.f32 0.1, %v3367_v40  ;;  %v3386_v30 = vmul.f32 0.1, %v3349_v8  ;;  %v7265_v60 = vmax.f32 %v3365_v2, %v3391_v10 }
 0x483   : > { %1226 = vrot.lane.b32.xlu0 %v7064_v18, %s10305_s22  ;;  %v3372_v21 = vpop.f32.mrf.mxu1  ;;  %v3382_v63 = vmul.f32 0.1, %v3337_v6 }
 0x484   : > { %1228 = vrot.lane.b32.xlu1 %v7067_v59, %s10305_s22  ;;  %v3373_v39 = vadd.f32 %v3372_v21, %v6969_v5  ;;  %s7187_s22 = sld [smem:[#allocation2 + $0x5]]  ;;  %v3393_v46 = vmul.f32 0.1, %v3371_v44  ;;  %v7218_v55 = vmax.f32 %v3367_v40, %v3392_v53  ;;  %v7253_v21 = vmax.f32 %v3361_v49, %v3390_v29  ;;  %10735 = vst [vmem:[#allocation49_spill] sm:$0xff] %v7265_v60 }
 0x485   : > { %v3376_v35 = vpop.f32.mrf.mxu1  ;;  %v7274_v40 = vmax.f32 %v3355_v22, %v3388_v41  ;;  %v3381_v53 = vmul.f32 0.1, %v3335_v38 }
 0x486   : > { %v3377_v42 = vadd.f32 %v3376_v35, %v6967_v3  ;;  %v3394_v56 = vmul.f32 0.1, %v3373_v39  ;;  %10718 = sst [smem:[#allocation32_spill]] %s7190_s20  ;;  %10725 = vst [vmem:[#allocation39_spill] sm:$0xff] %v7218_v55  ;;  %10732 = vst [vmem:[#allocation46_spill] sm:$0xff] %v7253_v21  ;;  %v3424_v13 = vmul.f32 %v6740_v47, %v7218_v55  ;;  %v7263_v14 = vmax.f32 %v3371_v44, %v3393_v46 }
 0x487   : > { %1266 = vrot.lane.b32.xlu0 %v7064_v18, %s10303_s23  ;;  %v3378_v45 = vpop.f32.mrf.mxu1  ;;  %v3385_v35 = vmul.f32 0.1, %v3347_v9  ;;  %10739 = vst [vmem:[#allocation53_spill] sm:$0xff] %v7274_v40  ;;  %v7280_v44 = vmax.f32 %v3353_v52, %v3387_v23  ;;  %v7304_v46 = vmax.f32 %v3337_v6, %v3382_v63  ;;  %v1133_v52 = vshrl.u32 %v349_v24, 7  ;;  %s7542_s20 = sld [smem:[#allocation2 + $0x15]] }
 0x488   : > { %1268 = vrot.lane.b32.xlu1 %v7067_v59, %s10303_s23  ;;  %v3379_v36 = vadd.f32 %v3378_v45, %v6967_v3  ;;  %s7184_s23 = sld [smem:[#allocation2 + $0x35]]  ;;  %v3395_v5 = vmul.f32 0.1, %v3377_v42  ;;  %v7210_v51 = vmax.f32 %v3373_v39, %v3394_v56  ;;  %v3384_v45 = vmul.f32 0.1, %v3343_v12  ;;  %10734 = vst [vmem:[#allocation48_spill] sm:$0xff] %v7263_v14 }
 0x489   : > { %v7272_v39 = vmax.f32 %v3359_v27, %v3389_v17  ;;  %10741 = vst [vmem:[#allocation55_spill] sm:$0xff] %v7280_v44  ;;  %v7282_v56 = vmax.f32 %v3349_v8, %v3386_v30  ;;  %v3422_v27 = vmul.f32 %v6740_v47, %v7253_v21  ;;  %v7302_v22 = vmax.f32 %v3347_v9, %v3385_v35  ;;  %v5943_v63 = vld [vmem:[%s10766_s7 + $0x30] ss:$8 sm:$0x3] }
 0x48a   : > { %v3396_v48 = vmul.f32 0.1, %v3379_v36  ;;  %10717 = sst [smem:[#allocation31_spill]] %s7187_s22  ;;  %10723 = vst [vmem:[#allocation37_spill] sm:$0xff] %v7210_v51  ;;  %v7241_v15 = vmax.f32 %v3377_v42, %v3395_v5  ;;  %v3426_v33 = vmul.f32 %v6740_v47, %v7210_v51  ;;  %v7289_v2 = vmax.f32 %v3343_v12, %v3384_v45  ;;  %10749 = vst [vmem:[#allocation63_spill] sm:$0xff] %v7304_v46 }
 0x48b   : > { %1306 = vrot.lane.b32.xlu0 %v7064_v18, %s10299_s25  ;;  %10738 = vst [vmem:[#allocation52_spill] sm:$0xff] %v7272_v39  ;;  %10742 = vst [vmem:[#allocation56_spill] sm:$0xff] %v7282_v56  ;;  %v7298_v5 = vadd.f32 %v3424_v13, %v7265_v60  ;;  %v2071_v8 = vstv %s7149_s21  ;;  %v7317_v12 = vsel %vm353_vm2, %v7210_v51, -inf  ;;  %v7322_v9 = vsel %vm353_vm2, %v7218_v55, -inf  ;;  %s7328_s21 = sld [smem:[#allocation2 + $0x3e]] }
 0x48c   : > { %1308 = vrot.lane.b32.xlu1 %v7067_v59, %s10299_s25  ;;  %s10311_s25 = smov 9   ;;  %v7199_v3 = vmax.f32 %v3379_v36, %v3396_v48  ;;  %10729 = vst [vmem:[#allocation43_spill] sm:$0xff] %v7241_v15  ;;  %v3383_v48 = vmul.f32 0.1, %v3341_v62  ;;  %v7287_v49 = vadd.f32 %v3426_v33, %v7263_v14  ;;  %10745 = vst [vmem:[#allocation59_spill] sm:$0xff] %v7289_v2  ;;  %v7333_v6 = vsel %vm353_vm2, %v7253_v21, -inf }
 0x48d   : > { %10747 = vst [vmem:[#allocation61_spill] sm:$0xff] %v7298_v5  ;;  %10748 = vst [vmem:[#allocation62_spill] sm:$0xff] %v7302_v22  ;;  %v3420_v24 = vmul.f32 %v6740_v47, %v7274_v40  ;;  %v7326_v10 = vmax.f32 %v3335_v38, %v3381_v53  ;;  %v7340_v17 = vsel %vm353_vm2, %v7274_v40, -inf  ;;  %v2073_v41 = vmul.f32 %v2071_v8, %v7067_v59  ;;  %v5877_v21 = vld [vmem:[%s10766_s7 + $0x2] ss:$8 sm:$0x3] }
 0x48e   : > { %10716 = sst [smem:[#allocation30_spill]] %s7184_s23  ;;  %10720 = vst [vmem:[#allocation34_spill] sm:$0xff] %v7199_v3  ;;  %v3428_v11 = vmul.f32 %v6740_v47, %v7199_v3  ;;  %v7239_v1 = vsel %vm353_vm2, %v7199_v3, -inf  ;;  %10744 = vst [vmem:[#allocation58_spill] sm:$0xff] %v7287_v49  ;;  %v7310_v29 = vmax.f32 %v3341_v62, %v3383_v48  ;;  %v2072_v62 = vmul.f32 %v2071_v8, %v7064_v18 }
 0x48f   : > { %1346 = vrot.lane.b32.xlu0 %v7064_v18, %s10297_s26  ;;  %10728 = vst [vmem:[#allocation42_spill] sm:$0xff] %v7239_v1  ;;  %10753 = vst [vmem:[#allocation67_spill] sm:$0xff] %v7317_v12  ;;  %v3416_v23 = vmul.f32 %v6740_v47, %v7289_v2  ;;  %v7355_v30 = vsel %vm353_vm2, %v7282_v56, -inf  ;;  %v7357_v38 = vsub.s32 0, %v1133_v52  ;;  %v3414_v33 = vmul.f32 %v6740_v47, %v7304_v46  ;;  %10795 = sst [smem:[#allocation107_spill]] %s7542_s20  ;;  %s10513_s20 = smov 117  }
 0x490   : > { %1348 = vrot.lane.b32.xlu1 %v7067_v59, %s10297_s26  ;;  %s7175_s26 = sld [smem:[#allocation2 + $0x34]]  ;;  %v7270_v36 = vadd.f32 %v3428_v11, %v7241_v15  ;;  %10751 = vst [vmem:[#allocation65_spill] sm:$0xff] %v7310_v29  ;;  %10754 = vst [vmem:[#allocation68_spill] sm:$0xff] %v7322_v9  ;;  %v3418_v11 = vmul.f32 %v6740_v47, %v7282_v56  ;;  %v7366_v35 = vsel %vm353_vm2, %v7289_v2, -inf  ;;  %v7371_v45 = vsel %vm353_vm2, %v7304_v46, -inf }
 0x491   : > { %10755 = vst [vmem:[#allocation69_spill] sm:$0xff] %v7326_v10  ;;  %10756 = sst [smem:[#allocation70_spill]] %s7328_s21  ;;  %10757 = vst [vmem:[#allocation71_spill] sm:$0xff] %v7333_v6  ;;  %v7373_v13 = vsub.s32 1, %v1133_v52  ;;  %v7383_v48 = vadd.f32 %v3422_v27, %v7272_v39  ;;  %v2068_v52 = vstv %s7147_s16  ;;  %v7394_v8 = vadd.f32 %v3420_v24, %v7280_v44 }
 0x492   : > { %10737 = vst [vmem:[#allocation51_spill] sm:$0xff] %v7270_v36  ;;  %10758 = vst [vmem:[#allocation72_spill] sm:$0xff] %v7340_v17  ;;  %s7346_s21 = sld [smem:[#allocation2 + $0xe]]  ;;  %v2077_v53 = vrot.slane %v2073_v41, 1  ;;  %v2076_v24 = vrot.slane %v2072_v62, 1  ;;  %v7407_v47 = vadd.f32 %v3418_v11, %v7302_v22  ;;  %v7414_v0 = vadd.f32 %v3416_v23, %v7310_v29 }
 0x493   : > { %1386 = vrot.lane.b32.xlu0 %v7064_v18, %s10295_s27  ;;  %10760 = vst [vmem:[#allocation74_spill] sm:$0xff] %v7355_v30  ;;  %10761 = vst [vmem:[#allocation75_spill] sm:$0xff] %v7357_v38  ;;  %v7417_v42 = vadd.f32 %v3414_v33, %v7326_v10  ;;  %v5874_v11 = vld [vmem:[%s10766_s7 + $0x1] ss:$8 sm:$0x3]  ;;  %v2070_v27 = vmul.f32 %v2068_v52, %v7067_v59  ;;  %v7430_v23 = vrot.slane %v5943_v63, %v7357_v38  ;;  %s7458_s16 = sld [smem:[#allocation2 + $0x12]] }
 0x494   : > { %1388 = vrot.lane.b32.xlu1 %v7067_v59, %s10295_s27  ;;  %s7172_s27 = sld [smem:[#allocation2 + $0x3]]  ;;  %10763 = vst [vmem:[#allocation77_spill] sm:$0xff] %v7366_v35  ;;  %10764 = vst [vmem:[#allocation78_spill] sm:$0xff] %v7371_v45  ;;  %v7433_v33 = vrot.slane %v5943_v63, %v7373_v13  ;;  %v2069_v41 = vmul.f32 %v2068_v52, %v7064_v18  ;;  %v7439_v51 = vrot.slane %v1130_v34, %v7357_v38  ;;  %v5880_v55 = vld [vmem:[%s10766_s7 + $0x3] ss:$8 sm:$0x3] }
 0x495   : > { %10767 = vst [vmem:[#allocation80_spill] sm:$0xff] %v7383_v48  ;;  %10768 = vst [vmem:[#allocation81_spill] sm:$0xff] %v7394_v8  ;;  %v7452_v63 = vrot.slane %v1130_v34, %v7373_v13  ;;  %v2081_v3 = vadd.f32 %v2077_v53, %v2070_v27  ;;  %v7461_v40 = vrot.slane %v5874_v11, %v7357_v38  ;;  %v5883_v52 = vld [vmem:[%s10766_s7 + $0x4] ss:$8 sm:$0x3]  ;;  %s7609_s23 = sld [smem:[#allocation2 + $0x48]] }
 0x496   : > { %10769 = vst [vmem:[#allocation82_spill] sm:$0xff] %v7407_v47  ;;  %10771 = vst [vmem:[#allocation84_spill] sm:$0xff] %v7414_v0  ;;  %v2080_v62 = vadd.f32 %v2076_v24, %v2069_v41  ;;  %v7464_v56 = vrot.slane %v5874_v11, %v7373_v13  ;;  %v7474_v46 = vrot.slane %v5877_v21, %v7357_v38  ;;  %v5886_v41 = vld [vmem:[%s10766_s7 + $0x5] ss:$8 sm:$0x3]  ;;  %s7753_s22 = sld [smem:[#allocation2 + $0x4e]] }
 0x497   : > { %1426 = vrot.lane.b32.xlu0 %v7064_v18, %s10291_s28  ;;  %10772 = vst [vmem:[#allocation85_spill] sm:$0xff] %v7417_v42  ;;  %10774 = vst [vmem:[#allocation87_spill] sm:$0xff] %v7430_v23  ;;  %v7477_v53 = vrot.slane %v5877_v21, %v7373_v13  ;;  %v7487_v11 = vrot.slane %v5880_v55, %v7357_v38  ;;  %v7490_v2 = vrot.slane %v5880_v55, %v7373_v13  ;;  %v5889_v21 = vld [vmem:[%s10766_s7 + $0x6] ss:$8 sm:$0x3] }
 0x498   : > { %1428 = vrot.lane.b32.xlu1 %v7067_v59, %s10291_s28  ;;  %s7167_s28 = sld [smem:[#allocation2 + $0x2]]  ;;  %10775 = vst [vmem:[#allocation88_spill] sm:$0xff] %v7433_v33  ;;  %10776 = vst [vmem:[#allocation89_spill] sm:$0xff] %v7439_v51  ;;  %v7504_v55 = vrot.slane %v5883_v52, %v7357_v38  ;;  %v5892_v27 = vld [vmem:[%s10766_s7 + $0x7] ss:$8 sm:$0x3]  ;;  %v7513_v7 = vmul.f32 %v7433_v33, %v2081_v3  ;;  %v7516_v24 = vmul.f32 %v7430_v23, %v2080_v62 }
 0x499   : > { %10759 = sst [smem:[#allocation73_spill]] %s7346_s21  ;;  %10778 = vst [vmem:[#allocation90_spill] sm:$0xff] %v7452_v63  ;;  %10780 = vst [vmem:[#allocation92_spill] sm:$0xff] %v7461_v40  ;;  %v7519_v16 = vrot.slane %v5883_v52, %v7373_v13  ;;  %v7523_v34 = vrot.slane %v5886_v41, %v7357_v38  ;;  %v7526_v25 = vrot.slane %v5886_v41, %v7373_v13  ;;  %v5895_v3 = vld [vmem:[%s10766_s7 + $0x10] ss:$8 sm:$0x3] }
 0x49a   : > { %10714 = sst [smem:[#allocation28_spill]] %s7172_s27  ;;  %10781 = vst [vmem:[#allocation93_spill] sm:$0xff] %v7464_v56  ;;  %10782 = vst [vmem:[#allocation94_spill] sm:$0xff] %v7474_v46  ;;  %v7536_v23 = vrot.slane %v5889_v21, %v7357_v38  ;;  %v7545_v41 = vrot.slane %v5889_v21, %v7373_v13  ;;  %v5901_v62 = vld [vmem:[%s10766_s7 + $0x12] ss:$8 sm:$0x3]  ;;  %v7560_v21 = vrot.slane %v5892_v27, %v7357_v38 }
 0x49b   : > { %1466 = vrot.lane.b32.xlu0 %v7064_v18, %s10289_s29  ;;  %10779 = sst [smem:[#allocation91_spill]] %s7458_s16  ;;  %10783 = vst [vmem:[#allocation95_spill] sm:$0xff] %v7477_v53  ;;  %10785 = vst [vmem:[#allocation97_spill] sm:$0xff] %v7487_v11  ;;  %v7563_v32 = vrot.slane %v5892_v27, %v7373_v13  ;;  %v7566_v52 = vrot.slane %v5895_v3, %v7357_v38  ;;  %v7575_v54 = vrot.slane %v5895_v3, %v7373_v13  ;;  %v5907_v33 = vld [vmem:[%s10766_s7 + $0x14] ss:$8 sm:$0x3] }
 0x49c   : > { %1468 = vrot.lane.b32.xlu1 %v7067_v59, %s10289_s29  ;;  %s10301_s29 = smov 10   ;;  %10786 = vst [vmem:[#allocation98_spill] sm:$0xff] %v7490_v2  ;;  %s7497_s27 = sld [smem:[#allocation2 + $0x44]]  ;;  %10787 = vst [vmem:[#allocation99_spill] sm:$0xff] %v7504_v55  ;;  %v7579_v27 = vrot.slane %v5898_v19, %v7357_v38  ;;  %v7588_v20 = vrot.slane %v5898_v19, %v7373_v13  ;;  %v7592_v43 = vrot.slane %v5901_v62, %v7357_v38 }
 0x49d   : > { %10789 = vst [vmem:[#allocation101_spill] sm:$0xff] %v7513_v7  ;;  %10790 = vst [vmem:[#allocation102_spill] sm:$0xff] %v7516_v24  ;;  %v7601_v37 = vrot.slane %v5901_v62, %v7373_v13  ;;  %v7616_v62 = vrot.slane %v5904_v31, %v7357_v38  ;;  %v7619_v4 = vrot.slane %v5904_v31, %v7373_v13  ;;  %v5919_v19 = vld [vmem:[%s10766_s7 + $0x20] ss:$8 sm:$0x3]  ;;  %s7686_s21 = sld [smem:[#allocation2 + $0x1b]] }
 0x49e   : > { %10713 = sst [smem:[#allocation27_spill]] %s7167_s28  ;;  %10791 = vst [vmem:[#allocation103_spill] sm:$0xff] %v7519_v16  ;;  %10792 = vst [vmem:[#allocation104_spill] sm:$0xff] %v7523_v34  ;;  %v7622_v3 = vrot.slane %v5907_v33, %v7357_v38  ;;  %v7632_v58 = vrot.slane %v5907_v33, %v7373_v13  ;;  %v7636_v57 = vrot.slane %v5910_v61, %v7357_v38  ;;  %v5922_v31 = vld [vmem:[%s10766_s7 + $0x21] ss:$8 sm:$0x3] }
 0x49f   : > { %1506 = vrot.lane.b32.xlu0 %v7064_v18, %s10285_s11  ;;  %s7484_s28 = sld [smem:[#allocation2 + $0x13]]  ;;  %10793 = vst [vmem:[#allocation105_spill] sm:$0xff] %v7526_v25  ;;  %10794 = vst [vmem:[#allocation106_spill] sm:$0xff] %v7536_v23  ;;  %v7645_v10 = vrot.slane %v5910_v61, %v7373_v13  ;;  %v7649_v29 = vrot.slane %v5913_v26, %v7357_v38  ;;  %v7658_v45 = vrot.slane %v5913_v26, %v7373_v13  ;;  %v5925_v35 = vld [vmem:[%s10766_s7 + $0x22] ss:$8 sm:$0x3] }
 0x4a0   : > { %1508 = vrot.lane.b32.xlu1 %v7067_v59, %s10285_s11  ;;  %s7159_s11 = sld [smem:[#allocation2 + $0x1]]  ;;  %10796 = vst [vmem:[#allocation108_spill] sm:$0xff] %v7545_v41  ;;  %10797 = vst [vmem:[#allocation109_spill] sm:$0xff] %v7560_v21  ;;  %v7674_v26 = vrot.slane %v5916_v50, %v7357_v38  ;;  %v7677_v30 = vrot.slane %v5916_v50, %v7373_v13  ;;  %v7680_v33 = vrot.slane %v5919_v19, %v7357_v38  ;;  %v5928_v42 = vld [vmem:[%s10766_s7 + $0x23] ss:$8 sm:$0x3] }
 0x4a1   : > { %10798 = vst [vmem:[#allocation110_spill] sm:$0xff] %v7563_v32  ;;  %10799 = vst [vmem:[#allocation111_spill] sm:$0xff] %v7566_v52  ;;  %v7689_v22 = vrot.slane %v5919_v19, %v7373_v13  ;;  %v7693_v17 = vrot.slane %v5922_v31, %v7357_v38  ;;  %v5931_v61 = vld [vmem:[%s10766_s7 + $0x24] ss:$8 sm:$0x3]  ;;  %v7703_v19 = vrot.slane %v5922_v31, %v7373_v13  ;;  %s7741_s16 = sld [smem:[#allocation2 + $0x1d]] }
 0x4a2   : > { %10804 = vst [vmem:[#allocation112_spill] sm:$0xff] %v7575_v54  ;;  %10805 = vst [vmem:[#allocation113_spill] sm:$0xff] %v7579_v27  ;;  %v7707_v6 = vrot.slane %v5925_v35, %v7357_v38  ;;  %v5934_v39 = vld [vmem:[%s10766_s7 + $0x25] ss:$8 sm:$0x3]  ;;  %v7716_v8 = vrot.slane %v5925_v35, %v7373_v13  ;;  %v7720_v31 = vrot.slane %v5928_v42, %v7357_v38  ;;  %vm10547_vm2 = vcmp.lt.s32.totalorder %v6729_v28, 19 }
 0x4a3   : > { %1546 = vrot.lane.b32.xlu0 %v7064_v18, %s10283_s12  ;;  %10806 = vst [vmem:[#allocation114_spill] sm:$0xff] %v7588_v20  ;;  %10807 = vst [vmem:[#allocation115_spill] sm:$0xff] %v7592_v43  ;;  %10829 = sst [smem:[#allocation130_spill]] %s7686_s21  ;;  %v5937_v50 = vld [vmem:[%s10766_s7 + $0x26] ss:$8 sm:$0x3]  ;;  %v7731_v35 = vrot.slane %v5928_v42, %v7373_v13  ;;  %v7735_v60 = vrot.slane %v5931_v61, %v7357_v38  ;;  %v7746_v12 = vrot.slane %v5931_v61, %v7373_v13 }
 0x4a4   : > { %1548 = vrot.lane.b32.xlu1 %v7067_v59, %s10283_s12  ;;  %s7157_s12 = sld [smem:[#allocation2 + $0x31]]  ;;  %10810 = vst [vmem:[#allocation117_spill] sm:$0xff] %v7601_v37  ;;  %10814 = vst [vmem:[#allocation118_spill] sm:$0xff] %v7616_v62  ;;  %v5940_v48 = vld [vmem:[%s10766_s7 + $0x27] ss:$8 sm:$0x3]  ;;  %v7750_v9 = vrot.slane %v5934_v39, %v7357_v38  ;;  %v7756_v5 = vrot.slane %v5934_v39, %v7373_v13  ;;  %v7760_v49 = vrot.slane %v5937_v50, %v7357_v38 }
 0x4a5   : > { %10784 = sst [smem:[#allocation96_spill]] %s7484_s28  ;;  %10815 = vst [vmem:[#allocation119_spill] sm:$0xff] %v7619_v4  ;;  %10816 = vst [vmem:[#allocation120_spill] sm:$0xff] %v7622_v3  ;;  %v5946_v42 = vld [vmem:[%s10766_s7 + $0x31] ss:$8 sm:$0x3]  ;;  %v7769_v14 = vrot.slane %v5937_v50, %v7373_v13  ;;  %v7773_v39 = vrot.slane %v5940_v48, %v7357_v38  ;;  %v7786_v50 = vrot.slane %v5940_v48, %v7373_v13 }
 0x4a6   : > { %10711 = sst [smem:[#allocation25_spill]] %s7159_s11  ;;  %10819 = vst [vmem:[#allocation122_spill] sm:$0xff] %v7632_v58  ;;  %10820 = vst [vmem:[#allocation123_spill] sm:$0xff] %v7636_v57  ;;  %v5949_v61 = vld [vmem:[%s10766_s7 + $0x32] ss:$8 sm:$0x3] }
 0x4a7   : > { %1586 = vrot.lane.b32.xlu0 %v7064_v18, %s10279_s13  ;;  %s7471_s11 = sld [smem:[#allocation2 + $0x43]]  ;;  %10821 = vst [vmem:[#allocation124_spill] sm:$0xff] %v7645_v10  ;;  %10822 = vst [vmem:[#allocation125_spill] sm:$0xff] %v7649_v29  ;;  %v5952_v24 = vld [vmem:[%s10766_s7 + $0x33] ss:$8 sm:$0x3] }
 0x4a8   : > { %1588 = vrot.lane.b32.xlu1 %v7067_v59, %s10279_s13  ;;  %s10293_s13 = smov 11   ;;  %10825 = vst [vmem:[#allocation126_spill] sm:$0xff] %v7658_v45  ;;  %10826 = vst [vmem:[#allocation127_spill] sm:$0xff] %v7674_v26  ;;  %s7726_s28 = sld [smem:[#allocation2 + $0x4d]] }
 0x4a9   : > { %10827 = vst [vmem:[#allocation128_spill] sm:$0xff] %v7677_v30  ;;  %10828 = vst [vmem:[#allocation129_spill] sm:$0xff] %v7680_v33  ;;  %10838 = sst [smem:[#allocation139_spill]] %s7741_s16  ;;  %v5955_v36 = vld [vmem:[%s10766_s7 + $0x34] ss:$8 sm:$0x3] }
 0x4aa   : > { %10830 = vst [vmem:[#allocation131_spill] sm:$0xff] %v7689_v22  ;;  %10831 = vst [vmem:[#allocation132_spill] sm:$0xff] %v7693_v17  ;;  %v10852_v48 = vstv %s7157_s12  ;;  %s7832_s21 = sld [smem:[#allocation2 + $0x20]]  ;;  %s10519_s16 = smov 113  }
 0x4ab   : > { %1626 = vrot.lane.b32.xlu0 %v7064_v18, %s10281_s14  ;;  %10832 = vst [vmem:[#allocation133_spill] sm:$0xff] %v7703_v19  ;;  %10833 = vst [vmem:[#allocation134_spill] sm:$0xff] %v7707_v6 }
 0x4ac   : > { %1628 = vrot.lane.b32.xlu1 %v7067_v59, %s10281_s14  ;;  %s7155_s14 = sld [smem:[#allocation2]]  ;;  %10834 = vst [vmem:[#allocation135_spill] sm:$0xff] %v7716_v8  ;;  %10835 = vst [vmem:[#allocation136_spill] sm:$0xff] %v7720_v31 }
 0x4ad   : > { %10836 = vst [vmem:[#allocation137_spill] sm:$0xff] %v7731_v35  ;;  %10837 = vst [vmem:[#allocation138_spill] sm:$0xff] %v7735_v60 }
 0x4ae   : > { %10839 = vst [vmem:[#allocation140_spill] sm:$0xff] %v7746_v12  ;;  %10840 = vst [vmem:[#allocation141_spill] sm:$0xff] %v7750_v9 }
 0x4af   : > { %1666 = vrot.lane.b32.xlu0 %v7064_v18, %s10287_s15  ;;  %10841 = vst [vmem:[#allocation142_spill] sm:$0xff] %v7756_v5  ;;  %10842 = vst [vmem:[#allocation143_spill] sm:$0xff] %v7760_v49 }
 0x4b0   : > { %1668 = vrot.lane.b32.xlu1 %v7067_v59, %s10287_s15  ;;  %s7161_s15 = sld [smem:[#allocation2 + $0x32]]  ;;  %10844 = vst [vmem:[#allocation145_spill] sm:$0xff] %v7769_v14  ;;  %10845 = vst [vmem:[#allocation146_spill] sm:$0xff] %v7773_v39  ;;  %v7797_v39 = vrot.slane %v5946_v42, %v7357_v38  ;;  %v7800_v14 = vrot.slane %v5946_v42, %v7373_v13  ;;  %v7815_v42 = vrot.slane %v5949_v61, %v7373_v13 }
 0x4b1   : > { %10847 = vst [vmem:[#allocation148_spill] sm:$0xff] %v7786_v50 }
 0x4b2   : > { %10710 = sst [smem:[#allocation24_spill]] %s7155_s14  ;;  %10848 = vst [vmem:[#allocation149_spill] sm:$0xff] %v7797_v39  ;;  %10849 = vst [vmem:[#allocation150_spill] sm:$0xff] %v7800_v14  ;;  %v7812_v39 = vrot.slane %v5949_v61, %v7357_v38  ;;  %v5958_v61 = vld [vmem:[%s10766_s7 + $0x35] ss:$8 sm:$0x3] }
 0x4b3   : > { %1706 = vrot.lane.b32.xlu0 %v7064_v18, %s10293_s13  ;;  %s7531_s14 = sld [smem:[#allocation2 + $0x45]]  ;;  %10851 = vst [vmem:[#allocation152_spill] sm:$0xff] %v7815_v42  ;;  %v7841_v42 = vrot.slane %v5955_v36, %v7357_v38 }
 0x4b4   : > { %1708 = vrot.lane.b32.xlu1 %v7067_v59, %s10293_s13  ;;  %s7170_s13 = sld [smem:[#allocation2 + $0x33]]  ;;  %10850 = vst [vmem:[#allocation151_spill] sm:$0xff] %v7812_v39 }
 0x4b5   : > { %10857 = vst [vmem:[#allocation155_spill] sm:$0xff] %v7841_v42 }
 0x4b6   : > { %10712 = sst [smem:[#allocation26_spill]] %s7161_s15  ;;  %s10374_s15 = smov 126  }
 0x4b7   : > { %1746 = vrot.lane.b32.xlu0 %v7064_v18, %s10301_s29 }
 0x4b8   : > { %1748 = vrot.lane.b32.xlu1 %v7067_v59, %s10301_s29  ;;  %s7182_s29 = sld [smem:[#allocation2 + $0x4]] }
 0x4ba   : > { %v10865_v6 = vstv %s7170_s13  ;;  %v10872_v22 = vstv %s7170_s13  ;;  %s7913_s13 = sld [smem:[#allocation2 + $0x52]] }
 0x4bb   : > { %1786 = vrot.lane.b32.xlu0 %v7064_v18, %s10311_s25 }
 0x4bc   : > { %1788 = vrot.lane.b32.xlu1 %v7067_v59, %s10311_s25  ;;  %s7197_s25 = sld [smem:[#allocation2 + $0x6]] }
 0x4be   : > { %10715 = sst [smem:[#allocation29_spill]] %s7182_s29 }
 0x4bf   : > { %1826 = vrot.lane.b32.xlu0 %v7064_v18, %s10317_s19  ;;  %s10800_s29 = sld [smem:[#allocation57_spill]] }
 0x4c0   : > { %1828 = vrot.lane.b32.xlu1 %v7067_v59, %s10317_s19  ;;  %s7216_s19 = sld [smem:[#allocation2 + $0x38]] }
 0x4c1   : > { %10802 = sst [smem:[#allocation57_spill]] %s7572_s1 }
 0x4c2   : > { %10719 = sst [smem:[#allocation33_spill]] %s7197_s25 }
 0x4c3   : > { %1866 = vrot.lane.b32.xlu0 %v7064_v18, %s10319_s0  ;;  %s7553_s25 = sld [smem:[#allocation2 + $0x46]] }
 0x4c4   : > { %1868 = vrot.lane.b32.xlu1 %v7067_v59, %s10319_s0  ;;  %s7245_s0 = sld [smem:[#allocation2 + $0x9]] }
 0x4c5   : > { %s10854_s1 = sld [smem:[#allocation26_spill]] }
 0x4c6   : > { %10724 = sst [smem:[#allocation38_spill]] %s7216_s19 }
 0x4c7   : > { %1906 = vrot.lane.b32.xlu0 %v7064_v18, %s10323_s30  ;;  %s7628_s19 = sld [smem:[#allocation2 + $0x19]] }
 0x4c8   : > { %1908 = vrot.lane.b32.xlu1 %v7067_v59, %s10323_s30  ;;  %s7276_s30 = sld [smem:[#allocation2 + $0xb]] }
 0x4c9   : > { %10855 = sst [smem:[#allocation26_spill]] %s7832_s21  ;;  %s10533_s21 = smov 110  }
 0x4ca   : > { %10730 = sst [smem:[#allocation44_spill]] %s7245_s0 }
 0x4cb   : > { %1946 = vrot.lane.b32.xlu0 %v7064_v18, %s10329_s6  ;;  %s7585_s0 = sld [smem:[#allocation2 + $0x47]]  ;;  %v10860_v1 = vstv %s10854_s1 }
 0x4cc   : > { %1948 = vrot.lane.b32.xlu1 %v7067_v59, %s10329_s6  ;;  %s7312_s6 = sld [smem:[#allocation2 + $0xd]] }
 0x4cd   : > { %10817 = sst [smem:[#allocation121_spill]] %s7628_s19 }
 0x4ce   : > { %10740 = sst [smem:[#allocation54_spill]] %s7276_s30  ;;  %s10416_s30 = smov 122  }
 0x4cf   : > { %1986 = vrot.lane.b32.xlu0 %v7064_v18, %s10334_s5  ;;  %s7807_s19 = sld [smem:[#allocation2 + $0x1f]] }
 0x4d0   : > { %1988 = vrot.lane.b32.xlu1 %v7067_v59, %s10334_s5  ;;  %s7375_s5 = sld [smem:[#allocation2 + $0xf]] }
 0x4d2   : > { %10752 = sst [smem:[#allocation66_spill]] %s7312_s6 }
 0x4d3   : > { %s7359_s6 = sld [smem:[#allocation2 + $0x3f]]  ;;  %2026 = vrot.lane.b32.xlu0 %v7064_v18, %s10343_s3 }
 0x4d4   : > { %2028 = vrot.lane.b32.xlu1 %v7067_v59, %s10343_s3  ;;  %s7426_s3 = sld [smem:[#allocation2 + $0x11]] }
 0x4d6   : > { %10765 = sst [smem:[#allocation79_spill]] %s7375_s5 }
 0x4d7   : > { %s7666_s5 = sld [smem:[#allocation2 + $0x4b]] }
 0x4d9   : > { %10762 = sst [smem:[#allocation76_spill]] %s7359_s6 }
 0x4da   : > { %s7411_s6 = sld [smem:[#allocation2 + $0x41]] }
 0x4db   : > { %10773 = sst [smem:[#allocation86_spill]] %s7426_s3 }
 0x4dc   : > { %s7445_s3 = sld [smem:[#allocation2 + $0x42]] }
 0x4e0   : > { %10770 = sst [smem:[#allocation83_spill]] %s7411_s6  ;;  %s10777_s6 = smov 127  }
 0x4e1   : > { %2101 = vrot.lane.b32.xlu1 %v7067_v59, %s10777_s6  ;;  %2099 = vrot.lane.b32.xlu0 %v7064_v18, %s10777_s6  ;;  %s7510_s6 = sld [smem:[#allocation2 + $0x14]] }
 0x4e5   : > { %2141 = vrot.lane.b32.xlu1 %v7067_v59, %s10374_s15  ;;  %2139 = vrot.lane.b32.xlu0 %v7064_v18, %s10374_s15  ;;  %s7818_s15 = sld [smem:[#allocation2 + $0x50]] }
 0x4e7   : > { %10788 = sst [smem:[#allocation100_spill]] %s7510_s6  ;;  %s10472_s6 = smov 119  }
 0x4e9   : > { %2181 = vrot.lane.b32.xlu1 %v7067_v59, %s10388_s17  ;;  %2179 = vrot.lane.b32.xlu0 %v7064_v18, %s10388_s17  ;;  %s7699_s17 = sld [smem:[#allocation2 + $0x4c]]  ;;  %v1108_v47 = vpop.permute.xlu0 %1107 }
 0x4ea   : > { %v1110_v44 = vpop.permute.xlu1 %1109 }
 0x4eb   : > { %v1113_v15 = vsel %vm1111_vm7, %v1110_v44, %v1108_v47  ;;  %v1112_v50 = vsel %vm1111_vm7, %v1108_v47, %v1110_v44  ;;  %v7826_v44 = vrot.slane %v5952_v24, %v7357_v38  ;;  %v7844_v47 = vrot.slane %v5955_v36, %v7373_v13  ;;  %v5961_v36 = vld [vmem:[%s10766_s7 + $0x36] ss:$8 sm:$0x3] }
 0x4ec   : > { %v1120_v14 = vmul.f32 %v10852_v48, %v1113_v15  ;;  %v7837_v48 = vrot.slane %v5952_v24, %v7373_v13  ;;  %v5964_v24 = vld [vmem:[%s10766_s7 + $0x37] ss:$8 sm:$0x3] }
 0x4ed   : > { %2221 = vrot.lane.b32.xlu1 %v7067_v59, %s10416_s30  ;;  %2219 = vrot.lane.b32.xlu0 %v7064_v18, %s10416_s30  ;;  %s10818_s30 = sld [smem:[#allocation83_spill]]  ;;  %v1147_v7 = vpop.permute.xlu0 %1146  ;;  %10853 = vst [vmem:[#allocation153_spill] sm:$0xff] %v7826_v44  ;;  %10858 = vst [vmem:[#allocation156_spill] sm:$0xff] %v7844_v47  ;;  %v10859_v44 = vstv %s7157_s12 }
 0x4ee   : > { %10824 = sst [smem:[#allocation83_spill]] %s7655_s18  ;;  %v1149_v0 = vpop.permute.xlu1 %1148  ;;  %s10486_s18 = smov 118   ;;  %10856 = vst [vmem:[#allocation154_spill] sm:$0xff] %v7837_v48  ;;  %v1121_v39 = vmul.f32 %v10859_v44, %v1112_v50  ;;  %v7866_v48 = vrot.slane %v5958_v61, %v7373_v13  ;;  %v1124_v35 = vrot.slane %v1120_v14, 1  ;;  %v7884_v14 = vrot.slane %v5961_v36, %v7357_v38 }
 0x4ef   : > { %v1152_v9 = vsel %vm1150_vm8, %v1149_v0, %v1147_v7  ;;  %v1151_v12 = vsel %vm1150_vm8, %v1147_v7, %v1149_v0  ;;  %s10861_s12 = sld [smem:[#allocation24_spill]]  ;;  %v7863_v7 = vrot.slane %v5958_v61, %v7357_v38  ;;  %v10864_v0 = vstv %s10854_s1 }
 0x4f0   : > { %v1159_v44 = vmul.f32 %v10860_v1, %v1152_v9  ;;  %10863 = vst [vmem:[#allocation158_spill] sm:$0xff] %v7866_v48  ;;  %10866 = vst [vmem:[#allocation159_spill] sm:$0xff] %v7884_v14  ;;  %v1125_v8 = vrot.slane %v1121_v39, 1  ;;  %10874 = sst [smem:[#allocation24_spill]] %s7905_s9  ;;  %s10530_s9 = smov 111  }
 0x4f1   : > { %2261 = vrot.lane.b32.xlu1 %v7067_v59, %s10432_s8  ;;  %2259 = vrot.lane.b32.xlu0 %v7064_v18, %s10432_s8  ;;  %s7713_s8 = sld [smem:[#allocation2 + $0x1c]]  ;;  %v1187_v5 = vpop.permute.xlu0 %1186  ;;  %10862 = vst [vmem:[#allocation157_spill] sm:$0xff] %v7863_v7  ;;  %v1160_v7 = vmul.f32 %v10864_v0, %v1151_v12 }
 0x4f2   : > { %v1189_v49 = vpop.permute.xlu1 %1188  ;;  %v1163_v17 = vrot.slane %v1159_v44, 1  ;;  %s10892_s1 = sld [smem:[#allocation29_spill]] }
 0x4f3   : > { %v1192_v60 = vsel %vm1190_vm9, %v1189_v49, %v1187_v5  ;;  %v1191_v1 = vsel %vm1190_vm9, %v1187_v5, %v1189_v49  ;;  %v7887_v49 = vrot.slane %v5961_v36, %v7373_v13 }
 0x4f4   : > { %v1199_v61 = vmul.f32 %v10865_v6, %v1192_v60  ;;  %v7895_v6 = vrot.slane %v5964_v24, %v7357_v38  ;;  %v1200_v14 = vmul.f32 %v10872_v22, %v1191_v1  ;;  %v1164_v22 = vrot.slane %v1160_v7, 1 }
 0x4f5   : > { %2301 = vrot.lane.b32.xlu1 %v7067_v59, %s10451_s2  ;;  %2299 = vrot.lane.b32.xlu0 %v7064_v18, %s10451_s2  ;;  %s7766_s2 = sld [smem:[#allocation2 + $0x1e]]  ;;  %v1227_v42 = vpop.permute.xlu0 %1226  ;;  %10868 = vst [vmem:[#allocation160_spill] sm:$0xff] %v7887_v49  ;;  %v10869_v5 = vstv %s10861_s12  ;;  %s10511_s12 = smov 116  }
 0x4f6   : > { %v1229_v47 = vpop.permute.xlu1 %1228  ;;  %v1117_v31 = vmul.f32 %v10869_v5, %v1113_v15  ;;  %10870 = vst [vmem:[#allocation161_spill] sm:$0xff] %v7895_v6  ;;  %v10871_v48 = vmov %v10869_v5  ;;  %v5967_v15 = vld [vmem:[%s10766_s7 + $0x40] ss:$8 sm:$0x3]  ;;  %v7910_v6 = vrot.slane %v5964_v24, %v7373_v13 }
 0x4f7   : > { %v1118_v19 = vmul.f32 %v10871_v48, %v1112_v50  ;;  %v1203_v48 = vrot.slane %v1199_v61, 1  ;;  %v1231_v44 = vsel %vm1230_vm10, %v1227_v42, %v1229_v47  ;;  %v1232_v36 = vsel %vm1230_vm10, %v1229_v47, %v1227_v42 }
 0x4f8   : > { %v1128_v39 = vadd.f32 %v1124_v35, %v1117_v31  ;;  %10876 = vst [vmem:[#allocation162_spill] sm:$0xff] %v7910_v6  ;;  %v7929_v61 = vrot.slane %v5967_v15, %v7357_v38  ;;  %v1204_v47 = vrot.slane %v1200_v14, 1  ;;  %v7941_v49 = vrot.slane %v5967_v15, %v7373_v13 }
 0x4f9   : > { %2341 = vrot.lane.b32.xlu1 %v7067_v59, %s10472_s6  ;;  %2339 = vrot.lane.b32.xlu0 %v7064_v18, %s10472_s6  ;;  %s7875_s6 = sld [smem:[#allocation2 + $0x51]]  ;;  %v1267_v30 = vpop.permute.xlu0 %1266 }
 0x4fa   : > { %v1269_v33 = vpop.permute.xlu1 %1268  ;;  %10880 = vst [vmem:[#allocation163_spill] sm:$0xff] %v7929_v61  ;;  %10884 = vst [vmem:[#allocation164_spill] sm:$0xff] %v7941_v49 }
 0x4fb   : > { %10843 = sst [smem:[#allocation144_spill]] %s7766_s2  ;;  %v1272_v50 = vsel %vm1270_vm11, %v1269_v33, %v1267_v30 }
 0x4fc   : > { %s10873_s2 = sld [smem:[#allocation27_spill]] }
 0x4fd   : > { %2381 = vrot.lane.b32.xlu1 %v7067_v59, %s10486_s18  ;;  %2379 = vrot.lane.b32.xlu0 %v7064_v18, %s10486_s18  ;;  %s10867_s18 = sld [smem:[#allocation25_spill]] }
 0x4fe   : > { %10877 = sst [smem:[#allocation25_spill]] %s7913_s13 }
 0x4ff   : > { %s8062_s13 = sld [smem:[#allocation2 + $0x55]] }
 0x501   : > { %2421 = vrot.lane.b32.xlu1 %v7067_v59, %s10513_s20  ;;  %2419 = vrot.lane.b32.xlu0 %v7064_v18, %s10513_s20  ;;  %s10890_s20 = sld [smem:[#allocation32_spill]] }
 0x502   : > { %v10879_v24 = vstv %s10873_s2 }
 0x503   : > { %v10875_v5 = vstv %s10867_s18  ;;  %v1196_v7 = vmul.f32 %v10879_v24, %v1192_v60  ;;  %s10881_s18 = sld [smem:[#allocation30_spill]] }
 0x504   : > { %v1156_v0 = vmul.f32 %v10875_v5, %v1152_v9  ;;  %v1129_v9 = vadd.f32 %v1125_v8, %v1118_v19  ;;  %v10878_v31 = vmov %v10875_v5  ;;  %v1271_v5 = vsel %vm1270_vm11, %v1267_v30, %v1269_v33  ;;  %v1309_v8 = vpop.permute.xlu1 %1308  ;;  %v5970_v30 = vld [vmem:[%s10766_s7 + $0x41] ss:$8 sm:$0x3] }
 0x505   : > { %2461 = vrot.lane.b32.xlu1 %v7067_v59, %s10511_s12  ;;  %v1157_v35 = vmul.f32 %v10878_v31, %v1151_v12  ;;  %2459 = vrot.lane.b32.xlu0 %v7064_v18, %s10511_s12  ;;  %v1307_v12 = vpop.permute.xlu0 %1306  ;;  %v10882_v19 = vstv %s7175_s26  ;;  %v1207_v26 = vadd.f32 %v1203_v48, %v1196_v7  ;;  %s7952_s12 = sld [smem:[#allocation2 + $0x22]]  ;;  %s10523_s26 = smov 112  }
 0x506   : > { %v1167_v42 = vadd.f32 %v1163_v17, %v1156_v0  ;;  %v1239_v60 = vmul.f32 %v10882_v19, %v1232_v36  ;;  %v10883_v31 = vmov %v10882_v19  ;;  %v1142_v17 = vmul.f32 %v7439_v51, %v1128_v39 }
 0x507   : > { %v1240_v24 = vmul.f32 %v10883_v31, %v1231_v44  ;;  %v1168_v14 = vadd.f32 %v1164_v22, %v1157_v35  ;;  %v10885_v0 = vstv %s10873_s2  ;;  %v1143_v33 = vmul.f32 %v7452_v63, %v1129_v9  ;;  %s10889_s2 = sld [smem:[#allocation28_spill]] }
 0x508   : > { %v1197_v61 = vmul.f32 %v10885_v0, %v1191_v1  ;;  %v1312_v48 = vsel %vm10529_vm12, %v1309_v8, %v1307_v12  ;;  %v1182_v35 = vmul.f32 %v7461_v40, %v1167_v42  ;;  %v1311_v19 = vsel %vm10529_vm12, %v1307_v12, %v1309_v8  ;;  %v1349_v9 = vpop.permute.xlu1 %1348 }
 0x509   : > { %2501 = vrot.lane.b32.xlu1 %v7067_v59, %s10519_s16  ;;  %v10887_v15 = vstv %s10881_s18  ;;  %2499 = vrot.lane.b32.xlu0 %v7064_v18, %s10519_s16  ;;  %v1347_v31 = vpop.permute.xlu0 %1346  ;;  %s7967_s18 = sld [smem:[#allocation2 + $0x53]]  ;;  %v7972_v63 = vrot.slane %v5970_v30, %v7357_v38  ;;  %v1222_v42 = vmul.f32 %v7474_v46, %v1207_v26  ;;  %v10894_v12 = vstv %s10890_s20 }
 0x50a   : > { %v1279_v39 = vmul.f32 %v10887_v15, %v1272_v50  ;;  %v10888_v1 = vmov %v10887_v15  ;;  %v1208_v7 = vadd.f32 %v1204_v47, %v1197_v61  ;;  %v1243_v15 = vrot.slane %v1239_v60, 1  ;;  %s7988_s16 = sld [smem:[#allocation2 + $0x23]] }
 0x50b   : > { %10886 = sst [smem:[#allocation27_spill]] %s7952_s12  ;;  %v1280_v22 = vmul.f32 %v10888_v1, %v1271_v5  ;;  %v1244_v1 = vrot.slane %v1240_v24, 1  ;;  %v1183_v61 = vmul.f32 %v7464_v56, %v1168_v14  ;;  %v1319_v0 = vmul.f32 %v10894_v12, %v1312_v48 }
 0x50c   : > { %v1283_v6 = vrot.slane %v1279_v39, 1  ;;  %v10896_v51 = vmov %v10894_v12  ;;  %v1184_v26 = vadd.f32 %v1182_v35, %v1142_v17  ;;  %v10898_v14 = vstv %s10892_s1  ;;  %v1389_v12 = vpop.permute.xlu1 %1388  ;;  %s10901_s20 = sld [smem:[#allocation31_spill]] }
 0x50d   : > { %v10893_v47 = vstv %s10889_s2  ;;  %2541 = vrot.lane.b32.xlu1 %v7067_v59, %s10523_s26  ;;  %v1284_v40 = vrot.slane %v1280_v22, 1  ;;  %v1320_v49 = vmul.f32 %v10896_v51, %v1311_v19  ;;  %2539 = vrot.lane.b32.xlu0 %v7064_v18, %s10523_s26  ;;  %v1387_v46 = vpop.permute.xlu0 %1386  ;;  %v7994_v56 = vrot.slane %v5970_v30, %v7373_v13  ;;  %s8000_s2 = sld [smem:[#allocation2 + $0x54]] }
 0x50e   : > { %v1236_v8 = vmul.f32 %v10893_v47, %v1232_v36  ;;  %v10895_v60 = vmov %v10893_v47  ;;  %v1223_v36 = vmul.f32 %v7477_v53, %v1208_v7  ;;  %v1276_v47 = vmul.f32 %v10898_v14, %v1272_v50  ;;  %s10902_s26 = sld [smem:[#allocation35_spill]] }
 0x50f   : > { %10891 = sst [smem:[#allocation30_spill]] %s7967_s18  ;;  %v1237_v24 = vmul.f32 %v10895_v60, %v1231_v44  ;;  %10899 = vst [vmem:[#allocation165_spill] sm:$0xff] %v7994_v56  ;;  %v10900_v22 = vmov %v10898_v14  ;;  %v1352_v60 = vsel %vm10532_vm13, %v1349_v9, %v1347_v31  ;;  %v1185_v17 = vadd.f32 %v1183_v61, %v1143_v33  ;;  %v5973_v33 = vld [vmem:[%s10766_s7 + $0x42] ss:$8 sm:$0x3]  ;;  %s10564_s18 = smov 109  }
 0x510   : > { %10897 = sst [smem:[#allocation28_spill]] %s7988_s16  ;;  %v1247_v44 = vadd.f32 %v1243_v15, %v1236_v8  ;;  %v1277_v51 = vmul.f32 %v10900_v22, %v1271_v5  ;;  %v1224_v35 = vadd.f32 %v1222_v42, %v1184_v26  ;;  %v1323_v7 = vrot.slane %v1319_v0, 1  ;;  %v1429_v26 = vpop.permute.xlu1 %1428 }
 0x511   : > { %v1248_v39 = vadd.f32 %v1244_v1, %v1237_v24  ;;  %2579 = vrot.lane.b32.xlu1 %v7064_v18, %s10530_s9  ;;  %v1287_v5 = vadd.f32 %v1283_v6, %v1276_v47  ;;  %v1324_v15 = vrot.slane %v1320_v49, 1  ;;  %v1351_v1 = vsel %vm10532_vm13, %v1347_v31, %v1349_v9  ;;  %2581 = vrot.lane.b32.xlu0 %v7067_v59, %s10530_s9  ;;  %v1427_v6 = vpop.permute.xlu0 %1426  ;;  %s10906_s9 = sld [smem:[#allocation38_spill]] }
 0x512   : > { %v1288_v30 = vadd.f32 %v1284_v40, %v1277_v51  ;;  %v1225_v0 = vadd.f32 %v1223_v36, %v1185_v17  ;;  %v10903_v61 = vstv %s10901_s20  ;;  %vm10559_vm12 = vcmp.lt.s32.totalorder %v6729_v28, 18  ;;  %s10909_s20 = sld [smem:[#allocation33_spill]] }
 0x513   : > { %v1316_v42 = vmul.f32 %v10903_v61, %v1312_v48  ;;  %v1262_v49 = vmul.f32 %v7487_v11, %v1247_v44  ;;  %v1263_v9 = vmul.f32 %v7490_v2, %v1248_v39  ;;  %v10905_v31 = vmov %v10903_v61  ;;  %s10912_s1 = sld [smem:[#allocation41_spill]]  ;;  %v11088_v11 = vld [vmem:[#allocation84_spill] sm:$0xff] }
 0x514   : > { %v10904_v8 = vstv %s10902_s26  ;;  %v1317_v14 = vmul.f32 %v10905_v31, %v1311_v19  ;;  %v1392_v36 = vsel %vm10569_vm14, %v1389_v12, %v1387_v46  ;;  %v8030_v51 = vrot.slane %v5973_v33, %v7357_v38  ;;  %s8047_s26 = sld [smem:[#allocation2 + $0x24]] }
 0x515   : > { %v1359_v24 = vmul.f32 %v10904_v8, %v1352_v60  ;;  %v1327_v47 = vadd.f32 %v1323_v7, %v1316_v42  ;;  %v10907_v48 = vmov %v10904_v8  ;;  %2621 = vrot.lane.b32.xlu1 %v7067_v59, %s10533_s21  ;;  %v8033_v44 = vrot.slane %v5973_v33, %v7373_v13  ;;  %2619 = vrot.lane.b32.xlu0 %v7064_v18, %s10533_s21  ;;  %s10915_s12 = sld [smem:[#allocation36_spill]]  ;;  %s10562_s21 = smov 108  }
 0x516   : > { %v1360_v22 = vmul.f32 %v10907_v48, %v1351_v1  ;;  %10908 = vst [vmem:[#allocation166_spill] sm:$0xff] %v8030_v51  ;;  %v1302_v39 = vmul.f32 %v7504_v55, %v1287_v5  ;;  %v1303_v19 = vmul.f32 %v7519_v16, %v1288_v30  ;;  %v1328_v17 = vadd.f32 %v1324_v15, %v1317_v14  ;;  %v1469_v48 = vpop.permute.xlu1 %1468  ;;  %v1467_v5 = vpop.permute.xlu0 %1466  ;;  %s10922_s16 = sld [smem:[#allocation40_spill]] }
 0x517   : > { %v1363_v61 = vrot.slane %v1359_v24, 1  ;;  %v1391_v42 = vsel %vm10569_vm14, %v1387_v46, %v1389_v12  ;;  %v10910_v8 = vstv %s10906_s9  ;;  %v1432_v33 = vsel %vm10544_vm15, %v1429_v26, %v1427_v6  ;;  %v5976_v46 = vld [vmem:[%s10766_s7 + $0x43] ss:$8 sm:$0x3] }
 0x518   : > { %v1399_v31 = vmul.f32 %v10910_v8, %v1392_v36  ;;  %vm10558_vm13 = vcmp.lt.s32.totalorder %v6729_v28, 17  ;;  %v1264_v30 = vadd.f32 %v1262_v49, %v1224_v35  ;;  %v1265_v15 = vadd.f32 %v1263_v9, %v1225_v0 }
 0x519   : > { %v10913_v14 = vstv %s10909_s20  ;;  %v1342_v12 = vmul.f32 %v7523_v34, %v1327_v47  ;;  %v1364_v40 = vrot.slane %v1360_v22, 1  ;;  %v1431_v16 = vsel %vm10544_vm15, %v1427_v6, %v1429_v26  ;;  %2659 = vrot.lane.b32.xlu1 %v7064_v18, %s10564_s18  ;;  %2661 = vrot.lane.b32.xlu0 %v7067_v59, %s10564_s18  ;;  %s10923_s20 = sld [smem:[#allocation50_spill]] }
 0x51a   : > { %10911 = sst [smem:[#allocation32_spill]] %s8047_s26  ;;  %v1356_v24 = vmul.f32 %v10913_v14, %v1352_v60  ;;  %v10914_v8 = vmov %v10913_v14  ;;  %v1304_v60 = vadd.f32 %v1302_v39, %v1264_v30  ;;  %v1343_v35 = vmul.f32 %v7526_v25, %v1328_v17  ;;  %v1509_v22 = vpop.permute.xlu1 %1508  ;;  %v1507_v14 = vpop.permute.xlu0 %1506 }
 0x51b   : > { %v1357_v50 = vmul.f32 %v10914_v8, %v1351_v1  ;;  %v10916_v0 = vstv %s10906_s9  ;;  %v10917_v9 = vstv %s10912_s1  ;;  %vm10552_vm15 = vcmp.lt.s32.totalorder %v6729_v28, 16  ;;  %s10920_s9 = sld [smem:[#allocation45_spill]] }
 0x51c   : > { %v1400_v49 = vmul.f32 %v10916_v0, %v1391_v42  ;;  %v1439_v1 = vmul.f32 %v10917_v9, %v1432_v33  ;;  %v1305_v26 = vadd.f32 %v1303_v19, %v1265_v15  ;;  %v1367_v6 = vadd.f32 %v1363_v61, %v1356_v24  ;;  %s10928_s1 = sld [smem:[#allocation44_spill]] }
 0x51d   : > { %v1403_v47 = vrot.slane %v1399_v31, 1  ;;  %v8073_v8 = vrot.slane %v5976_v46, %v7357_v38  ;;  %v10918_v39 = vstv %s10915_s12  ;;  %v10919_v30 = vmov %v10917_v9  ;;  %2701 = vrot.lane.b32.xlu1 %v7067_v59, %s10562_s21  ;;  %2699 = vrot.lane.b32.xlu0 %v7064_v18, %s10562_s21  ;;  %s10553_s12 = smov 107   ;;  %s10572_s21 = smov 102  }
 0x51e   : > { %v1396_v17 = vmul.f32 %v10918_v39, %v1392_v36  ;;  %v1440_v0 = vmul.f32 %v10919_v30, %v1431_v16  ;;  %v1472_v9 = vsel %vm10547_vm2, %v1469_v48, %v1467_v5  ;;  %v8082_v7 = vrot.slane %v5976_v46, %v7373_v13  ;;  %s8200_s26 = sld [smem:[#allocation2 + $0x57]] }
 0x51f   : > { %v1344_v25 = vadd.f32 %v1342_v12, %v1304_v60  ;;  %v1368_v19 = vadd.f32 %v1364_v40, %v1357_v50  ;;  %v10921_v61 = vmov %v10918_v39  ;;  %v1471_v15 = vsel %vm10547_vm2, %v1467_v5, %v1469_v48  ;;  %v8097_v50 = vld [vmem:[%s10766_s7 + $0x44] ss:$8 sm:$0x3]  ;;  %v1549_v12 = vpop.permute.xlu1 %1548  ;;  %v1547_v60 = vpop.permute.xlu0 %1546  ;;  %s10949_s18 = sld [smem:[#allocation66_spill]] }
 0x520   : > { %v1397_v31 = vmul.f32 %v10921_v61, %v1391_v42  ;;  %v1345_v36 = vadd.f32 %v1343_v35, %v1305_v26  ;;  %v1404_v24 = vrot.slane %v1400_v49, 1  ;;  %v1443_v39 = vrot.slane %v1439_v1, 1 }
 0x521   : > { %v1512_v46 = vsel %vm10559_vm12, %v1509_v22, %v1507_v14  ;;  %v1382_v40 = vmul.f32 %v7536_v23, %v1367_v6  ;;  %v1407_v42 = vadd.f32 %v1403_v47, %v1396_v17  ;;  %v10924_v48 = vstv %s10920_s9  ;;  %2739 = vrot.lane.b32.xlu1 %v7064_v18, %s10553_s12  ;;  %2741 = vrot.lane.b32.xlu0 %v7067_v59, %s10553_s12  ;;  %s10931_s9 = sld [smem:[#allocation47_spill]] }
 0x522   : > { %v1479_v5 = vmul.f32 %v10924_v48, %v1472_v9  ;;  %v10925_v49 = vstv %s10922_s16  ;;  %v1444_v26 = vrot.slane %v1440_v0, 1  ;;  %v10926_v30 = vmov %v10924_v48  ;;  %s10556_s16 = smov 104   ;;  %s8152_s12 = sld [smem:[#allocation2 + $0x25]] }
 0x523   : > { %v1436_v1 = vmul.f32 %v10925_v49, %v1432_v33  ;;  %v1480_v61 = vmul.f32 %v10926_v30, %v1471_v15  ;;  %v1511_v34 = vsel %vm10559_vm12, %v1507_v14, %v1509_v22  ;;  %vm10566_vm2 = vcmp.lt.s32.totalorder %v6729_v28, 15  ;;  %v1589_v23 = vpop.permute.xlu1 %1588 }
 0x524   : > { %v1383_v6 = vmul.f32 %v7545_v41, %v1368_v19  ;;  %v10927_v47 = vstv %s10923_s20  ;;  %v8118_v33 = vrot.slane %v8097_v50, %v7357_v38  ;;  %v1408_v0 = vadd.f32 %v1404_v24, %v1397_v31  ;;  %v1587_v31 = vpop.permute.xlu0 %1586 }
 0x525   : > { %v1519_v17 = vmul.f32 %v10927_v47, %v1512_v46  ;;  %v1437_v22 = vmul.f32 %v10925_v49, %v1431_v16  ;;  %v1447_v14 = vadd.f32 %v1443_v39, %v1436_v1  ;;  %v1552_v19 = vsel %vm10558_vm13, %v1549_v12, %v1547_v60  ;;  %2781 = vrot.lane.b32.xlu1 %v7067_v59, %s10556_s16 }
 0x526   : > { %v1384_v30 = vadd.f32 %v1382_v40, %v1344_v25  ;;  %v1483_v47 = vrot.slane %v1479_v5, 1  ;;  %v10929_v35 = vstv %s10923_s20  ;;  %v1551_v48 = vsel %vm10558_vm13, %v1547_v60, %v1549_v12  ;;  %s10933_s20 = sld [smem:[#allocation64_spill]]  ;;  %2779 = vrot.lane.b32.xlu0 %v7064_v18, %s10556_s16  ;;  %s10560_s16 = smov 103  }
 0x527   : > { %v1520_v41 = vmul.f32 %v10929_v35, %v1511_v34  ;;  %v1422_v16 = vmul.f32 %v7560_v21, %v1407_v42  ;;  %v1448_v24 = vadd.f32 %v1444_v26, %v1437_v22  ;;  %v10930_v39 = vstv %s10928_s1  ;;  %s8159_s1 = sld [smem:[#allocation2 + $0x56]] }
 0x528   : > { %v1476_v1 = vmul.f32 %v10930_v39, %v1472_v9  ;;  %v1484_v49 = vrot.slane %v1480_v61, 1  ;;  %v1523_v55 = vrot.slane %v1519_v17, 1  ;;  %v10932_v2 = vstv %s10800_s29  ;;  %s10939_s29 = sld [smem:[#allocation54_spill]] }
 0x529   : > { %v1559_v25 = vmul.f32 %v10932_v2, %v1552_v19  ;;  %v1591_v40 = vsel %vm10552_vm15, %v1587_v31, %v1589_v23  ;;  %v1592_v5 = vsel %vm10552_vm15, %v1589_v23, %v1587_v31  ;;  %v1385_v42 = vadd.f32 %v1383_v6, %v1345_v36  ;;  %v1629_v31 = vpop.permute.xlu1 %1628  ;;  %2819 = vrot.lane.b32.xlu1 %v7064_v18, %s10560_s16 }
 0x52a   : > { %v1423_v12 = vmul.f32 %v7563_v32, %v1408_v0  ;;  %v1462_v9 = vmul.f32 %v7566_v52, %v1447_v14  ;;  %v10934_v60 = vmov %v10932_v2  ;;  %v10935_v2 = vmov %v10930_v39  ;;  %v1627_v39 = vpop.permute.xlu0 %1626  ;;  %2821 = vrot.lane.b32.xlu0 %v7067_v59, %s10560_s16  ;;  %s8178_s16 = sld [smem:[#allocation2 + $0x26]] }
 0x52b   : > { %v1560_v35 = vmul.f32 %v10934_v60, %v1551_v48  ;;  %v1477_v26 = vmul.f32 %v10935_v2, %v1471_v15  ;;  %v1487_v23 = vadd.f32 %v1483_v47, %v1476_v1  ;;  %v10936_v61 = vstv %s10931_s9  ;;  %s10942_s9 = sld [smem:[#allocation60_spill]] }
 0x52c   : > { %v1516_v17 = vmul.f32 %v10936_v61, %v1512_v46  ;;  %v1524_v22 = vrot.slane %v1520_v41, 1  ;;  %vm10583_vm15 = vcmp.lt.s32.totalorder %v6729_v28, 12  ;;  %v1424_v36 = vadd.f32 %v1422_v16, %v1384_v30 }
 0x52d   : > { %v1463_v6 = vmul.f32 %v7575_v54, %v1448_v24  ;;  %v10937_v0 = vstv %s10933_s20  ;;  %v1488_v15 = vadd.f32 %v1484_v49, %v1477_v26  ;;  %v10940_v47 = vmov %v10936_v61  ;;  %v1669_v61 = vpop.permute.xlu1 %1668  ;;  %s10943_s20 = sld [smem:[#allocation70_spill]]  ;;  %2861 = vrot.lane.b32.xlu1 %v7067_v59, %s10572_s21 }
 0x52e   : > { %v1599_v14 = vmul.f32 %v10937_v0, %v1592_v5  ;;  %v10938_v60 = vmov %v10937_v0  ;;  %v1517_v46 = vmul.f32 %v10940_v47, %v1511_v34  ;;  %v1527_v41 = vadd.f32 %v1523_v55, %v1516_v17  ;;  %2859 = vrot.lane.b32.xlu0 %v7064_v18, %s10572_s21  ;;  %s6549_s21 = smov 100  }
 0x52f   : > { %v1600_v52 = vmul.f32 %v10938_v60, %v1591_v40  ;;  %v1563_v1 = vrot.slane %v1559_v25, 1  ;;  %vm10574_vm13 = vcmp.lt.s32.totalorder %v6729_v28, 11  ;;  %v1425_v30 = vadd.f32 %v1423_v12, %v1385_v42  ;;  %v1667_v42 = vpop.permute.xlu0 %1666 }
 0x530   : > { %v1464_v16 = vadd.f32 %v1462_v9, %v1424_v36  ;;  %v1564_v24 = vrot.slane %v1560_v35, 1  ;;  %v8170_v49 = vrot.slane %v8097_v50, %v7373_v13  ;;  %v1502_v34 = vmul.f32 %v7579_v27, %v1487_v23 }
 0x531   : > { %v1528_v55 = vadd.f32 %v1524_v22, %v1517_v46  ;;  %v10941_v25 = vstv %s10939_s29  ;;  %v1632_v26 = vsel %vm10566_vm2, %v1629_v31, %v1627_v39  ;;  %vm10580_vm12 = vcmp.lt.s32.totalorder %v6729_v28, 10  ;;  %s10648_s29 = smov 99  }
 0x532   : > { %v1556_v2 = vmul.f32 %v10941_v25, %v1552_v19  ;;  %v10944_v12 = vmov %v10941_v25  ;;  %v1603_v9 = vrot.slane %v1599_v14, 1  ;;  %v1604_v35 = vrot.slane %v1600_v52, 1 }
 0x533   : > { %v1557_v50 = vmul.f32 %v10944_v12, %v1551_v48  ;;  %v1631_v23 = vsel %vm10566_vm2, %v1627_v39, %v1629_v31  ;;  %v1465_v19 = vadd.f32 %v1463_v6, %v1425_v30  ;;  %v1503_v17 = vmul.f32 %v7588_v20, %v1488_v15  ;;  %v5982_v48 = vld [vmem:[%s10766_s7 + $0x45] ss:$8 sm:$0x3]  ;;  %v1707_v30 = vpop.permute.xlu0 %1706 }
 0x534   : > { %v1542_v22 = vmul.f32 %v7592_v43, %v1527_v41  ;;  %v1567_v36 = vadd.f32 %v1563_v1, %v1556_v2  ;;  %v10945_v0 = vstv %s10942_s9  ;;  %v10947_v14 = vstv %s10943_s20  ;;  %v1709_v1 = vpop.permute.xlu1 %1708  ;;  %s10570_s9 = smov 101   ;;  %s10950_s20 = sld [smem:[#allocation76_spill]] }
 0x535   : > { %v1568_v52 = vadd.f32 %v1564_v24, %v1557_v50  ;;  %v1596_v31 = vmul.f32 %v10945_v0, %v1592_v5  ;;  %v10946_v39 = vmov %v10945_v0  ;;  %v1639_v60 = vmul.f32 %v10947_v14, %v1632_v26  ;;  %2901 = vrot.lane.b32.xlu1 %v7067_v59, %s10570_s9  ;;  %2899 = vrot.lane.b32.xlu0 %v7064_v18, %s10570_s9  ;;  %s10958_s9 = sld [smem:[#allocation79_spill]] }
 0x536   : > { %v1597_v6 = vmul.f32 %v10946_v39, %v1591_v40  ;;  %vm10576_vm2 = vcmp.lt.s32.totalorder %v6729_v28, 9  ;;  %v1504_v15 = vadd.f32 %v1502_v34, %v1464_v16  ;;  %v1543_v47 = vmul.f32 %v7601_v37, %v1528_v55 }
 0x537   : > { %v10948_v46 = vmov %v10947_v14  ;;  %v1607_v5 = vadd.f32 %v1603_v9, %v1596_v31  ;;  %v8208_v2 = vrot.slane %v5982_v48, %v7357_v38  ;;  %v1505_v12 = vadd.f32 %v1503_v17, %v1465_v19  ;;  %v1747_v31 = vpop.permute.xlu0 %1746 }
 0x538   : > { %v1640_v41 = vmul.f32 %v10948_v46, %v1631_v23  ;;  %v1608_v25 = vadd.f32 %v1604_v35, %v1597_v6  ;;  %v1544_v50 = vadd.f32 %v1542_v22, %v1504_v15  ;;  %v1582_v0 = vmul.f32 %v7616_v62, %v1567_v36 }
 0x539   : > { %vm10578_vm14 = vcmp.lt.s32.totalorder %v6729_v28, 8  ;;  %v8215_v16 = vrot.slane %v5982_v48, %v7373_v13  ;;  %v1583_v34 = vmul.f32 %v7619_v4, %v1568_v52  ;;  %v1643_v55 = vrot.slane %v1639_v60, 1  ;;  %v1749_v48 = vpop.permute.xlu1 %1748  ;;  %2941 = vrot.lane.b32.xlu1 %v7067_v59, %s6549_s21  ;;  %2939 = vrot.lane.b32.xlu0 %v7064_v18, %s6549_s21 }
 0x53a   : > { %v1671_v9 = vsel %vm10583_vm15, %v1667_v42, %v1669_v61  ;;  %v1672_v35 = vsel %vm10583_vm15, %v1669_v61, %v1667_v42  ;;  %v1545_v19 = vadd.f32 %v1543_v47, %v1505_v12  ;;  %v10951_v17 = vstv %s10949_s18  ;;  %v5985_v42 = vld [vmem:[%s10766_s7 + $0x46] ss:$8 sm:$0x3]  ;;  %s10956_s18 = sld [smem:[#allocation73_spill]] }
 0x53b   : > { %v1636_v22 = vmul.f32 %v10951_v17, %v1632_v26  ;;  %v1644_v36 = vrot.slane %v1640_v41, 1  ;;  %v1622_v52 = vmul.f32 %v7622_v3, %v1607_v5  ;;  %v1623_v6 = vmul.f32 %v7632_v58, %v1608_v25 }
 0x53c   : > { %v10952_v14 = vmov %v10951_v17  ;;  %v1712_v61 = vsel %vm10574_vm13, %v1709_v1, %v1707_v30  ;;  %v1584_v26 = vadd.f32 %v1582_v0, %v1544_v50  ;;  %v10953_v15 = vstv %s10950_s20  ;;  %s8262_s20 = sld [smem:[#allocation2 + $0x27]] }
 0x53d   : > { %v1637_v60 = vmul.f32 %v10952_v14, %v1631_v23  ;;  %v1679_v47 = vmul.f32 %v10953_v15, %v1672_v35  ;;  %v10954_v46 = vmov %v10953_v15  ;;  %v1711_v5 = vsel %vm10574_vm13, %v1707_v30, %v1709_v1  ;;  %v1789_v30 = vpop.permute.xlu1 %1788  ;;  %v1787_v15 = vpop.permute.xlu0 %1786  ;;  %2981 = vrot.lane.b32.xlu1 %v7067_v59, %s10648_s29  ;;  %2979 = vrot.lane.b32.xlu0 %v7064_v18, %s10648_s29  ;;  %s9553_s29 = sld [smem:[#allocation2 + $0x9d]] }
 0x53e   : > { %v1680_v41 = vmul.f32 %v10954_v46, %v1671_v9  ;;  %v1585_v23 = vadd.f32 %v1583_v34, %v1545_v19  ;;  %v1647_v25 = vadd.f32 %v1643_v55, %v1636_v22  ;;  %v1752_v12 = vsel %vm10580_vm12, %v1749_v48, %v1747_v31 }
 0x53f   : > { %v1648_v0 = vadd.f32 %v1644_v36, %v1637_v60  ;;  %v10955_v17 = vstv %s7390_s24  ;;  %v1751_v1 = vsel %vm10580_vm12, %v1747_v31, %v1749_v48  ;;  %vm10601_vm13 = vcmp.lt.s32.totalorder %v6729_v28, 7  ;;  %s10646_s24 = smov 98  }
 0x540   : > { %v1719_v14 = vmul.f32 %v10955_v17, %v1712_v61  ;;  %v8255_v34 = vrot.slane %v5985_v42, %v7357_v38  ;;  %v1624_v55 = vadd.f32 %v1622_v52, %v1584_v26  ;;  %v1625_v19 = vadd.f32 %v1623_v6, %v1585_v23 }
 0x541   : > { %v10957_v22 = vmov %v10955_v17  ;;  %v8260_v36 = vrot.slane %v5985_v42, %v7373_v13  ;;  %v1683_v48 = vrot.slane %v1679_v47, 1  ;;  %v1684_v31 = vrot.slane %v1680_v41, 1  ;;  %3021 = vrot.lane.b32.xlu1 %v7067_v59, %s10646_s24  ;;  %3019 = vrot.lane.b32.xlu0 %v7064_v18, %s10646_s24  ;;  %s9549_s24 = sld [smem:[#allocation2 + $0xcd]] }
 0x542   : > { %v1720_v46 = vmul.f32 %v10957_v22, %v1711_v5  ;;  %v10959_v60 = vstv %s10818_s30  ;;  %v1792_v39 = vsel %vm10576_vm2, %v1789_v30, %v1787_v15  ;;  %v1662_v52 = vmul.f32 %v7636_v57, %v1647_v25  ;;  %v1829_v25 = vpop.permute.xlu1 %1828  ;;  %v1827_v57 = vpop.permute.xlu0 %1826  ;;  %s8284_s30 = sld [smem:[#allocation2 + $0x58]] }
 0x543   : > { %v1759_v17 = vmul.f32 %v10959_v60, %v1752_v12  ;;  %v10960_v6 = vstv %s10956_s18  ;;  %v10961_v42 = vmov %v10959_v60  ;;  %v1791_v47 = vsel %vm10576_vm2, %v1787_v15, %v1789_v30  ;;  %s10972_s18 = sld [smem:[#allocation91_spill]] }
 0x544   : > { %v1676_v26 = vmul.f32 %v10960_v6, %v1672_v35  ;;  %v1760_v23 = vmul.f32 %v10961_v42, %v1751_v1  ;;  %v1663_v41 = vmul.f32 %v7645_v10, %v1648_v0  ;;  %v10962_v22 = vmov %v10960_v6 }
 0x545   : > { %v1677_v60 = vmul.f32 %v10962_v22, %v1671_v9  ;;  %v10963_v24 = vstv %s10958_s9  ;;  %v1723_v40 = vrot.slane %v1719_v14, 1  ;;  %v1724_v35 = vrot.slane %v1720_v46, 1 }
 0x546   : > { %v1716_v50 = vmul.f32 %v10963_v24, %v1712_v61  ;;  %v10964_v6 = vstv %s7445_s3  ;;  %v1831_v15 = vsel %vm10578_vm14, %v1827_v57, %v1829_v25  ;;  %v1832_v0 = vsel %vm10578_vm14, %v1829_v25, %v1827_v57  ;;  %s10968_s3 = sld [smem:[#allocation86_spill]]  ;;  %v1869_v59 = vpop.permute.xlu1 %1868 }
 0x547   : > { %v1799_v30 = vmul.f32 %v10964_v6, %v1792_v39  ;;  %vm10584_vm2 = vcmp.lt.s32.totalorder %v6729_v28, 6  ;;  %v1687_v24 = vadd.f32 %v1683_v48, %v1676_v26  ;;  %v1688_v9 = vadd.f32 %v1684_v31, %v1677_v60 }
 0x548   : > { %v1763_v61 = vrot.slane %v1759_v17, 1  ;;  %v10965_v14 = vmov %v10964_v6  ;;  %v1664_v46 = vadd.f32 %v1662_v52, %v1624_v55  ;;  %v10966_v22 = vstv %s10958_s9  ;;  %v1867_v55 = vpop.permute.xlu0 %1866  ;;  %s10983_s9 = sld [smem:[#allocation96_spill]] }
 0x549   : > { %v1800_v42 = vmul.f32 %v10965_v14, %v1791_v47  ;;  %v1717_v6 = vmul.f32 %v10966_v22, %v1711_v5  ;;  %v1764_v10 = vrot.slane %v1760_v23, 1  ;;  %v10967_v57 = vstv %s7471_s11  ;;  %s8426_s11 = sld [smem:[#allocation2 + $0x29]] }
 0x54a   : > { %v1839_v25 = vmul.f32 %v10967_v57, %v1832_v0  ;;  %vm10588_vm14 = vcmp.lt.s32.totalorder %v6729_v28, 3  ;;  %v1665_v48 = vadd.f32 %v1663_v41, %v1625_v19  ;;  %v1727_v31 = vadd.f32 %v1723_v40, %v1716_v50 }
 0x54b   : > { %v10969_v17 = vstv %s7404_s4  ;;  %v10970_v60 = vmov %v10967_v57  ;;  %v1728_v52 = vadd.f32 %v1724_v35, %v1717_v6  ;;  %v1803_v22 = vrot.slane %v1799_v30, 1  ;;  %v10974_v30 = vld [vmem:[#allocation127_spill] sm:$0xff]  ;;  %s11109_s4 = sld [smem:[#allocation24_spill]] }
 0x54c   : > { %v1756_v26 = vmul.f32 %v10969_v17, %v1752_v12  ;;  %v1840_v14 = vmul.f32 %v10970_v60, %v1831_v15  ;;  %v10971_v5 = vmov %v10969_v17  ;;  %v1702_v18 = vmul.f32 %v7649_v29, %v1687_v24 }
 0x54d   : > { %v1757_v23 = vmul.f32 %v10971_v5, %v1751_v1  ;;  %v1703_v58 = vmul.f32 %v7658_v45, %v1688_v9  ;;  %v1804_v40 = vrot.slane %v1800_v42, 1  ;;  %vm10587_vm12 = vcmp.lt.s32.totalorder %v6729_v28, 2  ;;  %v1909_v9 = vpop.permute.xlu1 %1908  ;;  %v1907_v5 = vpop.permute.xlu0 %1906  ;;  %v10976_v42 = vld [vmem:[#allocation128_spill] sm:$0xff] }
 0x54e   : > { %v1767_v19 = vadd.f32 %v1763_v61, %v1756_v26  ;;  %v10973_v50 = vstv %s10968_s3  ;;  %v1843_v35 = vrot.slane %v1839_v25, 1  ;;  %v1872_v1 = vsel %vm10601_vm13, %v1869_v59, %v1867_v55  ;;  %s8392_s3 = sld [smem:[#allocation2 + $0x59]] }
 0x54f   : > { %v1768_v12 = vadd.f32 %v1764_v10, %v1757_v23  ;;  %v1796_v41 = vmul.f32 %v10973_v50, %v1792_v39  ;;  %v1742_v6 = vmul.f32 %v10974_v30, %v1727_v31  ;;  %v10975_v17 = vmov %v10973_v50 }
 0x550   : > { %v1797_v24 = vmul.f32 %v10975_v17, %v1791_v47  ;;  %v1844_v60 = vrot.slane %v1840_v14, 1  ;;  %v1743_v26 = vmul.f32 %v10976_v42, %v1728_v52  ;;  %v10977_v23 = vstv %s10972_s18  ;;  %v5988_v47 = vld [vmem:[%s10766_s7 + $0x47] ss:$8 sm:$0x3]  ;;  %v10981_v52 = vld [vmem:[#allocation131_spill] sm:$0xff]  ;;  %s11007_s18 = sld [smem:[#allocation116_spill]] }
 0x551   : > { %v1807_v10 = vadd.f32 %v1803_v22, %v1796_v41  ;;  %v1836_v57 = vmul.f32 %v10977_v23, %v1832_v0  ;;  %v1871_v39 = vsel %vm10601_vm13, %v1867_v55, %v1869_v59  ;;  %v1704_v25 = vadd.f32 %v1702_v18, %v1664_v46  ;;  %v10980_v17 = vld [vmem:[#allocation129_spill] sm:$0xff]  ;;  %v1949_v55 = vpop.permute.xlu1 %1948 }
 0x552   : > { %v1808_v50 = vadd.f32 %v1804_v40, %v1797_v24  ;;  %v10978_v45 = vmov %v10977_v23  ;;  %v10979_v31 = vstv %s7497_s27  ;;  %v1705_v14 = vadd.f32 %v1703_v58, %v1665_v48  ;;  %v1947_v58 = vpop.permute.xlu0 %1946  ;;  %s10993_s27 = sld [smem:[#allocation100_spill]] }
 0x553   : > { %v1837_v29 = vmul.f32 %v10978_v45, %v1831_v15  ;;  %v1879_v30 = vmul.f32 %v10979_v31, %v1872_v1  ;;  %v1782_v61 = vmul.f32 %v10980_v17, %v1767_v19  ;;  %v1783_v22 = vmul.f32 %v10981_v52, %v1768_v12  ;;  %v10984_v19 = vld [vmem:[#allocation132_spill] sm:$0xff] }
 0x554   : > { %v1847_v41 = vadd.f32 %v1843_v35, %v1836_v57  ;;  %vm10590_vm15 = vcmp.lt.s32.totalorder %v6729_v28, 1  ;;  %v10982_v59 = vmov %v10979_v31  ;;  %v1911_v45 = vsel %vm10584_vm2, %v1907_v5, %v1909_v9 }
 0x555   : > { %v1848_v0 = vadd.f32 %v1844_v60, %v1837_v29  ;;  %v1880_v46 = vmul.f32 %v10982_v59, %v1871_v39  ;;  %v1912_v15 = vsel %vm10584_vm2, %v1909_v9, %v1907_v5  ;;  %v1744_v48 = vadd.f32 %v1742_v6, %v1704_v25  ;;  %v10985_v29 = vld [vmem:[#allocation133_spill] sm:$0xff]  ;;  %v10988_v25 = vld [vmem:[#allocation134_spill] sm:$0xff] }
 0x556   : > { %v1745_v18 = vadd.f32 %v1743_v26, %v1705_v14  ;;  %v1822_v57 = vmul.f32 %v10984_v19, %v1807_v10  ;;  %v8345_v40 = vrot.slane %v5988_v47, %v7357_v38  ;;  %v1823_v12 = vmul.f32 %v10985_v29, %v1808_v50  ;;  %v10989_v50 = vld [vmem:[#allocation135_spill] sm:$0xff]  ;;  %v1989_v19 = vpop.permute.xlu1 %1988  ;;  %v1987_v52 = vpop.permute.xlu0 %1986 }
 0x557   : > { %v1883_v35 = vrot.slane %v1879_v30, 1  ;;  %v1951_v24 = vsel %vm10588_vm14, %v1947_v58, %v1949_v55  ;;  %v1952_v60 = vsel %vm10588_vm14, %v1949_v55, %v1947_v58  ;;  %vm10589_vm2 = vcmp.lt.s32.totalorder %v6729_v28, 127 }
 0x558   : > { %v1784_v6 = vadd.f32 %v1782_v61, %v1744_v48  ;;  %v1785_v9 = vadd.f32 %v1783_v22, %v1745_v18  ;;  %v10986_v5 = vstv %s7531_s14  ;;  %v1862_v31 = vmul.f32 %v10988_v25, %v1847_v41  ;;  %s10996_s14 = sld [smem:[#allocation107_spill]] }
 0x559   : > { %v1919_v26 = vmul.f32 %v10986_v5, %v1912_v15  ;;  %v10987_v10 = vmov %v10986_v5  ;;  %v1863_v30 = vmul.f32 %v10989_v50, %v1848_v0  ;;  %v10990_v14 = vstv %s10983_s9  ;;  %s11018_s9 = sld [smem:[#allocation121_spill]] }
 0x55a   : > { %v1920_v23 = vmul.f32 %v10987_v10, %v1911_v45  ;;  %v1876_v59 = vmul.f32 %v10990_v14, %v1872_v1  ;;  %v1884_v29 = vrot.slane %v1880_v46, 1  ;;  %v10991_v55 = vstv %s7553_s25  ;;  %s8383_s25 = sld [smem:[#allocation2 + $0x28]] }
 0x55b   : > { %v1959_v58 = vmul.f32 %v10991_v55, %v1952_v60  ;;  %v10992_v61 = vmov %v10991_v55  ;;  %v1991_v22 = vsel %vm10587_vm12, %v1987_v52, %v1989_v19  ;;  %v1992_v41 = vsel %vm10587_vm12, %v1989_v19, %v1987_v52  ;;  %v2029_v52 = vpop.permute.xlu1 %2028  ;;  %v2027_v19 = vpop.permute.xlu0 %2026 }
 0x55c   : > { %v1960_v48 = vmul.f32 %v10992_v61, %v1951_v24  ;;  %v1824_v18 = vadd.f32 %v1822_v57, %v1784_v6  ;;  %v1825_v0 = vadd.f32 %v1823_v12, %v1785_v9  ;;  %v10994_v5 = vmov %v10990_v14 }
 0x55d   : > { %v1877_v1 = vmul.f32 %v10994_v5, %v1871_v39  ;;  %v1887_v46 = vadd.f32 %v1883_v35, %v1876_v59  ;;  %v1923_v10 = vrot.slane %v1919_v26, 1  ;;  %v1924_v14 = vrot.slane %v1920_v23, 1 }
 0x55e   : > { %v10995_v50 = vstv %s7585_s0  ;;  %v8374_v61 = vrot.slane %v5988_v47, %v7373_v13  ;;  %v1864_v25 = vadd.f32 %v1862_v31, %v1824_v18  ;;  %v1865_v17 = vadd.f32 %v1863_v30, %v1825_v0  ;;  %v11000_v47 = vld [vmem:[#allocation136_spill] sm:$0xff]  ;;  %s11002_s0 = sld [smem:[#allocation57_spill]] }
 0x55f   : > { %v1999_v55 = vmul.f32 %v10995_v50, %v1992_v41  ;;  %v1888_v42 = vadd.f32 %v1884_v29, %v1877_v1  ;;  %v10997_v3 = vmov %v10995_v50  ;;  %v10998_v57 = vstv %s10993_s27  ;;  %s8431_s27 = sld [smem:[#allocation2 + $0x5a]] }
 0x560   : > { %v2000_v4 = vmul.f32 %v10997_v3, %v1991_v22  ;;  %v1916_v12 = vmul.f32 %v10998_v57, %v1912_v15  ;;  %v10999_v39 = vmov %v10998_v57  ;;  %v1963_v6 = vrot.slane %v1959_v58, 1  ;;  %v11004_v58 = vld [vmem:[#allocation137_spill] sm:$0xff] }
 0x561   : > { %v1917_v35 = vmul.f32 %v10999_v39, %v1911_v45  ;;  %v1964_v9 = vrot.slane %v1960_v48, 1  ;;  %vm10591_vm12 = vcmp.lt.s32.totalorder %v6729_v28, 126  ;;  %v1902_v26 = vmul.f32 %v11000_v47, %v1887_v46  ;;  %v2102_v46 = vpop.permute.xlu1 %2101 }
 0x562   : > { %v11001_v29 = vstv %s10996_s14  ;;  %v2031_v3 = vsel %vm10590_vm15, %v2027_v19, %v2029_v52  ;;  %v2032_v15 = vsel %vm10590_vm15, %v2029_v52, %v2027_v19  ;;  %v1927_v45 = vadd.f32 %v1923_v10, %v1916_v12  ;;  %v2100_v52 = vpop.permute.xlu0 %2099  ;;  %s11056_s14 = sld [smem:[#allocation147_spill]] }
 0x563   : > { %v1956_v23 = vmul.f32 %v11001_v29, %v1952_v60  ;;  %v1928_v31 = vadd.f32 %v1924_v14, %v1917_v35  ;;  %v11003_v50 = vmov %v11001_v29  ;;  %v2003_v59 = vrot.slane %v1999_v55, 1  ;;  %v11010_v29 = vld [vmem:[#allocation138_spill] sm:$0xff] }
 0x564   : > { %v1957_v30 = vmul.f32 %v11003_v50, %v1951_v24  ;;  %vm10592_vm14 = vcmp.lt.s32.totalorder %v6729_v28, 125  ;;  %v1903_v48 = vmul.f32 %v11004_v58, %v1888_v42  ;;  %v2004_v60 = vrot.slane %v2000_v4, 1 }
 0x565   : > { %v11005_v18 = vstv %s7609_s23  ;;  %v1967_v19 = vadd.f32 %v1963_v6, %v1956_v23  ;;  %v11008_v14 = vstv %s11002_s0  ;;  %v2104_v24 = vsel %vm10589_vm2, %v2100_v52, %v2102_v46  ;;  %s8466_s0 = sld [smem:[#allocation2 + $0x2a]] }
 0x566   : > { %v2039_v0 = vmul.f32 %v11005_v18, %v2032_v15  ;;  %v11006_v5 = vmov %v11005_v18  ;;  %v1968_v10 = vadd.f32 %v1964_v9, %v1957_v30  ;;  %v1996_v57 = vmul.f32 %v11008_v14, %v1992_v41  ;;  %v11011_v18 = vld [vmem:[#allocation140_spill] sm:$0xff]  ;;  %s11130_s23 = sld [smem:[#allocation28_spill]] }
 0x567   : > { %v2040_v1 = vmul.f32 %v11006_v5, %v2031_v3  ;;  %v11009_v55 = vmov %v11008_v14  ;;  %v2105_v39 = vsel %vm10589_vm2, %v2102_v46, %v2100_v52  ;;  %v1904_v35 = vadd.f32 %v1902_v26, %v1864_v25  ;;  %v5991_v25 = vld [vmem:[%s10766_s7 + $0x50] ss:$8 sm:$0x3] }
 0x568   : > { %v1997_v12 = vmul.f32 %v11009_v55, %v1991_v22  ;;  %v2043_v42 = vrot.slane %v2039_v0, 1  ;;  %v1942_v50 = vmul.f32 %v11010_v29, %v1927_v45  ;;  %v1943_v5 = vmul.f32 %v11011_v18, %v1928_v31  ;;  %v2140_v55 = vpop.permute.xlu0 %2139  ;;  %v11015_v45 = vld [vmem:[#allocation141_spill] sm:$0xff] }
 0x569   : > { %v2044_v4 = vrot.slane %v2040_v1, 1  ;;  %v2007_v6 = vadd.f32 %v2003_v59, %v1996_v57  ;;  %v11012_v23 = vstv %s11007_s18  ;;  %v11014_v22 = vstv %s7642_s10  ;;  %v2142_v1 = vpop.permute.xlu1 %2141  ;;  %v11016_v59 = vld [vmem:[#allocation142_spill] sm:$0xff]  ;;  %v11022_v57 = vld [vmem:[#allocation146_spill] sm:$0xff]  ;;  %s8474_s18 = sld [smem:[#allocation2 + $0x5b]] }
 0x56a   : > { %v2008_v9 = vadd.f32 %v2004_v60, %v1997_v12  ;;  %v2036_v41 = vmul.f32 %v11012_v23, %v2032_v15  ;;  %v11013_v30 = vmov %v11012_v23  ;;  %v2112_v0 = vmul.f32 %v11014_v22, %v2104_v24  ;;  %v11023_v12 = vld [vmem:[#allocation148_spill] sm:$0xff]  ;;  %v11044_v29 = vld [vmem:[#allocation61_spill] sm:$0xff]  ;;  %s8536_s10 = sld [smem:[#allocation2 + $0x2c]] }
 0x56b   : > { %v2037_v14 = vmul.f32 %v11013_v30, %v2031_v3  ;;  %vm10600_vm2 = vcmp.lt.s32.totalorder %v6729_v28, 122  ;;  %v1905_v26 = vadd.f32 %v1903_v48, %v1865_v17  ;;  %v1982_v31 = vmul.f32 %v11015_v45, %v1967_v19  ;;  %v11019_v17 = vld [vmem:[#allocation143_spill] sm:$0xff] }
 0x56c   : > { %v1983_v60 = vmul.f32 %v11016_v59, %v1968_v10  ;;  %v11017_v46 = vmov %v11014_v22  ;;  %v2047_v3 = vadd.f32 %v2043_v42, %v2036_v41  ;;  %vm10597_vm15 = vcmp.lt.s32.totalorder %v6729_v28, 121  ;;  %v11020_v10 = vld [vmem:[#allocation145_spill] sm:$0xff]  ;;  %v11024_v59 = vld [vmem:[#allocation51_spill] sm:$0xff] }
 0x56d   : > { %v2113_v15 = vmul.f32 %v11017_v46, %v2105_v39  ;;  %v2048_v52 = vadd.f32 %v2044_v4, %v2037_v14  ;;  %v1944_v23 = vadd.f32 %v1942_v50, %v1904_v35  ;;  %v1945_v30 = vadd.f32 %v1943_v5, %v1905_v26  ;;  %v2182_v41 = vpop.permute.xlu1 %2181  ;;  %v2180_v35 = vpop.permute.xlu0 %2179  ;;  %3451 = vadd.xlane.f32.xlu0 %v11024_v59 }
 0x56e   : > { %v2022_v48 = vmul.f32 %v11019_v17, %v2007_v6  ;;  %v8435_v19 = vrot.slane %v5991_v25, %v7357_v38  ;;  %v2023_v22 = vmul.f32 %v11020_v10, %v2008_v9  ;;  %v2116_v46 = vrot.slane %v2112_v0, 1 }
 0x56f   : > { %v2144_v42 = vsel %vm10591_vm12, %v2140_v55, %v2142_v1  ;;  %v2145_v4 = vsel %vm10591_vm12, %v2142_v1, %v2140_v55  ;;  %v1984_v50 = vadd.f32 %v1982_v31, %v1944_v23  ;;  %v1985_v5 = vadd.f32 %v1983_v60, %v1945_v30 }
 0x570   : > { %v11021_v6 = vstv %s11018_s9  ;;  %v2117_v26 = vrot.slane %v2113_v15, 1  ;;  %v2062_v9 = vmul.f32 %v11022_v57, %v2047_v3  ;;  %v2063_v0 = vmul.f32 %v11023_v12, %v2048_v52  ;;  %s8510_s9 = sld [smem:[#allocation2 + $0x2b]] }
 0x571   : > { %v2109_v14 = vmul.f32 %v11021_v6, %v2104_v24  ;;  %v2184_v10 = vsel %vm10592_vm14, %v2180_v35, %v2182_v41  ;;  %v2185_v17 = vsel %vm10592_vm14, %v2182_v41, %v2180_v35  ;;  %v5994_v24 = vld [vmem:[%s10766_s7 + $0x51] ss:$8 sm:$0x3]  ;;  %v11025_v1 = vmov %v11021_v6  ;;  %v2222_v6 = vpop.permute.xlu1 %2221  ;;  %v2220_v12 = vpop.permute.xlu0 %2219 }
 0x572   : > { %v2110_v55 = vmul.f32 %v11025_v1, %v2105_v39  ;;  %v11026_v31 = vstv %s7666_s5  ;;  %vm2303_vm12 = vcmp.lt.s32.totalorder %v6729_v28, 120  ;;  %v8462_v52 = vrot.slane %v5991_v25, %v7373_v13  ;;  %s11030_s5 = sld [smem:[#allocation83_spill]] }
 0x573   : > { %v2152_v60 = vmul.f32 %v11026_v31, %v2144_v42  ;;  %v11027_v15 = vmov %v11026_v31  ;;  %v2024_v23 = vadd.f32 %v2022_v48, %v1984_v50  ;;  %v2025_v30 = vadd.f32 %v2023_v22, %v1985_v5  ;;  %v11031_v22 = vld [vmem:[#allocation43_spill] sm:$0xff]  ;;  %v11034_v5 = vld [vmem:[#allocation58_spill] sm:$0xff] }
 0x574   : > { %v2153_v3 = vmul.f32 %v11027_v15, %v2145_v4  ;;  %v2120_v59 = vadd.f32 %v2116_v46, %v2109_v14  ;;  %v11028_v41 = vstv %s7699_s17  ;;  %v2121_v39 = vadd.f32 %v2117_v26, %v2110_v55  ;;  %v11032_v46 = vld [vmem:[#allocation42_spill] sm:$0xff]  ;;  %3448 = vadd.xlane.f32.xlu1 %v11034_v5  ;;  %s11035_s17 = sld [smem:[#allocation130_spill]]  ;;  %v11039_v15 = vld [vmem:[#allocation150_spill] sm:$0xff] }
 0x575   : > { %v2192_v35 = vmul.f32 %v11028_v41, %v2184_v10  ;;  %v11029_v1 = vmov %v11028_v41  ;;  %v8472_v57 = vrot.slane %v5994_v24, %v7357_v38  ;;  %v2064_v25 = vadd.f32 %v2062_v9, %v2024_v23 }
 0x576   : > { %v2193_v31 = vmul.f32 %v11029_v1, %v2185_v17  ;;  %v2065_v48 = vadd.f32 %v2063_v0, %v2025_v30  ;;  %v11033_v50 = vmax.f32 %v11031_v22, %v11032_v46  ;;  %v8482_v26 = vrot.slane %v5994_v24, %v7373_v13  ;;  %v11036_v0 = vld [vmem:[#allocation149_spill] sm:$0xff] }
 0x577   : > { %v2156_v55 = vrot.slane %v2152_v60, 1  ;;  %v2157_v41 = vrot.slane %v2153_v3, 1  ;;  %v2224_v1 = vsel %vm10600_vm2, %v2220_v12, %v2222_v6  ;;  %v2225_v9 = vsel %vm10600_vm2, %v2222_v6, %v2220_v12  ;;  %v2262_v60 = vpop.permute.xlu1 %2261  ;;  %v2260_v3 = vpop.permute.xlu0 %2259  ;;  %v11040_v6 = vld [vmem:[#allocation102_spill] sm:$0xff] }
 0x578   : > { %3499 = vmax.xlane.f32.xlu0 %v11033_v50  ;;  %vm10602_vm14 = vcmp.lt.s32.totalorder %v6729_v28, 119  ;;  %v2135_v23 = vmul.f32 %v11036_v0, %v2120_v59  ;;  %v11037_v30 = vstv %s11030_s5  ;;  %v2196_v5 = vrot.slane %v2192_v35, 1  ;;  %s8545_s5 = sld [smem:[#allocation2 + $0x5d]] }
 0x579   : > { %v2149_v46 = vmul.f32 %v11037_v30, %v2144_v42  ;;  %v11038_v50 = vmov %v11037_v30  ;;  %v2136_v14 = vmul.f32 %v11039_v15, %v2121_v39  ;;  %v2197_v45 = vrot.slane %v2193_v31, 1  ;;  %v5997_v39 = vld [vmem:[%s10766_s7 + $0x52] ss:$8 sm:$0x3]  ;;  %v11045_v31 = vld [vmem:[#allocation101_spill] sm:$0xff] }
 0x57a   : > { %v2150_v24 = vmul.f32 %v11038_v50, %v2145_v4  ;;  %v2264_v18 = vsel %vm10597_vm15, %v2260_v3, %v2262_v60  ;;  %v2265_v12 = vsel %vm10597_vm15, %v2262_v60, %v2260_v3  ;;  %v2097_v59 = vadd.f32 %v11040_v6, %v2064_v25  ;;  %v11048_v15 = vld [vmem:[#allocation67_spill] sm:$0xff] }
 0x57b   : > { %v11041_v42 = vstv %s11035_s17  ;;  %v11042_v4 = vstv %s7726_s28  ;;  %v2098_v60 = vadd.f32 %v11045_v31, %v2065_v48  ;;  %v2160_v3 = vadd.f32 %v2156_v55, %v2149_v46  ;;  %s8518_s28 = sld [smem:[#allocation2 + $0x5c]]  ;;  %v2302_v37 = vpop.permute.xlu1 %2301  ;;  %v2300_v48 = vpop.permute.xlu0 %2299 }
 0x57c   : > { %v2189_v30 = vmul.f32 %v11041_v42, %v2184_v10  ;;  %v2232_v35 = vmul.f32 %v11042_v4, %v2224_v1  ;;  %v11043_v50 = vmov %v11042_v4  ;;  %3445 = vadd.xlane.f32.xlu0 %v11044_v29  ;;  %v2161_v25 = vadd.f32 %v2157_v41, %v2150_v24  ;;  %s8590_s17 = sld [smem:[#allocation2 + $0x2d]] }
 0x57d   : > { %v2233_v0 = vmul.f32 %v11043_v50, %v2225_v9  ;;  %v11046_v6 = vmov %v11041_v42  ;;  %v11047_v42 = vld [vmem:[#allocation48_spill] sm:$0xff]  ;;  %v11050_v50 = vstv %s7753_s22  ;;  %vm10607_vm15 = vcmp.lt.s32.totalorder %v6729_v28, 118  ;;  %s11055_s22 = sld [smem:[#allocation139_spill]] }
 0x57e   : > { %v2190_v10 = vmul.f32 %v11046_v6, %v2185_v17  ;;  %v11049_v4 = vmax.f32 %v11047_v42, %v11048_v15  ;;  %v2200_v29 = vadd.f32 %v2196_v5, %v2189_v30  ;;  %v2272_v58 = vmul.f32 %v11050_v50, %v2264_v18  ;;  %v11054_v5 = vld [vmem:[#allocation80_spill] sm:$0xff]  ;;  %v11057_v30 = vld [vmem:[#allocation151_spill] sm:$0xff] }
 0x57f   : > { %v11051_v47 = vmov %v11050_v50  ;;  %v8528_v17 = vrot.slane %v5997_v39, %v7357_v38  ;;  %v8531_v15 = vrot.slane %v5997_v39, %v7373_v13  ;;  %v2137_v41 = vadd.f32 %v2135_v23, %v2097_v59  ;;  %v11058_v6 = vld [vmem:[#allocation152_spill] sm:$0xff]  ;;  %v11060_v23 = vld [vmem:[#allocation49_spill] sm:$0xff]  ;;  %v2342_v54 = vpop.permute.xlu1 %2341 }
 0x580   : > { %3496 = vmax.xlane.f32.xlu1 %v11049_v4  ;;  %v2273_v62 = vmul.f32 %v11051_v47, %v2265_v12  ;;  %v2201_v20 = vadd.f32 %v2197_v45, %v2190_v10  ;;  %v2236_v46 = vrot.slane %v2232_v35, 1  ;;  %v2237_v24 = vrot.slane %v2233_v0, 1  ;;  %3442 = vadd.xlane.f32.xlu0 %v11054_v5  ;;  %v11061_v59 = vld [vmem:[#allocation68_spill] sm:$0xff]  ;;  %v11063_v35 = vld [vmem:[#allocation153_spill] sm:$0xff] }
 0x581   : > { %11052 = vst [vmem:[#allocation51_spill] sm:$0xff] %v8528_v17  ;;  %11053 = vst [vmem:[#allocation42_spill] sm:$0xff] %v8531_v15  ;;  %v2304_v47 = vsel %vm2303_vm12, %v2300_v48, %v2302_v37  ;;  %v2138_v45 = vadd.f32 %v2136_v14, %v2098_v60  ;;  %v2175_v31 = vmul.f32 %v11057_v30, %v2160_v3  ;;  %v11059_v39 = vstv %s7713_s8  ;;  %v11065_v14 = vld [vmem:[#allocation154_spill] sm:$0xff]  ;;  %s11073_s8 = sld [smem:[#allocation144_spill]] }
 0x582   : > { %v2176_v10 = vmul.f32 %v11058_v6, %v2161_v25  ;;  %v2229_v4 = vmul.f32 %v11059_v39, %v2224_v1  ;;  %v11062_v0 = vmax.f32 %v11060_v23, %v11061_v59  ;;  %v2215_v50 = vmul.f32 %v11063_v35, %v2200_v29  ;;  %v2340_v6 = vpop.permute.xlu0 %2339  ;;  %v11078_v35 = vld [vmem:[#allocation82_spill] sm:$0xff]  ;;  %v11114_v23 = vld [vmem:[#allocation161_spill] sm:$0xff] }
 0x583   : > { %v11064_v5 = vmov %v11059_v39  ;;  %v2276_v55 = vrot.slane %v2272_v58, 1  ;;  %v2277_v27 = vrot.slane %v2273_v62, 1  ;;  %vm10608_vm2 = vcmp.lt.s32.totalorder %v6729_v28, 117 }
 0x584   : > { %3493 = vmax.xlane.f32.xlu1 %v11062_v0  ;;  %v2230_v43 = vmul.f32 %v11064_v5, %v2225_v9  ;;  %v2216_v60 = vmul.f32 %v11065_v14, %v2201_v20  ;;  %v11066_v3 = vstv %s11055_s22  ;;  %v11068_v59 = vstv %s11056_s14  ;;  %v6000_v9 = vld [vmem:[%s10766_s7 + $0x53] ss:$8 sm:$0x3]  ;;  %v11069_v5 = vld [vmem:[#allocation81_spill] sm:$0xff]  ;;  %s8664_s22 = sld [smem:[#allocation2 + $0x2e]] }
 0x585   : > { %v2269_v1 = vmul.f32 %v11066_v3, %v2264_v18  ;;  %v11067_v25 = vmov %v11066_v3  ;;  %v2312_v0 = vmul.f32 %v11068_v59, %v2304_v47  ;;  %v2240_v58 = vadd.f32 %v2236_v46, %v2229_v4  ;;  %3439 = vadd.xlane.f32.xlu0 %v11069_v5  ;;  %v11070_v3 = vld [vmem:[#allocation52_spill] sm:$0xff] }
 0x586   : > { %v2270_v39 = vmul.f32 %v11067_v25, %v2265_v12  ;;  %v2241_v62 = vadd.f32 %v2237_v24, %v2230_v43  ;;  %v2305_v29 = vsel %vm2303_vm12, %v2302_v37, %v2300_v48  ;;  %v2344_v20 = vsel %vm10602_vm14, %v2340_v6, %v2342_v54  ;;  %v11071_v25 = vld [vmem:[#allocation71_spill] sm:$0xff]  ;;  %v2382_v37 = vpop.permute.xlu1 %2381  ;;  %v11077_v43 = vld [vmem:[#allocation156_spill] sm:$0xff] }
 0x587   : > { %v2177_v18 = vadd.f32 %v2175_v31, %v2137_v41  ;;  %v2178_v12 = vadd.f32 %v2176_v10, %v2138_v45  ;;  %v11072_v59 = vmax.f32 %v11070_v3, %v11071_v25  ;;  %vm10610_vm13 = vcmp.lt.s32.totalorder %v6729_v28, 116  ;;  %v6003_v41 = vld [vmem:[%s10766_s7 + $0x54] ss:$8 sm:$0x3] }
 0x588   : > { %v2280_v24 = vadd.f32 %v2276_v55, %v2269_v1  ;;  %v2281_v4 = vadd.f32 %v2277_v27, %v2270_v39  ;;  %v8573_v48 = vrot.slane %v6000_v9, %v7357_v38  ;;  %v8576_v5 = vrot.slane %v6000_v9, %v7373_v13  ;;  %v2380_v1 = vpop.permute.xlu0 %2379 }
 0x589   : > { %3490 = vmax.xlane.f32.xlu1 %v11072_v59  ;;  %v2217_v45 = vadd.f32 %v2215_v50, %v2177_v18  ;;  %v11074_v31 = vstv %s11056_s14  ;;  %v2316_v25 = vrot.slane %v2312_v0, 1  ;;  %v11075_v55 = vstv %s7818_s15  ;;  %v11076_v59 = vld [vmem:[#allocation155_spill] sm:$0xff]  ;;  %3436 = vadd.xlane.f32.xlu0 %v11078_v35  ;;  %s8602_s14 = sld [smem:[#allocation2 + $0x5e]]  ;;  %v11085_v35 = vld [vmem:[#allocation158_spill] sm:$0xff] }
 0x58a   : > { %v2313_v10 = vmul.f32 %v11074_v31, %v2305_v29  ;;  %v2352_v27 = vmul.f32 %v11075_v55, %v2344_v20  ;;  %v2218_v39 = vadd.f32 %v2216_v60, %v2178_v12  ;;  %v2255_v46 = vmul.f32 %v11076_v59, %v2240_v58  ;;  %v11080_v31 = vld [vmem:[#allocation55_spill] sm:$0xff]  ;;  %v2422_v12 = vpop.permute.xlu1 %2421  ;;  %s11091_s15 = sld [smem:[#allocation25_spill]] }
 0x58b   : > { %v2256_v14 = vmul.f32 %v11077_v43, %v2241_v62  ;;  %v2345_v9 = vsel %vm10602_vm14, %v2342_v54, %v2340_v6  ;;  %v11079_v50 = vstv %s11073_s8  ;;  %v11081_v0 = vld [vmem:[#allocation72_spill] sm:$0xff]  ;;  %v8600_v58 = vrot.slane %v6003_v41, %v7357_v38  ;;  %v11084_v54 = vld [vmem:[#allocation157_spill] sm:$0xff] }
 0x58c   : > { %v2309_v18 = vmul.f32 %v11079_v50, %v2304_v47  ;;  %v11082_v30 = vmax.f32 %v11080_v31, %v11081_v0  ;;  %v2295_v6 = vmul.f32 %v11084_v54, %v2280_v24  ;;  %v2296_v62 = vmul.f32 %v11085_v35, %v2281_v4  ;;  %v2420_v59 = vpop.permute.xlu0 %2419 }
 0x58d   : > { %11083 = vst [vmem:[#allocation58_spill] sm:$0xff] %v8600_v58  ;;  %v2384_v47 = vsel %vm10607_vm15, %v2380_v1, %v2382_v37  ;;  %v2317_v50 = vrot.slane %v2313_v10, 1  ;;  %v2353_v60 = vmul.f32 %v11075_v55, %v2345_v9  ;;  %v2356_v43 = vrot.slane %v2352_v27, 1  ;;  %3433 = vadd.xlane.f32.xlu0 %v11088_v11  ;;  %v11097_v55 = vld [vmem:[#allocation159_spill] sm:$0xff] }
 0x58e   : > { %3487 = vmax.xlane.f32.xlu1 %v11082_v30  ;;  %v2385_v30 = vsel %vm10607_vm15, %v2382_v37, %v2380_v1  ;;  %v2320_v0 = vadd.f32 %v2316_v25, %v2309_v18  ;;  %vm10611_vm14 = vcmp.lt.s32.totalorder %v6729_v28, 113  ;;  %v2257_v24 = vadd.f32 %v2255_v46, %v2217_v45  ;;  %v11092_v46 = vld [vmem:[#allocation62_spill] sm:$0xff] }
 0x58f   : > { %v2258_v54 = vadd.f32 %v2256_v14, %v2218_v39  ;;  %v11086_v4 = vstv %s11073_s8  ;;  %v11087_v32 = vstv %s7807_s19  ;;  %v11089_v53 = vstv %s7875_s6  ;;  %v11093_v14 = vld [vmem:[#allocation74_spill] sm:$0xff]  ;;  %s11098_s6 = sld [smem:[#allocation30_spill]]  ;;  %s11256_s8 = smov 17  }
 0x590   : > { %v2310_v35 = vmul.f32 %v11086_v4, %v2305_v29  ;;  %v2349_v21 = vmul.f32 %v11087_v32, %v2344_v20  ;;  %v2392_v37 = vmul.f32 %v11089_v53, %v2384_v47  ;;  %v11090_v1 = vmov %v11089_v53  ;;  %v2462_v20 = vpop.permute.xlu1 %2461 }
 0x591   : > { %v2393_v10 = vmul.f32 %v11090_v1, %v2385_v30  ;;  %v2424_v25 = vsel %vm10608_vm2, %v2420_v59, %v2422_v12  ;;  %v2425_v27 = vsel %vm10608_vm2, %v2422_v12, %v2420_v59  ;;  %v11094_v45 = vmax.f32 %v11092_v46, %v11093_v14  ;;  %v2460_v1 = vpop.permute.xlu0 %2459  ;;  %v11116_v46 = vld [vmem:[#allocation69_spill] sm:$0xff] }
 0x592   : > { %vm10612_vm15 = vcmp.lt.s32.totalorder %v6729_v28, 112  ;;  %v2297_v32 = vadd.f32 %v2295_v6, %v2257_v24  ;;  %v2298_v11 = vadd.f32 %v2296_v62, %v2258_v54  ;;  %v11095_v29 = vstv %s7807_s19  ;;  %v6006_v54 = vld [vmem:[%s10766_s7 + $0x55] ss:$8 sm:$0x3]  ;;  %s11102_s19 = sld [smem:[#allocation26_spill]] }
 0x593   : > { %3484 = vmax.xlane.f32.xlu1 %v11094_v45  ;;  %v2350_v53 = vmul.f32 %v11095_v29, %v2345_v9  ;;  %v8633_v39 = vrot.slane %v6003_v41, %v7373_v13  ;;  %v2321_v18 = vadd.f32 %v2317_v50, %v2310_v35  ;;  %v2335_v4 = vmul.f32 %v11097_v55, %v2320_v0  ;;  %v11101_v50 = vld [vmem:[#allocation85_spill] sm:$0xff]  ;;  %v11104_v0 = vld [vmem:[#allocation77_spill] sm:$0xff] }
 0x594   : > { %v2357_v59 = vrot.slane %v2353_v60, 1  ;;  %v2360_v12 = vadd.f32 %v2356_v43, %v2349_v21  ;;  %v11099_v6 = vstv %s11091_s15  ;;  %v2464_v41 = vsel %vm10610_vm13, %v2460_v1, %v2462_v20  ;;  %3430 = vadd.xlane.f32.xlu0 %v11101_v50  ;;  %v11103_v60 = vld [vmem:[#allocation65_spill] sm:$0xff]  ;;  %v2502_v42 = vpop.permute.xlu1 %2501  ;;  %s8671_s15 = sld [smem:[#allocation2 + $0x5f]] }
 0x595   : > { %11096 = vst [vmem:[#allocation102_spill] sm:$0xff] %v8633_v39  ;;  %v2432_v9 = vmul.f32 %v11099_v6, %v2424_v25  ;;  %v11100_v62 = vmov %v11099_v6  ;;  %v2465_v35 = vsel %vm10610_vm13, %v2462_v20, %v2460_v1  ;;  %v2396_v21 = vrot.slane %v2392_v37, 1  ;;  %v2500_v29 = vpop.permute.xlu0 %2499 }
 0x596   : > { %v2433_v24 = vmul.f32 %v11100_v62, %v2425_v27  ;;  %v2397_v43 = vrot.slane %v2393_v10, 1  ;;  %v11105_v14 = vmax.f32 %v11103_v60, %v11104_v0  ;;  %vm10615_vm2 = vcmp.lt.s32.totalorder %v6729_v28, 111  ;;  %v11111_v10 = vld [vmem:[#allocation160_spill] sm:$0xff]  ;;  %v11117_v60 = vld [vmem:[#allocation78_spill] sm:$0xff] }
 0x597   : > { %v11106_v6 = vstv %s11098_s6  ;;  %v8659_v20 = vrot.slane %v6006_v54, %v7357_v38  ;;  %v8662_v37 = vrot.slane %v6006_v54, %v7373_v13  ;;  %v2336_v1 = vmul.f32 %v11111_v10, %v2321_v18  ;;  %s11115_s6 = sld [smem:[#allocation27_spill]] }
 0x598   : > { %3481 = vmax.xlane.f32.xlu1 %v11105_v14  ;;  %v2472_v62 = vmul.f32 %v11106_v6, %v2464_v41  ;;  %v11107_v55 = vmov %v11106_v6  ;;  %v2361_v50 = vadd.f32 %v2357_v59, %v2350_v53  ;;  %v11112_v0 = vstv %s11102_s19  ;;  %s11257_s19 = smov 16  }
 0x599   : > { %v2473_v22 = vmul.f32 %v11107_v55, %v2465_v35  ;;  %11108 = vst [vmem:[#allocation61_spill] sm:$0xff] %v8659_v20  ;;  %11110 = vst [vmem:[#allocation101_spill] sm:$0xff] %v8662_v37  ;;  %v2389_v14 = vmul.f32 %v11112_v0, %v2384_v47  ;;  %v11113_v45 = vmov %v11112_v0  ;;  %v2337_v55 = vadd.f32 %v2335_v4, %v2297_v32 }
 0x59a   : > { %v2390_v6 = vmul.f32 %v11113_v45, %v2385_v30  ;;  %v2375_v3 = vmul.f32 %v11114_v23, %v2360_v12  ;;  %v2436_v31 = vrot.slane %v2432_v9, 1  ;;  %v2437_v54 = vrot.slane %v2433_v24, 1  ;;  %v2542_v12 = vpop.permute.xlu1 %2541  ;;  %v11121_v24 = vld [vmem:[#allocation162_spill] sm:$0xff] }
 0x59b   : > { %v11118_v37 = vmax.f32 %v11116_v46, %v11117_v60  ;;  %v2400_v18 = vadd.f32 %v2396_v21, %v2389_v14  ;;  %v11119_v59 = vstv %s11109_s4  ;;  %v2476_v45 = vrot.slane %v2472_v62, 1  ;;  %s11258_s4 = smov 15  }
 0x59c   : > { %v2401_v53 = vadd.f32 %v2397_v43, %v2390_v6  ;;  %v2429_v47 = vmul.f32 %v11119_v59, %v2424_v25  ;;  %v11120_v0 = vmov %v11119_v59  ;;  %v2477_v10 = vrot.slane %v2473_v22, 1  ;;  %v2540_v22 = vpop.permute.xlu0 %2539 }
 0x59d   : > { %3478 = vmax.xlane.f32.xlu0 %v11118_v37  ;;  %v2430_v30 = vmul.f32 %v11120_v0, %v2425_v27  ;;  %v2504_v32 = vsel %vm10611_vm14, %v2500_v29, %v2502_v42  ;;  %v2505_v4 = vsel %vm10611_vm14, %v2502_v42, %v2500_v29  ;;  %vm10616_vm13 = vcmp.lt.s32.totalorder %v6729_v28, 110 }
 0x59e   : > { %v2338_v9 = vadd.f32 %v2336_v1, %v2298_v11  ;;  %v2376_v21 = vmul.f32 %v11121_v24, %v2361_v50  ;;  %v11122_v43 = vstv %s11115_s6  ;;  %v2440_v62 = vadd.f32 %v2436_v31, %v2429_v47  ;;  %v11124_v11 = vld [vmem:[#allocation163_spill] sm:$0xff]  ;;  %v11125_v1 = vld [vmem:[#allocation164_spill] sm:$0xff]  ;;  %v2580_v0 = vpop.permute.xlu1 %2579  ;;  %s11261_s6 = smov 10  }
 0x59f   : > { %v2469_v25 = vmul.f32 %v11122_v43, %v2464_v41  ;;  %v11123_v60 = vmov %v11122_v43  ;;  %v2441_v37 = vadd.f32 %v2437_v54, %v2430_v30  ;;  %v2544_v14 = vsel %vm10612_vm15, %v2540_v22, %v2542_v12 }
 0x5a0   : > { %v2470_v27 = vmul.f32 %v11123_v60, %v2465_v35  ;;  %v2545_v42 = vsel %vm10612_vm15, %v2542_v12, %v2540_v22  ;;  %v2415_v29 = vmul.f32 %v11124_v11, %v2400_v18  ;;  %v2416_v50 = vmul.f32 %v11125_v1, %v2401_v53  ;;  %v2582_v22 = vpop.permute.xlu0 %2581 }
 0x5a1   : > { %v11126_v41 = vstv %s8000_s2  ;;  %vm10617_vm14 = vcmp.lt.s32.totalorder %v6729_v28, 109  ;;  %v2377_v31 = vadd.f32 %v2375_v3, %v2337_v55  ;;  %v2480_v47 = vadd.f32 %v2476_v45, %v2469_v25  ;;  %s11131_s2 = sld [smem:[#allocation32_spill]] }
 0x5a2   : > { %v2512_v6 = vmul.f32 %v11126_v41, %v2504_v32  ;;  %v11127_v59 = vmov %v11126_v41  ;;  %v2481_v54 = vadd.f32 %v2477_v10, %v2470_v27  ;;  %v2378_v43 = vadd.f32 %v2376_v21, %v2338_v9  ;;  %v2622_v30 = vpop.permute.xlu1 %2621 }
 0x5a3   : > { %v2513_v35 = vmul.f32 %v11127_v59, %v2505_v4  ;;  %v11128_v60 = vstv %s8062_s13  ;;  %v2455_v41 = vmul.f32 %v7972_v63, %v2440_v62  ;;  %v2456_v59 = vmul.f32 %v7994_v56, %v2441_v37  ;;  %s11264_s13 = smov 7  }
 0x5a4   : > { %v2552_v24 = vmul.f32 %v11128_v60, %v2544_v14  ;;  %v11129_v12 = vmov %v11128_v60  ;;  %v2584_v3 = vsel %vm10615_vm2, %v2580_v0, %v2582_v22  ;;  %v2585_v10 = vsel %vm10615_vm2, %v2582_v22, %v2580_v0 }
 0x5a5   : > { %v2553_v18 = vmul.f32 %v11129_v12, %v2545_v42  ;;  %v2417_v55 = vadd.f32 %v2415_v29, %v2377_v31  ;;  %v2418_v45 = vadd.f32 %v2416_v50, %v2378_v43  ;;  %v2516_v9 = vrot.slane %v2512_v6, 1  ;;  %v2620_v6 = vpop.permute.xlu0 %2619 }
 0x5a6   : > { %v2517_v21 = vrot.slane %v2513_v35, 1  ;;  %vm10618_vm15 = vcmp.lt.s32.totalorder %v6729_v28, 108  ;;  %v2495_v25 = vmul.f32 %v8030_v51, %v2480_v47  ;;  %v2496_v27 = vmul.f32 %v8033_v44, %v2481_v54 }
 0x5a7   : > { %v11132_v62 = vstv %s8159_s1  ;;  %v11134_v53 = vstv %s11130_s23  ;;  %v2556_v50 = vrot.slane %v2552_v24, 1  ;;  %v2557_v31 = vrot.slane %v2553_v18, 1  ;;  %s8802_s1 = sld [smem:[#allocation2 + $0x30]]  ;;  %s11262_s23 = smov 9  }
 0x5a8   : > { %v2592_v37 = vmul.f32 %v11132_v62, %v2584_v3  ;;  %v11133_v60 = vmov %v11132_v62  ;;  %v2509_v56 = vmul.f32 %v11134_v53, %v2504_v32  ;;  %v11135_v0 = vmov %v11134_v53 }
 0x5a9   : > { %v2593_v12 = vmul.f32 %v11133_v60, %v2585_v10  ;;  %v2510_v29 = vmul.f32 %v11135_v0, %v2505_v4  ;;  %v2457_v43 = vadd.f32 %v2455_v41, %v2417_v55  ;;  %v2458_v35 = vadd.f32 %v2456_v59, %v2418_v45  ;;  %v2660_v59 = vpop.permute.xlu1 %2659 }
 0x5aa   : > { %v11136_v22 = vstv %s11131_s2  ;;  %v2520_v62 = vadd.f32 %v2516_v9, %v2509_v56  ;;  %v2624_v32 = vsel %vm10616_vm13, %v2620_v6, %v2622_v30  ;;  %v2625_v4 = vsel %vm10616_vm13, %v2622_v30, %v2620_v6  ;;  %v2662_v9 = vpop.permute.xlu0 %2661  ;;  %s11263_s2 = smov 8  }
 0x5ab   : > { %v2549_v47 = vmul.f32 %v11136_v22, %v2544_v14  ;;  %v11137_v51 = vmov %v11136_v22  ;;  %v2521_v60 = vadd.f32 %v2517_v21, %v2510_v29  ;;  %v2497_v24 = vadd.f32 %v2495_v25, %v2457_v43 }
 0x5ac   : > { %v2550_v54 = vmul.f32 %v11137_v51, %v2545_v42  ;;  %v2498_v18 = vadd.f32 %v2496_v27, %v2458_v35  ;;  %v2596_v53 = vrot.slane %v2592_v37, 1  ;;  %v2597_v41 = vrot.slane %v2593_v12, 1 }
 0x5ad   : > { %vm10619_vm2 = vcmp.lt.s32.totalorder %v6729_v28, 107  ;;  %v2560_v14 = vadd.f32 %v2556_v50, %v2549_v47  ;;  %v11138_v42 = vstv %s8200_s26  ;;  %v11140_v21 = vstv %s8152_s12  ;;  %v2702_v47 = vpop.permute.xlu1 %2701  ;;  %s8762_s12 = sld [smem:[#allocation2 + $0x2f]]  ;;  %s11265_s26 = smov 6  }
 0x5ae   : > { %v2561_v51 = vadd.f32 %v2557_v31, %v2550_v54  ;;  %v2632_v56 = vmul.f32 %v11138_v42, %v2624_v32  ;;  %v11139_v55 = vmov %v11138_v42  ;;  %v2589_v0 = vmul.f32 %v11140_v21, %v2584_v3  ;;  %v6009_v54 = vld [vmem:[%s10766_s7 + $0x56] ss:$8 sm:$0x3] }
 0x5af   : > { %v2633_v45 = vmul.f32 %v11139_v55, %v2625_v4  ;;  %v11141_v29 = vmov %v11140_v21  ;;  %v2664_v25 = vsel %vm10617_vm14, %v2660_v59, %v2662_v9  ;;  %v2665_v27 = vsel %vm10617_vm14, %v2662_v9, %v2660_v59 }
 0x5b0   : > { %v2590_v30 = vmul.f32 %v11141_v29, %v2585_v10  ;;  %v2535_v37 = vmul.f32 %v8073_v8, %v2520_v62  ;;  %v2536_v12 = vmul.f32 %v8082_v7, %v2521_v60  ;;  %v2636_v50 = vrot.slane %v2632_v56, 1 }
 0x5b1   : > { %v2637_v31 = vrot.slane %v2633_v45, 1  ;;  %vm10620_vm13 = vcmp.lt.s32.totalorder %v6729_v28, 104  ;;  %v2600_v6 = vadd.f32 %v2596_v53, %v2589_v0  ;;  %v11142_v43 = vstv %s8178_s16  ;;  %v2700_v53 = vpop.permute.xlu0 %2699  ;;  %s8768_s16 = sld [smem:[#allocation2 + $0x60]] }
 0x5b2   : > { %v2601_v3 = vadd.f32 %v2597_v41, %v2590_v30  ;;  %v2629_v10 = vmul.f32 %v11142_v43, %v2624_v32  ;;  %v11143_v35 = vmov %v11142_v43  ;;  %v2575_v59 = vmul.f32 %v8118_v33, %v2560_v14 }
 0x5b3   : > { %v2630_v22 = vmul.f32 %v11143_v35, %v2625_v4  ;;  %v2576_v62 = vmul.f32 %v8170_v49, %v2561_v51  ;;  %v11144_v60 = vstv %s8284_s30  ;;  %v2704_v41 = vsel %vm10618_vm15, %v2700_v53, %v2702_v47  ;;  %s11213_s30 = smov 127  }
 0x5b4   : > { %v2672_v42 = vmul.f32 %v11144_v60, %v2664_v25  ;;  %v11145_v56 = vmov %v11144_v60  ;;  %v2640_v32 = vadd.f32 %v2636_v50, %v2629_v10  ;;  %v2705_v45 = vsel %vm10618_vm15, %v2702_v47, %v2700_v53 }
 0x5b5   : > { %v2673_v55 = vmul.f32 %v11145_v56, %v2665_v27  ;;  %v2641_v4 = vadd.f32 %v2637_v31, %v2630_v22  ;;  %v2537_v14 = vadd.f32 %v2535_v37, %v2497_v24  ;;  %v2538_v51 = vadd.f32 %v2536_v12, %v2498_v18  ;;  %v2740_v24 = vpop.permute.xlu1 %2739  ;;  %v2742_v35 = vpop.permute.xlu0 %2741 }
 0x5b6   : > { %vm10621_vm14 = vcmp.lt.s32.totalorder %v6729_v28, 103  ;;  %v8772_v9 = vrot.slane %v6009_v54, %v7357_v38  ;;  %v8775_v21 = vrot.slane %v6009_v54, %v7373_v13  ;;  %v2615_v0 = vmul.f32 %v8208_v2, %v2600_v6 }
 0x5b7   : > { %v2616_v29 = vmul.f32 %v8215_v16, %v2601_v3  ;;  %v11148_v30 = vstv %s8392_s3  ;;  %v2577_v18 = vadd.f32 %v2575_v59, %v2537_v14  ;;  %v2578_v37 = vadd.f32 %v2576_v62, %v2538_v51  ;;  %s11246_s3 = smov 29  }
 0x5b8   : > { %11146 = vst [vmem:[#allocation67_spill] sm:$0xff] %v8772_v9  ;;  %11147 = vst [vmem:[#allocation80_spill] sm:$0xff] %v8775_v21  ;;  %v2712_v50 = vmul.f32 %v11148_v30, %v2704_v41  ;;  %v11149_v31 = vmov %v11148_v30  ;;  %v2676_v12 = vrot.slane %v2672_v42, 1  ;;  %v2677_v10 = vrot.slane %v2673_v55, 1 }
 0x5b9   : > { %v2713_v43 = vmul.f32 %v11149_v31, %v2705_v45  ;;  %v2655_v22 = vmul.f32 %v8255_v34, %v2640_v32  ;;  %v2656_v47 = vmul.f32 %v8260_v36, %v2641_v4  ;;  %v11150_v6 = vstv %s8262_s20  ;;  %v2782_v30 = vpop.permute.xlu1 %2781  ;;  %s8810_s20 = sld [smem:[#allocation2 + $0x61]] }
 0x5ba   : > { %v2669_v3 = vmul.f32 %v11150_v6, %v2664_v25  ;;  %v11151_v54 = vmov %v11150_v6  ;;  %v2716_v56 = vrot.slane %v2712_v50, 1  ;;  %v2744_v59 = vsel %vm10619_vm2, %v2740_v24, %v2742_v35 }
 0x5bb   : > { %v2670_v60 = vmul.f32 %v11151_v54, %v2665_v27  ;;  %v2717_v53 = vrot.slane %v2713_v43, 1  ;;  %v2745_v62 = vsel %vm10619_vm2, %v2742_v35, %v2740_v24  ;;  %v2617_v42 = vadd.f32 %v2615_v0, %v2577_v18  ;;  %v2780_v54 = vpop.permute.xlu0 %2779 }
 0x5bc   : > { %v2618_v55 = vadd.f32 %v2616_v29, %v2578_v37  ;;  %v11152_v32 = vstv %s8383_s25  ;;  %vm10622_vm15 = vcmp.lt.s32.totalorder %v6729_v28, 102  ;;  %v2680_v25 = vadd.f32 %v2676_v12, %v2669_v3  ;;  %s11245_s25 = smov 30  }
 0x5bd   : > { %v2709_v14 = vmul.f32 %v11152_v32, %v2704_v41  ;;  %v11153_v4 = vmov %v11152_v32  ;;  %v2681_v27 = vadd.f32 %v2677_v10, %v2670_v60  ;;  %v11154_v50 = vstv %s8431_s27  ;;  %s11248_s27 = smov 27  }
 0x5be   : > { %v2710_v51 = vmul.f32 %v11153_v4, %v2705_v45  ;;  %v2752_v31 = vmul.f32 %v11154_v50, %v2744_v59  ;;  %v11155_v43 = vmov %v11154_v50  ;;  %v2784_v0 = vsel %vm10620_vm13, %v2780_v54, %v2782_v30 }
 0x5bf   : > { %v2753_v6 = vmul.f32 %v11155_v43, %v2745_v62  ;;  %v2785_v41 = vsel %vm10620_vm13, %v2782_v30, %v2780_v54  ;;  %v2657_v24 = vadd.f32 %v2655_v22, %v2617_v42  ;;  %v2658_v18 = vadd.f32 %v2656_v47, %v2618_v55  ;;  %v2820_v30 = vpop.permute.xlu1 %2819 }
 0x5c0   : > { %v2720_v37 = vadd.f32 %v2716_v56, %v2709_v14  ;;  %v2721_v12 = vadd.f32 %v2717_v53, %v2710_v51  ;;  %vm2903_vm2 = vcmp.lt.s32.totalorder %v6729_v28, 101  ;;  %v2756_v10 = vrot.slane %v2752_v31, 1  ;;  %v2822_v53 = vpop.permute.xlu0 %2821 }
 0x5c1   : > { %v2757_v35 = vrot.slane %v2753_v6, 1  ;;  %v11156_v3 = vstv %s8474_s18  ;;  %v2695_v50 = vmul.f32 %v8345_v40, %v2680_v25  ;;  %v2696_v43 = vmul.f32 %v8374_v61, %v2681_v27  ;;  %v6012_v25 = vld [vmem:[%s10766_s7 + $0x57] ss:$8 sm:$0x3]  ;;  %s11207_s18 = sld [smem:[#allocation172_spill]] }
 0x5c2   : > { %v2792_v60 = vmul.f32 %v11156_v3, %v2784_v0  ;;  %v11157_v32 = vmov %v11156_v3  ;;  %v11158_v54 = vstv %s8426_s11  ;;  %v2824_v14 = vsel %vm10621_vm14, %v2820_v30, %v2822_v53  ;;  %s11247_s11 = smov 28  }
 0x5c3   : > { %v2793_v4 = vmul.f32 %v11157_v32, %v2785_v41  ;;  %v2749_v22 = vmul.f32 %v11158_v54, %v2744_v59  ;;  %v11159_v47 = vmov %v11158_v54  ;;  %v2825_v51 = vsel %vm10621_vm14, %v2822_v53, %v2820_v30  ;;  %v2862_v53 = vpop.permute.xlu1 %2861 }
 0x5c4   : > { %v2750_v56 = vmul.f32 %v11159_v47, %v2745_v62  ;;  %v2796_v42 = vrot.slane %v2792_v60, 1  ;;  %v2735_v27 = vmul.f32 %v8435_v19, %v2720_v37  ;;  %v2736_v59 = vmul.f32 %v8462_v52, %v2721_v12  ;;  %v2860_v37 = vpop.permute.xlu0 %2859 }
 0x5c5   : > { %v2797_v55 = vrot.slane %v2793_v4, 1  ;;  %v11160_v31 = vstv %s8466_s0  ;;  %vm2943_vm13 = vcmp.lt.s32.totalorder %v6729_v28, 100  ;;  %v2760_v60 = vadd.f32 %v2756_v10, %v2749_v22  ;;  %s11249_s0 = smov 26  }
 0x5c6   : > { %v2789_v62 = vmul.f32 %v11160_v31, %v2784_v0  ;;  %v11161_v6 = vmov %v11160_v31  ;;  %v2761_v32 = vadd.f32 %v2757_v35, %v2750_v56  ;;  %v11162_v4 = vstv %s8518_s28  ;;  %s11251_s28 = smov 24  }
 0x5c7   : > { %v2790_v3 = vmul.f32 %v11161_v6, %v2785_v41  ;;  %v2832_v30 = vmul.f32 %v11162_v4, %v2824_v14  ;;  %v11163_v54 = vmov %v11162_v4  ;;  %v2697_v45 = vadd.f32 %v2695_v50, %v2657_v24 }
 0x5c8   : > { %v2833_v47 = vmul.f32 %v11163_v54, %v2825_v51  ;;  %v2698_v29 = vadd.f32 %v2696_v43, %v2658_v18  ;;  %v8842_v12 = vrot.slane %v6012_v25, %v7357_v38  ;;  %v8845_v0 = vrot.slane %v6012_v25, %v7373_v13  ;;  %v2900_v54 = vpop.permute.xlu0 %2899 }
 0x5c9   : > { %v2800_v41 = vadd.f32 %v2796_v42, %v2789_v62  ;;  %v2801_v10 = vadd.f32 %v2797_v55, %v2790_v3  ;;  %v2737_v56 = vadd.f32 %v2735_v27, %v2697_v45  ;;  %v2864_v24 = vsel %vm10622_vm15, %v2860_v37, %v2862_v53  ;;  %v2902_v55 = vpop.permute.xlu1 %2901 }
 0x5ca   : > { %11164 = vst [vmem:[#allocation68_spill] sm:$0xff] %v8842_v12  ;;  %11165 = vst [vmem:[#allocation81_spill] sm:$0xff] %v8845_v0  ;;  %v2738_v31 = vadd.f32 %v2736_v59, %v2698_v29  ;;  %v2865_v18 = vsel %vm10622_vm15, %v2862_v53, %v2860_v37  ;;  %v2775_v50 = vmul.f32 %v8472_v57, %v2760_v60  ;;  %v2836_v42 = vrot.slane %v2832_v30, 1 }
 0x5cb   : > { %v2776_v43 = vmul.f32 %v8482_v26, %v2761_v32  ;;  %v2837_v25 = vrot.slane %v2833_v47, 1  ;;  %vm2983_vm14 = vcmp.lt.s32.totalorder %v6729_v28, 99  ;;  %v11166_v62 = vstv %s8510_s9  ;;  %s11250_s9 = smov 25  }
 0x5cc   : > { %v2829_v45 = vmul.f32 %v11166_v62, %v2824_v14  ;;  %v11167_v29 = vmov %v11166_v62  ;;  %v11168_v59 = vstv %s8545_s5  ;;  %v2815_v60 = vmul.f32 %v8528_v17, %v2800_v41  ;;  %s11253_s5 = smov 20  }
 0x5cd   : > { %v2830_v27 = vmul.f32 %v11167_v29, %v2825_v51  ;;  %v2872_v6 = vmul.f32 %v11168_v59, %v2864_v24  ;;  %v11169_v3 = vmov %v11168_v59  ;;  %v2816_v32 = vmul.f32 %v8531_v15, %v2801_v10  ;;  %v2942_v15 = vpop.permute.xlu1 %2941 }
 0x5ce   : > { %v2873_v4 = vmul.f32 %v11169_v3, %v2865_v18  ;;  %v2904_v30 = vsel %vm2903_vm2, %v2900_v54, %v2902_v55  ;;  %v2905_v47 = vsel %vm2903_vm2, %v2902_v55, %v2900_v54  ;;  %v11170_v14 = vstv %s8536_s10  ;;  %s11209_s10 = sld [smem:[#allocation170_spill]] }
 0x5cf   : > { %v2869_v53 = vmul.f32 %v11170_v14, %v2864_v24  ;;  %v11171_v37 = vmov %v11170_v14  ;;  %v2876_v62 = vrot.slane %v2872_v6, 1  ;;  %vm3023_vm15 = vcmp.lt.s32.totalorder %v6729_v28, 98 }
 0x5d0   : > { %v2870_v51 = vmul.f32 %v11171_v37, %v2865_v18  ;;  %v2877_v29 = vrot.slane %v2873_v4, 1  ;;  %v2840_v59 = vadd.f32 %v2836_v42, %v2829_v45  ;;  %v2841_v3 = vadd.f32 %v2837_v25, %v2830_v27  ;;  %v2940_v18 = vpop.permute.xlu0 %2939 }
 0x5d1   : > { %v11172_v41 = vstv %s8602_s14  ;;  %v2777_v17 = vadd.f32 %v2775_v50, %v2737_v56  ;;  %v2778_v55 = vadd.f32 %v2776_v43, %v2738_v31  ;;  %v2880_v24 = vadd.f32 %v2876_v62, %v2869_v53  ;;  %v2982_v62 = vpop.permute.xlu1 %2981  ;;  %s11210_s14 = sld [smem:[#allocation171_spill]] }
 0x5d2   : > { %v2912_v10 = vmul.f32 %v11172_v41, %v2904_v30  ;;  %v11173_v35 = vmov %v11172_v41  ;;  %v2881_v54 = vadd.f32 %v2877_v29, %v2870_v51  ;;  %v2944_v42 = vsel %vm2943_vm13, %v2940_v18, %v2942_v15 }
 0x5d3   : > { %v2913_v22 = vmul.f32 %v11173_v35, %v2905_v47  ;;  %v2945_v25 = vsel %vm2943_vm13, %v2942_v15, %v2940_v18  ;;  %v2817_v45 = vadd.f32 %v2815_v60, %v2777_v17  ;;  %v2818_v35 = vadd.f32 %v2816_v32, %v2778_v55  ;;  %v6015_v15 = vld [vmem:[%s10766_s7 + $0x60] ss:$8 sm:$0x3]  ;;  %s11353_s7 = smov 99  }
 0x5d4   : > { %v2916_v6 = vrot.slane %v2912_v10, 1  ;;  %v11174_v27 = vstv %s8590_s17  ;;  %v2855_v31 = vmul.f32 %v8573_v48, %v2840_v59  ;;  %v2856_v43 = vmul.f32 %v8576_v5, %v2841_v3  ;;  %s11254_s17 = smov 19  }
 0x5d5   : > { %v2917_v4 = vrot.slane %v2913_v22, 1  ;;  %v2909_v14 = vmul.f32 %v11174_v27, %v2904_v30  ;;  %v11175_v56 = vmov %v11174_v27  ;;  %v11176_v53 = vstv %s8671_s15  ;;  %s11260_s15 = smov 11  }
 0x5d6   : > { %v2910_v50 = vmul.f32 %v11175_v56, %v2905_v47  ;;  %v2952_v22 = vmul.f32 %v11176_v53, %v2944_v42  ;;  %v11177_v37 = vmov %v11176_v53  ;;  %v2895_v17 = vmul.f32 %v8600_v58, %v2880_v24  ;;  %v2980_v47 = vpop.permute.xlu0 %2979 }
 0x5d7   : > { %v2953_v51 = vmul.f32 %v11177_v37, %v2945_v25  ;;  %v2896_v60 = vmul.f32 %v8633_v39, %v2881_v54  ;;  %v2920_v32 = vadd.f32 %v2916_v6, %v2909_v14  ;;  %v11178_v29 = vstv %s8664_s22  ;;  %v3022_v14 = vpop.permute.xlu1 %3021  ;;  %s11259_s22 = smov 12  }
 0x5d8   : > { %v2921_v30 = vadd.f32 %v2917_v4, %v2910_v50  ;;  %v2949_v59 = vmul.f32 %v11178_v29, %v2944_v42  ;;  %v11179_v3 = vmov %v11178_v29  ;;  %v2956_v10 = vrot.slane %v2952_v22, 1  ;;  %v11182_v50 = vld [vmem:[#allocation101_spill] sm:$0xff] }
 0x5d9   : > { %v2950_v41 = vmul.f32 %v11179_v3, %v2945_v25  ;;  %v2957_v55 = vrot.slane %v2953_v51, 1  ;;  %v2984_v18 = vsel %vm2983_vm14, %v2980_v47, %v2982_v62  ;;  %v2985_v27 = vsel %vm2983_vm14, %v2982_v62, %v2980_v47 }
 0x5da   : > { %v8907_v24 = vrot.slane %v6015_v15, %v7357_v38  ;;  %v8910_v54 = vrot.slane %v6015_v15, %v7373_v13  ;;  %v2857_v6 = vadd.f32 %v2855_v31, %v2817_v45  ;;  %v2858_v4 = vadd.f32 %v2856_v43, %v2818_v35  ;;  %v3020_v47 = vpop.permute.xlu0 %3019 }
 0x5db   : > { %v2960_v42 = vadd.f32 %v2956_v10, %v2949_v59  ;;  %v2961_v25 = vadd.f32 %v2957_v55, %v2950_v41  ;;  %v2935_v56 = vmul.f32 %v8659_v20, %v2920_v32  ;;  %v2936_v53 = vmul.f32 %v11182_v50, %v2921_v30 }
 0x5dc   : > { %11180 = vst [vmem:[#allocation71_spill] sm:$0xff] %v8907_v24  ;;  %11181 = vst [vmem:[#allocation82_spill] sm:$0xff] %v8910_v54  ;;  %v11183_v22 = vstv %s8768_s16  ;;  %v2897_v29 = vadd.f32 %v2895_v17, %v2857_v6  ;;  %v2898_v13 = vadd.f32 %v2896_v60, %v2858_v4  ;;  %v3024_v45 = vsel %vm3023_vm15, %v3020_v47, %v3022_v14  ;;  %s11267_s16 = smov 2  }
 0x5dd   : > { %v2992_v37 = vmul.f32 %v11183_v22, %v2984_v18  ;;  %v11184_v51 = vmov %v11183_v22  ;;  %v3025_v35 = vsel %vm3023_vm15, %v3022_v14, %v3020_v47  ;;  %v11185_v31 = vstv %s8762_s12  ;;  %s11266_s12 = smov 3  }
 0x5de   : > { %v2993_v62 = vmul.f32 %v11184_v51, %v2985_v27  ;;  %v2989_v43 = vmul.f32 %v11185_v31, %v2984_v18  ;;  %v11186_v15 = vmov %v11185_v31  ;;  %v2975_v3 = vmul.f32 %v8772_v9, %v2960_v42  ;;  %v11374_v9 = vld [vmem:[#allocation133_spill] sm:$0xff] }
 0x5df   : > { %v2990_v32 = vmul.f32 %v11186_v15, %v2985_v27  ;;  %v2996_v30 = vrot.slane %v2992_v37, 1  ;;  %v2976_v41 = vmul.f32 %v8775_v21, %v2961_v25  ;;  %v11187_v17 = vstv %s8810_s20  ;;  %s11269_s20 = smov 126  }
 0x5e0   : > { %v2997_v59 = vrot.slane %v2993_v62, 1  ;;  %v3032_v10 = vmul.f32 %v11187_v17, %v3024_v45  ;;  %v11188_v60 = vmov %v11187_v17  ;;  %v2937_v6 = vadd.f32 %v2935_v56, %v2897_v29 }
 0x5e1   : > { %v3033_v55 = vmul.f32 %v11188_v60, %v3025_v35  ;;  %v2938_v4 = vadd.f32 %v2936_v53, %v2898_v13  ;;  %v3000_v22 = vadd.f32 %v2996_v30, %v2989_v43  ;;  %v11189_v50 = vstv %s8802_s1  ;;  %s11268_s1 = smov 1  }
 0x5e2   : > { %v3001_v51 = vadd.f32 %v2997_v59, %v2990_v32  ;;  %v3029_v14 = vmul.f32 %v11189_v50, %v3024_v45  ;;  %v11190_v47 = vmov %v11189_v50  ;;  %v3036_v31 = vrot.slane %v3032_v10, 1 }
 0x5e3   : > { %v3030_v18 = vmul.f32 %v11190_v47, %v3025_v35  ;;  %v3037_v27 = vrot.slane %v3033_v55, 1  ;;  %v3015_v37 = vmul.f32 %v8842_v12, %v3000_v22  ;;  %v2977_v62 = vadd.f32 %v2975_v3, %v2937_v6  ;;  %v11191_v55 = vld [vmem:[#allocation22_spill] sm:$0xff]  ;;  %v11193_v22 = vld [vmem:[#allocation21_spill] sm:$0xff] }
 0x5e4   : > { %v3016_v42 = vmul.f32 %v8845_v0, %v3001_v51  ;;  %v2978_v25 = vadd.f32 %v2976_v41, %v2938_v4  ;;  %v3040_v15 = vadd.f32 %v3036_v31, %v3029_v14  ;;  %v11194_v14 = vld [vmem:[#allocation20_spill] sm:$0xff] }
 0x5e5   : > { %v3041_v17 = vadd.f32 %v3037_v27, %v3030_v18  ;;  %v3017_v21 = vadd.f32 %v3015_v37, %v2977_v62  ;;  %v11195_v18 = vld [vmem:[#allocation19_spill] sm:$0xff]  ;;  %v11196_v27 = vld [vmem:[#allocation18_spill] sm:$0xff] }
 0x5e6   : > { %v3018_v60 = vadd.f32 %v3016_v42, %v2978_v25  ;;  %v3055_v56 = vmul.f32 %v8907_v24, %v3040_v15  ;;  %v11197_v42 = vld [vmem:[#allocation17_spill] sm:$0xff]  ;;  %v11198_v15 = vld [vmem:[#allocation16_spill] sm:$0xff] }
 0x5e7   : > { %v3056_v53 = vmul.f32 %v8910_v54, %v3041_v17 }
 0x5e8   : > { %v3057_v29 = vadd.f32 %v3055_v56, %v3017_v21  ;;  %v11192_v21 = vld [vmem:[#allocation23_spill] sm:$0xff] }
 0x5e9   : > { %v3058_v50 = vadd.f32 %v3056_v53, %v3018_v60  ;;  %v11199_v60 = vld [vmem:[#allocation15_spill] sm:$0xff]  ;;  %v11200_v53 = vld [vmem:[#allocation14_spill] sm:$0xff] }
 0x5ea   : > { %v6016_v13 = vmul.f32 -1.442695, %v3057_v29 }
 0x5eb   : > { %v6017_v45 = vmul.f32 -1.442695, %v3058_v50  ;;  %v11201_v50 = vld [vmem:[#allocation13_spill] sm:$0xff] }
 0x5ec   : > { %6415 = vpow2.f32 %v6016_v13 }
 0x5ed   : > { %6417 = vpow2.f32 %v6017_v45 }
 0x5f6   : > { %v3452_v25 = vpop.xlane.xlu0 %3451 }
 0x5f9   : > { %v6416_v35 = vpop.eup %6415 }
 0x5fa   : > { %v6418_v43 = vpop.eup %6417  ;;  %v3065_v32 = vadd.f32 1.0, %v6416_v35 }
 0x5fb   : > { %v3066_v30 = vadd.f32 1.0, %v6418_v43  ;;  %v11202_v43 = vld [vmem:[#allocation12_spill] sm:$0xff] }
 0x5fc   : > { %6419 = vrcp.f32 %v3065_v32 }
 0x5fd   : > { %6421 = vrcp.f32 %v3066_v30  ;;  %v3449_v35 = vpop.xlane.xlu1 %3448  ;;  %v11203_v30 = vld [vmem:[#allocation11_spill] sm:$0xff] }
 0x601   : > { %v3500_v45 = vpop.xlane.xlu0 %3499 }
 0x609   : > { %v6420_v59 = vpop.eup %6419 }
 0x60a   : > { %v6422_v3 = vpop.eup %6421  ;;  %v3074_v41 = vrot.slane %v6420_v59, %v7357_v38 }
 0x60b   : > { %v3078_v10 = vrot.slane %v6422_v3, %v7357_v38  ;;  %v11204_v3 = vld [vmem:[#allocation10_spill] sm:$0xff] }
 0x60c   : > { %v3093_v6 = vmul.f32 %v3074_v41, %v11191_v55  ;;  %v3091_v47 = vmul.f32 %v3074_v41, %v11194_v14  ;;  %v3089_v37 = vmul.f32 %v3074_v41, %v11196_v27  ;;  %v3087_v17 = vmul.f32 %v3074_v41, %v11198_v15  ;;  %v3497_v14 = vpop.xlane.xlu1 %3496 }
 0x60d   : > { %v3094_v4 = vmul.f32 %v3078_v10, %v11192_v21  ;;  %v3092_v51 = vmul.f32 %v3078_v10, %v11193_v22  ;;  %v3090_v31 = vmul.f32 %v3078_v10, %v11195_v18  ;;  %v3088_v62 = vmul.f32 %v3078_v10, %v11197_v42  ;;  %v11206_v22 = vld [vmem:[#allocation8_spill] sm:$0xff] }
 0x60e   : > { %v3086_v56 = vmul.f32 %v3078_v10, %v11199_v60  ;;  %v3085_v29 = vmul.f32 %v3074_v41, %v11200_v53  ;;  %v3084_v13 = vmul.f32 %v3078_v10, %v11201_v50  ;;  %v3083_v32 = vmul.f32 %v3074_v41, %v11202_v43 }
 0x60f   : > { %3115 = vmatprep.subr.mxu0 %v3094_v4  ;;  %v3082_v59 = vmul.f32 %v3078_v10, %v11203_v30  ;;  %v3081_v55 = vmul.f32 %v3074_v41, %v11204_v3  ;;  %v3446_v4 = vpop.xlane.xlu0 %3445  ;;  %v3460_v18 = vmul.f32 0.0069444445, %v3452_v25  ;;  %v3459_v27 = vmul.f32 0.0069444445, %v3449_v35 }
 0x610   : > { %3116 = vmatpush1.msra.mxu0 %v3093_v6  ;;  %v11205_v6 = vld [vmem:[#allocation9_spill] sm:$0xff]  ;;  %v11208_v42 = vmov 0.0  }
 0x611   : > { %3117 = vmatprep.subr.mxu0 %v3092_v51  ;;  %v3080_v21 = vmul.f32 %v3078_v10, %v11205_v6  ;;  %v3079_v51 = vmul.f32 %v3074_v41, %v11206_v22  ;;  %v3507_v41 = vsel %vm681_vm4, %v3459_v27, %v3497_v14 }
 0x612   : > { %3118 = vmatpush1.msra.mxu0 %v3091_v47  ;;  %v3095_v47 = vld [vmem:[%s11207_s18] sm:$0xf]  ;;  %s9609_s18 = sld [smem:[#allocation2 + $0xa0]] }
 0x613   : > { %3119 = vmatprep.subr.mxu0 %v3090_v31  ;;  %v3508_v31 = vsel %vm681_vm4, %v3460_v18, %v3500_v45  ;;  %v3443_v10 = vpop.xlane.xlu0 %3442 }
 0x614   : > { %3120 = vmatpush1.msra.mxu0 %v3089_v37  ;;  %v3458_v37 = vmul.f32 0.0069444445, %v3446_v4  ;;  %v3457_v15 = vmul.f32 0.0069444445, %v3443_v10  ;;  %v6045_v4 = vld [vmem:[%s11209_s10 + $0x4] sm:$0xf] }
 0x615   : > { %3121 = vmatprep.subr.mxu0 %v3088_v62  ;;  %v3494_v62 = vpop.xlane.xlu1 %3493  ;;  %v6050_v10 = vld [vmem:[%s11210_s14 + $0x58] sm:$0xff]  ;;  %s11252_s10 = smov 21  }
 0x616   : > { %3122 = vmatpush1.msra.mxu0 %v3087_v17  ;;  %v3506_v25 = vsel %vm681_vm4, %v3458_v37, %v3494_v62  ;;  %v6048_v37 = vld [vmem:[%s11210_s14 + $0x48] sm:$0xff]  ;;  %v6051_v62 = vld [vmem:[%s11210_s14 + $0x60] sm:$0xff] }
 0x617   : > { %3123 = vmatprep.subr.mxu0 %v3086_v56  ;;  %v3440_v17 = vpop.xlane.xlu0 %3439 }
 0x618   : > { %3124 = vmatpush1.msra.mxu0 %v3085_v29  ;;  %v3456_v53 = vmul.f32 0.0069444445, %v3440_v17 }
 0x619   : > { %3125 = vmatprep.subr.mxu0 %v3084_v13  ;;  %v3491_v60 = vpop.xlane.xlu1 %3490 }
 0x61a   : > { %3126 = vmatpush1.msra.mxu0 %v3083_v32  ;;  %v3505_v56 = vsel %vm681_vm4, %v3457_v15, %v3491_v60  ;;  %v6054_v15 = vld [vmem:[%s11210_s14 + $0x78] sm:$0xff] }
 0x61b   : > { %3127 = vmatprep.subr.mxu0 %v3082_v59  ;;  %v3437_v29 = vpop.xlane.xlu0 %3436 }
 0x61c   : > { %3128 = vmatpush1.msra.mxu0 %v3081_v55  ;;  %v3455_v45 = vmul.f32 0.0069444445, %v3437_v29 }
 0x61d   : > { %3129 = vmatprep.subr.mxu0 %v3080_v21  ;;  %v3488_v50 = vpop.xlane.xlu1 %3487 }
 0x61e   : > { %3130 = vmatpush1.msra.mxu0 %v3079_v51  ;;  %v3504_v13 = vsel %vm681_vm4, %v3456_v53, %v3488_v50  ;;  %v6047_v51 = vld [vmem:[%s11210_s14 + $0x40] sm:$0xff] }
 0x61f   : > { %6264 = vmatprep.subr.mxu0 %v11208_v42  ;;  %6018 = vmatmul.mubr.msk.f32.vlgmr.msra.gmra.mxu0 %vm691_vm5, %v3095_v47  ;;  %v3434_v35 = vpop.xlane.xlu0 %3433 }
 0x620   : > { %6265 = vmatpush3.msra.mxu0 %v3508_v31  ;;  %6280 = vmatprep.mubr.msk.f32.mxu0 %vm6503_vm3, %v11208_v42  ;;  %v3454_v30 = vmul.f32 0.0069444445, %v3434_v35 }
 0x621   : > { %6266 = vmatprep.subr.mxu0 %v11208_v42  ;;  %v3485_v43 = vpop.xlane.xlu1 %3484 }
 0x622   : > { %6267 = vmatpush3.msra.mxu0 %v3507_v41  ;;  %v3503_v32 = vsel %vm681_vm4, %v3455_v45, %v3485_v43  ;;  %v6052_v41 = vld [vmem:[%s11210_s14 + $0x68] sm:$0xff] }
 0x623   : > { %6268 = vmatprep.subr.mxu0 %v11208_v42  ;;  %v3431_v59 = vpop.xlane.xlu0 %3430 }
 0x624   : > { %6269 = vmatpush3.msra.mxu0 %v3506_v25  ;;  %v3453_v6 = vmul.f32 0.0069444445, %v3431_v59  ;;  %v6053_v25 = vld [vmem:[%s11210_s14 + $0x70] sm:$0xff] }
 0x625   : > { %6270 = vmatprep.subr.mxu0 %v11208_v42  ;;  %v3482_v3 = vpop.xlane.xlu1 %3481 }
 0x626   : > { %6271 = vmatpush3.msra.mxu0 %v3505_v56  ;;  %v3502_v55 = vsel %vm681_vm4, %v3454_v30, %v3482_v3 }
 0x627   : > { %6272 = vmatprep.subr.mxu0 %v11208_v42  ;;  %v3479_v21 = vpop.xlane.xlu0 %3478 }
 0x628   : > { %6273 = vmatpush3.msra.mxu0 %v3504_v13  ;;  %v3501_v22 = vsel %vm681_vm4, %v3453_v6, %v3479_v21  ;;  %vm11292_vm4 = vcmp.lt.s32.totalorder %v6729_v28, 24 }
 0x629   : > { %6274 = vmatprep.subr.mxu0 %v11208_v42 }
 0x62a   : > { %6275 = vmatpush3.msra.mxu0 %v3503_v32 }
 0x62b   : > { %6276 = vmatprep.subr.mxu0 %v11208_v42 }
 0x62c   : > { %6277 = vmatpush3.msra.mxu0 %v3502_v55 }
 0x62d   : > { %6278 = vmatprep.subr.mxu0 %v11208_v42  ;;  %v6049_v42 = vld [vmem:[%s11210_s14 + $0x50] sm:$0xff]  ;;  %s11255_s14 = smov 18  }
 0x62e   : > { %6279 = vmatpush3.msra.mxu0 %v3501_v22 }
 0x62f   : > { %6281 = vmatmul.mubr.msk.f32.vlgmr.msra.gmra.mxu0 %vm691_vm5, %v6045_v4 }
 0x630   : > { %6285 = vmatprep.mubr.msk.f32.mxu0 %vm414_vm1, %v6047_v51 }
 0x6df   : > { %v8988_v14 = vpop.f32.mrf.mxu0 }
 0x6e0   : > { %11211 = vst [vmem:[#allocation72_spill] sm:$0xff] %v8988_v14 }
 0x6e1   : > { %v8990_v47 = vpop.f32.mrf.mxu0 }
 0x6e2   : > { %11212 = vst [vmem:[#allocation84_spill] sm:$0xff] %v8990_v47 }
 0x6ef   : > { %v3580_v18 = vpop.f32.mrf.mxu0 }
 0x6f0   : > { %v3584_v31 = vmax.f32 %v3580_v18, 0.0 }
 0x6f1   : > { %v6282_v27 = vpop.f32.mrf.mxu0 }
 0x6f2   : > { %6283 = vmatprep.subr.msk.mxu0 %vm439_vm0, %v3584_v31 }
 0x6f3   : > { %6284 = vmatpush3.msk.msra.mxu0 %vm439_vm0, %v3584_v31 }
 0x6f4   : > { %6286 = vmatmul.mubr.msk.f32.vlgmr.msra.gmra.mxu0 %vm414_vm1, %v6048_v37 }
 0x6f5   : > { %6288 = vmatprep.mubr.msk.f32.mxu0 %vm414_vm1, %v6049_v42 }
 0x6f8   : > { %6289 = vmatmul.mubr.msk.f32.gmra.mxu0 %vm414_vm1, %v6050_v10 }
 0x6f9   : > { %6291 = vmatprep.mubr.msk.f32.mxu0 %vm414_vm1, %v6051_v62 }
 0x6fc   : > { %6292 = vmatmul.mubr.msk.f32.gmra.mxu0 %vm414_vm1, %v6052_v41 }
 0x6fd   : > { %6294 = vmatprep.mubr.msk.f32.mxu0 %vm414_vm1, %v6053_v25 }
 0x700   : > { %6295 = vmatmul.mubr.msk.f32.gmra.mxu0 %vm414_vm1, %v6054_v15  ;;  %vm11287_vm1 = vcmp.lt.s32.totalorder %v6729_v28, 25 }
 0x701   : > { %vm11288_vm3 = vmmov %vm11287_vm1 }
 0x7b4   : > { %v6287_v17 = vpop.f32.mrf.mxu0 }
 0x7b5   : > { %3736 = vrot.lane.b32.xlu0 %v6287_v17, %s11213_s30 }
 0x7b6   : > { %v3687_v60 = vpop.f32.mrf.mxu0 }
 0x7b7   : > { %3734 = vrot.lane.b32.xlu1 %v3687_v60, %s11213_s30 }
 0x7b8   : > { %v6290_v56 = vpop.f32.mrf.mxu0 }
 0x7ba   : > { %v3697_v53 = vpop.f32.mrf.mxu0 }
 0x7bb   : > { %3738 = vrot.lane.b32.xlu1 %v3697_v53, %s11213_s30 }
 0x7bc   : > { %v6293_v29 = vpop.f32.mrf.mxu0 }
 0x7be   : > { %v3707_v50 = vpop.f32.mrf.mxu0 }
 0x7bf   : > { %3740 = vrot.lane.b32.xlu1 %v6290_v56, %s11213_s30  ;;  %3742 = vrot.lane.b32.xlu0 %v3707_v50, %s11213_s30 }
 0x7c0   : > { %v6296_v13 = vpop.f32.mrf.mxu0 }
 0x7c2   : > { %v3717_v45 = vpop.f32.mrf.mxu0 }
 0x7c3   : > { %3744 = vrot.lane.b32.xlu1 %v6293_v29, %s11213_s30  ;;  %3746 = vrot.lane.b32.xlu0 %v3717_v45, %s11213_s30 }
 0x7c7   : > { %3748 = vrot.lane.b32.xlu1 %v6296_v13, %s11213_s30 }
 0x827   : > { %v3737_v35 = vpop.permute.xlu0 %3736 }
 0x828   : > { %v3759_v43 = vadd.f32 %v6287_v17, %v3737_v35 }
 0x829   : > { %v3735_v32 = vpop.permute.xlu1 %3734 }
 0x82a   : > { %v6065_v30 = vmul.f32 -1.442695, %v3759_v43  ;;  %v3758_v59 = vadd.f32 %v3735_v32, %v3687_v60 }
 0x82c   : > { %6423 = vpow2.f32 %v6065_v30  ;;  %v6064_v3 = vmul.f32 -1.442695, %v3758_v59 }
 0x82d   : > { %v3739_v55 = vpop.permute.xlu1 %3738 }
 0x82e   : > { %6425 = vpow2.f32 %v6064_v3  ;;  %v3760_v6 = vadd.f32 %v3739_v55, %v3697_v53 }
 0x830   : > { %v6066_v21 = vmul.f32 -1.442695, %v3760_v6 }
 0x831   : > { %v3741_v4 = vpop.permute.xlu1 %3740  ;;  %v3743_v22 = vpop.permute.xlu0 %3742 }
 0x832   : > { %6427 = vpow2.f32 %v6066_v21  ;;  %v3761_v51 = vadd.f32 %v6290_v56, %v3741_v4  ;;  %v3762_v18 = vadd.f32 %v3743_v22, %v3707_v50 }
 0x834   : > { %v6067_v31 = vmul.f32 -1.442695, %v3761_v51  ;;  %v6068_v27 = vmul.f32 -1.442695, %v3762_v18 }
 0x835   : > { %v3745_v37 = vpop.permute.xlu1 %3744  ;;  %v3747_v42 = vpop.permute.xlu0 %3746 }
 0x836   : > { %6429 = vpow2.f32 %v6067_v31  ;;  %v3763_v10 = vadd.f32 %v6293_v29, %v3745_v37  ;;  %v3764_v62 = vadd.f32 %v3747_v42, %v3717_v45 }
 0x837   : > { %6431 = vpow2.f32 %v6068_v27 }
 0x838   : > { %v6069_v41 = vmul.f32 -1.442695, %v3763_v10  ;;  %v6070_v25 = vmul.f32 -1.442695, %v3764_v62 }
 0x839   : > { %v6424_v15 = vpop.eup %6423  ;;  %v3749_v17 = vpop.permute.xlu1 %3748 }
 0x83a   : > { %v3791_v60 = vadd.f32 1.0, %v6424_v15  ;;  %6433 = vpow2.f32 %v6069_v41  ;;  %v3765_v53 = vadd.f32 %v6296_v13, %v3749_v17  ;;  %v11215_v15 = vld [vmem:[#allocation63_spill] sm:$0xff] }
 0x83b   : > { %v6426_v35 = vpop.eup %6425  ;;  %6435 = vpow2.f32 %v6070_v25 }
 0x83c   : > { %6437 = vrcp.f32 %v3791_v60  ;;  %v3790_v56 = vadd.f32 1.0, %v6426_v35  ;;  %v6071_v50 = vmul.f32 -1.442695, %v3765_v53  ;;  %v11217_v53 = vld [vmem:[#allocation65_spill] sm:$0xff] }
 0x83e   : > { %6439 = vrcp.f32 %v3790_v56  ;;  %v11219_v56 = vld [vmem:[#allocation59_spill] sm:$0xff] }
 0x83f   : > { %v6428_v43 = vpop.eup %6427  ;;  %6441 = vpow2.f32 %v6071_v50 }
 0x840   : > { %v3792_v32 = vadd.f32 1.0, %v6428_v43  ;;  %v11221_v43 = vld [vmem:[#allocation62_spill] sm:$0xff] }
 0x842   : > { %6443 = vrcp.f32 %v3792_v32 }
 0x843   : > { %v6430_v29 = vpop.eup %6429 }
 0x844   : > { %v6432_v45 = vpop.eup %6431  ;;  %v3793_v30 = vadd.f32 1.0, %v6430_v29  ;;  %v11223_v29 = vld [vmem:[#allocation56_spill] sm:$0xff] }
 0x845   : > { %v3794_v59 = vadd.f32 1.0, %v6432_v45 }
 0x846   : > { %6445 = vrcp.f32 %v3793_v30 }
 0x847   : > { %v6434_v3 = vpop.eup %6433  ;;  %6447 = vrcp.f32 %v3794_v59 }
 0x848   : > { %v6436_v55 = vpop.eup %6435  ;;  %v3795_v6 = vadd.f32 1.0, %v6434_v3 }
 0x849   : > { %v6438_v13 = vpop.eup %6437  ;;  %v3796_v21 = vadd.f32 1.0, %v6436_v55 }
 0x84a   : > { %6449 = vrcp.f32 %v3795_v6  ;;  %3821 = vperm.xlu1 %6382, %v6438_v13   ;;  %v11225_v6 = vld [vmem:[#allocation55_spill] sm:$0xff] }
 0x84b   : > { %v6440_v4 = vpop.eup %6439  ;;  %6451 = vrcp.f32 %v3796_v21  ;;  %v11227_v21 = vld [vmem:[#allocation53_spill] sm:$0xff] }
 0x84c   : > { %v6442_v22 = vpop.eup %6441  ;;  %3816 = vperm.xlu0 %6381, %v6440_v4  }
 0x84d   : > { %v3797_v51 = vadd.f32 1.0, %v6442_v22 }
 0x84f   : > { %v6444_v18 = vpop.eup %6443  ;;  %6453 = vrcp.f32 %v3797_v51 }
 0x850   : > { %3826 = vperm.xlu0 %6381, %v6444_v18  }
 0x853   : > { %v6446_v31 = vpop.eup %6445 }
 0x854   : > { %v6448_v27 = vpop.eup %6447  ;;  %3831 = vperm.xlu1 %6382, %v6446_v31   ;;  %v11229_v31 = vld [vmem:[#allocation52_spill] sm:$0xff] }
 0x855   : > { %3836 = vperm.xlu0 %6381, %v6448_v27  }
 0x857   : > { %v6450_v37 = vpop.eup %6449 }
 0x858   : > { %v6452_v42 = vpop.eup %6451  ;;  %3841 = vperm.xlu1 %6382, %v6450_v37   ;;  %v11231_v37 = vld [vmem:[#allocation46_spill] sm:$0xff] }
 0x859   : > { %3846 = vperm.xlu0 %6381, %v6452_v42  }
 0x85c   : > { %v6454_v10 = vpop.eup %6453 }
 0x85d   : > { %3851 = vperm.xlu1 %6382, %v6454_v10  }
 0x8c5   : > { %v3822_v41 = vpop.permute.xlu1 %3821 }
 0x8c6   : > { %v9037_v35 = vmul.f32 %v3822_v41, %v11217_v53  ;;  %v9040_v50 = vmul.f32 %v3822_v41, %v11219_v56  ;;  %v11235_v53 = vld [vmem:[#allocation39_spill] sm:$0xff] }
 0x8c7   : > { %v3817_v62 = vpop.permute.xlu0 %3816 }
 0x8c8   : > { %v9031_v25 = vmul.f32 %v3817_v62, %v11116_v46  ;;  %v9034_v17 = vmul.f32 %v3817_v62, %v11215_v15  ;;  %11218 = vst [vmem:[#allocation77_spill] sm:$0xff] %v9037_v35  ;;  %11220 = vst [vmem:[#allocation161_spill] sm:$0xff] %v9040_v50  ;;  %v11233_v15 = vld [vmem:[#allocation49_spill] sm:$0xff] }
 0x8ca   : > { %11214 = vst [vmem:[#allocation74_spill] sm:$0xff] %v9031_v25  ;;  %11216 = vst [vmem:[#allocation85_spill] sm:$0xff] %v9034_v17  ;;  %v3870_v46 = vadd.f32 %v9037_v35, %v9031_v25  ;;  %v3883_v30 = vadd.f32 %v9040_v50, %v9034_v17 }
 0x8cb   : > { %v3827_v60 = vpop.permute.xlu0 %3826 }
 0x8cc   : > { %v9043_v32 = vmul.f32 %v3827_v60, %v11221_v43  ;;  %v9046_v45 = vmul.f32 %v3827_v60, %v11223_v29 }
 0x8ce   : > { %11222 = vst [vmem:[#allocation69_spill] sm:$0xff] %v9043_v32  ;;  %11224 = vst [vmem:[#allocation78_spill] sm:$0xff] %v9046_v45  ;;  %v3871_v3 = vadd.f32 %v3870_v46, %v9043_v32  ;;  %v3884_v55 = vadd.f32 %v3883_v30, %v9046_v45  ;;  %v3898_v29 = vmax.f32 %v9031_v25, %v9043_v32 }
 0x8cf   : > { %v3832_v59 = vpop.permute.xlu1 %3831  ;;  %v3911_v46 = vmax.f32 %v9034_v17, %v9046_v45 }
 0x8d0   : > { %v9055_v13 = vmul.f32 %v3832_v59, %v11225_v6  ;;  %v9058_v4 = vmul.f32 %v3832_v59, %v11227_v21  ;;  %v3837_v22 = vpop.permute.xlu0 %3836  ;;  %v11239_v6 = vld [vmem:[#allocation37_spill] sm:$0xff] }
 0x8d1   : > { %v9063_v27 = vmul.f32 %v3837_v22, %v11229_v31  ;;  %v9066_v42 = vmul.f32 %v3837_v22, %v11231_v37 }
 0x8d2   : > { %11226 = vst [vmem:[#allocation163_spill] sm:$0xff] %v9055_v13  ;;  %11228 = vst [vmem:[#allocation164_spill] sm:$0xff] %v9058_v4  ;;  %v3872_v51 = vadd.f32 %v3871_v3, %v9055_v13  ;;  %v3885_v18 = vadd.f32 %v3884_v55, %v9058_v4  ;;  %v11237_v3 = vld [vmem:[#allocation48_spill] sm:$0xff]  ;;  %v3899_v22 = vmax.f32 %v9037_v35, %v9055_v13 }
 0x8d3   : > { %11230 = vst [vmem:[#allocation22_spill] sm:$0xff] %v9063_v27  ;;  %11232 = vst [vmem:[#allocation23_spill] sm:$0xff] %v9066_v42  ;;  %v3842_v10 = vpop.permute.xlu1 %3841  ;;  %v3913_v31 = vmax.f32 %v3911_v46, %v9066_v42 }
 0x8d4   : > { %v3873_v62 = vadd.f32 %v3872_v51, %v9063_v27  ;;  %v3886_v41 = vadd.f32 %v3885_v18, %v9066_v42  ;;  %v9071_v60 = vmul.f32 %v3842_v10, %v11233_v15  ;;  %v9074_v56 = vmul.f32 %v3842_v10, %v11235_v53  ;;  %v3847_v43 = vpop.permute.xlu0 %3846  ;;  %v11241_v53 = vld [vmem:[#allocation43_spill] sm:$0xff] }
 0x8d5   : > { %v9083_v55 = vmul.f32 %v3847_v43, %v11237_v3  ;;  %v9086_v21 = vmul.f32 %v3847_v43, %v11239_v6  ;;  %v3912_v51 = vmax.f32 %v9040_v50, %v9058_v4  ;;  %v3900_v18 = vmax.f32 %v3898_v29, %v9063_v27  ;;  %v11243_v3 = vld [vmem:[#allocation34_spill] sm:$0xff] }
 0x8d6   : > { %11234 = vst [vmem:[#allocation21_spill] sm:$0xff] %v9071_v60  ;;  %11236 = vst [vmem:[#allocation20_spill] sm:$0xff] %v9074_v56  ;;  %v3874_v30 = vadd.f32 %v3873_v62, %v9071_v60  ;;  %v3887_v59 = vadd.f32 %v3886_v41, %v9074_v56  ;;  %v3901_v41 = vmax.f32 %v3899_v22, %v9071_v60 }
 0x8d7   : > { %11238 = vst [vmem:[#allocation19_spill] sm:$0xff] %v9083_v55  ;;  %11240 = vst [vmem:[#allocation18_spill] sm:$0xff] %v9086_v21  ;;  %v3914_v15 = vmax.f32 %v3912_v51, %v9074_v56  ;;  %v3902_v47 = vmax.f32 %v3900_v18, %v9083_v55  ;;  %v3915_v29 = vmax.f32 %v3913_v31, %v9086_v21 }
 0x8d8   : > { %v3875_v37 = vadd.f32 %v3874_v30, %v9083_v55  ;;  %v3888_v10 = vadd.f32 %v3887_v59, %v9086_v21  ;;  %v3852_v62 = vpop.permute.xlu1 %3851 }
 0x8d9   : > { %v9099_v43 = vmul.f32 %v3852_v62, %v11241_v53  ;;  %v9102_v6 = vmul.f32 %v3852_v62, %v11243_v3 }
 0x8db   : > { %11242 = vst [vmem:[#allocation17_spill] sm:$0xff] %v9099_v43  ;;  %11244 = vst [vmem:[#allocation16_spill] sm:$0xff] %v9102_v6  ;;  %v3876_v46 = vadd.f32 %v3875_v37, %v9099_v43  ;;  %v3889_v30 = vadd.f32 %v3888_v10, %v9102_v6  ;;  %v3903_v59 = vmax.f32 %v3901_v41, %v9099_v43 }
 0x8dc   : > { %v3916_v22 = vmax.f32 %v3914_v15, %v9102_v6  ;;  %v11291_v6 = vld [vmem:[#allocation103_spill] sm:$0xff] }
 0x8dd   : > { %v3877_v14 = vrot.slane %v3876_v46, 4  ;;  %v3890_v51 = vrot.slane %v3889_v30, 4  ;;  %v3904_v25 = vmax.f32 %v3902_v47, %v3903_v59 }
 0x8de   : > { %v3917_v53 = vmax.f32 %v3915_v29, %v3916_v22 }
 0x8df   : > { %v3878_v17 = vadd.f32 %v3877_v14, %v3876_v46  ;;  %v3891_v35 = vadd.f32 %v3890_v51, %v3889_v30  ;;  %v3905_v62 = vrot.slane %v3904_v25, 4 }
 0x8e0   : > { %v3918_v3 = vrot.slane %v3917_v53, 4 }
 0x8e1   : > { %v3879_v50 = vrot.slane %v3878_v17, 2  ;;  %v3892_v18 = vrot.slane %v3891_v35, 2  ;;  %v3906_v32 = vmax.f32 %v3904_v25, %v3905_v62 }
 0x8e2   : > { %v3919_v31 = vmax.f32 %v3917_v53, %v3918_v3 }
 0x8e3   : > { %v3880_v45 = vadd.f32 %v3879_v50, %v3878_v17  ;;  %v3893_v37 = vadd.f32 %v3892_v18, %v3891_v35  ;;  %v3907_v13 = vrot.slane %v3906_v32, 2 }
 0x8e4   : > { %v3920_v10 = vrot.slane %v3919_v31, 2 }
 0x8e5   : > { %v3881_v4 = vrot.slane %v3880_v45, 1  ;;  %v3894_v41 = vrot.slane %v3893_v37, 1  ;;  %v3908_v27 = vmax.f32 %v3906_v32, %v3907_v13 }
 0x8e6   : > { %v3921_v15 = vmax.f32 %v3919_v31, %v3920_v10 }
 0x8e7   : > { %v3882_v42 = vadd.f32 %v3881_v4, %v3880_v45  ;;  %v3895_v60 = vadd.f32 %v3894_v41, %v3893_v37  ;;  %v3909_v47 = vrot.slane %v3908_v27, 1 }
 0x8e8   : > { %v3922_v29 = vrot.slane %v3921_v15, 1 }
 0x8e9   : > { %v3896_v14 = vmul.f32 0.015625, %v3882_v42  ;;  %v3897_v46 = vmul.f32 0.015625, %v3895_v60  ;;  %v3910_v30 = vmax.f32 %v3908_v27, %v3909_v47 }
 0x8ea   : > { %v3923_v59 = vmax.f32 %v3921_v15, %v3922_v29 }
 0x8eb   : > { %v9111_v22 = vsel %vm1104_vm6, %v3896_v14, %v3910_v30 }
 0x8ec   : > { %v9114_v25 = vsel %vm1104_vm6, %v3897_v46, %v3923_v59  ;;  %3926 = vrot.lane.b32.xlu0 %v9111_v22, %s11245_s25  ;;  %vm11293_vm6 = vmmov %vm11292_vm4 }
 0x8ed   : > { %3928 = vrot.lane.b32.xlu1 %v9114_v25, %s11245_s25  ;;  %s11270_s25 = smov 125  }
 0x8f0   : > { %3952 = vrot.lane.b32.xlu0 %v9111_v22, %s11246_s3 }
 0x8f1   : > { %3954 = vrot.lane.b32.xlu1 %v9114_v25, %s11246_s3  ;;  %s6073_s3 = sld [smem:[#allocation2 + $0xb1]] }
 0x8f4   : > { %3978 = vrot.lane.b32.xlu0 %v9111_v22, %s11247_s11 }
 0x8f5   : > { %3980 = vrot.lane.b32.xlu1 %v9114_v25, %s11247_s11  ;;  %s9224_s11 = sld [smem:[#allocation2 + $0x98]] }
 0x8f7   : > { %v3937_v17 = vstv %s6073_s3  ;;  %s11289_s3 = smov 113  }
 0x8f8   : > { %4004 = vrot.lane.b32.xlu0 %v9111_v22, %s11248_s27 }
 0x8f9   : > { %4006 = vrot.lane.b32.xlu1 %v9114_v25, %s11248_s27  ;;  %s9226_s27 = sld [smem:[#allocation2 + $0xc9]] }
 0x8fb   : > { %v10637_v42 = vstv %s9224_s11 }
 0x8fc   : > { %4030 = vrot.lane.b32.xlu0 %v9111_v22, %s11249_s0  ;;  %v9274_v29 = vmul.f32 %v10637_v42, %v9114_v25 }
 0x8fd   : > { %4032 = vrot.lane.b32.xlu1 %v9114_v25, %s11249_s0  ;;  %s11271_s0 = smov 122  }
 0x8ff   : > { %v10638_v60 = vstv %s9226_s27 }
 0x900   : > { %4056 = vrot.lane.b32.xlu0 %v9111_v22, %s11250_s9 }
 0x901   : > { %4058 = vrot.lane.b32.xlu1 %v9114_v25, %s11250_s9  ;;  %s9232_s9 = sld [smem:[#allocation2 + $0x81]] }
 0x904   : > { %4082 = vrot.lane.b32.xlu0 %v9111_v22, %s11251_s28 }
 0x905   : > { %4084 = vrot.lane.b32.xlu1 %v9114_v25, %s11251_s28  ;;  %s9234_s28 = sld [smem:[#allocation2 + $0xb2]] }
 0x907   : > { %v3960_v3 = vstv %s9232_s9  ;;  %s9366_s9 = sld [smem:[#allocation2 + $0xba]] }
 0x908   : > { %4108 = vrot.lane.b32.xlu0 %v9111_v22, %s11252_s10 }
 0x909   : > { %4110 = vrot.lane.b32.xlu1 %v9114_v25, %s11252_s10  ;;  %s11272_s10 = smov 121  }
 0x90b   : > { %v3963_v18 = vstv %s9234_s28  ;;  %s9370_s28 = sld [smem:[#allocation2 + $0x8a]] }
 0x90c   : > { %4134 = vrot.lane.b32.xlu0 %v9111_v22, %s11253_s5 }
 0x90d   : > { %4136 = vrot.lane.b32.xlu1 %v9114_v25, %s11253_s5  ;;  %s9240_s5 = sld [smem:[#allocation2 + $0xb3]] }
 0x910   : > { %4160 = vrot.lane.b32.xlu0 %v9111_v22, %s11254_s17 }
 0x911   : > { %4162 = vrot.lane.b32.xlu1 %v9114_v25, %s11254_s17  ;;  %s9242_s17 = sld [smem:[#allocation2 + $0x82]] }
 0x913   : > { %v3989_v47 = vstv %s9240_s5  ;;  %s11299_s5 = smov 111  }
 0x914   : > { %4186 = vrot.lane.b32.xlu0 %v9111_v22, %s11255_s14 }
 0x915   : > { %4188 = vrot.lane.b32.xlu1 %v9114_v25, %s11255_s14  ;;  %s9248_s14 = sld [smem:[#allocation2 + $0x83]] }
 0x918   : > { %4212 = vrot.lane.b32.xlu0 %v9111_v22, %s11256_s8 }
 0x919   : > { %4214 = vrot.lane.b32.xlu1 %v9114_v25, %s11256_s8  ;;  %s11273_s8 = smov 120  }
 0x91c   : > { %4238 = vrot.lane.b32.xlu0 %v9111_v22, %s11257_s19 }
 0x91d   : > { %4240 = vrot.lane.b32.xlu1 %v9114_v25, %s11257_s19  ;;  %s9252_s19 = sld [smem:[#allocation2 + $0xb4]] }
 0x920   : > { %4264 = vrot.lane.b32.xlu0 %v9111_v22, %s11258_s4 }
 0x921   : > { %4266 = vrot.lane.b32.xlu1 %v9114_v25, %s11258_s4  ;;  %s9264_s4 = sld [smem:[#allocation2 + $0x84]] }
 0x924   : > { %4290 = vrot.lane.b32.xlu0 %v9111_v22, %s11259_s22 }
 0x925   : > { %4292 = vrot.lane.b32.xlu1 %v9114_v25, %s11259_s22  ;;  %s11274_s22 = smov 119  }
 0x928   : > { %4316 = vrot.lane.b32.xlu0 %v9111_v22, %s11260_s15 }
 0x929   : > { %4318 = vrot.lane.b32.xlu1 %v9114_v25, %s11260_s15  ;;  %s9269_s15 = sld [smem:[#allocation2 + $0xb5]] }
 0x92c   : > { %4342 = vrot.lane.b32.xlu0 %v9111_v22, %s11261_s6 }
 0x92d   : > { %4344 = vrot.lane.b32.xlu1 %v9114_v25, %s11261_s6  ;;  %s11275_s6 = smov 118  }
 0x930   : > { %4368 = vrot.lane.b32.xlu0 %v9111_v22, %s11262_s23 }
 0x931   : > { %4370 = vrot.lane.b32.xlu1 %v9114_v25, %s11262_s23  ;;  %s9296_s23 = sld [smem:[#allocation2 + $0x85]] }
 0x934   : > { %4394 = vrot.lane.b32.xlu0 %v9111_v22, %s11263_s2 }
 0x935   : > { %4396 = vrot.lane.b32.xlu1 %v9114_v25, %s11263_s2  ;;  %s9298_s2 = sld [smem:[#allocation2 + $0xb6]] }
 0x938   : > { %4420 = vrot.lane.b32.xlu0 %v9111_v22, %s11264_s13 }
 0x939   : > { %4422 = vrot.lane.b32.xlu1 %v9114_v25, %s11264_s13  ;;  %s9306_s13 = sld [smem:[#allocation2 + $0x86]] }
 0x93c   : > { %4446 = vrot.lane.b32.xlu0 %v9111_v22, %s11265_s26 }
 0x93d   : > { %4448 = vrot.lane.b32.xlu1 %v9114_v25, %s11265_s26  ;;  %s11280_s26 = smov 117  }
 0x940   : > { %4472 = vrot.lane.b32.xlu0 %v9111_v22, %s11266_s12 }
 0x941   : > { %4474 = vrot.lane.b32.xlu1 %v9114_v25, %s11266_s12  ;;  %s9312_s12 = sld [smem:[#allocation2 + $0xb7]] }
 0x944   : > { %4498 = vrot.lane.b32.xlu0 %v9111_v22, %s11267_s16 }
 0x945   : > { %4500 = vrot.lane.b32.xlu1 %v9114_v25, %s11267_s16  ;;  %s9316_s16 = sld [smem:[#allocation2 + $0x87]] }
 0x948   : > { %4524 = vrot.lane.b32.xlu0 %v9111_v22, %s11268_s1 }
 0x949   : > { %4526 = vrot.lane.b32.xlu1 %v9114_v25, %s11268_s1  ;;  %s9320_s1 = sld [smem:[#allocation2 + $0xb8]] }
 0x94c   : > { %4570 = vrot.lane.b32.xlu0 %v9111_v22, %s11213_s30 }
 0x94d   : > { %4572 = vrot.lane.b32.xlu1 %v9114_v25, %s11213_s30  ;;  %s6072_s30 = sld [smem:[#allocation2 + $0x80]] }
 0x950   : > { %4596 = vrot.lane.b32.xlu0 %v9111_v22, %s11269_s20 }
 0x951   : > { %4598 = vrot.lane.b32.xlu1 %v9114_v25, %s11269_s20  ;;  %s11283_s20 = smov 116  }
 0x953   : > { %v3934_v13 = vstv %s6072_s30  ;;  %s11294_s30 = smov 112  }
 0x954   : > { %4622 = vrot.lane.b32.xlu0 %v9111_v22, %s11270_s25 }
 0x955   : > { %4624 = vrot.lane.b32.xlu1 %v9114_v25, %s11270_s25  ;;  %s9340_s25 = sld [smem:[#allocation2 + $0x88]] }
 0x958   : > { %4648 = vrot.lane.b32.xlu0 %v9111_v22, %s11271_s0 }
 0x959   : > { %4650 = vrot.lane.b32.xlu1 %v9114_v25, %s11271_s0  ;;  %s9362_s0 = sld [smem:[#allocation2 + $0x89]] }
 0x95c   : > { %4674 = vrot.lane.b32.xlu0 %v9111_v22, %s11272_s10 }
 0x95d   : > { %4676 = vrot.lane.b32.xlu1 %v9114_v25, %s11272_s10  ;;  %s9372_s10 = sld [smem:[#allocation2 + $0xbb]] }
 0x95e   : > { %v3927_v50 = vpop.permute.xlu0 %3926 }
 0x95f   : > { %v3929_v35 = vpop.permute.xlu1 %3928 }
 0x960   : > { %v3930_v32 = vsel %vm1111_vm7, %v3927_v50, %v3929_v35  ;;  %v3931_v45 = vsel %vm1111_vm7, %v3929_v35, %v3927_v50  ;;  %4700 = vrot.lane.b32.xlu0 %v9111_v22, %s11273_s8  ;;  %vm11295_vm7 = vcmp.lt.s32.totalorder %v6729_v28, 21 }
 0x961   : > { %v3938_v4 = vmul.f32 %v3937_v17, %v3931_v45  ;;  %v3939_v27 = vmul.f32 %v3937_v17, %v3930_v32  ;;  %4702 = vrot.lane.b32.xlu1 %v9114_v25, %s11273_s8  ;;  %v3935_v37 = vmul.f32 %v3934_v13, %v3931_v45  ;;  %v3936_v10 = vmul.f32 %v3934_v13, %v3930_v32  ;;  %s9390_s8 = sld [smem:[#allocation2 + $0x8c]] }
 0x962   : > { %v3953_v31 = vpop.permute.xlu0 %3952  ;;  %v3986_v32 = vstv %s9242_s17  ;;  %v9282_v13 = vmul.f32 %v10638_v60, %v9114_v25  ;;  %s9384_s17 = sld [smem:[#allocation2 + $0x8b]] }
 0x963   : > { %v3942_v51 = vrot.slane %v3938_v4, 1  ;;  %v3943_v53 = vrot.slane %v3939_v27, 1  ;;  %v3955_v62 = vpop.permute.xlu1 %3954 }
 0x964   : > { %v3956_v41 = vsel %vm1150_vm8, %v3953_v31, %v3955_v62  ;;  %v3957_v15 = vsel %vm1150_vm8, %v3955_v62, %v3953_v31  ;;  %4726 = vrot.lane.b32.xlu0 %v9111_v22, %s11274_s22  ;;  %v4015_v31 = vstv %s9252_s19  ;;  %vm11296_vm8 = vmmov %vm11295_vm7  ;;  %s9394_s19 = sld [smem:[#allocation2 + $0xbd]] }
 0x965   : > { %4728 = vrot.lane.b32.xlu1 %v9114_v25, %s11274_s22  ;;  %v3946_v14 = vadd.f32 %v3942_v51, %v3935_v37  ;;  %v3947_v46 = vadd.f32 %v3943_v53, %v3936_v10  ;;  %v3964_v30 = vmul.f32 %v3963_v18, %v3957_v15  ;;  %v3965_v59 = vmul.f32 %v3963_v18, %v3956_v41  ;;  %v11276_v37 = vld [vmem:[#allocation89_spill] sm:$0xff]  ;;  %s9404_s22 = sld [smem:[#allocation2 + $0x8d]] }
 0x966   : > { %v3961_v17 = vmul.f32 %v3960_v3, %v3957_v15  ;;  %v3962_v35 = vmul.f32 %v3960_v3, %v3956_v41  ;;  %v3979_v45 = vpop.permute.xlu0 %3978  ;;  %v4012_v3 = vstv %s9248_s14  ;;  %v11277_v41 = vld [vmem:[#allocation90_spill] sm:$0xff]  ;;  %s9388_s14 = sld [smem:[#allocation2 + $0xbc]] }
 0x967   : > { %v3981_v50 = vpop.permute.xlu1 %3980  ;;  %v3968_v4 = vrot.slane %v3964_v30, 1  ;;  %v3969_v27 = vrot.slane %v3965_v59, 1  ;;  %v3948_v10 = vmul.f32 %v3946_v14, %v11276_v37  ;;  %v3949_v15 = vmul.f32 %v3947_v46, %v11277_v41  ;;  %v11278_v14 = vld [vmem:[#allocation92_spill] sm:$0xff]  ;;  %v11279_v46 = vld [vmem:[#allocation93_spill] sm:$0xff] }
 0x968   : > { %v3982_v51 = vsel %vm1190_vm9, %v3979_v45, %v3981_v50  ;;  %v3983_v53 = vsel %vm1190_vm9, %v3981_v50, %v3979_v45  ;;  %4752 = vrot.lane.b32.xlu0 %v9111_v22, %s11275_s6  ;;  %vm11302_vm9 = vcmp.lt.s32.totalorder %v6729_v28, 20 }
 0x969   : > { %v3990_v62 = vmul.f32 %v3989_v47, %v3983_v53  ;;  %v3991_v18 = vmul.f32 %v3989_v47, %v3982_v51  ;;  %4754 = vrot.lane.b32.xlu1 %v9114_v25, %s11275_s6  ;;  %v3972_v42 = vadd.f32 %v3968_v4, %v3961_v17  ;;  %v3973_v30 = vadd.f32 %v3969_v27, %v3962_v35  ;;  %s9412_s6 = sld [smem:[#allocation2 + $0x8e]] }
 0x96a   : > { %v3987_v59 = vmul.f32 %v3986_v32, %v3983_v53  ;;  %v3988_v47 = vmul.f32 %v3986_v32, %v3982_v51  ;;  %v4005_v56 = vpop.permute.xlu0 %4004  ;;  %v4038_v51 = vstv %s9264_s4  ;;  %v4041_v53 = vstv %s9269_s15  ;;  %s11304_s4 = smov 110   ;;  %s9408_s15 = sld [smem:[#allocation2 + $0xbe]] }
 0x96b   : > { %v3994_v50 = vrot.slane %v3990_v62, 1  ;;  %v3995_v45 = vrot.slane %v3991_v18, 1  ;;  %v4007_v60 = vpop.permute.xlu1 %4006  ;;  %v3974_v37 = vmul.f32 %v3972_v42, %v11278_v14  ;;  %v3975_v17 = vmul.f32 %v3973_v30, %v11279_v46  ;;  %v11282_v30 = vld [vmem:[#allocation95_spill] sm:$0xff] }
 0x96c   : > { %v4008_v35 = vsel %vm1230_vm10, %v4005_v56, %v4007_v60  ;;  %v4009_v4 = vsel %vm1230_vm10, %v4007_v60, %v4005_v56  ;;  %4778 = vrot.lane.b32.xlu0 %v9111_v22, %s11280_s26  ;;  %v11281_v56 = vld [vmem:[#allocation94_spill] sm:$0xff]  ;;  %vm11303_vm10 = vmmov %vm11302_vm9 }
 0x96d   : > { %v3998_v27 = vadd.f32 %v3994_v50, %v3987_v59  ;;  %v3999_v32 = vadd.f32 %v3995_v45, %v3988_v47  ;;  %4780 = vrot.lane.b32.xlu1 %v9114_v25, %s11280_s26  ;;  %v3976_v42 = vadd.f32 %v3974_v37, %v3948_v10  ;;  %v3977_v62 = vadd.f32 %v3975_v17, %v3949_v15  ;;  %s9428_s26 = sld [smem:[#allocation2 + $0xc0]] }
 0x96e   : > { %v4016_v18 = vmul.f32 %v4015_v31, %v4009_v4  ;;  %v4017_v41 = vmul.f32 %v4015_v31, %v4008_v35  ;;  %v4013_v47 = vmul.f32 %v4012_v3, %v4009_v4  ;;  %v4014_v50 = vmul.f32 %v4012_v3, %v4008_v35  ;;  %v4031_v14 = vpop.permute.xlu0 %4030  ;;  %v11286_v3 = vld [vmem:[#allocation98_spill] sm:$0xff] }
 0x96f   : > { %v4000_v60 = vmul.f32 %v3998_v27, %v11281_v56  ;;  %v4001_v59 = vmul.f32 %v3999_v32, %v11282_v30  ;;  %v4033_v45 = vpop.permute.xlu1 %4032  ;;  %v11284_v35 = vstv %s9226_s27  ;;  %v4067_v30 = vstv %s9298_s2  ;;  %s9350_s27 = sld [smem:[#allocation2 + $0xb9]]  ;;  %s11309_s2 = smov 109  }
 0x970   : > { %v4020_v10 = vrot.slane %v4016_v18, 1  ;;  %v4021_v15 = vrot.slane %v4017_v41, 1  ;;  %v4034_v31 = vsel %vm1270_vm11, %v4031_v14, %v4033_v45  ;;  %v4035_v37 = vsel %vm1270_vm11, %v4033_v45, %v4031_v14  ;;  %4804 = vrot.lane.b32.xlu0 %v9111_v22, %s11283_s20  ;;  %v11285_v45 = vld [vmem:[#allocation97_spill] sm:$0xff] }
 0x971   : > { %v4002_v46 = vadd.f32 %v4000_v60, %v3976_v42  ;;  %v4003_v17 = vadd.f32 %v4001_v59, %v3977_v62  ;;  %4806 = vrot.lane.b32.xlu1 %v9114_v25, %s11283_s20  ;;  %v9332_v4 = vmul.f32 %v11284_v35, %v9111_v22  ;;  %v4042_v18 = vmul.f32 %v4041_v53, %v4035_v37  ;;  %s9444_s20 = sld [smem:[#allocation2 + $0x91]] }
 0x972   : > { %v4024_v27 = vadd.f32 %v4020_v10, %v4013_v47  ;;  %v4025_v32 = vadd.f32 %v4021_v15, %v4014_v50  ;;  %v4043_v41 = vmul.f32 %v4041_v53, %v4034_v31  ;;  %v4039_v42 = vmul.f32 %v4038_v51, %v4035_v37  ;;  %v4057_v59 = vpop.permute.xlu0 %4056 }
 0x973   : > { %v4040_v62 = vmul.f32 %v4038_v51, %v4034_v31  ;;  %v4059_v56 = vpop.permute.xlu1 %4058  ;;  %v4064_v60 = vstv %s9296_s23  ;;  %v4046_v55 = vrot.slane %v4042_v18, 1  ;;  %v4090_v50 = vstv %s9306_s13  ;;  %s9420_s23 = sld [smem:[#allocation2 + $0xbf]] }
 0x974   : > { %v4026_v14 = vmul.f32 %v4024_v27, %v11285_v45  ;;  %v4027_v35 = vmul.f32 %v4025_v32, %v11286_v3  ;;  %v4047_v47 = vrot.slane %v4043_v41, 1  ;;  %v4060_v53 = vsel %vm11287_vm1, %v4057_v59, %v4059_v56  ;;  %4830 = vrot.lane.b32.xlu0 %v9111_v22, %s11289_s3  ;;  %s9424_s13 = sld [smem:[#allocation2 + $0x8f]] }
 0x975   : > { %v4061_v51 = vsel %vm11288_vm3, %v4059_v56, %v4057_v59  ;;  %4832 = vrot.lane.b32.xlu1 %v9114_v25, %s11289_s3  ;;  %v4093_v10 = vstv %s9312_s12  ;;  %v4050_v37 = vadd.f32 %v4046_v55, %v4039_v42  ;;  %v4069_v32 = vmul.f32 %v4067_v30, %v4060_v53  ;;  %v11290_v59 = vld [vmem:[#allocation99_spill] sm:$0xff]  ;;  %s9430_s12 = sld [smem:[#allocation2 + $0x90]] }
 0x976   : > { %v4028_v15 = vadd.f32 %v4026_v14, %v4002_v46  ;;  %v4029_v31 = vadd.f32 %v4027_v35, %v4003_v17  ;;  %v4051_v3 = vadd.f32 %v4047_v47, %v4040_v62  ;;  %v4068_v27 = vmul.f32 %v4067_v30, %v4061_v51  ;;  %v4083_v41 = vpop.permute.xlu0 %4082  ;;  %s9450_s3 = sld [smem:[#allocation2 + $0x92]] }
 0x977   : > { %v4085_v18 = vpop.permute.xlu1 %4084  ;;  %v4116_v45 = vstv %s9316_s16  ;;  %v4119_v56 = vstv %s9320_s1  ;;  %v4052_v21 = vmul.f32 %v4050_v37, %v11290_v59  ;;  %v4065_v46 = vmul.f32 %v4064_v60, %v4061_v51  ;;  %s9436_s16 = sld [smem:[#allocation2 + $0xc1]]  ;;  %s11314_s1 = smov 108  }
 0x978   : > { %v4053_v43 = vmul.f32 %v4051_v3, %v11291_v6  ;;  %v4086_v38 = vsel %vm11292_vm4, %v4083_v41, %v4085_v18  ;;  %v4087_v55 = vsel %vm11293_vm6, %v4085_v18, %v4083_v41  ;;  %v4066_v17 = vmul.f32 %v4064_v60, %v4060_v53  ;;  %4856 = vrot.lane.b32.xlu0 %v9111_v22, %s11294_s30 }
 0x979   : > { %v4072_v42 = vrot.slane %v4068_v27, 1  ;;  %v4073_v62 = vrot.slane %v4069_v32, 1  ;;  %4858 = vrot.lane.b32.xlu1 %v9114_v25, %s11294_s30  ;;  %v4054_v30 = vadd.f32 %v4052_v21, %v4028_v15  ;;  %v4094_v6 = vmul.f32 %v4093_v10, %v4087_v55  ;;  %v11297_v15 = vld [vmem:[#allocation104_spill] sm:$0xff]  ;;  %v11298_v32 = vld [vmem:[#allocation105_spill] sm:$0xff]  ;;  %s9464_s30 = sld [smem:[#allocation2 + $0x93]] }
 0x97a   : > { %v4055_v14 = vadd.f32 %v4053_v43, %v4029_v31  ;;  %v4095_v35 = vmul.f32 %v4093_v10, %v4086_v38  ;;  %v4091_v53 = vmul.f32 %v4090_v50, %v4087_v55  ;;  %v4092_v51 = vmul.f32 %v4090_v50, %v4086_v38  ;;  %v4109_v3 = vpop.permute.xlu0 %4108 }
 0x97b   : > { %v4076_v47 = vadd.f32 %v4072_v42, %v4065_v46  ;;  %v4077_v60 = vadd.f32 %v4073_v62, %v4066_v17  ;;  %v4111_v37 = vpop.permute.xlu1 %4110  ;;  %v4098_v27 = vrot.slane %v4094_v6, 1  ;;  %v4142_v38 = vstv %s9340_s25  ;;  %s9448_s25 = sld [smem:[#allocation2 + $0xc2]] }
 0x97c   : > { %v4099_v21 = vrot.slane %v4095_v35, 1  ;;  %v4112_v43 = vsel %vm11295_vm7, %v4109_v3, %v4111_v37  ;;  %v4113_v10 = vsel %vm11296_vm8, %v4111_v37, %v4109_v3  ;;  %v4145_v50 = vstv %s9350_s27  ;;  %4882 = vrot.lane.b32.xlu0 %v9111_v22, %s11299_s5  ;;  %s9454_s27 = sld [smem:[#allocation2 + $0xc3]] }
 0x97d   : > { %v4078_v31 = vmul.f32 %v4076_v47, %v11297_v15  ;;  %v4079_v18 = vmul.f32 %v4077_v60, %v11298_v32  ;;  %4884 = vrot.lane.b32.xlu1 %v9114_v25, %s11299_s5  ;;  %v4102_v41 = vadd.f32 %v4098_v27, %v4091_v53  ;;  %v4120_v55 = vmul.f32 %v4119_v56, %v4113_v10  ;;  %v11300_v60 = vld [vmem:[#allocation106_spill] sm:$0xff]  ;;  %s11324_s5 = smov 104  }
 0x97e   : > { %v4103_v59 = vadd.f32 %v4099_v21, %v4092_v51  ;;  %v4121_v46 = vmul.f32 %v4119_v56, %v4112_v43  ;;  %v4117_v62 = vmul.f32 %v4116_v45, %v4113_v10  ;;  %v4118_v6 = vmul.f32 %v4116_v45, %v4112_v43  ;;  %v4135_v47 = vpop.permute.xlu0 %4134  ;;  %v11301_v51 = vld [vmem:[#allocation108_spill] sm:$0xff] }
 0x97f   : > { %v4080_v17 = vadd.f32 %v4078_v31, %v4054_v30  ;;  %v4081_v42 = vadd.f32 %v4079_v18, %v4055_v14  ;;  %v4137_v35 = vpop.permute.xlu1 %4136  ;;  %v4104_v53 = vmul.f32 %v4102_v41, %v11300_v60  ;;  %v4124_v56 = vrot.slane %v4120_v55, 1 }
 0x980   : > { %v4105_v37 = vmul.f32 %v4103_v59, %v11301_v51  ;;  %v4125_v3 = vrot.slane %v4121_v46, 1  ;;  %v4138_v27 = vsel %vm11302_vm9, %v4135_v47, %v4137_v35  ;;  %v4139_v30 = vsel %vm11303_vm10, %v4137_v35, %v4135_v47  ;;  %4908 = vrot.lane.b32.xlu0 %v9111_v22, %s11304_s4  ;;  %v11305_v46 = vld [vmem:[#allocation109_spill] sm:$0xff]  ;;  %v11306_v47 = vld [vmem:[#allocation110_spill] sm:$0xff] }
 0x981   : > { %4910 = vrot.lane.b32.xlu1 %v9114_v25, %s11304_s4  ;;  %v4168_v45 = vstv %s9362_s0  ;;  %v4171_v14 = vstv %s9366_s9  ;;  %v4106_v21 = vadd.f32 %v4104_v53, %v4080_v17  ;;  %v4128_v10 = vadd.f32 %v4124_v56, %v4117_v62  ;;  %s11319_s0 = smov 107   ;;  %s9468_s9 = sld [smem:[#allocation2 + $0xc4]] }
 0x982   : > { %v4107_v43 = vadd.f32 %v4105_v37, %v4081_v42  ;;  %v4129_v15 = vadd.f32 %v4125_v3, %v4118_v6  ;;  %v4146_v31 = vmul.f32 %v4145_v50, %v4139_v30  ;;  %v4147_v32 = vmul.f32 %v4145_v50, %v4138_v27  ;;  %v4161_v41 = vpop.permute.xlu0 %4160  ;;  %s11330_s4 = smov 103  }
 0x983   : > { %v4163_v18 = vpop.permute.xlu1 %4162  ;;  %v4194_v59 = vstv %s9370_s28  ;;  %v4197_v55 = vstv %s9372_s10  ;;  %v4130_v35 = vmul.f32 %v4128_v10, %v11305_v46  ;;  %vm11307_vm11 = vcmp.lt.s32.totalorder %v6729_v28, 19  ;;  %v11313_v46 = vld [vmem:[#allocation112_spill] sm:$0xff]  ;;  %s9472_s28 = sld [smem:[#allocation2 + $0x94]] }
 0x984   : > { %v4131_v17 = vmul.f32 %v4129_v15, %v11306_v47  ;;  %v4164_v42 = vsel %vm11307_vm11, %v4161_v41, %v4163_v18  ;;  %vm11308_vm1 = vmmov %vm11307_vm11  ;;  %v4143_v6 = vmul.f32 %v4142_v38, %v4139_v30  ;;  %v4144_v50 = vmul.f32 %v4142_v38, %v4138_v27  ;;  %4934 = vrot.lane.b32.xlu0 %v9111_v22, %s11309_s2  ;;  %s9480_s10 = sld [smem:[#allocation2 + $0xc5]] }
 0x985   : > { %v4165_v62 = vsel %vm11308_vm1, %v4163_v18, %v4161_v41  ;;  %v4150_v60 = vrot.slane %v4146_v31, 1  ;;  %v4151_v53 = vrot.slane %v4147_v32, 1  ;;  %4936 = vrot.lane.b32.xlu1 %v9114_v25, %s11309_s2  ;;  %v4132_v51 = vadd.f32 %v4130_v35, %v4106_v21  ;;  %v11312_v18 = vld [vmem:[#allocation111_spill] sm:$0xff]  ;;  %s9514_s2 = sld [smem:[#allocation2 + $0xca]] }
 0x986   : > { %v4133_v37 = vadd.f32 %v4131_v17, %v4107_v43  ;;  %v4172_v56 = vmul.f32 %v4171_v14, %v4165_v62  ;;  %v4173_v3 = vmul.f32 %v4171_v14, %v4164_v42  ;;  %v4169_v27 = vmul.f32 %v4168_v45, %v4165_v62  ;;  %v4187_v31 = vpop.permute.xlu0 %4186 }
 0x987   : > { %v4154_v10 = vadd.f32 %v4150_v60, %v4143_v6  ;;  %v4155_v38 = vadd.f32 %v4151_v53, %v4144_v50  ;;  %v4170_v30 = vmul.f32 %v4168_v45, %v4164_v42  ;;  %v4189_v15 = vpop.permute.xlu1 %4188  ;;  %vm11310_vm3 = vcmp.lt.s32.totalorder %v6729_v28, 18 }
 0x988   : > { %v4176_v32 = vrot.slane %v4172_v56, 1  ;;  %v4177_v21 = vrot.slane %v4173_v3, 1  ;;  %v4190_v14 = vsel %vm11310_vm3, %v4187_v31, %v4189_v15  ;;  %vm11311_vm4 = vmmov %vm11310_vm3  ;;  %v4220_v45 = vstv %s9384_s17  ;;  %4960 = vrot.lane.b32.xlu0 %v9111_v22, %s11314_s1  ;;  %s9484_s17 = sld [smem:[#allocation2 + $0x95]] }
 0x989   : > { %v4191_v43 = vsel %vm11311_vm4, %v4189_v15, %v4187_v31  ;;  %v4156_v41 = vmul.f32 %v4154_v10, %v11312_v18  ;;  %v4157_v35 = vmul.f32 %v4155_v38, %v11313_v46  ;;  %4962 = vrot.lane.b32.xlu1 %v9114_v25, %s11314_s1  ;;  %v4223_v47 = vstv %s9388_s14  ;;  %v11315_v38 = vld [vmem:[#allocation113_spill] sm:$0xff]  ;;  %s9488_s14 = sld [smem:[#allocation2 + $0xc6]]  ;;  %s11338_s1 = smov 102  }
 0x98a   : > { %v4180_v17 = vadd.f32 %v4176_v32, %v4169_v27  ;;  %v4181_v42 = vadd.f32 %v4177_v21, %v4170_v30  ;;  %v4198_v62 = vmul.f32 %v4197_v55, %v4191_v43  ;;  %v4199_v6 = vmul.f32 %v4197_v55, %v4190_v14  ;;  %v4213_v10 = vpop.permute.xlu0 %4212  ;;  %v11316_v30 = vld [vmem:[#allocation114_spill] sm:$0xff] }
 0x98b   : > { %v4158_v50 = vadd.f32 %v4156_v41, %v4132_v51  ;;  %v4159_v60 = vadd.f32 %v4157_v35, %v4133_v37  ;;  %v4195_v53 = vmul.f32 %v4194_v59, %v4191_v43  ;;  %v4196_v56 = vmul.f32 %v4194_v59, %v4190_v14  ;;  %v4215_v3 = vpop.permute.xlu1 %4214  ;;  %11335 = sst [smem:[#allocation38_spill]] %s9514_s2 }
 0x98c   : > { %v4182_v27 = vmul.f32 %v4180_v17, %v11315_v38  ;;  %v4183_v15 = vmul.f32 %v4181_v42, %v11316_v30  ;;  %v4202_v55 = vrot.slane %v4198_v62, 1  ;;  %v4203_v31 = vrot.slane %v4199_v6, 1  ;;  %4986 = vrot.lane.b32.xlu0 %v9111_v22, %s11319_s0  ;;  %v11320_v6 = vld [vmem:[#allocation115_spill] sm:$0xff]  ;;  %s9629_s2 = sld [smem:[#allocation2 + $0xd2]] }
 0x98d   : > { %vm11317_vm6 = vcmp.lt.s32.totalorder %v6729_v28, 17  ;;  %4988 = vrot.lane.b32.xlu1 %v9114_v25, %s11319_s0  ;;  %v4246_v59 = vstv %s9390_s8  ;;  %v4249_v37 = vstv %s9394_s19  ;;  %v4272_v42 = vstv %s9404_s22  ;;  %s9490_s8 = sld [smem:[#allocation2 + $0x96]] }
 0x98e   : > { %v4216_v32 = vsel %vm11317_vm6, %v4213_v10, %v4215_v3  ;;  %vm11318_vm7 = vmmov %vm11317_vm6  ;;  %v4184_v21 = vadd.f32 %v4182_v27, %v4158_v50  ;;  %v4185_v14 = vadd.f32 %v4183_v15, %v4159_v60  ;;  %v4206_v43 = vadd.f32 %v4202_v55, %v4195_v53  ;;  %v4239_v17 = vpop.permute.xlu0 %4238  ;;  %s9496_s19 = sld [smem:[#allocation2 + $0xc7]] }
 0x98f   : > { %v4217_v51 = vsel %vm11318_vm7, %v4215_v3, %v4213_v10  ;;  %v4207_v18 = vadd.f32 %v4203_v31, %v4196_v56  ;;  %v4225_v46 = vmul.f32 %v4223_v47, %v4216_v32  ;;  %v4241_v35 = vpop.permute.xlu1 %4240  ;;  %v4275_v62 = vstv %s9408_s15  ;;  %v11321_v10 = vld [vmem:[#allocation117_spill] sm:$0xff]  ;;  %s9503_s22 = sld [smem:[#allocation2 + $0x97]] }
 0x990   : > { %v4224_v41 = vmul.f32 %v4223_v47, %v4217_v51  ;;  %v4208_v3 = vmul.f32 %v4206_v43, %v11320_v6  ;;  %vm11322_vm8 = vcmp.lt.s32.totalorder %v6729_v28, 16  ;;  %v4221_v56 = vmul.f32 %v4220_v45, %v4217_v51  ;;  %5012 = vrot.lane.b32.xlu0 %v9111_v22, %s11324_s5  ;;  %v11329_v6 = vld [vmem:[#allocation119_spill] sm:$0xff]  ;;  %s9508_s15 = sld [smem:[#allocation2 + $0xc8]] }
 0x991   : > { %v4209_v50 = vmul.f32 %v4207_v18, %v11321_v10  ;;  %v4242_v60 = vsel %vm11322_vm8, %v4239_v17, %v4241_v35  ;;  %vm11323_vm9 = vmmov %vm11322_vm8  ;;  %v4222_v47 = vmul.f32 %v4220_v45, %v4216_v32  ;;  %v4229_v27 = vrot.slane %v4225_v46, 1  ;;  %5014 = vrot.lane.b32.xlu1 %v9114_v25, %s11324_s5  ;;  %s9526_s0 = sld [smem:[#allocation2 + $0x9a]] }
 0x992   : > { %v4243_v53 = vsel %vm11323_vm9, %v4241_v35, %v4239_v17  ;;  %v4228_v38 = vrot.slane %v4224_v41, 1  ;;  %v4210_v30 = vadd.f32 %v4208_v3, %v4184_v21  ;;  %v4251_v31 = vmul.f32 %v4249_v37, %v4242_v60  ;;  %v4265_v41 = vpop.permute.xlu0 %4264  ;;  %s9532_s5 = sld [smem:[#allocation2 + $0x9b]] }
 0x993   : > { %v4211_v15 = vadd.f32 %v4209_v50, %v4185_v14  ;;  %v4250_v55 = vmul.f32 %v4249_v37, %v4243_v53  ;;  %v4233_v51 = vadd.f32 %v4229_v27, %v4222_v47  ;;  %v4247_v45 = vmul.f32 %v4246_v59, %v4243_v53  ;;  %v4267_v18 = vpop.permute.xlu1 %4266  ;;  %11325 = sst [smem:[#allocation29_spill]] %s9490_s8  ;;  %v11328_v14 = vld [vmem:[#allocation118_spill] sm:$0xff] }
 0x994   : > { %v4232_v43 = vadd.f32 %v4228_v38, %v4221_v56  ;;  %v4248_v32 = vmul.f32 %v4246_v59, %v4242_v60  ;;  %v4255_v35 = vrot.slane %v4251_v31, 1  ;;  %vm11326_vm10 = vcmp.lt.s32.totalorder %v6729_v28, 15  ;;  %5038 = vrot.lane.b32.xlu0 %v9111_v22, %s11330_s4 }
 0x995   : > { %v4254_v46 = vrot.slane %v4250_v55, 1  ;;  %v4268_v21 = vsel %vm11326_vm10, %v4265_v41, %v4267_v18  ;;  %vm11327_vm11 = vmmov %vm11326_vm10  ;;  %v4235_v3 = vmul.f32 %v4233_v51, %v11329_v6  ;;  %5040 = vrot.lane.b32.xlu1 %v9114_v25, %s11330_s4  ;;  %v4301_v59 = vstv %s9420_s23  ;;  %11331 = sst [smem:[#allocation31_spill]] %s9503_s22  ;;  %s11347_s4 = smov 101  }
 0x996   : > { %v4269_v37 = vsel %vm11327_vm11, %v4267_v18, %v4265_v41  ;;  %v4234_v17 = vmul.f32 %v4232_v43, %v11328_v14  ;;  %v4560_v10 = vrot.slane %v9332_v4, 1  ;;  %v4259_v60 = vadd.f32 %v4255_v35, %v4248_v32  ;;  %v4291_v43 = vpop.permute.xlu0 %4290  ;;  %s9510_s23 = sld [smem:[#allocation2 + $0x99]]  ;;  %v11333_v4 = vld [vmem:[#allocation120_spill] sm:$0xff] }
 0x997   : > { %v4258_v50 = vadd.f32 %v4254_v46, %v4247_v45  ;;  %v4276_v53 = vmul.f32 %v4275_v62, %v4269_v37  ;;  %v4277_v56 = vmul.f32 %v4275_v62, %v4268_v21  ;;  %v4237_v38 = vadd.f32 %v4235_v3, %v4211_v15  ;;  %v4293_v31 = vpop.permute.xlu1 %4292  ;;  %v11334_v45 = vld [vmem:[#allocation122_spill] sm:$0xff]  ;;  %11340 = sst [smem:[#allocation33_spill]] %s9526_s0 }
 0x998   : > { %v4236_v47 = vadd.f32 %v4234_v17, %v4210_v30  ;;  %v4273_v27 = vmul.f32 %v4272_v42, %v4269_v37  ;;  %v4274_v55 = vmul.f32 %v4272_v42, %v4268_v21  ;;  %v4261_v32 = vmul.f32 %v4259_v60, %v11334_v45  ;;  %5064 = vrot.lane.b32.xlu0 %v9111_v22, %s11338_s1  ;;  %11342 = sst [smem:[#allocation36_spill]] %s9532_s5  ;;  %v11343_v60 = vld [vmem:[#allocation123_spill] sm:$0xff] }
 0x999   : > { %v4260_v51 = vmul.f32 %v4258_v50, %v11333_v4  ;;  %v4280_v18 = vrot.slane %v4276_v53, 1  ;;  %v4281_v62 = vrot.slane %v4277_v56, 1  ;;  %v4298_v41 = vstv %s9412_s6  ;;  %5066 = vrot.lane.b32.xlu1 %v9114_v25, %s11338_s1  ;;  %s9530_s6 = sld [smem:[#allocation2 + $0xcb]]  ;;  %v11344_v56 = vld [vmem:[#allocation124_spill] sm:$0xff] }
 0x99a   : > { %vm11336_vm1 = vcmp.lt.s32.totalorder %v6729_v28, 12  ;;  %v11339_v42 = vstv %s9224_s11  ;;  %v4263_v21 = vadd.f32 %v4261_v32, %v4237_v38  ;;  %v4317_v50 = vpop.permute.xlu0 %4316  ;;  %v11345_v38 = vrot.slane %v9282_v13, 1  ;;  %s9539_s11 = sld [smem:[#allocation2 + $0xcc]] }
 0x99b   : > { %v4294_v30 = vsel %vm11336_vm1, %v4291_v43, %v4293_v31  ;;  %vm11337_vm3 = vmmov %vm11336_vm1  ;;  %v4553_v46 = vmul.f32 %v11339_v42, %v9111_v22  ;;  %v4262_v35 = vadd.f32 %v4260_v51, %v4236_v47  ;;  %v4284_v37 = vadd.f32 %v4280_v18, %v4273_v27  ;;  %v4319_v3 = vpop.permute.xlu1 %4318  ;;  %s9543_s1 = sld [smem:[#allocation2 + $0x9c]] }
 0x99c   : > { %11332 = sst [smem:[#allocation35_spill]] %s9510_s23  ;;  %v4295_v15 = vsel %vm11337_vm3, %v4293_v31, %v4291_v43  ;;  %v4285_v14 = vadd.f32 %v4281_v62, %v4274_v55  ;;  %v4303_v6 = vmul.f32 %v4301_v59, %v4294_v30  ;;  %v4565_v27 = vadd.f32 %v11345_v38, %v9274_v29  ;;  %5090 = vrot.lane.b32.xlu0 %v9111_v22, %s11347_s4  ;;  %s11359_s23 = smov 98  }
 0x99d   : > { %v4302_v17 = vmul.f32 %v4301_v59, %v4295_v15  ;;  %v4286_v53 = vmul.f32 %v4284_v37, %v11343_v60  ;;  %v4564_v55 = vadd.f32 %v4560_v10, %v4553_v46  ;;  %v4299_v31 = vmul.f32 %v4298_v41, %v4295_v15  ;;  %5092 = vrot.lane.b32.xlu1 %v9114_v25, %s11347_s4  ;;  %s9591_s4 = sld [smem:[#allocation2 + $0xd0]] }
 0x99e   : > { %v4287_v47 = vmul.f32 %v4285_v14, %v11344_v56  ;;  %v4300_v59 = vmul.f32 %v4298_v41, %v4294_v30  ;;  %v4307_v4 = vrot.slane %v4303_v6, 1  ;;  %v4324_v13 = vstv %s9424_s13  ;;  %v4343_v30 = vpop.permute.xlu0 %4342  ;;  %v11351_v14 = vld [vmem:[#allocation126_spill] sm:$0xff]  ;;  %s9615_s22 = sld [smem:[#allocation2 + $0xd1]] }
 0x99f   : > { %11341 = sst [smem:[#allocation41_spill]] %s9530_s6  ;;  %v4306_v43 = vrot.slane %v4302_v17, 1  ;;  %v4288_v51 = vadd.f32 %v4286_v53, %v4262_v35  ;;  %v4327_v29 = vstv %s9428_s26  ;;  %v4345_v18 = vpop.permute.xlu1 %4344  ;;  %v4350_v62 = vstv %s9430_s12  ;;  %v11352_v56 = vld [vmem:[#allocation88_spill] sm:$0xff] }
 0x9a0   : > { %11346 = sst [smem:[#allocation45_spill]] %s9539_s11  ;;  %v4289_v45 = vadd.f32 %v4287_v47, %v4263_v21  ;;  %v4311_v32 = vadd.f32 %v4307_v4, %v4300_v59  ;;  %v4353_v41 = vstv %s9436_s16  ;;  %vm11348_vm4 = vcmp.lt.s32.totalorder %v6729_v28, 11  ;;  %v11350_v21 = vld [vmem:[#allocation125_spill] sm:$0xff]  ;;  %5116 = vrot.lane.b32.xlu0 %v9111_v22, %s6549_s21 }
 0x9a1   : > { %v4310_v10 = vadd.f32 %v4306_v43, %v4299_v31  ;;  %v4320_v15 = vsel %vm11348_vm4, %v4317_v50, %v4319_v3  ;;  %vm11349_vm6 = vmmov %vm11348_vm4  ;;  %v4376_v46 = vstv %s9444_s20  ;;  %v4379_v35 = vstv %s9448_s25  ;;  %s9561_s26 = sld [smem:[#allocation2 + $0xce]]  ;;  %5118 = vrot.lane.b32.xlu1 %v9114_v25, %s6549_s21 }
 0x9a2   : > { %v4321_v42 = vsel %vm11349_vm6, %v4319_v3, %v4317_v50  ;;  %v4313_v17 = vmul.f32 %v4311_v32, %v11351_v14  ;;  %v4405_v60 = vstv %s9454_s27  ;;  %s9569_s16 = sld [smem:[#allocation2 + $0x9e]]  ;;  %v9577_v47 = vmul.f32 %v4565_v27, %v11352_v56 }
 0x9a3   : > { %v4312_v37 = vmul.f32 %v4310_v10, %v11350_v21  ;;  %s9579_s25 = sld [smem:[#allocation2 + $0xcf]]  ;;  %v4328_v59 = vmul.f32 %v4327_v29, %v4321_v42  ;;  %v4329_v43 = vmul.f32 %v4327_v29, %v4320_v15  ;;  %v4371_v4 = vpop.permute.xlu1 %4370  ;;  %v4369_v10 = vpop.permute.xlu0 %4368  ;;  %v11354_v29 = vld [vmem:[#allocation87_spill] sm:$0xff]  ;;  %vm11355_vm7 = vcmp.lt.s32.totalorder %v6729_v28, 10 }
 0x9a4   : > { %v9583_v31 = vadd.f32 %v4313_v17, %v4289_v45  ;;  %s9585_s21 = sld [smem:[#allocation2 + $0x9f]]  ;;  %v9599_v17 = vmul.f32 %v4564_v55, %v11354_v29  ;;  %v4346_v56 = vsel %vm11355_vm7, %v4343_v30, %v4345_v18  ;;  %vm11356_vm8 = vmmov %vm11355_vm7  ;;  %5142 = vrot.lane.b32.xlu0 %v9111_v22, %s11353_s7  ;;  %vm11357_vm9 = vcmp.lt.s32.totalorder %v6729_v28, 9 }
 0x9a5   : > { %v9581_v38 = vadd.f32 %v4312_v37, %v4288_v51  ;;  %5144 = vrot.lane.b32.xlu1 %v9114_v25, %s11353_s7  ;;  %v4347_v14 = vsel %vm11356_vm8, %v4345_v18, %v4343_v30  ;;  %v4332_v37 = vrot.slane %v4328_v59, 1  ;;  %v4333_v55 = vrot.slane %v4329_v43, 1  ;;  %vm11358_vm10 = vmmov %vm11357_vm9  ;;  %s9621_s7 = sld [smem:[#allocation2 + $0xa1]] }
 0x9a6   : > { %v4372_v29 = vsel %vm11357_vm9, %v4369_v10, %v4371_v4  ;;  %v4373_v53 = vsel %vm11358_vm10, %v4371_v4, %v4369_v10  ;;  %v4325_v59 = vmul.f32 %v4324_v13, %v4321_v42  ;;  %v4326_v43 = vmul.f32 %v4324_v13, %v4320_v15  ;;  %s11360_s11 = sld [smem:[#allocation173_spill]] }
 0x9a7   : > { %v4397_v51 = vpop.permute.xlu1 %4396  ;;  %v4395_v27 = vpop.permute.xlu0 %4394  ;;  %v4354_v3 = vmul.f32 %v4353_v41, %v4347_v14  ;;  %v4355_v32 = vmul.f32 %v4353_v41, %v4346_v56  ;;  %v4380_v4 = vmul.f32 %v4379_v35, %v4373_v53  ;;  %v4381_v10 = vmul.f32 %v4379_v35, %v4372_v29  ;;  %s9638_s0 = sld [smem:[#allocation2 + $0xa2]] }
 0x9a8   : > { %5168 = vrot.lane.b32.xlu0 %v9111_v22, %s11359_s23  ;;  %v4337_v42 = vadd.f32 %v4333_v55, %v4326_v43  ;;  %vm11361_vm11 = vcmp.lt.s32.totalorder %v6729_v28, 8  ;;  %v4351_v22 = vmul.f32 %v4350_v62, %v4347_v14  ;;  %v4352_v30 = vmul.f32 %v4350_v62, %v4346_v56  ;;  %s9727_s12 = sld [smem:[#allocation2 + $0xa3]] }
 0x9a9   : > { %5170 = vrot.lane.b32.xlu1 %v9114_v25, %s11359_s23  ;;  %v4336_v25 = vadd.f32 %v4332_v37, %v4325_v59  ;;  %s9645_s23 = sld [smem:[#allocation2 + $0xd3]]  ;;  %v4358_v37 = vrot.slane %v4354_v3, 1  ;;  %v4359_v55 = vrot.slane %v4355_v32, 1  ;;  %v4398_v59 = vsel %vm11361_vm11, %v4395_v27, %v4397_v51  ;;  %vm11362_vm1 = vmmov %vm11361_vm11  ;;  %v11363_v3 = vld [vmem:[#allocation127_spill] sm:$0xff]  ;;  %v11364_v32 = vld [vmem:[#allocation128_spill] sm:$0xff] }
 0x9aa   : > { %v4399_v43 = vsel %vm11362_vm1, %v4397_v51, %v4395_v27  ;;  %v4384_v41 = vrot.slane %v4380_v4, 1  ;;  %v4385_v15 = vrot.slane %v4381_v10, 1  ;;  %v4339_v18 = vmul.f32 %v4337_v42, %v11364_v32  ;;  %s9733_s20 = sld [smem:[#allocation2 + $0xd4]] }
 0x9ab   : > { %v4423_v21 = vpop.permute.xlu1 %4422  ;;  %v4421_v45 = vpop.permute.xlu0 %4420  ;;  %v4338_v6 = vmul.f32 %v4336_v25, %v11363_v3  ;;  %v4377_v50 = vmul.f32 %v4376_v46, %v4373_v53  ;;  %v4378_v27 = vmul.f32 %v4376_v46, %v4372_v29  ;;  %v4406_v62 = vmul.f32 %v4405_v60, %v4399_v43  ;;  %s9741_s27 = sld [smem:[#allocation2 + $0xa4]] }
 0x9ac   : > { %v3172_v13 = vld [vmem:[%s11360_s11] sm:$0xf]  ;;  %v6174_v35 = vld [vmem:[%s11360_s11 + $0x4] sm:$0xf]  ;;  %v4407_v56 = vmul.f32 %v4405_v60, %v4398_v59  ;;  %vm11365_vm3 = vcmp.lt.s32.totalorder %v6729_v28, 7  ;;  %v4363_v53 = vadd.f32 %v4359_v55, %v4352_v30  ;;  %v11367_v32 = vstv %s9468_s9  ;;  %s11404_s9 = sld [smem:[#allocation31_spill]] }
 0x9ad   : > { %3175 = vperm.xlu1 %6382, %v3172_v13   ;;  %5318 = vperm.xlu0 %6381, %v6174_v35   ;;  %v4424_v4 = vsel %vm11365_vm3, %v4421_v45, %v4423_v21  ;;  %vm11366_vm4 = vmmov %vm11365_vm3  ;;  %v4362_v13 = vadd.f32 %v4358_v37, %v4351_v22  ;;  %v4388_v46 = vadd.f32 %v4384_v41, %v4377_v50  ;;  %v4410_v30 = vrot.slane %v4406_v62, 1  ;;  %v11369_v50 = vld [vmem:[#allocation129_spill] sm:$0xff]  ;;  %s11418_s8 = sld [smem:[#allocation41_spill]] }
 0x9ae   : > { %v4425_v10 = vsel %vm11366_vm4, %v4423_v21, %v4421_v45  ;;  %v4389_v29 = vadd.f32 %v4385_v15, %v4378_v27  ;;  %v11368_v24 = vmov %v11367_v32  ;;  %v4340_v21 = vadd.f32 %v4338_v6, %v9581_v38  ;;  %v11370_v15 = vld [vmem:[#allocation131_spill] sm:$0xff]  ;;  %v11373_v27 = vld [vmem:[#allocation132_spill] sm:$0xff]  ;;  %s11419_s6 = sld [smem:[#allocation35_spill]] }
 0x9af   : > { %v4449_v14 = vpop.permute.xlu1 %4448  ;;  %v4447_v51 = vpop.permute.xlu0 %4446  ;;  %v4432_v54 = vmul.f32 %v11367_v32, %v4425_v10  ;;  %v4433_v60 = vmul.f32 %v11368_v24, %v4424_v4  ;;  %v4341_v45 = vadd.f32 %v4339_v18, %v9583_v31  ;;  %v4411_v22 = vrot.slane %v4407_v56, 1  ;;  %s9789_s5 = sld [smem:[#allocation2 + $0xd8]] }
 0x9b0   : > { %v4364_v41 = vmul.f32 %v4362_v13, %v11369_v50  ;;  %v4365_v37 = vmul.f32 %v4363_v53, %v11370_v15  ;;  %vm11371_vm6 = vcmp.lt.s32.totalorder %v6729_v28, 6  ;;  %v4390_v32 = vmul.f32 %v4388_v46, %v11373_v27  ;;  %s11428_s13 = sld [smem:[#allocation33_spill]] }
 0x9b1   : > { %v4450_v24 = vsel %vm11371_vm6, %v4447_v51, %v4449_v14  ;;  %vm11372_vm7 = vmmov %vm11371_vm6  ;;  %v4391_v6 = vmul.f32 %v4389_v29, %v11374_v9  ;;  %v11375_v38 = vstv %s9450_s3  ;;  %v4436_v56 = vrot.slane %v4432_v54, 1  ;;  %s11399_s3 = sld [smem:[#allocation29_spill]] }
 0x9b2   : > { %v4451_v55 = vsel %vm11372_vm7, %v4449_v14, %v4447_v51  ;;  %v4403_v31 = vmul.f32 %v11375_v38, %v4399_v43  ;;  %v11376_v18 = vmov %v11375_v38  ;;  %v4437_v13 = vrot.slane %v4433_v60, 1 }
 0x9b3   : > { %v4475_v0 = vpop.permute.xlu1 %4474  ;;  %v4473_v12 = vpop.permute.xlu0 %4472  ;;  %v4404_v62 = vmul.f32 %v11376_v18, %v4398_v59  ;;  %vm11377_vm8 = vcmp.lt.s32.totalorder %v6729_v28, 3  ;;  %v11379_v9 = vstv %s9480_s10  ;;  %v4366_v38 = vadd.f32 %v4364_v41, %v4340_v21  ;;  %s9757_s10 = sld [smem:[#allocation2 + $0xa5]] }
 0x9b4   : > { %v4476_v53 = vsel %vm11377_vm8, %v4473_v12, %v4475_v0  ;;  %vm11378_vm9 = vmmov %vm11377_vm8  ;;  %v4414_v50 = vadd.f32 %v4410_v30, %v4403_v31  ;;  %v4458_v29 = vmul.f32 %v11379_v9, %v4451_v55  ;;  %v11380_v27 = vmov %v11379_v9 }
 0x9b5   : > { %v4477_v14 = vsel %vm11378_vm9, %v4475_v0, %v4473_v12  ;;  %v4415_v15 = vadd.f32 %v4411_v22, %v4404_v62  ;;  %v4459_v43 = vmul.f32 %v11380_v27, %v4450_v24  ;;  %v4367_v35 = vadd.f32 %v4365_v37, %v4341_v45  ;;  %v11388_v62 = vld [vmem:[#allocation135_spill] sm:$0xff] }
 0x9b6   : > { %v11381_v59 = vstv %s9464_s30  ;;  %v11383_v25 = vstv %s9488_s14  ;;  %vm11385_vm10 = vcmp.lt.s32.totalorder %v6729_v28, 2  ;;  %v4392_v22 = vadd.f32 %v4390_v32, %v4366_v38  ;;  %v11396_v38 = vld [vmem:[#allocation137_spill] sm:$0xff]  ;;  %s9747_s30 = sld [smem:[#allocation2 + $0xd5]] }
 0x9b7   : > { %v4501_v51 = vpop.permute.xlu1 %4500  ;;  %v4499_v46 = vpop.permute.xlu0 %4498  ;;  %v4429_v18 = vmul.f32 %v11381_v59, %v4425_v10  ;;  %v11382_v54 = vmov %v11381_v59  ;;  %v4484_v20 = vmul.f32 %v11383_v25, %v4477_v14  ;;  %v11384_v3 = vmov %v11383_v25  ;;  %vm11386_vm11 = vmmov %vm11385_vm10  ;;  %s9773_s14 = sld [smem:[#allocation2 + $0xa6]] }
 0x9b8   : > { %v4430_v60 = vmul.f32 %v11382_v54, %v4424_v4  ;;  %v4485_v12 = vmul.f32 %v11384_v3, %v4476_v53  ;;  %v4502_v0 = vsel %vm11385_vm10, %v4499_v46, %v4501_v51  ;;  %v4503_v30 = vsel %vm11386_vm11, %v4501_v51, %v4499_v46  ;;  %v11387_v4 = vld [vmem:[#allocation134_spill] sm:$0xff] }
 0x9b9   : > { %v4393_v21 = vadd.f32 %v4391_v6, %v4367_v35  ;;  %v4440_v45 = vadd.f32 %v4436_v56, %v4429_v18  ;;  %v4416_v31 = vmul.f32 %v4414_v50, %v11387_v4  ;;  %v4417_v25 = vmul.f32 %v4415_v15, %v11388_v62 }
 0x9ba   : > { %v4441_v10 = vadd.f32 %v4437_v13, %v4430_v60  ;;  %v4462_v3 = vrot.slane %v4458_v29, 1  ;;  %v4463_v9 = vrot.slane %v4459_v43, 1  ;;  %v11389_v27 = vstv %s9496_s19  ;;  %v11395_v29 = vld [vmem:[#allocation136_spill] sm:$0xff]  ;;  %s9779_s19 = sld [smem:[#allocation2 + $0xd7]] }
 0x9bb   : > { %v4527_v41 = vpop.permute.xlu1 %4526  ;;  %v4525_v37 = vpop.permute.xlu0 %4524  ;;  %v4510_v59 = vmul.f32 %v11389_v27, %v4503_v30  ;;  %v11390_v54 = vmov %v11389_v27  ;;  %vm11391_vm1 = vcmp.lt.s32.totalorder %v6729_v28, 1  ;;  %v11393_v6 = vstv %s9472_s28  ;;  %s11407_s28 = sld [smem:[#allocation38_spill]] }
 0x9bc   : > { %v4511_v51 = vmul.f32 %v11390_v54, %v4502_v0  ;;  %v4528_v32 = vsel %vm11391_vm1, %v4525_v37, %v4527_v41  ;;  %vm11392_vm3 = vmmov %vm11391_vm1  ;;  %v4455_v56 = vmul.f32 %v11393_v6, %v4451_v55  ;;  %v11394_v13 = vmov %v11393_v6 }
 0x9bd   : > { %v4529_v35 = vsel %vm11392_vm3, %v4527_v41, %v4525_v37  ;;  %v4456_v46 = vmul.f32 %v11394_v13, %v4450_v24  ;;  %v4488_v50 = vrot.slane %v4484_v20, 1  ;;  %v4489_v15 = vrot.slane %v4485_v12, 1 }
 0x9be   : > { %v4442_v43 = vmul.f32 %v4440_v45, %v11395_v29  ;;  %v4443_v18 = vmul.f32 %v4441_v10, %v11396_v38  ;;  %v11397_v60 = vstv %s9508_s15  ;;  %v4466_v55 = vadd.f32 %v4462_v3, %v4455_v56  ;;  %s9785_s15 = sld [smem:[#allocation2 + $0xa7]] }
 0x9bf   : > { %v4536_v4 = vmul.f32 %v11397_v60, %v4529_v35  ;;  %v11398_v62 = vmov %v11397_v60  ;;  %v4573_v37 = vpop.permute.xlu1 %4572  ;;  %v4571_v27 = vpop.permute.xlu0 %4570  ;;  %v4467_v24 = vadd.f32 %v4463_v9, %v4456_v46  ;;  %v11400_v20 = vstv %s9484_s17  ;;  %s9761_s17 = sld [smem:[#allocation2 + $0xd6]] }
 0x9c0   : > { %v4537_v41 = vmul.f32 %v11398_v62, %v4528_v32  ;;  %v4481_v12 = vmul.f32 %v11400_v20, %v4477_v14  ;;  %v11401_v54 = vmov %v11400_v20  ;;  %v4418_v45 = vadd.f32 %v4416_v31, %v4392_v22 }
 0x9c1   : > { %v4482_v6 = vmul.f32 %v11401_v54, %v4476_v53  ;;  %v4419_v10 = vadd.f32 %v4417_v25, %v4393_v21  ;;  %v4514_v13 = vrot.slane %v4510_v59, 1  ;;  %v4515_v29 = vrot.slane %v4511_v51, 1  ;;  %v11408_v25 = vld [vmem:[#allocation138_spill] sm:$0xff] }
 0x9c2   : > { %v4492_v38 = vadd.f32 %v4488_v50, %v4481_v12  ;;  %v11402_v62 = vstv %s11399_s3  ;;  %v4540_v3 = vrot.slane %v4536_v4, 1  ;;  %v4541_v9 = vrot.slane %v4537_v41, 1  ;;  %v11412_v41 = vld [vmem:[#allocation141_spill] sm:$0xff]  ;;  %s11430_s3 = sld [smem:[#allocation45_spill]] }
 0x9c3   : > { %v4493_v60 = vadd.f32 %v4489_v15, %v4482_v6  ;;  %v4507_v42 = vmul.f32 %v11402_v62, %v4503_v30  ;;  %v11403_v39 = vmov %v11402_v62  ;;  %vm11405_vm4 = vcmp.lt.s32.totalorder %v6729_v28, 127  ;;  %v4599_v22 = vpop.permute.xlu1 %4598  ;;  %v4597_v21 = vpop.permute.xlu0 %4596 }
 0x9c4   : > { %v4508_v58 = vmul.f32 %v11403_v39, %v4502_v0  ;;  %v4574_v14 = vsel %vm11405_vm4, %v4571_v27, %v4573_v37  ;;  %vm11406_vm6 = vmmov %vm11405_vm4  ;;  %v4444_v31 = vadd.f32 %v4442_v43, %v4418_v45  ;;  %v4445_v30 = vadd.f32 %v4443_v18, %v4419_v10  ;;  %v11409_v39 = vld [vmem:[#allocation140_spill] sm:$0xff]  ;;  %v11413_v43 = vld [vmem:[#allocation142_spill] sm:$0xff] }
 0x9c5   : > { %v4575_v53 = vsel %vm11406_vm6, %v4573_v37, %v4571_v27  ;;  %v4468_v59 = vmul.f32 %v4466_v55, %v11408_v25  ;;  %v4469_v0 = vmul.f32 %v4467_v24, %v11409_v39  ;;  %v4518_v51 = vadd.f32 %v4514_v13, %v4507_v42 }
 0x9c6   : > { %v4519_v56 = vadd.f32 %v4515_v29, %v4508_v58  ;;  %v11410_v46 = vstv %s11404_s9  ;;  %v4494_v37 = vmul.f32 %v4492_v38, %v11412_v41  ;;  %v4495_v18 = vmul.f32 %v4493_v60, %v11413_v43  ;;  %v11420_v60 = vld [vmem:[#allocation143_spill] sm:$0xff]  ;;  %v11424_v41 = vld [vmem:[#allocation146_spill] sm:$0xff]  ;;  %s9811_s9 = sld [smem:[#allocation2 + $0xa8]] }
 0x9c7   : > { %v4533_v50 = vmul.f32 %v11410_v46, %v4529_v35  ;;  %v11411_v15 = vmov %v11410_v46  ;;  %v11414_v27 = vstv %s11407_s28  ;;  %vm11416_vm7 = vcmp.lt.s32.totalorder %v6729_v28, 126  ;;  %v4623_v54 = vpop.permute.xlu0 %4622  ;;  %s9821_s28 = sld [smem:[#allocation2 + $0xd9]] }
 0x9c8   : > { %v4534_v4 = vmul.f32 %v11411_v15, %v4528_v32  ;;  %v4582_v55 = vmul.f32 %v11414_v27, %v4574_v14  ;;  %v11415_v20 = vmov %v11414_v27  ;;  %v4600_v58 = vsel %vm11416_vm7, %v4597_v21, %v4599_v22  ;;  %vm11417_vm8 = vmmov %vm11416_vm7  ;;  %v4625_v32 = vpop.permute.xlu1 %4624 }
 0x9c9   : > { %v4583_v24 = vmul.f32 %v11415_v20, %v4575_v53  ;;  %v4544_v42 = vadd.f32 %v4540_v3, %v4533_v50  ;;  %v4601_v35 = vsel %vm11417_vm8, %v4599_v22, %v4597_v21  ;;  %v4841_v45 = vstv %s9733_s20  ;;  %v11421_v3 = vld [vmem:[#allocation145_spill] sm:$0xff] }
 0x9ca   : > { %v4545_v12 = vadd.f32 %v4541_v9, %v4534_v4  ;;  %v4867_v13 = vstv %s9747_s30  ;;  %v4470_v29 = vadd.f32 %v4468_v59, %v4444_v31  ;;  %v4471_v38 = vadd.f32 %v4469_v0, %v4445_v30  ;;  %v11425_v59 = vld [vmem:[#allocation148_spill] sm:$0xff]  ;;  %s11570_s30 = sld [smem:[#allocation172_spill]] }
 0x9cb   : > { %v4520_v62 = vmul.f32 %v4518_v51, %v11420_v60  ;;  %v4521_v9 = vmul.f32 %v4519_v56, %v11421_v3  ;;  %v4586_v22 = vrot.slane %v4582_v55, 1  ;;  %v4587_v21 = vrot.slane %v4583_v24, 1  ;;  %v4649_v43 = vpop.permute.xlu0 %4648  ;;  %v11455_v60 = vld [vmem:[#allocation153_spill] sm:$0xff] }
 0x9cc   : > { %v11422_v25 = vstv %s11418_s8  ;;  %v4496_v15 = vadd.f32 %v4494_v37, %v4470_v29  ;;  %v4497_v4 = vadd.f32 %v4495_v18, %v4471_v38  ;;  %v4546_v31 = vmul.f32 %v4544_v42, %v11424_v41  ;;  %v4651_v0 = vpop.permute.xlu1 %4650  ;;  %s9827_s8 = sld [smem:[#allocation2 + $0xa9]] }
 0x9cd   : > { %v4608_v39 = vmul.f32 %v11422_v25, %v4600_v58  ;;  %v11423_v46 = vmov %v11422_v25  ;;  %v4547_v30 = vmul.f32 %v4545_v12, %v11425_v59  ;;  %v11426_v51 = vstv %s11419_s6  ;;  %s11438_s6 = sld [smem:[#allocation36_spill]] }
 0x9ce   : > { %v4609_v50 = vmul.f32 %v11423_v46, %v4601_v35  ;;  %v4579_v27 = vmul.f32 %v11426_v51, %v4574_v14  ;;  %v11427_v20 = vmov %v11426_v51  ;;  %v4893_v3 = vstv %s9761_s17 }
 0x9cf   : > { %v4580_v56 = vmul.f32 %v11427_v20, %v4575_v53  ;;  %v4522_v55 = vadd.f32 %v4520_v62, %v4496_v15  ;;  %v4523_v24 = vadd.f32 %v4521_v9, %v4497_v4  ;;  %vm11429_vm9 = vcmp.lt.s32.totalorder %v6729_v28, 125 }
 0x9d0   : > { %v4626_v37 = vsel %vm11429_vm9, %v4623_v54, %v4625_v32  ;;  %vm11431_vm10 = vmmov %vm11429_vm9  ;;  %v4590_v42 = vadd.f32 %v4586_v22, %v4579_v27  ;;  %v4612_v14 = vrot.slane %v4608_v39, 1  ;;  %v4613_v53 = vrot.slane %v4609_v50, 1  ;;  %v4677_v25 = vpop.permute.xlu1 %4676 }
 0x9d1   : > { %v4627_v18 = vsel %vm11431_vm10, %v4625_v32, %v4623_v54  ;;  %v4591_v12 = vadd.f32 %v4587_v21, %v4580_v56  ;;  %v4548_v29 = vadd.f32 %v4546_v31, %v4522_v55  ;;  %v4549_v38 = vadd.f32 %v4547_v30, %v4523_v24  ;;  %v4675_v32 = vpop.permute.xlu0 %4674  ;;  %v11441_v55 = vld [vmem:[#allocation149_spill] sm:$0xff] }
 0x9d2   : > { %vm11432_vm11 = vcmp.lt.s32.totalorder %v6729_v28, 122  ;;  %v11434_v54 = vstv %s11428_s13  ;;  %v11436_v46 = vstv %s11430_s3  ;;  %v11439_v51 = vstv %s9549_s24  ;;  %s9833_s13 = sld [smem:[#allocation2 + $0xda]] }
 0x9d3   : > { %v4652_v62 = vsel %vm11432_vm11, %v4649_v43, %v4651_v0  ;;  %vm11433_vm1 = vmmov %vm11432_vm11  ;;  %v4605_v22 = vmul.f32 %v11434_v54, %v4600_v58  ;;  %v11435_v21 = vmov %v11434_v54  ;;  %v4634_v50 = vmul.f32 %v11436_v46, %v4626_v37  ;;  %v11442_v54 = vld [vmem:[#allocation150_spill] sm:$0xff]  ;;  %s9865_s24 = sld [smem:[#allocation2 + $0xaa]] }
 0x9d4   : > { %v4653_v9 = vsel %vm11433_vm1, %v4651_v0, %v4649_v43  ;;  %v4606_v39 = vmul.f32 %v11435_v21, %v4601_v35  ;;  %v11437_v15 = vmov %v11436_v46  ;;  %v4660_v58 = vmul.f32 %v11439_v51, %v4652_v62  ;;  %v4703_v46 = vpop.permute.xlu1 %4702 }
 0x9d5   : > { %v4635_v4 = vmul.f32 %v11437_v15, %v4627_v18  ;;  %v4616_v0 = vadd.f32 %v4612_v14, %v4605_v22  ;;  %v11440_v27 = vmov %v11439_v51  ;;  %v4569_v20 = vadd.f32 %v9577_v47, %v4549_v38  ;;  %v4701_v47 = vpop.permute.xlu0 %4700  ;;  %v11447_v15 = vld [vmem:[#allocation151_spill] sm:$0xff]  ;;  %v11448_v51 = vld [vmem:[#allocation152_spill] sm:$0xff] }
 0x9d6   : > { %v4617_v43 = vadd.f32 %v4613_v53, %v4606_v39  ;;  %v4661_v35 = vmul.f32 %v11440_v27, %v4653_v9  ;;  %v4568_v56 = vadd.f32 %v9599_v17, %v4548_v29  ;;  %v4592_v24 = vmul.f32 %v4590_v42, %v11441_v55 }
 0x9d7   : > { %v4593_v21 = vmul.f32 %v4591_v12, %v11442_v54  ;;  %v4638_v14 = vrot.slane %v4634_v50, 1  ;;  %v4639_v53 = vrot.slane %v4635_v4, 1  ;;  %vm11443_vm3 = vcmp.lt.s32.totalorder %v6729_v28, 121 }
 0x9d8   : > { %v4678_v22 = vsel %vm11443_vm3, %v4675_v32, %v4677_v25  ;;  %vm11444_vm4 = vmmov %vm11443_vm3  ;;  %v11445_v38 = vstv %s11438_s6  ;;  %v4704_v12 = vsel %vm2303_vm12, %v4701_v47, %v4703_v46  ;;  %v4705_v50 = vsel %vm2303_vm12, %v4703_v46, %v4701_v47  ;;  %v4729_v41 = vpop.permute.xlu1 %4728 }
 0x9d9   : > { %v4679_v39 = vsel %vm11444_vm4, %v4677_v25, %v4675_v32  ;;  %v4631_v17 = vmul.f32 %v11445_v38, %v4626_v37  ;;  %v11446_v42 = vmov %v11445_v38  ;;  %v4618_v4 = vmul.f32 %v4616_v0, %v11447_v15 }
 0x9da   : > { %v4632_v29 = vmul.f32 %v11446_v42, %v4627_v18  ;;  %v4619_v27 = vmul.f32 %v4617_v43, %v11448_v51  ;;  %v4664_v55 = vrot.slane %v4660_v58, 1  ;;  %v4665_v25 = vrot.slane %v4661_v35, 1  ;;  %v4727_v58 = vpop.permute.xlu0 %4726 }
 0x9db   : > { %v11449_v32 = vstv %s9543_s1  ;;  %v11451_v59 = vstv %s9561_s26  ;;  %v4642_v46 = vadd.f32 %v4638_v14, %v4631_v17  ;;  %v11453_v0 = vstv %s9579_s25  ;;  %s9869_s1 = sld [smem:[#allocation2 + $0xdb]] }
 0x9dc   : > { %v4657_v54 = vmul.f32 %v11449_v32, %v4652_v62  ;;  %v11450_v37 = vmov %v11449_v32  ;;  %v4686_v18 = vmul.f32 %v11451_v59, %v4678_v22  ;;  %v11452_v42 = vmov %v11451_v59  ;;  %s10023_s26 = sld [smem:[#allocation2 + $0xde]] }
 0x9dd   : > { %v4658_v38 = vmul.f32 %v11450_v37, %v4653_v9  ;;  %v4687_v30 = vmul.f32 %v11452_v42, %v4679_v39  ;;  %v4643_v47 = vadd.f32 %v4639_v53, %v4632_v29  ;;  %v4712_v15 = vmul.f32 %v11453_v0, %v4704_v12  ;;  %s10049_s25 = sld [smem:[#allocation2 + $0xdf]] }
 0x9de   : > { %v11454_v43 = vmov %v11453_v0  ;;  %v4594_v35 = vadd.f32 %v4592_v24, %v4568_v56  ;;  %v4595_v62 = vadd.f32 %v4593_v21, %v4569_v20  ;;  %v4668_v59 = vadd.f32 %v4664_v55, %v4657_v54  ;;  %v11456_v20 = vld [vmem:[#allocation154_spill] sm:$0xff]  ;;  %v4753_v9 = vpop.permute.xlu0 %4752 }
 0x9df   : > { %v4713_v51 = vmul.f32 %v11454_v43, %v4705_v50  ;;  %v4669_v37 = vadd.f32 %v4665_v25, %v4658_v38  ;;  %v4690_v29 = vrot.slane %v4686_v18, 1  ;;  %v4691_v0 = vrot.slane %v4687_v30, 1  ;;  %v4755_v43 = vpop.permute.xlu1 %4754 }
 0x9e0   : > { %v4620_v53 = vadd.f32 %v4618_v4, %v4594_v35  ;;  %v4621_v17 = vadd.f32 %v4619_v27, %v4595_v62  ;;  %v4644_v56 = vmul.f32 %v4642_v46, %v11455_v60  ;;  %v4645_v24 = vmul.f32 %v4643_v47, %v11456_v20  ;;  %v11461_v27 = vld [vmem:[#allocation155_spill] sm:$0xff]  ;;  %v11462_v60 = vld [vmem:[#allocation156_spill] sm:$0xff] }
 0x9e1   : > { %v4716_v21 = vrot.slane %v4712_v15, 1  ;;  %v4717_v32 = vrot.slane %v4713_v51, 1  ;;  %v11457_v31 = vstv %s9553_s29  ;;  %vm11459_vm12 = vcmp.lt.s32.totalorder %v6729_v28, 119  ;;  %s9923_s29 = sld [smem:[#allocation2 + $0xab]] }
 0x9e2   : > { %v4683_v55 = vmul.f32 %v11457_v31, %v4678_v22  ;;  %v11458_v25 = vmov %v11457_v31  ;;  %v4730_v4 = vsel %vm11459_vm12, %v4727_v58, %v4729_v41  ;;  %vm11460_vm6 = vmmov %vm11459_vm12  ;;  %v4670_v38 = vmul.f32 %v4668_v59, %v11461_v27 }
 0x9e3   : > { %v4684_v54 = vmul.f32 %v11458_v25, %v4679_v39  ;;  %v4731_v30 = vsel %vm11460_vm6, %v4729_v41, %v4727_v58  ;;  %v4671_v18 = vmul.f32 %v4669_v37, %v11462_v60  ;;  %v11463_v46 = vstv %s9569_s16  ;;  %v4781_v58 = vpop.permute.xlu1 %4780  ;;  %s10043_s16 = sld [smem:[#allocation2 + $0xae]] }
 0x9e4   : > { %v4709_v47 = vmul.f32 %v11463_v46, %v4704_v12  ;;  %v11464_v15 = vmov %v11463_v46  ;;  %v4694_v22 = vadd.f32 %v4690_v29, %v4683_v55  ;;  %vm11465_vm7 = vcmp.lt.s32.totalorder %v6729_v28, 118  ;;  %v4779_v12 = vpop.permute.xlu0 %4778 }
 0x9e5   : > { %v4710_v31 = vmul.f32 %v11464_v15, %v4705_v50  ;;  %v4695_v39 = vadd.f32 %v4691_v0, %v4684_v54  ;;  %v4756_v51 = vsel %vm11465_vm7, %v4753_v9, %v4755_v43  ;;  %vm11466_vm8 = vmmov %vm11465_vm7  ;;  %v11467_v59 = vstv %s9591_s4  ;;  %v11475_v15 = vld [vmem:[#allocation159_spill] sm:$0xff]  ;;  %s10063_s4 = sld [smem:[#allocation2 + $0xe0]] }
 0x9e6   : > { %v4757_v41 = vsel %vm11466_vm8, %v4755_v43, %v4753_v9  ;;  %v4720_v35 = vadd.f32 %v4716_v21, %v4709_v47  ;;  %v4738_v37 = vmul.f32 %v11467_v59, %v4730_v4  ;;  %v11468_v20 = vmov %v11467_v59  ;;  %v11476_v59 = vld [vmem:[#allocation160_spill] sm:$0xff] }
 0x9e7   : > { %v4721_v62 = vadd.f32 %v4717_v32, %v4710_v31  ;;  %v4739_v25 = vmul.f32 %v11468_v20, %v4731_v30  ;;  %v4646_v27 = vadd.f32 %v4644_v56, %v4620_v53  ;;  %v4647_v60 = vadd.f32 %v4645_v24, %v4621_v17  ;;  %v11473_v53 = vld [vmem:[#allocation157_spill] sm:$0xff]  ;;  %v11474_v56 = vld [vmem:[#allocation158_spill] sm:$0xff]  ;;  %v4807_v47 = vpop.permute.xlu1 %4806 }
 0x9e8   : > { %v11469_v0 = vstv %s9615_s22  ;;  %vm11471_vm9 = vcmp.lt.s32.totalorder %v6729_v28, 117  ;;  %v4696_v17 = vmul.f32 %v4694_v22, %v11473_v53  ;;  %v4697_v24 = vmul.f32 %v4695_v39, %v11474_v56  ;;  %v4805_v50 = vpop.permute.xlu0 %4804  ;;  %s9929_s22 = sld [smem:[#allocation2 + $0xdc]] }
 0x9e9   : > { %v4764_v55 = vmul.f32 %v11469_v0, %v4756_v51  ;;  %v11470_v54 = vmov %v11469_v0  ;;  %v4782_v9 = vsel %vm11471_vm9, %v4779_v12, %v4781_v58  ;;  %vm11472_vm10 = vmmov %vm11471_vm9  ;;  %v4672_v43 = vadd.f32 %v4670_v38, %v4646_v27 }
 0x9ea   : > { %v4765_v46 = vmul.f32 %v11470_v54, %v4757_v41  ;;  %v4783_v32 = vsel %vm11472_vm10, %v4781_v58, %v4779_v12  ;;  %v4673_v21 = vadd.f32 %v4671_v18, %v4647_v60  ;;  %v4722_v31 = vmul.f32 %v4720_v35, %v11475_v15 }
 0x9eb   : > { %v4723_v20 = vmul.f32 %v4721_v62, %v11476_v59  ;;  %v4742_v0 = vrot.slane %v4738_v37, 1  ;;  %v4743_v54 = vrot.slane %v4739_v25, 1  ;;  %v11477_v42 = vstv %s9629_s2  ;;  %v4833_v59 = vpop.permute.xlu1 %4832  ;;  %s9991_s2 = sld [smem:[#allocation2 + $0xdd]] }
 0x9ec   : > { %v4790_v29 = vmul.f32 %v11477_v42, %v4782_v9  ;;  %v11478_v58 = vmov %v11477_v42  ;;  %vm11479_vm11 = vcmp.lt.s32.totalorder %v6729_v28, 116  ;;  %v11481_v22 = vstv %s9585_s21  ;;  %s10055_s21 = sld [smem:[#allocation2 + $0xaf]] }
 0x9ed   : > { %v4791_v12 = vmul.f32 %v11478_v58, %v4783_v32  ;;  %v4808_v38 = vsel %vm11479_vm11, %v4805_v50, %v4807_v47  ;;  %vm11480_vm1 = vmmov %vm11479_vm11  ;;  %v4735_v39 = vmul.f32 %v11481_v22, %v4730_v4  ;;  %v11482_v35 = vmov %v11481_v22 }
 0x9ee   : > { %v4809_v18 = vsel %vm11480_vm1, %v4807_v47, %v4805_v50  ;;  %v4736_v62 = vmul.f32 %v11482_v35, %v4731_v30  ;;  %v4768_v27 = vrot.slane %v4764_v55, 1  ;;  %v4769_v37 = vrot.slane %v4765_v46, 1  ;;  %v4831_v46 = vpop.permute.xlu0 %4830 }
 0x9ef   : > { %v4698_v25 = vadd.f32 %v4696_v17, %v4672_v43  ;;  %v4699_v42 = vadd.f32 %v4697_v24, %v4673_v21  ;;  %v11483_v60 = vstv %s9645_s23  ;;  %v4746_v50 = vadd.f32 %v4742_v0, %v4735_v39  ;;  %s10119_s23 = sld [smem:[#allocation2 + $0xe1]] }
 0x9f0   : > { %v4816_v53 = vmul.f32 %v11483_v60, %v4808_v38  ;;  %v11484_v56 = vmov %v11483_v60  ;;  %v4747_v47 = vadd.f32 %v4743_v54, %v4736_v62  ;;  %v11485_v4 = vstv %s9609_s18  ;;  %s9985_s18 = sld [smem:[#allocation2 + $0xac]] }
 0x9f1   : > { %v4817_v15 = vmul.f32 %v11484_v56, %v4809_v18  ;;  %v4761_v58 = vmul.f32 %v11485_v4, %v4756_v51  ;;  %v11486_v30 = vmov %v11485_v4  ;;  %v4724_v22 = vadd.f32 %v4722_v31, %v4698_v25  ;;  %v4859_v31 = vpop.permute.xlu1 %4858 }
 0x9f2   : > { %v4762_v55 = vmul.f32 %v11486_v30, %v4757_v41  ;;  %v4725_v43 = vadd.f32 %v4723_v20, %v4699_v42  ;;  %v4794_v21 = vrot.slane %v4790_v29, 1  ;;  %v4795_v17 = vrot.slane %v4791_v12, 1  ;;  %v11491_v20 = vld [vmem:[#allocation162_spill] sm:$0xff]  ;;  %v4857_v39 = vpop.permute.xlu0 %4856 }
 0x9f3   : > { %v4772_v24 = vadd.f32 %v4768_v27, %v4761_v58  ;;  %v11487_v60 = vstv %s9621_s7  ;;  %v4820_v6 = vrot.slane %v4816_v53, 1  ;;  %v4821_v0 = vrot.slane %v4817_v15, 1  ;;  %s10113_s7 = sld [smem:[#allocation2 + $0xb0]] }
 0x9f4   : > { %v4773_v35 = vadd.f32 %v4769_v37, %v4762_v55  ;;  %v4787_v56 = vmul.f32 %v11487_v60, %v4782_v9  ;;  %v11488_v14 = vmov %v11487_v60  ;;  %vm11489_vm3 = vcmp.lt.s32.totalorder %v6729_v28, 113  ;;  %v11496_v55 = vld [vmem:[#allocation165_spill] sm:$0xff] }
 0x9f5   : > { %v4788_v10 = vmul.f32 %v11488_v14, %v4783_v32  ;;  %v4834_v51 = vsel %vm11489_vm3, %v4831_v46, %v4833_v59  ;;  %vm11490_vm4 = vmmov %vm11489_vm3  ;;  %v4748_v29 = vmul.f32 %v4746_v50, %v11114_v23  ;;  %v4749_v54 = vmul.f32 %v4747_v47, %v11491_v20 }
 0x9f6   : > { %v4835_v41 = vsel %vm11490_vm4, %v4833_v59, %v4831_v46  ;;  %v11492_v12 = vstv %s9638_s0  ;;  %v4798_v62 = vadd.f32 %v4794_v21, %v4787_v56  ;;  %vm11494_vm12 = vcmp.lt.s32.totalorder %v6729_v28, 112  ;;  %v4885_v59 = vpop.permute.xlu1 %4884  ;;  %s10017_s0 = sld [smem:[#allocation2 + $0xad]] }
 0x9f7   : > { %v4813_v9 = vmul.f32 %v11492_v12, %v4808_v38  ;;  %v11493_v14 = vmov %v11492_v12  ;;  %v4799_v27 = vadd.f32 %v4795_v17, %v4788_v10  ;;  %v4860_v37 = vsel %vm11494_vm12, %v4857_v39, %v4859_v31  ;;  %vm11495_vm6 = vmmov %vm11494_vm12 }
 0x9f8   : > { %v4814_v32 = vmul.f32 %v11493_v14, %v4809_v18  ;;  %v4861_v25 = vsel %vm11495_vm6, %v4859_v31, %v4857_v39  ;;  %v4774_v23 = vmul.f32 %v4772_v24, %v11124_v11  ;;  %v4775_v42 = vmul.f32 %v4773_v35, %v11125_v1  ;;  %v4883_v1 = vpop.permute.xlu0 %4882  ;;  %v11499_v24 = vld [vmem:[#allocation166_spill] sm:$0xff] }
 0x9f9   : > { %v4842_v53 = vmul.f32 %v4841_v45, %v4834_v51  ;;  %v4843_v38 = vmul.f32 %v4841_v45, %v4835_v41  ;;  %v4824_v18 = vadd.f32 %v4820_v6, %v4813_v9  ;;  %v5046_v50 = vstv %s9923_s29 }
 0x9fa   : > { %v4825_v15 = vadd.f32 %v4821_v0, %v4814_v32  ;;  %v5049_v47 = vstv %s9929_s22  ;;  %v4750_v10 = vadd.f32 %v4748_v29, %v4724_v22  ;;  %v4751_v4 = vadd.f32 %v4749_v54, %v4725_v43  ;;  %v4911_v56 = vpop.permute.xlu1 %4910 }
 0x9fb   : > { %v4868_v58 = vmul.f32 %v4867_v13, %v4860_v37  ;;  %v4869_v11 = vmul.f32 %v4867_v13, %v4861_v25  ;;  %v4800_v30 = vmul.f32 %v4798_v62, %v7972_v63  ;;  %v4801_v45 = vmul.f32 %v4799_v27, %v11496_v55 }
 0x9fc   : > { %vm11497_vm7 = vcmp.lt.s32.totalorder %v6729_v28, 111  ;;  %v4776_v22 = vadd.f32 %v4774_v23, %v4750_v10  ;;  %v4777_v43 = vadd.f32 %v4775_v42, %v4751_v4  ;;  %v4846_v21 = vrot.slane %v4842_v53, 1  ;;  %v4909_v9 = vpop.permute.xlu0 %4908 }
 0x9fd   : > { %v4886_v6 = vsel %vm11497_vm7, %v4883_v1, %v4885_v59  ;;  %vm11498_vm8 = vmmov %vm11497_vm7  ;;  %v4847_v17 = vrot.slane %v4843_v38, 1  ;;  %v4826_v13 = vmul.f32 %v4824_v18, %v11499_v24  ;;  %v4827_v35 = vmul.f32 %v4825_v15, %v8033_v44 }
 0x9fe   : > { %v4887_v46 = vsel %vm11498_vm8, %v4885_v59, %v4883_v1  ;;  %v4894_v63 = vmul.f32 %v4893_v3, %v4886_v6  ;;  %v11500_v0 = vstv %s9727_s12  ;;  %v4872_v54 = vrot.slane %v4868_v58, 1  ;;  %v4937_v18 = vpop.permute.xlu1 %4936  ;;  %s11566_s12 = sld [smem:[#allocation7_spill]] }
 0x9ff   : > { %v4895_v60 = vmul.f32 %v4893_v3, %v4887_v46  ;;  %v4839_v31 = vmul.f32 %v11500_v0, %v4834_v51  ;;  %v11501_v29 = vmov %v11500_v0  ;;  %v4873_v12 = vrot.slane %v4869_v11, 1 }
 0xa00   : > { %v4840_v20 = vmul.f32 %v11501_v29, %v4835_v41  ;;  %v4802_v14 = vadd.f32 %v4800_v30, %v4776_v22  ;;  %v4803_v32 = vadd.f32 %v4801_v45, %v4777_v43  ;;  %v11502_v39 = vstv %s9741_s27  ;;  %v4935_v11 = vpop.permute.xlu0 %4934 }
 0xa01   : > { %v4865_v62 = vmul.f32 %v11502_v39, %v4860_v37  ;;  %v11503_v27 = vmov %v11502_v39  ;;  %v4850_v3 = vadd.f32 %v4846_v21, %v4839_v31  ;;  %vm11504_vm9 = vcmp.lt.s32.totalorder %v6729_v28, 110 }
 0xa02   : > { %v4866_v44 = vmul.f32 %v11503_v27, %v4861_v25  ;;  %v4851_v23 = vadd.f32 %v4847_v17, %v4840_v20  ;;  %v4912_v51 = vsel %vm11504_vm9, %v4909_v9, %v4911_v56  ;;  %vm11505_vm10 = vmmov %vm11504_vm9  ;;  %v4828_v42 = vadd.f32 %v4826_v13, %v4802_v14 }
 0xa03   : > { %v4913_v41 = vsel %vm11505_vm10, %v4911_v56, %v4909_v9  ;;  %v4829_v53 = vadd.f32 %v4827_v35, %v4803_v32  ;;  %v4898_v37 = vrot.slane %v4894_v63, 1  ;;  %v4899_v38 = vrot.slane %v4895_v60, 1 }
 0xa04   : > { %v4876_v25 = vadd.f32 %v4872_v54, %v4865_v62  ;;  %v4877_v15 = vadd.f32 %v4873_v12, %v4866_v44  ;;  %v11506_v59 = vstv %s9779_s19  ;;  %v11508_v1 = vstv %s9757_s10  ;;  %v4961_v12 = vpop.permute.xlu0 %4960  ;;  %s11572_s10 = sld [smem:[#allocation6_spill]] }
 0xa05   : > { %v4920_v10 = vmul.f32 %v11506_v59, %v4912_v51  ;;  %v11507_v4 = vmov %v11506_v59  ;;  %v4891_v30 = vmul.f32 %v11508_v1, %v4886_v6  ;;  %v11509_v55 = vmov %v11508_v1 }
 0xa06   : > { %v4921_v58 = vmul.f32 %v11507_v4, %v4913_v41  ;;  %v4892_v45 = vmul.f32 %v11509_v55, %v4887_v46  ;;  %vm11510_vm11 = vcmp.lt.s32.totalorder %v6729_v28, 109  ;;  %v4852_v21 = vmul.f32 %v4850_v3, %v8073_v8  ;;  %v4963_v46 = vpop.permute.xlu1 %4962 }
 0xa07   : > { %v4938_v22 = vsel %vm11510_vm11, %v4935_v11, %v4937_v18  ;;  %vm11511_vm1 = vmmov %vm11510_vm11  ;;  %v4853_v17 = vmul.f32 %v4851_v23, %v8082_v7  ;;  %v4924_v24 = vrot.slane %v4920_v10, 1  ;;  %v4902_v35 = vadd.f32 %v4898_v37, %v4891_v30 }
 0xa08   : > { %v4939_v43 = vsel %vm11511_vm1, %v4937_v18, %v4935_v11  ;;  %v4925_v13 = vrot.slane %v4921_v58, 1  ;;  %v4903_v63 = vadd.f32 %v4899_v38, %v4892_v45  ;;  %v11512_v60 = vstv %s9773_s14  ;;  %v4987_v59 = vpop.permute.xlu0 %4986 }
 0xa09   : > { %v4917_v56 = vmul.f32 %v11512_v60, %v4912_v51  ;;  %v11513_v6 = vmov %v11512_v60  ;;  %v4878_v31 = vmul.f32 %v4876_v25, %v8118_v33  ;;  %v4879_v29 = vmul.f32 %v4877_v15, %v8170_v49 }
 0xa0a   : > { %v4918_v0 = vmul.f32 %v11513_v6, %v4913_v41  ;;  %v11514_v20 = vstv %s9789_s5  ;;  %vm11516_vm3 = vcmp.lt.s32.totalorder %v6729_v28, 108  ;;  %v4854_v33 = vadd.f32 %v4852_v21, %v4828_v42  ;;  %v4989_v38 = vpop.permute.xlu1 %4988  ;;  %s11573_s17 = sshll.u32 %s11572_s10, 4 }
 0xa0b   : > { %v4946_v8 = vmul.f32 %v11514_v20, %v4938_v22  ;;  %v11515_v54 = vmov %v11514_v20  ;;  %v4928_v9 = vadd.f32 %v4924_v24, %v4917_v56  ;;  %v4964_v32 = vsel %vm11516_vm3, %v4961_v12, %v4963_v46  ;;  %vm11517_vm4 = vmmov %vm11516_vm3 }
 0xa0c   : > { %v4947_v7 = vmul.f32 %v11515_v54, %v4939_v43  ;;  %v4929_v14 = vadd.f32 %v4925_v13, %v4918_v0  ;;  %v4965_v39 = vsel %vm11517_vm4, %v4963_v46, %v4961_v12  ;;  %v4855_v49 = vadd.f32 %v4853_v17, %v4829_v53  ;;  %v5013_v6 = vpop.permute.xlu0 %5012 }
 0xa0d   : > { %v5072_v62 = vstv %s9985_s18  ;;  %v5075_v27 = vstv %s9991_s2  ;;  %v4904_v44 = vmul.f32 %v4902_v35, %v8208_v2  ;;  %v4905_v3 = vmul.f32 %v4903_v63, %v8215_v16 }
 0xa0e   : > { %v11518_v23 = vstv %s9821_s28  ;;  %v4880_v18 = vadd.f32 %v4878_v31, %v4854_v33  ;;  %v4881_v25 = vadd.f32 %v4879_v29, %v4855_v49  ;;  %v4950_v15 = vrot.slane %v4946_v8, 1  ;;  %v5015_v24 = vpop.permute.xlu1 %5014 }
 0xa0f   : > { %v4972_v51 = vmul.f32 %v11518_v23, %v4964_v32  ;;  %v11519_v41 = vmov %v11518_v23  ;;  %v4951_v42 = vrot.slane %v4947_v7, 1  ;;  %v4930_v53 = vmul.f32 %v4928_v9, %v8255_v34 }
 0xa10   : > { %v4973_v37 = vmul.f32 %v11519_v41, %v4965_v39  ;;  %v4931_v10 = vmul.f32 %v4929_v14, %v8260_v36  ;;  %v11520_v4 = vstv %s9785_s15  ;;  %vm11522_vm12 = vcmp.lt.s32.totalorder %v6729_v28, 107  ;;  %s11574_s15 = sld [smem:[#allocation176_spill]] }
 0xa11   : > { %v4943_v2 = vmul.f32 %v11520_v4, %v4938_v22  ;;  %v11521_v16 = vmov %v11520_v4  ;;  %v4976_v11 = vrot.slane %v4972_v51, 1  ;;  %v4990_v30 = vsel %vm11522_vm12, %v4987_v59, %v4989_v38  ;;  %vm11523_vm6 = vmmov %vm11522_vm12 }
 0xa12   : > { %v4944_v58 = vmul.f32 %v11521_v16, %v4939_v43  ;;  %v4977_v1 = vrot.slane %v4973_v37, 1  ;;  %v4991_v55 = vsel %vm11523_vm6, %v4989_v38, %v4987_v59  ;;  %v4906_v34 = vadd.f32 %v4904_v44, %v4880_v18  ;;  %v5041_v49 = vpop.permute.xlu1 %5040  ;;  %v5039_v38 = vpop.permute.xlu0 %5038 }
 0xa13   : > { %v4907_v36 = vadd.f32 %v4905_v3, %v4881_v25  ;;  %v11524_v45 = vstv %s9811_s9  ;;  %v4954_v43 = vadd.f32 %v4950_v15, %v4943_v2  ;;  %v11526_v35 = vstv %s9833_s13 }
 0xa14   : > { %v4969_v21 = vmul.f32 %v11524_v45, %v4964_v32  ;;  %v11525_v22 = vmov %v11524_v45  ;;  %v4955_v13 = vadd.f32 %v4951_v42, %v4944_v58  ;;  %v4998_v63 = vmul.f32 %v11526_v35, %v4990_v30 }
 0xa15   : > { %v4970_v17 = vmul.f32 %v11525_v22, %v4965_v39  ;;  %v11527_v60 = vmov %v11526_v35  ;;  %vm11528_vm7 = vcmp.lt.s32.totalorder %v6729_v28, 104  ;;  %v5098_v31 = vstv %s10017_s0 }
 0xa16   : > { %v4999_v56 = vmul.f32 %v11527_v60, %v4991_v55  ;;  %v5016_v0 = vsel %vm11528_vm7, %v5013_v6, %v5015_v24  ;;  %vm11529_vm8 = vmmov %vm11528_vm7  ;;  %v5101_v29 = vstv %s10023_s26  ;;  %v4932_v20 = vadd.f32 %v4930_v53, %v4906_v34  ;;  %v5065_v34 = vpop.permute.xlu0 %5064  ;;  %s346_s5 = scalar_lea.vmem %s11574_s15, %s11573_s17 }
 0xa17   : > { %v5017_v46 = vsel %vm11529_vm8, %v5015_v24, %v5013_v6  ;;  %v4933_v8 = vadd.f32 %v4931_v10, %v4907_v36  ;;  %v4980_v54 = vadd.f32 %v4976_v11, %v4969_v21  ;;  %v4981_v7 = vadd.f32 %v4977_v1, %v4970_v17  ;;  %v5067_v1 = vpop.permute.xlu1 %5066 }
 0xa18   : > { %v5002_v12 = vrot.slane %v4998_v63, 1  ;;  %v5003_v9 = vrot.slane %v4999_v56, 1  ;;  %v11530_v14 = vstv %s9869_s1  ;;  %v4956_v44 = vmul.f32 %v4954_v43, %v8345_v40 }
 0xa19   : > { %v5024_v32 = vmul.f32 %v11530_v14, %v5016_v0  ;;  %v11531_v39 = vmov %v11530_v14  ;;  %v4957_v3 = vmul.f32 %v4955_v13, %v8374_v61  ;;  %v11532_v23 = vstv %s9827_s8 }
 0xa1a   : > { %v5025_v33 = vmul.f32 %v11531_v39, %v5017_v46  ;;  %v4995_v51 = vmul.f32 %v11532_v23, %v4990_v30  ;;  %v11533_v41 = vmov %v11532_v23  ;;  %vm11534_vm9 = vcmp.lt.s32.totalorder %v6729_v28, 103 }
 0xa1b   : > { %v4996_v37 = vmul.f32 %v11533_v41, %v4991_v55  ;;  %v5028_v18 = vrot.slane %v5024_v32, 1  ;;  %v5042_v15 = vsel %vm11534_vm9, %v5039_v38, %v5041_v49  ;;  %vm11535_vm10 = vmmov %vm11534_vm9  ;;  %v4982_v40 = vmul.f32 %v4980_v54, %v8435_v19  ;;  %v5093_v56 = vpop.permute.xlu1 %5092  ;;  %v11540_v54 = vld [vmem:[#allocation51_spill] sm:$0xff] }
 0xa1c   : > { %v5029_v25 = vrot.slane %v5025_v33, 1  ;;  %v5043_v42 = vsel %vm11535_vm10, %v5041_v49, %v5039_v38  ;;  %v4983_v61 = vmul.f32 %v4981_v7, %v8462_v52  ;;  %v11536_v59 = vstv %s9865_s24 }
 0xa1d   : > { %v5021_v53 = vmul.f32 %v11536_v59, %v5016_v0  ;;  %v11537_v10 = vmov %v11536_v59  ;;  %v5006_v2 = vadd.f32 %v5002_v12, %v4995_v51  ;;  %v5007_v16 = vadd.f32 %v5003_v9, %v4996_v37 }
 0xa1e   : > { %v5022_v4 = vmul.f32 %v11537_v10, %v5017_v46  ;;  %v5050_v58 = vmul.f32 %v5049_v47, %v5042_v15  ;;  %v5051_v11 = vmul.f32 %v5049_v47, %v5043_v42  ;;  %v4958_v30 = vadd.f32 %v4956_v44, %v4932_v20 }
 0xa1f   : > { %v4959_v55 = vadd.f32 %v4957_v3, %v4933_v8  ;;  %v5124_v19 = vstv %s10043_s16  ;;  %v5127_v36 = vstv %s10049_s25  ;;  %v5032_v52 = vadd.f32 %v5028_v18, %v5021_v53  ;;  %v5091_v8 = vpop.permute.xlu0 %5090  ;;  %v5119_v3 = vpop.permute.xlu1 %5118 }
 0xa20   : > { %v5033_v45 = vadd.f32 %v5029_v25, %v5022_v4  ;;  %v5150_v21 = vstv %s10055_s21  ;;  %v5153_v22 = vstv %s10063_s4  ;;  %v4984_v17 = vadd.f32 %v4982_v40, %v4958_v30 }
 0xa21   : > { %v4985_v24 = vadd.f32 %v4983_v61, %v4959_v55  ;;  %vm11538_vm11 = vcmp.lt.s32.totalorder %v6729_v28, 102  ;;  %v5008_v13 = vmul.f32 %v5006_v2, %v8472_v57  ;;  %v5009_v35 = vmul.f32 %v5007_v16, %v8482_v26  ;;  %v11541_v57 = vld [vmem:[#allocation42_spill] sm:$0xff]  ;;  %v11542_v16 = vld [vmem:[#allocation58_spill] sm:$0xff] }
 0xa22   : > { %v5068_v43 = vsel %vm11538_vm11, %v5065_v34, %v5067_v1  ;;  %vm11539_vm1 = vmmov %vm11538_vm11  ;;  %v5054_v63 = vrot.slane %v5050_v58, 1  ;;  %v5055_v60 = vrot.slane %v5051_v11, 1  ;;  %v5047_v6 = vmul.f32 %v5046_v50, %v5042_v15  ;;  %v11543_v11 = vld [vmem:[#allocation102_spill] sm:$0xff] }
 0xa23   : > { %v5069_v47 = vsel %vm11539_vm1, %v5067_v1, %v5065_v34  ;;  %v5048_v0 = vmul.f32 %v5046_v50, %v5043_v42  ;;  %v5076_v46 = vmul.f32 %v5075_v27, %v5068_v43  ;;  %v5034_v7 = vmul.f32 %v5032_v52, %v11540_v54  ;;  %v5117_v38 = vpop.permute.xlu0 %5116  ;;  %v5145_v2 = vpop.permute.xlu1 %5144 }
 0xa24   : > { %v5077_v20 = vmul.f32 %v5075_v27, %v5069_v47  ;;  %v5035_v12 = vmul.f32 %v5033_v45, %v11541_v57  ;;  %v5094_v26 = vsel %vm2903_vm2, %v5091_v8, %v5093_v56  ;;  %v5095_v9 = vsel %vm2903_vm2, %v5093_v56, %v5091_v8 }
 0xa25   : > { %v5073_v50 = vmul.f32 %v5072_v62, %v5068_v43  ;;  %v5074_v14 = vmul.f32 %v5072_v62, %v5069_v47  ;;  %v5080_v32 = vrot.slane %v5076_v46, 1  ;;  %v5058_v27 = vadd.f32 %v5054_v63, %v5047_v6 }
 0xa26   : > { %v5081_v39 = vrot.slane %v5077_v20, 1  ;;  %v5059_v33 = vadd.f32 %v5055_v60, %v5048_v0  ;;  %v5102_v49 = vmul.f32 %v5101_v29, %v5094_v26  ;;  %v5103_v44 = vmul.f32 %v5101_v29, %v5095_v9  ;;  %v11544_v60 = vld [vmem:[#allocation61_spill] sm:$0xff] }
 0xa27   : > { %v5010_v23 = vadd.f32 %v5008_v13, %v4984_v17  ;;  %v5011_v51 = vadd.f32 %v5009_v35, %v4985_v24  ;;  %v5084_v41 = vadd.f32 %v5080_v32, %v5073_v50  ;;  %v5120_v25 = vsel %vm2943_vm13, %v5117_v38, %v5119_v3  ;;  %v5143_v34 = vpop.permute.xlu0 %5142  ;;  %v5171_v63 = vpop.permute.xlu1 %5170 }
 0xa28   : > { %v5085_v37 = vadd.f32 %v5081_v39, %v5074_v14  ;;  %v5106_v18 = vrot.slane %v5102_v49, 1  ;;  %v5107_v62 = vrot.slane %v5103_v44, 1  ;;  %v5121_v15 = vsel %vm2943_vm13, %v5119_v3, %v5117_v38  ;;  %v11546_v14 = vld [vmem:[#allocation67_spill] sm:$0xff]  ;;  %v11547_v39 = vld [vmem:[#allocation80_spill] sm:$0xff] }
 0xa29   : > { %v5036_v42 = vadd.f32 %v5034_v7, %v5010_v23  ;;  %v5037_v40 = vadd.f32 %v5035_v12, %v5011_v51  ;;  %v5099_v61 = vmul.f32 %v5098_v31, %v5094_v26  ;;  %v5100_v29 = vmul.f32 %v5098_v31, %v5095_v9  ;;  %v11548_v38 = vld [vmem:[#allocation68_spill] sm:$0xff] }
 0xa2a   : > { %v5060_v59 = vmul.f32 %v5058_v27, %v8573_v48  ;;  %v5061_v53 = vmul.f32 %v5059_v33, %v8576_v5  ;;  %v5128_v10 = vmul.f32 %v5127_v36, %v5120_v25  ;;  %v5129_v4 = vmul.f32 %v5127_v36, %v5121_v15 }
 0xa2b   : > { %v5086_v58 = vmul.f32 %v5084_v41, %v11542_v16  ;;  %v5087_v1 = vmul.f32 %v5085_v37, %v11543_v11  ;;  %v5110_v30 = vadd.f32 %v5106_v18, %v5099_v61  ;;  %v5111_v55 = vadd.f32 %v5107_v62, %v5100_v29  ;;  %v5169_v20 = vpop.permute.xlu0 %5168  ;;  %v11549_v62 = vld [vmem:[#allocation81_spill] sm:$0xff] }
 0xa2c   : > { %v5125_v52 = vmul.f32 %v5124_v19, %v5120_v25  ;;  %v5126_v31 = vmul.f32 %v5124_v19, %v5121_v15  ;;  %v5132_v45 = vrot.slane %v5128_v10, 1  ;;  %v5133_v48 = vrot.slane %v5129_v4, 1  ;;  %v11545_v19 = vld [vmem:[#allocation101_spill] sm:$0xff]  ;;  %v11551_v10 = vld [vmem:[#allocation82_spill] sm:$0xff] }
 0xa2d   : > { %v5146_v5 = vsel %vm2983_vm14, %v5143_v34, %v5145_v2  ;;  %v5147_v36 = vsel %vm2983_vm14, %v5145_v2, %v5143_v34  ;;  %v5176_v17 = vstv %s10113_s7  ;;  %v5179_v24 = vstv %s10119_s23 }
 0xa2e   : > { %v5062_v43 = vadd.f32 %v5060_v59, %v5036_v42  ;;  %v5063_v47 = vadd.f32 %v5061_v53, %v5037_v40  ;;  %v5136_v13 = vadd.f32 %v5132_v45, %v5125_v52  ;;  %v5137_v35 = vadd.f32 %v5133_v48, %v5126_v31  ;;  %v11550_v59 = vld [vmem:[#allocation71_spill] sm:$0xff]  ;;  %v11552_v45 = vld [vmem:[#allocation75_spill] sm:$0xff] }
 0xa2f   : > { %v5112_v56 = vmul.f32 %v5110_v30, %v11544_v60  ;;  %v5113_v6 = vmul.f32 %v5111_v55, %v11545_v19  ;;  %v5154_v0 = vmul.f32 %v5153_v22, %v5146_v5  ;;  %v5155_v46 = vmul.f32 %v5153_v22, %v5147_v36  ;;  %v11557_v60 = vld [vmem:[#allocation20_spill] sm:$0xff]  ;;  %v11558_v19 = vld [vmem:[#allocation21_spill] sm:$0xff] }
 0xa30   : > { %v5088_v8 = vadd.f32 %v5086_v58, %v5062_v43  ;;  %v5089_v54 = vadd.f32 %v5087_v1, %v5063_v47  ;;  %v5172_v7 = vsel %vm3023_vm15, %v5169_v20, %v5171_v63  ;;  %v5173_v57 = vsel %vm3023_vm15, %v5171_v63, %v5169_v20  ;;  %v11555_v47 = vld [vmem:[#allocation18_spill] sm:$0xff] }
 0xa31   : > { %v5151_v12 = vmul.f32 %v5150_v21, %v5146_v5  ;;  %v5152_v26 = vmul.f32 %v5150_v21, %v5147_v36  ;;  %v5158_v9 = vrot.slane %v5154_v0, 1  ;;  %v5159_v50 = vrot.slane %v5155_v46, 1  ;;  %v11553_v36 = vld [vmem:[#allocation17_spill] sm:$0xff]  ;;  %v11559_v0 = vld [vmem:[#allocation23_spill] sm:$0xff]  ;;  %v11560_v20 = vld [vmem:[#allocation22_spill] sm:$0xff] }
 0xa32   : > { %v5138_v32 = vmul.f32 %v5136_v13, %v11546_v14  ;;  %v5139_v27 = vmul.f32 %v5137_v35, %v11547_v39  ;;  %v5180_v22 = vmul.f32 %v5179_v24, %v5172_v7  ;;  %v5181_v33 = vmul.f32 %v5179_v24, %v5173_v57  ;;  %v11554_v24 = vld [vmem:[#allocation16_spill] sm:$0xff]  ;;  %v11556_v35 = vld [vmem:[#allocation19_spill] sm:$0xff] }
 0xa33   : > { %v5114_v49 = vadd.f32 %v5112_v56, %v5088_v8  ;;  %v5115_v44 = vadd.f32 %v5113_v6, %v5089_v54  ;;  %v5162_v3 = vadd.f32 %v5158_v9, %v5151_v12  ;;  %v5163_v23 = vadd.f32 %v5159_v50, %v5152_v26  ;;  %v11561_v54 = vld [vmem:[#allocation164_spill] sm:$0xff]  ;;  %v11563_v26 = vld [vmem:[#allocation78_spill] sm:$0xff]  ;;  %v11564_v50 = vld [vmem:[#allocation69_spill] sm:$0xff] }
 0xa34   : > { %v5177_v51 = vmul.f32 %v5176_v17, %v5172_v7  ;;  %v5178_v41 = vmul.f32 %v5176_v17, %v5173_v57  ;;  %v5184_v28 = vrot.slane %v5180_v22, 1  ;;  %v5185_v37 = vrot.slane %v5181_v33, 1  ;;  %v11562_v57 = vld [vmem:[#allocation163_spill] sm:$0xff]  ;;  %v11568_v33 = vld [vmem:[#allocation85_spill] sm:$0xff] }
 0xa35   : > { %v5164_v18 = vmul.f32 %v5162_v3, %v11548_v38  ;;  %v5165_v21 = vmul.f32 %v5163_v23, %v11549_v62  ;;  %v5140_v25 = vadd.f32 %v5138_v32, %v5114_v49  ;;  %v5141_v15 = vadd.f32 %v5139_v27, %v5115_v44  ;;  %v11565_v32 = vld [vmem:[#allocation161_spill] sm:$0xff]  ;;  %v11567_v27 = vld [vmem:[#allocation77_spill] sm:$0xff]  ;;  %v11569_v44 = vld [vmem:[#allocation74_spill] sm:$0xff] }
 0xa36   : > { %v5188_v42 = vadd.f32 %v5184_v28, %v5177_v51  ;;  %v5189_v40 = vadd.f32 %v5185_v37, %v5178_v41  ;;  %v6172_v23 = vld [vmem:[%s11570_s30 + $0x4] sm:$0xf]  ;;  %v5319_v51 = vpop.permute.xlu0 %5318 }
 0xa37   : > { %v5166_v61 = vadd.f32 %v5164_v18, %v5140_v25  ;;  %v5167_v29 = vadd.f32 %v5165_v21, %v5141_v15  ;;  %v5320_v38 = vrot.slane %v5319_v51, 4  ;;  %v10186_v18 = vld [vmem:[%s11566_s12] sm:$0xff]  ;;  %v10192_v15 = vld [vmem:[%s11566_s12 + $0x8] sm:$0xff] }
 0xa38   : > { %v5190_v53 = vmul.f32 %v5188_v42, %v11550_v59  ;;  %v5191_v4 = vmul.f32 %v5189_v40, %v11551_v10 }
 0xa3a   : > { %v5192_v2 = vadd.f32 %v5190_v53, %v5166_v61  ;;  %v5193_v16 = vadd.f32 %v5191_v4, %v5167_v29 }
 0xa3c   : > { %v6170_v58 = vmul.f32 -1.442695, %v5192_v2  ;;  %v6171_v11 = vmul.f32 -1.442695, %v5193_v16 }
 0xa3e   : > { %6455 = vpow2.f32 %v6170_v58 }
 0xa3f   : > { %6457 = vpow2.f32 %v6171_v11 }
 0xa4b   : > { %v6456_v1 = vpop.eup %6455 }
 0xa4c   : > { %v6458_v30 = vpop.eup %6457  ;;  %v5200_v55 = vadd.f32 1.0, %v6456_v1 }
 0xa4d   : > { %v5201_v34 = vadd.f32 1.0, %v6458_v30 }
 0xa4e   : > { %6459 = vrcp.f32 %v5200_v55 }
 0xa4f   : > { %6461 = vrcp.f32 %v5201_v34 }
 0xa5b   : > { %v6460_v52 = vpop.eup %6459 }
 0xa5c   : > { %v6462_v31 = vpop.eup %6461  ;;  %v5209_v48 = vrot.slane %v6460_v52, %v11552_v45 }
 0xa5d   : > { %v5213_v5 = vrot.slane %v6462_v31, %v11552_v45 }
 0xa5e   : > { %v5228_v17 = vmul.f32 %v5209_v48, %v11553_v36  ;;  %v5226_v63 = vmul.f32 %v5209_v48, %v11556_v35  ;;  %v5224_v6 = vmul.f32 %v5209_v48, %v11558_v19  ;;  %v5222_v8 = vmul.f32 %v5209_v48, %v11560_v20 }
 0xa5f   : > { %v5229_v43 = vmul.f32 %v5213_v5, %v11554_v24  ;;  %v5227_v13 = vmul.f32 %v5213_v5, %v11555_v47  ;;  %v5225_v56 = vmul.f32 %v5213_v5, %v11557_v60  ;;  %v5223_v46 = vmul.f32 %v5213_v5, %v11559_v0 }
 0xa60   : > { %v5221_v7 = vmul.f32 %v5213_v5, %v11561_v54  ;;  %v5220_v12 = vmul.f32 %v5209_v48, %v11562_v57  ;;  %v5219_v9 = vmul.f32 %v5213_v5, %v11563_v26  ;;  %v5218_v14 = vmul.f32 %v5209_v48, %v11564_v50 }
 0xa61   : > { %5251 = vmatprep.subr.mxu1 %v5229_v43  ;;  %v5217_v39 = vmul.f32 %v5213_v5, %v11565_v32  ;;  %v5216_v22 = vmul.f32 %v5209_v48, %v11567_v27  ;;  %v5215_v49 = vmul.f32 %v5213_v5, %v11568_v33  ;;  %v5214_v3 = vmul.f32 %v5209_v48, %v11569_v44 }
 0xa62   : > { %5252 = vmatpush1.msra.mxu1 %v5228_v17  ;;  %v6552_v5 = vmov 683565275   ;;  %v6553_v24 = vmov 2475754826   ;;  %v6554_v47 = vmov 2131351028  }
 0xa63   : > { %5253 = vmatprep.subr.mxu1 %v5227_v13  ;;  %v6555_v35 = vmov 2102212464   ;;  %v6556_v60 = vmov 920167782  }
 0xa64   : > { %5254 = vmatpush1.msra.mxu1 %v5226_v63 }
 0xa65   : > { %5255 = vmatprep.subr.mxu1 %v5225_v56 }
 0xa66   : > { %5256 = vmatpush1.msra.mxu1 %v5224_v6 }
 0xa67   : > { %5257 = vmatprep.subr.mxu1 %v5223_v46 }
 0xa68   : > { %5258 = vmatpush1.msra.mxu1 %v5222_v8  ;;  %v6557_v8 = vmov 1326507024  }
 0xa69   : > { %5259 = vmatprep.subr.mxu1 %v5221_v7 }
 0xa6a   : > { %5260 = vmatpush1.msra.mxu1 %v5220_v12 }
 0xa6b   : > { %5261 = vmatprep.subr.mxu1 %v5219_v9 }
 0xa6c   : > { %5262 = vmatpush1.msra.mxu1 %v5218_v14 }
 0xa6d   : > { %5263 = vmatprep.subr.mxu1 %v5217_v39 }
 0xa6e   : > { %5264 = vmatpush1.msra.mxu1 %v5216_v22 }
 0xa6f   : > { %5265 = vmatprep.subr.mxu1 %v5215_v49 }
 0xa70   : > { %5266 = vmatpush1.msra.mxu1 %v5214_v3 }
 0xa71   : > { %6173 = vmatmul.mubr.msk.f32.vlgmr.msra.gmra.mxu1 %vm691_vm5, %v6172_v23 }
 0xb31   : > { %v5301_v41 = vpop.f32.mrf.mxu1 }
 0xb32   : > { %v5308_v28 = vrot.slane %v5301_v41, 4 }
 0xb33   : > { %v5303_v37 = vpop.f32.mrf.mxu1 }
 0xb34   : > { %v5312_v62 = vadd.f32 %v10186_v18, %v5308_v28  ;;  %v5309_v21 = vrot.slane %v5303_v37, 4 }
 0xb36   : > { %v10189_v25 = vadd.f32 %v5320_v38, %v5312_v62  ;;  %v5313_v42 = vadd.f32 %v10192_v15, %v5309_v21 }
 0xb38   : > { %v5324_v40 = vand.u32 2147483647, %v10189_v25  ;;  %v5327_v61 = vand.u32 2139095040, %v10189_v25  ;;  %v10197_v29 = vadd.f32 %v5320_v38, %v5313_v42  ;;  %vm5326_vm1 = vcmp.lt.s32.totalorder %v10189_v25, 0 }
 0xb3a   : > { %v5328_v59 = vshrl.u32 %v5327_v61, 23  ;;  %v5331_v53 = vand.u32 8388607, %v5324_v40  ;;  %v5430_v10 = vand.u32 2139095040, %v10197_v29  ;;  %v5427_v2 = vand.u32 2147483647, %v10197_v29 }
 0xb3c   : > { %v6175_v4 = vadd.s32 4294967169, %v5328_v59  ;;  %v5431_v16 = vshrl.u32 %v5430_v10, 23  ;;  %v5332_v11 = vor.u32 8388608, %v5331_v53  ;;  %v5434_v30 = vand.u32 8388607, %v5427_v2 }
 0xb3e   : > { %v5334_v58 = vadd.s32 1, %v6175_v4  ;;  %v6179_v1 = vadd.s32 4294967169, %v5431_v16  ;;  %v10205_v45 = vshll.u32 %v5332_v11, 8  ;;  %v5435_v17 = vor.u32 8388608, %v5434_v30 }
 0xb40   : > { %vm5335_vm5 = vcmp.gt.s32.totalorder %v5334_v58, 0  ;;  %v5437_v34 = vadd.s32 1, %v6179_v1  ;;  %v5475_v41 = vshll.u32 %v5435_v17, 8 }
 0xb41   : > { %v5336_v55 = vsel %vm5335_vm5, %v5334_v58, 0  ;;  %vm5325_vm5 = vcmp.le.f32.partialorder %v5324_v40, 0.7853982 }
 0xb42   : > { %v5337_v52 = vshrl.u32 %v5336_v55, 5  ;;  %v5338_v31 = vand.u32 31, %v5336_v55  ;;  %vm5438_vm13 = vcmp.gt.s32.totalorder %v5437_v34, 0 }
 0xb43   : > { %v5439_v26 = vsel %vm5438_vm13, %v5437_v34, 0  ;;  %vm5429_vm13 = vcmp.lt.s32.totalorder %v10197_v29, 0 }
 0xb44   : > { %v5339_v48 = vsub.s32 32, %v5338_v31  ;;  %v5341_v36 = vshll.u32 %v6552_v5, %v5338_v31  ;;  %v5344_v43 = vshll.u32 %v6553_v24, %v5338_v31  ;;  %v5347_v13 = vshll.u32 %v6554_v47, %v5338_v31 }
 0xb45   : > { %v5350_v63 = vshll.u32 %v6555_v35, %v5338_v31  ;;  %v5353_v56 = vshll.u32 %v6556_v60, %v5338_v31  ;;  %vm5356_vm14 = vcmp.lt.s32.totalorder %v5337_v52, 1  ;;  %vm5358_vm15 = vcmp.lt.s32.totalorder %v5337_v52, 3 }
 0xb46   : > { %v5342_v19 = vshrl.u32 %v6553_v24, %v5339_v48  ;;  %v5345_v6 = vshrl.u32 %v6554_v47, %v5339_v48  ;;  %v5348_v0 = vshrl.u32 %v6555_v35, %v5339_v48  ;;  %v5340_v46 = vshrl.u32 %v6552_v5, %v5339_v48 }
 0xb47   : > { %v5351_v20 = vshrl.u32 %v6556_v60, %v5339_v48  ;;  %v5354_v54 = vshrl.u32 %v6557_v8, %v5339_v48  ;;  %vm5359_vm2 = vcmp.lt.s32.totalorder %v5337_v52, 4  ;;  %v5441_v14 = vand.u32 31, %v5439_v26 }
 0xb48   : > { %v5343_v7 = vor.u32 %v5342_v19, %v5341_v36  ;;  %v5346_v57 = vor.u32 %v5345_v6, %v5344_v43  ;;  %v5349_v12 = vor.u32 %v5348_v0, %v5347_v13  ;;  %vm5357_vm3 = vcmp.lt.s32.totalorder %v5337_v52, 2 }
 0xb49   : > { %v5352_v9 = vor.u32 %v5351_v20, %v5350_v63  ;;  %v5355_v50 = vor.u32 %v5354_v54, %v5353_v56  ;;  %v5442_v3 = vsub.s32 32, %v5441_v14  ;;  %v5440_v62 = vshrl.u32 %v5439_v26, 5 }
 0xb4a   : > { %v5360_v32 = vsel %vm5356_vm14, %v5340_v46, %v5343_v7  ;;  %v5361_v39 = vsel %vm5359_vm2, %v5349_v12, 2102212464  ;;  %v5364_v27 = vsel %vm5356_vm14, %v5343_v7, %v5346_v57  ;;  %v5368_v22 = vsel %vm5356_vm14, %v5346_v57, %v5349_v12 }
 0xb4b   : > { %v5362_v33 = vsel %vm5358_vm15, %v5346_v57, %v5361_v39  ;;  %v5365_v49 = vsel %vm5359_vm2, %v5352_v9, 920167782  ;;  %v5369_v44 = vsel %vm5359_vm2, %v5355_v50, 1326507024  ;;  %v5444_v53 = vshll.u32 %v6552_v5, %v5441_v14 }
 0xb4c   : > { %v5366_v23 = vsel %vm5358_vm15, %v5349_v12, %v5365_v49  ;;  %v5370_v51 = vsel %vm5358_vm15, %v5352_v9, %v5369_v44  ;;  %v5363_v28 = vsel %vm5357_vm3, %v5360_v32, %v5362_v33  ;;  %v5445_v10 = vshrl.u32 %v6553_v24, %v5442_v3 }
 0xb4d   : > { %v5367_v37 = vsel %vm5357_vm3, %v5364_v27, %v5366_v23  ;;  %v5371_v38 = vsel %vm5357_vm3, %v5368_v22, %v5370_v51  ;;  %v5447_v4 = vshll.u32 %v6553_v24, %v5441_v14  ;;  %v5448_v16 = vshrl.u32 %v6554_v47, %v5442_v3 }
 0xb4e   : > { %v10217_v21 = vmul.u32.u64.low %v10205_v45, %v5371_v38  ;;  %v10218_v42 = vmul.u32.u64.high %v10205_v45, %v5371_v38, %v10217_v21  ;;  %v10221_v61 = vmul.u32.u64.low %v10205_v45, %v5367_v37  ;;  %v10222_v59 = vmul.u32.u64.high %v10205_v45, %v5367_v37, %v10221_v61 }
 0xb4f   : > { %v5450_v58 = vshll.u32 %v6554_v47, %v5441_v14  ;;  %v5451_v11 = vshrl.u32 %v6555_v35, %v5442_v3  ;;  %v5453_v1 = vshll.u32 %v6555_v35, %v5441_v14  ;;  %v5454_v30 = vshrl.u32 %v6556_v60, %v5442_v3 }
 0xb50   : > { %v5446_v55 = vor.u32 %v5445_v10, %v5444_v53  ;;  %v5449_v34 = vor.u32 %v5448_v16, %v5447_v4  ;;  %v5456_v52 = vshll.u32 %v6556_v60, %v5441_v14  ;;  %v5457_v31 = vshrl.u32 %v6557_v8, %v5442_v3 }
 0xb51   : > { %v5379_v48 = vmul.u32 %v10205_v45, %v5363_v28  ;;  %vm5381_vm4 = vc.u32 %v10218_v42, %v10221_v61  ;;  %v5382_v36 = vadd.s32 1, %v10222_v59  ;;  %v5452_v17 = vor.u32 %v5451_v11, %v5450_v58 }
 0xb52   : > { %v5443_v43 = vshrl.u32 %v6552_v5, %v5442_v3  ;;  %v5455_v24 = vor.u32 %v5454_v30, %v5453_v1  ;;  %v5458_v13 = vor.u32 %v5457_v31, %v5456_v52  ;;  %vm5459_vm12 = vcmp.lt.s32.totalorder %v5440_v62, 1 }
 0xb53   : > { %v5383_v47 = vsel %vm5381_vm4, %v5382_v36, %v10222_v59  ;;  %vm5461_vm6 = vcmp.lt.s32.totalorder %v5440_v62, 3  ;;  %vm5462_vm7 = vcmp.lt.s32.totalorder %v5440_v62, 4  ;;  %v5467_v35 = vsel %vm5459_vm12, %v5446_v55, %v5449_v34 }
 0xb54   : > { %v5384_v63 = vadd.s32 %v5383_v47, %v5379_v48  ;;  %v5464_v60 = vsel %vm5462_vm7, %v5452_v17, 2102212464  ;;  %v5468_v56 = vsel %vm5462_vm7, %v5455_v24, 920167782  ;;  %v5471_v45 = vsel %vm5459_vm12, %v5449_v34, %v5452_v17 }
 0xb55   : > { %vm5460_vm8 = vcmp.lt.s32.totalorder %v5440_v62, 2  ;;  %v5463_v19 = vsel %vm5459_vm12, %v5443_v43, %v5446_v55  ;;  %v5469_v6 = vsel %vm5461_vm6, %v5452_v17, %v5468_v56  ;;  %v5472_v0 = vsel %vm5462_vm7, %v5458_v13, 1326507024 }
 0xb56   : > { %v5385_v46 = vadd.s32 536870912, %v5384_v63  ;;  %v5465_v20 = vsel %vm5461_vm6, %v5449_v34, %v5464_v60  ;;  %v5470_v8 = vsel %vm5460_vm8, %v5467_v35, %v5469_v6  ;;  %v5473_v5 = vsel %vm5461_vm6, %v5455_v24, %v5472_v0 }
 0xb57   : > { %v5474_v54 = vsel %vm5460_vm8, %v5471_v45, %v5473_v5  ;;  %v10232_v7 = vmul.u32.u64.low %v5475_v41, %v5470_v8  ;;  %v10233_v57 = vmul.u32.u64.high %v5475_v41, %v5470_v8, %v10232_v7  ;;  %v5466_v50 = vsel %vm5460_vm8, %v5463_v19, %v5465_v20 }
 0xb58   : > { %v5386_v12 = vshrl.u32 %v5385_v46, 30  ;;  %v10235_v26 = vmul.u32.u64.low %v5475_v41, %v5474_v54  ;;  %v10236_v9 = vmul.u32.u64.high %v5475_v41, %v5474_v54, %v10235_v26  ;;  %v5482_v27 = vmul.u32 %v5475_v41, %v5466_v50 }
 0xb59   : > { %v5485_v32 = vadd.s32 1, %v10233_v57  ;;  %v5380_v21 = vadd.s32 %v10221_v61, %v10218_v42  ;;  %vm5428_vm14 = vcmp.le.f32.partialorder %v5427_v2, 0.7853982  ;;  %vm5416_vm7 = vweird.f32 %v10189_v25 }
 0xb5a   : > { %v5387_v14 = vshll.u32 %v5386_v12, 30  ;;  %vm5484_vm9 = vc.u32 %v10236_v9, %v10232_v7  ;;  %v5483_v17 = vadd.s32 %v10232_v7, %v10236_v9  ;;  %v5410_v24 = vsub.s32 4, %v5386_v12 }
 0xb5b   : > { %v5486_v22 = vsel %vm5484_vm9, %v5485_v32, %v10233_v57  ;;  %v11571_v32 = vld [vmem:[#allocation72_spill] sm:$0xff] }
 0xb5c   : > { %v5388_v39 = vsub.s32 %v5384_v63, %v5387_v14  ;;  %v5487_v49 = vadd.s32 %v5486_v22, %v5482_v27  ;;  %v5411_v19 = vsel %vm5326_vm1, %v5410_v24, %v5386_v12 }
 0xb5d   : > { %v5413_v20 = vsel %vm5325_vm5, 0, %v5411_v19 }
 0xb5e   : > { %v5390_v33 = vsub.s32 0, %v5388_v39  ;;  %v5488_v3 = vadd.s32 536870912, %v5487_v49  ;;  %v5631_v5 = vadd.s32 3, %v5413_v20  ;;  %v5417_v26 = vand.u32 3, %v5413_v20 }
 0xb60   : > { %v6176_v44 = vmin.u32 %v5390_v33, %v5388_v39  ;;  %v5489_v51 = vshrl.u32 %v5488_v3, 30  ;;  %v5632_v9 = vand.u32 3, %v5631_v5  ;;  %vm5422_vm15 = vcmp.eq.s32.totalorder %v5417_v26, 2 }
 0xb61   : > { %vm5419_vm3 = vcmp.eq.s32.totalorder %v5417_v26, 0  ;;  %vm5418_vm12 = vcmp.lt.s32.totalorder %v5417_v26, 2 }
 0xb62   : > { %v5392_v23 = vclz %v6176_v44  ;;  %v5490_v37 = vshll.u32 %v5489_v51, 30  ;;  %v5513_v7 = vsub.s32 4, %v5489_v51  ;;  %vm5637_vm2 = vcmp.eq.s32.totalorder %v5632_v9, 2  ;;  %v3176_v44 = vpop.permute.xlu1 %3175 }
 0xb63   : > { %vm5634_vm4 = vcmp.eq.s32.totalorder %v5632_v9, 0  ;;  %vm5633_vm6 = vcmp.lt.s32.totalorder %v5632_v9, 2 }
 0xb64   : > { %v6177_v28 = vadd.s32 4294967294, %v5392_v23  ;;  %v5491_v62 = vsub.s32 %v5487_v49, %v5490_v37  ;;  %v5514_v12 = vsel %vm5429_vm13, %v5513_v7, %v5489_v51 }
 0xb65   : > { %v5516_v33 = vsel %vm5428_vm14, 0, %v5514_v12 }
 0xb66   : > { %vm6178_vm10 = vcmp.lt.s32.totalorder %v6177_v28, 0  ;;  %v5493_v53 = vsub.s32 0, %v5491_v62 }
 0xb67   : > { %v5395_v38 = vsel %vm6178_vm10, 0, %v6177_v28 }
 0xb68   : > { %v5396_v59 = vsub.s32 32, %v5395_v38  ;;  %v5400_v41 = vsub.s32 4294967266, %v5395_v38  ;;  %v5397_v10 = vshll.u32 %v5388_v39, %v5395_v38  ;;  %v6180_v58 = vmin.u32 %v5493_v53, %v5491_v62 }
 0xb69   : > { %v3170_v39 = vadd.f32 %v10186_v18, %v11571_v32  ;;  %v5735_v18 = vadd.s32 3, %v5516_v33 }
 0xb6a   : > { %v5398_v4 = vshrl.u32 %v5380_v21, %v5396_v59  ;;  %v5401_v16 = vadd.s32 127, %v5400_v41  ;;  %v5495_v30 = vclz %v6180_v58 }
 0xb6c   : > { %v5399_v11 = vor.u32 %v5398_v4, %v5397_v10  ;;  %v5402_v1 = vshll.u32 %v5401_v16, 23  ;;  %v6181_v34 = vadd.s32 4294967294, %v5495_v30  ;;  %v5520_v10 = vand.u32 3, %v5516_v33 }
 0xb6d   : > { %v5736_v4 = vand.u32 3, %v5735_v18 }
 0xb6e   : > { %v5403_v55 = vor.u32 4788187, %v5402_v1  ;;  %v5406_v31 = vcvt.s32.f32 %v5399_v11  ;;  %vm6182_vm11 = vcmp.lt.s32.totalorder %v6181_v34, 0  ;;  %vm5525_vm8 = vcmp.eq.s32.totalorder %v5520_v10, 2 }
 0xb6f   : > { %v5498_v36 = vsel %vm6182_vm11, 0, %v6181_v34  ;;  %vm5741_vm9 = vcmp.eq.s32.totalorder %v5736_v4, 2  ;;  %vm5522_vm10 = vcmp.eq.s32.totalorder %v5520_v10, 0  ;;  %vm5738_vm11 = vcmp.eq.s32.totalorder %v5736_v4, 0 }
 0xb70   : > { %v5404_v52 = vand.u32 2147483647, %v5403_v55  ;;  %v5499_v42 = vsub.s32 32, %v5498_v36  ;;  %v5503_v61 = vsub.s32 4294967266, %v5498_v36  ;;  %v5500_v13 = vshll.u32 %v5491_v62, %v5498_v36 }
 0xb71   : > { %v3178_v62 = vadd.f32 %v3176_v44, %v3170_v39 }
 0xb72   : > { %v5407_v48 = vmul.f32 %v5406_v31, %v5404_v52  ;;  %v5501_v47 = vshrl.u32 %v5483_v17, %v5499_v42  ;;  %v5504_v35 = vadd.s32 127, %v5503_v61 }
 0xb74   : > { %v5408_v43 = vxor.u32 2147483648, %v5407_v48  ;;  %v5502_v56 = vor.u32 %v5501_v47, %v5500_v13  ;;  %v5505_v45 = vshll.u32 %v5504_v35, 23 }
 0xb76   : > { %v5409_v63 = vsel %vm5326_vm1, %v5408_v43, %v5407_v48  ;;  %v5506_v6 = vor.u32 4788187, %v5505_v45  ;;  %v5509_v46 = vcvt.s32.f32 %v5502_v56  ;;  %vm5521_vm1 = vcmp.lt.s32.totalorder %v5520_v10, 2  ;;  %v11575_v48 = vld [vmem:[#allocation84_spill] sm:$0xff] }
 0xb77   : > { %v5412_v60 = vsel %vm5325_vm5, %v10189_v25, %v5409_v63  ;;  %vm5737_vm5 = vcmp.lt.s32.totalorder %v5736_v4, 2  ;;  %v3171_v36 = vadd.f32 %v10192_v15, %v11575_v48 }
 0xb78   : > { %6463 = vcosq.f32 %v5412_v60  ;;  %v5507_v0 = vand.u32 2147483647, %v5506_v6 }
 0xb79   : > { %6465 = vsinq.f32 %v5412_v60  ;;  %v3179_v24 = vadd.f32 %v3176_v44, %v3171_v36 }
 0xb7a   : > { %v5510_v8 = vmul.f32 %v5509_v46, %v5507_v0 }
 0xb7c   : > { %v5511_v54 = vxor.u32 2147483648, %v5510_v8 }
 0xb7e   : > { %v5512_v40 = vsel %vm5429_vm13, %v5511_v54, %v5510_v8  ;;  %vm5519_vm13 = vweird.f32 %v10197_v29 }
 0xb7f   : > { %v5515_v57 = vsel %vm5428_vm14, %v10197_v29, %v5512_v40 }
 0xb80   : > { %6467 = vcosq.f32 %v5515_v57 }
 0xb81   : > { %6469 = vsinq.f32 %v5515_v57 }
 0xb85   : > { %v6464_v50 = vpop.eup %6463 }
 0xb86   : > { %v6466_v14 = vpop.eup %6465  ;;  %v5423_v27 = vxor.u32 2147483648, %v6464_v50 }
 0xb87   : > { %v5420_v22 = vxor.u32 2147483648, %v6466_v14 }
 0xb88   : > { %v5424_v2 = vsel %vm5422_vm15, %v5423_v27, %v6466_v14  ;;  %v5639_v49 = vsel %vm5637_vm2, %v5423_v27, %v6466_v14 }
 0xb89   : > { %v5421_v3 = vsel %vm5419_vm3, %v6464_v50, %v5420_v22  ;;  %v5636_v23 = vsel %vm5634_vm4, %v6464_v50, %v5420_v22 }
 0xb8a   : > { %v5425_v51 = vsel %vm5418_vm12, %v5421_v3, %v5424_v2  ;;  %v5640_v28 = vsel %vm5633_vm6, %v5636_v23, %v5639_v49 }
 0xb8b   : > { %v5426_v37 = vsel %vm5416_vm7, nan, %v5425_v51  ;;  %v5641_v38 = vsel %vm5416_vm7, nan, %v5640_v28 }
 0xb8c   : > { %v5532_v21 = vrot.slane %v5426_v37, 4  ;;  %v5748_v59 = vrot.slane %v5641_v38, 4 }
 0xb8d   : > { %v6468_v16 = vpop.eup %6467 }
 0xb8e   : > { %v5536_v41 = vmul.f32 %v5532_v21, %v3178_v62  ;;  %v5752_v53 = vmul.f32 %v5748_v59, %v3178_v62  ;;  %v6470_v25 = vpop.eup %6469  ;;  %v5526_v11 = vxor.u32 2147483648, %v6468_v16 }
 0xb8f   : > { %v5523_v30 = vxor.u32 2147483648, %v6470_v25 }
 0xb90   : > { %v5756_v58 = vrot.slane %v5752_v53, 4  ;;  %v5527_v55 = vsel %vm5525_vm8, %v5526_v11, %v6470_v25  ;;  %v5743_v34 = vsel %vm5741_vm9, %v5526_v11, %v6470_v25 }
 0xb91   : > { %v5524_v52 = vsel %vm5522_vm10, %v6468_v16, %v5523_v30  ;;  %v5740_v31 = vsel %vm5738_vm11, %v6468_v16, %v5523_v30 }
 0xb92   : > { %v5760_v1 = vsel %vm439_vm0, %v5536_v41, %v5756_v58  ;;  %v5528_v17 = vsel %vm5521_vm1, %v5524_v52, %v5527_v55  ;;  %v5744_v42 = vsel %vm5737_vm5, %v5740_v31, %v5743_v34 }
 0xb93   : > { %5762 = vst [vmem:[%s346_s5] sm:$0xff] %v5760_v1  ;;  %v5529_v61 = vsel %vm5519_vm13, nan, %v5528_v17  ;;  %v5745_v43 = vsel %vm5519_vm13, nan, %v5744_v42 }
 0xb94   : > { %v5533_v13 = vrot.slane %v5529_v61, 4  ;;  %v5749_v47 = vrot.slane %v5745_v43, 4 }
 0xb96   : > { %v5753_v35 = vmul.f32 %v5749_v47, %v3179_v24  ;;  %v5537_v63 = vmul.f32 %v5533_v13, %v3179_v24 }
 0xb98   : > { %v5757_v60 = vrot.slane %v5753_v35, 4 }
 0xb9a   : > { %v5761_v56 = vsel %vm439_vm0, %v5537_v63, %v5757_v60 }
 0xb9b   : > { %5763 = vst [vmem:[%s346_s5 + $0x8] sm:$0xff] %v5761_v56 }
 0xb9c PF: > { %s11576_s3 = sld [smem:[#allocation5_spill]] }
 0xba2   : > { %s20_s30 = sadd.s32 1, %s11576_s3  }
 0xba3   : > { %p17_p1 = scmp.ge.s32.totalorder %s20_s30, 4  }
 0xba5   :  { %19 = sbr.rel (!%p17_p1) target bundleno = 12 (0xc), region = 145 }
 0xbaa   :  { %5785 = vsyncpa [#allocation3], 1 }
 0xbab   :  { %5787 = vsyncpa [#allocation3 + $0x1], 1 }

</bundles_post_ra>
